<compile_context>
chip_gen: v5e
topology: v5e:2x2
jax: 0.10.0
libtpu: 0.0.40
codegen_flags: <defaults>
</compile_context>

<pallas_src>
import functools
import math

import jax
import jax.numpy as jnp
import numpy as np
from jax import lax
from jax.experimental import pallas as pl
from jax.experimental.pallas import tpu as pltpu

_GELU_C = math.sqrt(2.0 / math.pi)


def _gelu_tanh(x):
    # TODO(synk): nn.GELU() default is exact erf-GELU; tanh approximation used
    # here (max abs err ~3e-3) to guarantee Mosaic lowering on all TPU gens.
    return 0.5 * x * (1.0 + jnp.tanh(_GELU_C * (x + 0.044715 * x * x * x)))


def _layer_norm(x, gamma, beta, eps):
    mu = jnp.mean(x, axis=-1, keepdims=True)
    var = jnp.mean((x - mu) * (x - mu), axis=-1, keepdims=True)
    return (x - mu) * lax.rsqrt(var + eps) * gamma + beta


def _block_kernel(x_ref,
                  g1_ref, b1_ref,
                  wq_ref, wk_ref, wv_ref, wp_ref, bp_ref,
                  g2_ref, b2_ref,
                  w1_ref, bb1_ref, w2_ref, bb2_ref,
                  o_ref, *, num_heads, scale, eps):
    """One batch element: norm1 -> MHSA -> +res -> norm2 -> MLP -> +res."""
    x = x_ref[0].astype(jnp.float32)                          # (N, C)

    # ---- norm1 + multi-head self-attention (sr_ratio == 1, no qkv bias) ----
    h = _layer_norm(x, g1_ref[...], b1_ref[...], eps)         # (N, C)

    attn_out = jnp.zeros_like(x)                              # (N, C)
    for hh in range(num_heads):                               # static unroll
        qh = jnp.dot(h, wq_ref[hh], preferred_element_type=jnp.float32)   # (N, hd)
        kh = jnp.dot(h, wk_ref[hh], preferred_element_type=jnp.float32)   # (N, hd)
        vh = jnp.dot(h, wv_ref[hh], preferred_element_type=jnp.float32)   # (N, hd)
        # scores = qh @ kh^T  (contract the head dim of both operands)
        s = lax.dot_general(qh, kh, (((1,), (1,)), ((), ())),
                            preferred_element_type=jnp.float32) * scale    # (N, N)
        s = s - jnp.max(s, axis=-1, keepdims=True)
        p = jnp.exp(s)
        p = p / jnp.sum(p, axis=-1, keepdims=True)            # softmax
        ctx = jnp.dot(p, vh, preferred_element_type=jnp.float32)           # (N, hd)
        # fold this head's slice of the output projection immediately
        attn_out = attn_out + jnp.dot(ctx, wp_ref[hh],
                                      preferred_element_type=jnp.float32)  # (N, C)
    x = x + attn_out + bp_ref[...]                            # proj bias + residual

    # ---- norm2 + MLP (fc1 -> GELU -> fc2) ----
    h2 = _layer_norm(x, g2_ref[...], b2_ref[...], eps)
    z = jnp.dot(h2, w1_ref[...], preferred_element_type=jnp.float32) + bb1_ref[...]
    z = _gelu_tanh(z)
    y = jnp.dot(z, w2_ref[...], preferred_element_type=jnp.float32) + bb2_ref[...]
    x = x + y

    o_ref[0] = x.astype(o_ref.dtype)


def block_forward(x, params, *, num_heads, eps=1e-5):
    """x: (B, N, C) float32.  Weights are in 'x @ W' (in, out) layout."""
    B, N, C = x.shape
    hd = C // num_heads
    Hm = params["w1"].shape[1]
    scale = float(hd) ** -0.5

    # Pre-split per-head weight stacks in the wrapper (avoids in-kernel lane
    # slicing / relayouts).  Column block h of q/k/v corresponds to head h.
    wq_h = params["wq"].reshape(C, num_heads, hd).transpose(1, 0, 2)          # (H,C,hd)
    wk_h = params["wkv"][:, :C].reshape(C, num_heads, hd).transpose(1, 0, 2)  # (H,C,hd)
    wv_h = params["wkv"][:, C:].reshape(C, num_heads, hd).transpose(1, 0, 2)  # (H,C,hd)
    wp_h = params["wproj"].reshape(num_heads, hd, C)                          # (H,hd,C)

    row = lambda v: v.reshape(1, -1).astype(jnp.float32)
    rep2 = lambda b: (0, 0)
    rep3 = lambda b: (0, 0, 0)

    kernel = functools.partial(_block_kernel, num_heads=num_heads,
                               scale=scale, eps=eps)

    return pl.pallas_call(
        kernel,
        out_shape=jax.ShapeDtypeStruct((B, N, C), x.dtype),
        grid_spec=pltpu.PrefetchScalarGridSpec(
            num_scalar_prefetch=0,
            grid=(B,),
            in_specs=[
                pl.BlockSpec((1, N, C), lambda b: (b, 0, 0)),   # x
                pl.BlockSpec((1, C), rep2),                     # ln1 gamma
                pl.BlockSpec((1, C), rep2),                     # ln1 beta
                pl.BlockSpec((num_heads, C, hd), rep3),         # Wq  per head
                pl.BlockSpec((num_heads, C, hd), rep3),         # Wk  per head
                pl.BlockSpec((num_heads, C, hd), rep3),         # Wv  per head
                pl.BlockSpec((num_heads, hd, C), rep3),         # Wproj per head
                pl.BlockSpec((1, C), rep2),                     # proj bias
                pl.BlockSpec((1, C), rep2),                     # ln2 gamma
                pl.BlockSpec((1, C), rep2),                     # ln2 beta
                pl.BlockSpec((C, Hm), rep2),                    # fc1 weight
                pl.BlockSpec((1, Hm), rep2),                    # fc1 bias
                pl.BlockSpec((Hm, C), rep2),                    # fc2 weight
                pl.BlockSpec((1, C), rep2),                     # fc2 bias
            ],
            out_specs=pl.BlockSpec((1, N, C), lambda b: (b, 0, 0)),
        ),
        compiler_params=pltpu.CompilerParams(
            dimension_semantics=("parallel",)),
    )(x,
      row(params["ln1_g"]), row(params["ln1_b"]),
      wq_h, wk_h, wv_h, wp_h, row(params["bproj"]),
      row(params["ln2_g"]), row(params["ln2_b"]),
      params["w1"], row(params["b1"]), params["w2"], row(params["b2"]))


def _block_reference(x, p, num_heads, eps=1e-5):
    """Plain-JAX reference of the same forward pass (full-width weights)."""
    B, N, C = x.shape
    hd = C // num_heads
    scale = float(hd) ** -0.5

    def ln(z, g, b):
        mu = jnp.mean(z, axis=-1, keepdims=True)
        var = jnp.mean((z - mu) ** 2, axis=-1, keepdims=True)
        return (z - mu) / jnp.sqrt(var + eps) * g + b

    h = ln(x, p["ln1_g"], p["ln1_b"])
    q = h @ p["wq"]
    kv = h @ p["wkv"]
    k, v = kv[..., :C], kv[..., C:]
    qh = q.reshape(B, N, num_heads, hd).transpose(0, 2, 1, 3)
    kh = k.reshape(B, N, num_heads, hd).transpose(0, 2, 1, 3)
    vh = v.reshape(B, N, num_heads, hd).transpose(0, 2, 1, 3)
    attn = jnp.einsum("bhqd,bhkd->bhqk", qh, kh) * scale
    attn = jax.nn.softmax(attn, axis=-1)
    ctx = jnp.einsum("bhqk,bhkd->bhqd", attn, vh)
    ctx = ctx.transpose(0, 2, 1, 3).reshape(B, N, C)
    x = x + ctx @ p["wproj"] + p["bproj"]

    h2 = ln(x, p["ln2_g"], p["ln2_b"])
    z = h2 @ p["w1"] + p["b1"]
    z = 0.5 * z * (1.0 + jnp.tanh(_GELU_C * (z + 0.044715 * z ** 3)))
    x = x + z @ p["w2"] + p["b2"]
    return x


if __name__ == "__main__":
    # Block(dim=128, num_heads=4, mlp_ratio=4.0, sr_ratio=1), batch=2, seq=128.
    B, N, C = 2, 128, 128
    num_heads = 4
    Hm = int(C * 4.0)
    eps = 1e-5

    key = jax.random.PRNGKey(0)
    ks = jax.random.split(key, 8)

    x = jax.random.normal(ks[0], (B, N, C), dtype=jnp.float32)

    params = {
        # LayerNorm default init: weight=1, bias=0.
        "ln1_g": jnp.ones((C,), jnp.float32), "ln1_b": jnp.zeros((C,), jnp.float32),
        "ln2_g": jnp.ones((C,), jnp.float32), "ln2_b": jnp.zeros((C,), jnp.float32),
        # Linear weights in (in, out) layout, bias where the module has one.
        "wq":   jax.random.normal(ks[1], (C, C),      jnp.float32) / np.sqrt(C),
        "wkv":  jax.random.normal(ks[2], (C, 2 * C),  jnp.float32) / np.sqrt(C),
        "wproj": jax.random.normal(ks[3], (C, C),     jnp.float32) / np.sqrt(C),
        "bproj": jax.random.normal(ks[4], (C,),       jnp.float32) * 0.02,
        "w1":   jax.random.normal(ks[5], (C, Hm),     jnp.float32) / np.sqrt(C),
        "b1":   jnp.zeros((Hm,), jnp.float32),
        "w2":   jax.random.normal(ks[6], (Hm, C),     jnp.float32) / np.sqrt(Hm),
        "b2":   jax.random.normal(ks[7], (C,),        jnp.float32) * 0.02,
    }
    # TODO(synk): sr_ratio > 1 branch (grouped Conv2d/Conv3d KV downsampling +
    # extra LayerNorm) is not implemented; this kernel covers the sr_ratio=1 path.

    out = block_forward(x, params, num_heads=num_heads, eps=eps)
    out = jax.block_until_ready(out)

    ref = _block_reference(x, params, num_heads, eps=eps)
    np.testing.assert_allclose(np.asarray(out), np.asarray(ref),
                               rtol=2e-3, atol=2e-3)

    assert out.shape == (B, N, C)
    print("KERNEL_OK")
</pallas_src>

<mosaic_0001>
module attributes {stable_mosaic.version = 11 : i64} {
  func.func @_block_kernel(%arg0: i32, %arg1: memref<1x128x128xf32, #tpu.memory_space<vmem>>, %arg2: memref<1x128xf32, #tpu.memory_space<vmem>>, %arg3: memref<1x128xf32, #tpu.memory_space<vmem>>, %arg4: memref<4x128x32xf32, #tpu.memory_space<vmem>>, %arg5: memref<4x128x32xf32, #tpu.memory_space<vmem>>, %arg6: memref<4x128x32xf32, #tpu.memory_space<vmem>>, %arg7: memref<4x32x128xf32, #tpu.memory_space<vmem>>, %arg8: memref<1x128xf32, #tpu.memory_space<vmem>>, %arg9: memref<1x128xf32, #tpu.memory_space<vmem>>, %arg10: memref<1x128xf32, #tpu.memory_space<vmem>>, %arg11: memref<128x512xf32, #tpu.memory_space<vmem>>, %arg12: memref<1x512xf32, #tpu.memory_space<vmem>>, %arg13: memref<512x128xf32, #tpu.memory_space<vmem>>, %arg14: memref<1x128xf32, #tpu.memory_space<vmem>>, %arg15: memref<1x128x128xf32, #tpu.memory_space<vmem>>) attributes {dimension_semantics = [#tpu.dimension_semantics<parallel>], iteration_bounds = array<i64: 2>, scalar_prefetch = 0 : i64, scratch_operands = 0 : i64, tpu.core_type = #tpu.core_type<tc>, window_params = [{transform_indices = @transform_0, window_bounds = array<i64: 1, 128, 128>}, {pipeline_mode = #tpu.pipeline_mode<synchronous>, transform_indices = @transform_1, window_bounds = array<i64: 1, 128>}, {pipeline_mode = #tpu.pipeline_mode<synchronous>, transform_indices = @transform_2, window_bounds = array<i64: 1, 128>}, {pipeline_mode = #tpu.pipeline_mode<synchronous>, transform_indices = @transform_3, window_bounds = array<i64: 4, 128, 32>}, {pipeline_mode = #tpu.pipeline_mode<synchronous>, transform_indices = @transform_4, window_bounds = array<i64: 4, 128, 32>}, {pipeline_mode = #tpu.pipeline_mode<synchronous>, transform_indices = @transform_5, window_bounds = array<i64: 4, 128, 32>}, {pipeline_mode = #tpu.pipeline_mode<synchronous>, transform_indices = @transform_6, window_bounds = array<i64: 4, 32, 128>}, {pipeline_mode = #tpu.pipeline_mode<synchronous>, transform_indices = @transform_7, window_bounds = array<i64: 1, 128>}, {pipeline_mode = #tpu.pipeline_mode<synchronous>, transform_indices = @transform_8, window_bounds = array<i64: 1, 128>}, {pipeline_mode = #tpu.pipeline_mode<synchronous>, transform_indices = @transform_9, window_bounds = array<i64: 1, 128>}, {pipeline_mode = #tpu.pipeline_mode<synchronous>, transform_indices = @transform_10, window_bounds = array<i64: 128, 512>}, {pipeline_mode = #tpu.pipeline_mode<synchronous>, transform_indices = @transform_11, window_bounds = array<i64: 1, 512>}, {pipeline_mode = #tpu.pipeline_mode<synchronous>, transform_indices = @transform_12, window_bounds = array<i64: 512, 128>}, {pipeline_mode = #tpu.pipeline_mode<synchronous>, transform_indices = @transform_13, window_bounds = array<i64: 1, 128>}, {transform_indices = @transform_14, window_bounds = array<i64: 1, 128, 128>}]} {
    %c0 = arith.constant 0 : index
    %c0_0 = arith.constant 0 : index
    %c0_1 = arith.constant 0 : index
    %0 = vector.load %arg1[%c0, %c0_0, %c0_1] : memref<1x128x128xf32, #tpu.memory_space<vmem>>, vector<1x128x128xf32>
    %1 = vector.shape_cast %0 : vector<1x128x128xf32> to vector<128x128xf32>
    %c0_2 = arith.constant 0 : index
    %c0_3 = arith.constant 0 : index
    %2 = vector.load %arg2[%c0_2, %c0_3] : memref<1x128xf32, #tpu.memory_space<vmem>>, vector<1x128xf32>
    %c0_4 = arith.constant 0 : index
    %c0_5 = arith.constant 0 : index
    %3 = vector.load %arg3[%c0_4, %c0_5] : memref<1x128xf32, #tpu.memory_space<vmem>>, vector<1x128xf32>
    %cst = arith.constant dense<0.000000e+00> : vector<128xf32>
    %4 = vector.multi_reduction <add>, %1, %cst [1] : vector<128x128xf32> to vector<128xf32>
    %5 = vector.shape_cast %4 : vector<128xf32> to vector<128x1xf32>
    %cst_6 = arith.constant 1.280000e+02 : f32
    %6 = vector.broadcast %cst_6 : f32 to vector<128x1xf32>
    %7 = arith.divf %5, %6 : vector<128x1xf32>
    %8 = vector.broadcast %7 : vector<128x1xf32> to vector<128x128xf32>
    %9 = arith.subf %1, %8 : vector<128x128xf32>
    %10 = vector.broadcast %7 : vector<128x1xf32> to vector<128x128xf32>
    %11 = arith.subf %1, %10 : vector<128x128xf32>
    %12 = arith.mulf %9, %11 : vector<128x128xf32>
    %cst_7 = arith.constant dense<0.000000e+00> : vector<128xf32>
    %13 = vector.multi_reduction <add>, %12, %cst_7 [1] : vector<128x128xf32> to vector<128xf32>
    %14 = vector.shape_cast %13 : vector<128xf32> to vector<128x1xf32>
    %cst_8 = arith.constant 1.280000e+02 : f32
    %15 = vector.broadcast %cst_8 : f32 to vector<128x1xf32>
    %16 = arith.divf %14, %15 : vector<128x1xf32>
    %17 = vector.broadcast %7 : vector<128x1xf32> to vector<128x128xf32>
    %18 = arith.subf %1, %17 : vector<128x128xf32>
    %cst_9 = arith.constant 9.99999974E-6 : f32
    %19 = vector.broadcast %cst_9 : f32 to vector<128x1xf32>
    %20 = arith.addf %16, %19 : vector<128x1xf32>
    %21 = math.rsqrt %20 : vector<128x1xf32>
    %22 = vector.broadcast %21 : vector<128x1xf32> to vector<128x128xf32>
    %23 = arith.mulf %18, %22 : vector<128x128xf32>
    %24 = vector.broadcast %2 : vector<1x128xf32> to vector<128x128xf32>
    %25 = arith.mulf %23, %24 : vector<128x128xf32>
    %26 = vector.broadcast %3 : vector<1x128xf32> to vector<128x128xf32>
    %27 = arith.addf %25, %26 : vector<128x128xf32>
    %cst_10 = arith.constant 0.000000e+00 : f32
    %28 = vector.broadcast %cst_10 : f32 to vector<128x128xf32>
    %c0_11 = arith.constant 0 : index
    %c0_12 = arith.constant 0 : index
    %c0_13 = arith.constant 0 : index
    %29 = vector.load %arg4[%c0_11, %c0_12, %c0_13] : memref<4x128x32xf32, #tpu.memory_space<vmem>>, vector<1x128x32xf32>
    %30 = vector.shape_cast %29 : vector<1x128x32xf32> to vector<128x32xf32>
    %cst_14 = arith.constant dense<0.000000e+00> : vector<128x32xf32>
    %31 = tpu.matmul %27, %30, %cst_14 {dimension_numbers = #tpu.dot_dimension_numbers<[1], [0], [0], [1], [0, 0, 1, 1], [], []>} : vector<128x128xf32>, vector<128x32xf32>, vector<128x32xf32> -> vector<128x32xf32>
    %c0_15 = arith.constant 0 : index
    %c0_16 = arith.constant 0 : index
    %c0_17 = arith.constant 0 : index
    %32 = vector.load %arg5[%c0_15, %c0_16, %c0_17] : memref<4x128x32xf32, #tpu.memory_space<vmem>>, vector<1x128x32xf32>
    %33 = vector.shape_cast %32 : vector<1x128x32xf32> to vector<128x32xf32>
    %cst_18 = arith.constant dense<0.000000e+00> : vector<128x32xf32>
    %34 = tpu.matmul %27, %33, %cst_18 {dimension_numbers = #tpu.dot_dimension_numbers<[1], [0], [0], [1], [0, 0, 1, 1], [], []>} : vector<128x128xf32>, vector<128x32xf32>, vector<128x32xf32> -> vector<128x32xf32>
    %c0_19 = arith.constant 0 : index
    %c0_20 = arith.constant 0 : index
    %c0_21 = arith.constant 0 : index
    %35 = vector.load %arg6[%c0_19, %c0_20, %c0_21] : memref<4x128x32xf32, #tpu.memory_space<vmem>>, vector<1x128x32xf32>
    %36 = vector.shape_cast %35 : vector<1x128x32xf32> to vector<128x32xf32>
    %cst_22 = arith.constant dense<0.000000e+00> : vector<128x32xf32>
    %37 = tpu.matmul %27, %36, %cst_22 {dimension_numbers = #tpu.dot_dimension_numbers<[1], [0], [0], [1], [0, 0, 1, 1], [], []>} : vector<128x128xf32>, vector<128x32xf32>, vector<128x32xf32> -> vector<128x32xf32>
    %cst_23 = arith.constant dense<0.000000e+00> : vector<128x128xf32>
    %38 = tpu.matmul %31, %34, %cst_23 {dimension_numbers = #tpu.dot_dimension_numbers<[1], [1], [0], [0], [0, 0, 1, 0], [], []>} : vector<128x32xf32>, vector<128x32xf32>, vector<128x128xf32> -> vector<128x128xf32>
    %cst_24 = arith.constant 0.176776692 : f32
    %39 = vector.broadcast %cst_24 : f32 to vector<128x128xf32>
    %40 = arith.mulf %38, %39 : vector<128x128xf32>
    %cst_25 = arith.constant dense<0xFF800000> : vector<128xf32>
    %41 = vector.multi_reduction <maximumf>, %40, %cst_25 [1] : vector<128x128xf32> to vector<128xf32>
    %42 = vector.shape_cast %41 : vector<128xf32> to vector<128x1xf32>
    %43 = vector.broadcast %42 : vector<128x1xf32> to vector<128x128xf32>
    %44 = arith.subf %40, %43 : vector<128x128xf32>
    %45 = math.exp %44 : vector<128x128xf32>
    %cst_26 = arith.constant dense<0.000000e+00> : vector<128xf32>
    %46 = vector.multi_reduction <add>, %45, %cst_26 [1] : vector<128x128xf32> to vector<128xf32>
    %47 = vector.shape_cast %46 : vector<128xf32> to vector<128x1xf32>
    %48 = vector.broadcast %47 : vector<128x1xf32> to vector<128x128xf32>
    %49 = arith.divf %45, %48 : vector<128x128xf32>
    %cst_27 = arith.constant dense<0.000000e+00> : vector<128x32xf32>
    %50 = tpu.matmul %49, %37, %cst_27 {dimension_numbers = #tpu.dot_dimension_numbers<[1], [0], [0], [1], [0, 0, 1, 1], [], []>} : vector<128x128xf32>, vector<128x32xf32>, vector<128x32xf32> -> vector<128x32xf32>
    %c0_28 = arith.constant 0 : index
    %c0_29 = arith.constant 0 : index
    %c0_30 = arith.constant 0 : index
    %51 = vector.load %arg7[%c0_28, %c0_29, %c0_30] : memref<4x32x128xf32, #tpu.memory_space<vmem>>, vector<1x32x128xf32>
    %52 = vector.shape_cast %51 : vector<1x32x128xf32> to vector<32x128xf32>
    %cst_31 = arith.constant dense<0.000000e+00> : vector<128x128xf32>
    %53 = tpu.matmul %50, %52, %cst_31 {dimension_numbers = #tpu.dot_dimension_numbers<[1], [0], [0], [1], [0, 0, 1, 1], [], []>} : vector<128x32xf32>, vector<32x128xf32>, vector<128x128xf32> -> vector<128x128xf32>
    %54 = arith.addf %28, %53 : vector<128x128xf32>
    %c1 = arith.constant 1 : index
    %c0_32 = arith.constant 0 : index
    %c0_33 = arith.constant 0 : index
    %55 = vector.load %arg4[%c1, %c0_32, %c0_33] : memref<4x128x32xf32, #tpu.memory_space<vmem>>, vector<1x128x32xf32>
    %56 = vector.shape_cast %55 : vector<1x128x32xf32> to vector<128x32xf32>
    %cst_34 = arith.constant dense<0.000000e+00> : vector<128x32xf32>
    %57 = tpu.matmul %27, %56, %cst_34 {dimension_numbers = #tpu.dot_dimension_numbers<[1], [0], [0], [1], [0, 0, 1, 1], [], []>} : vector<128x128xf32>, vector<128x32xf32>, vector<128x32xf32> -> vector<128x32xf32>
    %c1_35 = arith.constant 1 : index
    %c0_36 = arith.constant 0 : index
    %c0_37 = arith.constant 0 : index
    %58 = vector.load %arg5[%c1_35, %c0_36, %c0_37] : memref<4x128x32xf32, #tpu.memory_space<vmem>>, vector<1x128x32xf32>
    %59 = vector.shape_cast %58 : vector<1x128x32xf32> to vector<128x32xf32>
    %cst_38 = arith.constant dense<0.000000e+00> : vector<128x32xf32>
    %60 = tpu.matmul %27, %59, %cst_38 {dimension_numbers = #tpu.dot_dimension_numbers<[1], [0], [0], [1], [0, 0, 1, 1], [], []>} : vector<128x128xf32>, vector<128x32xf32>, vector<128x32xf32> -> vector<128x32xf32>
    %c1_39 = arith.constant 1 : index
    %c0_40 = arith.constant 0 : index
    %c0_41 = arith.constant 0 : index
    %61 = vector.load %arg6[%c1_39, %c0_40, %c0_41] : memref<4x128x32xf32, #tpu.memory_space<vmem>>, vector<1x128x32xf32>
    %62 = vector.shape_cast %61 : vector<1x128x32xf32> to vector<128x32xf32>
    %cst_42 = arith.constant dense<0.000000e+00> : vector<128x32xf32>
    %63 = tpu.matmul %27, %62, %cst_42 {dimension_numbers = #tpu.dot_dimension_numbers<[1], [0], [0], [1], [0, 0, 1, 1], [], []>} : vector<128x128xf32>, vector<128x32xf32>, vector<128x32xf32> -> vector<128x32xf32>
    %cst_43 = arith.constant dense<0.000000e+00> : vector<128x128xf32>
    %64 = tpu.matmul %57, %60, %cst_43 {dimension_numbers = #tpu.dot_dimension_numbers<[1], [1], [0], [0], [0, 0, 1, 0], [], []>} : vector<128x32xf32>, vector<128x32xf32>, vector<128x128xf32> -> vector<128x128xf32>
    %cst_44 = arith.constant 0.176776692 : f32
    %65 = vector.broadcast %cst_44 : f32 to vector<128x128xf32>
    %66 = arith.mulf %64, %65 : vector<128x128xf32>
    %cst_45 = arith.constant dense<0xFF800000> : vector<128xf32>
    %67 = vector.multi_reduction <maximumf>, %66, %cst_45 [1] : vector<128x128xf32> to vector<128xf32>
    %68 = vector.shape_cast %67 : vector<128xf32> to vector<128x1xf32>
    %69 = vector.broadcast %68 : vector<128x1xf32> to vector<128x128xf32>
    %70 = arith.subf %66, %69 : vector<128x128xf32>
    %71 = math.exp %70 : vector<128x128xf32>
    %cst_46 = arith.constant dense<0.000000e+00> : vector<128xf32>
    %72 = vector.multi_reduction <add>, %71, %cst_46 [1] : vector<128x128xf32> to vector<128xf32>
    %73 = vector.shape_cast %72 : vector<128xf32> to vector<128x1xf32>
    %74 = vector.broadcast %73 : vector<128x1xf32> to vector<128x128xf32>
    %75 = arith.divf %71, %74 : vector<128x128xf32>
    %cst_47 = arith.constant dense<0.000000e+00> : vector<128x32xf32>
    %76 = tpu.matmul %75, %63, %cst_47 {dimension_numbers = #tpu.dot_dimension_numbers<[1], [0], [0], [1], [0, 0, 1, 1], [], []>} : vector<128x128xf32>, vector<128x32xf32>, vector<128x32xf32> -> vector<128x32xf32>
    %c1_48 = arith.constant 1 : index
    %c0_49 = arith.constant 0 : index
    %c0_50 = arith.constant 0 : index
    %77 = vector.load %arg7[%c1_48, %c0_49, %c0_50] : memref<4x32x128xf32, #tpu.memory_space<vmem>>, vector<1x32x128xf32>
    %78 = vector.shape_cast %77 : vector<1x32x128xf32> to vector<32x128xf32>
    %cst_51 = arith.constant dense<0.000000e+00> : vector<128x128xf32>
    %79 = tpu.matmul %76, %78, %cst_51 {dimension_numbers = #tpu.dot_dimension_numbers<[1], [0], [0], [1], [0, 0, 1, 1], [], []>} : vector<128x32xf32>, vector<32x128xf32>, vector<128x128xf32> -> vector<128x128xf32>
    %80 = arith.addf %54, %79 : vector<128x128xf32>
    %c2 = arith.constant 2 : index
    %c0_52 = arith.constant 0 : index
    %c0_53 = arith.constant 0 : index
    %81 = vector.load %arg4[%c2, %c0_52, %c0_53] : memref<4x128x32xf32, #tpu.memory_space<vmem>>, vector<1x128x32xf32>
    %82 = vector.shape_cast %81 : vector<1x128x32xf32> to vector<128x32xf32>
    %cst_54 = arith.constant dense<0.000000e+00> : vector<128x32xf32>
    %83 = tpu.matmul %27, %82, %cst_54 {dimension_numbers = #tpu.dot_dimension_numbers<[1], [0], [0], [1], [0, 0, 1, 1], [], []>} : vector<128x128xf32>, vector<128x32xf32>, vector<128x32xf32> -> vector<128x32xf32>
    %c2_55 = arith.constant 2 : index
    %c0_56 = arith.constant 0 : index
    %c0_57 = arith.constant 0 : index
    %84 = vector.load %arg5[%c2_55, %c0_56, %c0_57] : memref<4x128x32xf32, #tpu.memory_space<vmem>>, vector<1x128x32xf32>
    %85 = vector.shape_cast %84 : vector<1x128x32xf32> to vector<128x32xf32>
    %cst_58 = arith.constant dense<0.000000e+00> : vector<128x32xf32>
    %86 = tpu.matmul %27, %85, %cst_58 {dimension_numbers = #tpu.dot_dimension_numbers<[1], [0], [0], [1], [0, 0, 1, 1], [], []>} : vector<128x128xf32>, vector<128x32xf32>, vector<128x32xf32> -> vector<128x32xf32>
    %c2_59 = arith.constant 2 : index
    %c0_60 = arith.constant 0 : index
    %c0_61 = arith.constant 0 : index
    %87 = vector.load %arg6[%c2_59, %c0_60, %c0_61] : memref<4x128x32xf32, #tpu.memory_space<vmem>>, vector<1x128x32xf32>
    %88 = vector.shape_cast %87 : vector<1x128x32xf32> to vector<128x32xf32>
    %cst_62 = arith.constant dense<0.000000e+00> : vector<128x32xf32>
    %89 = tpu.matmul %27, %88, %cst_62 {dimension_numbers = #tpu.dot_dimension_numbers<[1], [0], [0], [1], [0, 0, 1, 1], [], []>} : vector<128x128xf32>, vector<128x32xf32>, vector<128x32xf32> -> vector<128x32xf32>
    %cst_63 = arith.constant dense<0.000000e+00> : vector<128x128xf32>
    %90 = tpu.matmul %83, %86, %cst_63 {dimension_numbers = #tpu.dot_dimension_numbers<[1], [1], [0], [0], [0, 0, 1, 0], [], []>} : vector<128x32xf32>, vector<128x32xf32>, vector<128x128xf32> -> vector<128x128xf32>
    %cst_64 = arith.constant 0.176776692 : f32
    %91 = vector.broadcast %cst_64 : f32 to vector<128x128xf32>
    %92 = arith.mulf %90, %91 : vector<128x128xf32>
    %cst_65 = arith.constant dense<0xFF800000> : vector<128xf32>
    %93 = vector.multi_reduction <maximumf>, %92, %cst_65 [1] : vector<128x128xf32> to vector<128xf32>
    %94 = vector.shape_cast %93 : vector<128xf32> to vector<128x1xf32>
    %95 = vector.broadcast %94 : vector<128x1xf32> to vector<128x128xf32>
    %96 = arith.subf %92, %95 : vector<128x128xf32>
    %97 = math.exp %96 : vector<128x128xf32>
    %cst_66 = arith.constant dense<0.000000e+00> : vector<128xf32>
    %98 = vector.multi_reduction <add>, %97, %cst_66 [1] : vector<128x128xf32> to vector<128xf32>
    %99 = vector.shape_cast %98 : vector<128xf32> to vector<128x1xf32>
    %100 = vector.broadcast %99 : vector<128x1xf32> to vector<128x128xf32>
    %101 = arith.divf %97, %100 : vector<128x128xf32>
    %cst_67 = arith.constant dense<0.000000e+00> : vector<128x32xf32>
    %102 = tpu.matmul %101, %89, %cst_67 {dimension_numbers = #tpu.dot_dimension_numbers<[1], [0], [0], [1], [0, 0, 1, 1], [], []>} : vector<128x128xf32>, vector<128x32xf32>, vector<128x32xf32> -> vector<128x32xf32>
    %c2_68 = arith.constant 2 : index
    %c0_69 = arith.constant 0 : index
    %c0_70 = arith.constant 0 : index
    %103 = vector.load %arg7[%c2_68, %c0_69, %c0_70] : memref<4x32x128xf32, #tpu.memory_space<vmem>>, vector<1x32x128xf32>
    %104 = vector.shape_cast %103 : vector<1x32x128xf32> to vector<32x128xf32>
    %cst_71 = arith.constant dense<0.000000e+00> : vector<128x128xf32>
    %105 = tpu.matmul %102, %104, %cst_71 {dimension_numbers = #tpu.dot_dimension_numbers<[1], [0], [0], [1], [0, 0, 1, 1], [], []>} : vector<128x32xf32>, vector<32x128xf32>, vector<128x128xf32> -> vector<128x128xf32>
    %106 = arith.addf %80, %105 : vector<128x128xf32>
    %c3 = arith.constant 3 : index
    %c0_72 = arith.constant 0 : index
    %c0_73 = arith.constant 0 : index
    %107 = vector.load %arg4[%c3, %c0_72, %c0_73] : memref<4x128x32xf32, #tpu.memory_space<vmem>>, vector<1x128x32xf32>
    %108 = vector.shape_cast %107 : vector<1x128x32xf32> to vector<128x32xf32>
    %cst_74 = arith.constant dense<0.000000e+00> : vector<128x32xf32>
    %109 = tpu.matmul %27, %108, %cst_74 {dimension_numbers = #tpu.dot_dimension_numbers<[1], [0], [0], [1], [0, 0, 1, 1], [], []>} : vector<128x128xf32>, vector<128x32xf32>, vector<128x32xf32> -> vector<128x32xf32>
    %c3_75 = arith.constant 3 : index
    %c0_76 = arith.constant 0 : index
    %c0_77 = arith.constant 0 : index
    %110 = vector.load %arg5[%c3_75, %c0_76, %c0_77] : memref<4x128x32xf32, #tpu.memory_space<vmem>>, vector<1x128x32xf32>
    %111 = vector.shape_cast %110 : vector<1x128x32xf32> to vector<128x32xf32>
    %cst_78 = arith.constant dense<0.000000e+00> : vector<128x32xf32>
    %112 = tpu.matmul %27, %111, %cst_78 {dimension_numbers = #tpu.dot_dimension_numbers<[1], [0], [0], [1], [0, 0, 1, 1], [], []>} : vector<128x128xf32>, vector<128x32xf32>, vector<128x32xf32> -> vector<128x32xf32>
    %c3_79 = arith.constant 3 : index
    %c0_80 = arith.constant 0 : index
    %c0_81 = arith.constant 0 : index
    %113 = vector.load %arg6[%c3_79, %c0_80, %c0_81] : memref<4x128x32xf32, #tpu.memory_space<vmem>>, vector<1x128x32xf32>
    %114 = vector.shape_cast %113 : vector<1x128x32xf32> to vector<128x32xf32>
    %cst_82 = arith.constant dense<0.000000e+00> : vector<128x32xf32>
    %115 = tpu.matmul %27, %114, %cst_82 {dimension_numbers = #tpu.dot_dimension_numbers<[1], [0], [0], [1], [0, 0, 1, 1], [], []>} : vector<128x128xf32>, vector<128x32xf32>, vector<128x32xf32> -> vector<128x32xf32>
    %cst_83 = arith.constant dense<0.000000e+00> : vector<128x128xf32>
    %116 = tpu.matmul %109, %112, %cst_83 {dimension_numbers = #tpu.dot_dimension_numbers<[1], [1], [0], [0], [0, 0, 1, 0], [], []>} : vector<128x32xf32>, vector<128x32xf32>, vector<128x128xf32> -> vector<128x128xf32>
    %cst_84 = arith.constant 0.176776692 : f32
    %117 = vector.broadcast %cst_84 : f32 to vector<128x128xf32>
    %118 = arith.mulf %116, %117 : vector<128x128xf32>
    %cst_85 = arith.constant dense<0xFF800000> : vector<128xf32>
    %119 = vector.multi_reduction <maximumf>, %118, %cst_85 [1] : vector<128x128xf32> to vector<128xf32>
    %120 = vector.shape_cast %119 : vector<128xf32> to vector<128x1xf32>
    %121 = vector.broadcast %120 : vector<128x1xf32> to vector<128x128xf32>
    %122 = arith.subf %118, %121 : vector<128x128xf32>
    %123 = math.exp %122 : vector<128x128xf32>
    %cst_86 = arith.constant dense<0.000000e+00> : vector<128xf32>
    %124 = vector.multi_reduction <add>, %123, %cst_86 [1] : vector<128x128xf32> to vector<128xf32>
    %125 = vector.shape_cast %124 : vector<128xf32> to vector<128x1xf32>
    %126 = vector.broadcast %125 : vector<128x1xf32> to vector<128x128xf32>
    %127 = arith.divf %123, %126 : vector<128x128xf32>
    %cst_87 = arith.constant dense<0.000000e+00> : vector<128x32xf32>
    %128 = tpu.matmul %127, %115, %cst_87 {dimension_numbers = #tpu.dot_dimension_numbers<[1], [0], [0], [1], [0, 0, 1, 1], [], []>} : vector<128x128xf32>, vector<128x32xf32>, vector<128x32xf32> -> vector<128x32xf32>
    %c3_88 = arith.constant 3 : index
    %c0_89 = arith.constant 0 : index
    %c0_90 = arith.constant 0 : index
    %129 = vector.load %arg7[%c3_88, %c0_89, %c0_90] : memref<4x32x128xf32, #tpu.memory_space<vmem>>, vector<1x32x128xf32>
    %130 = vector.shape_cast %129 : vector<1x32x128xf32> to vector<32x128xf32>
    %cst_91 = arith.constant dense<0.000000e+00> : vector<128x128xf32>
    %131 = tpu.matmul %128, %130, %cst_91 {dimension_numbers = #tpu.dot_dimension_numbers<[1], [0], [0], [1], [0, 0, 1, 1], [], []>} : vector<128x32xf32>, vector<32x128xf32>, vector<128x128xf32> -> vector<128x128xf32>
    %132 = arith.addf %106, %131 : vector<128x128xf32>
    %133 = arith.addf %1, %132 : vector<128x128xf32>
    %c0_92 = arith.constant 0 : index
    %c0_93 = arith.constant 0 : index
    %134 = vector.load %arg8[%c0_92, %c0_93] : memref<1x128xf32, #tpu.memory_space<vmem>>, vector<1x128xf32>
    %135 = vector.broadcast %134 : vector<1x128xf32> to vector<128x128xf32>
    %136 = arith.addf %133, %135 : vector<128x128xf32>
    %c0_94 = arith.constant 0 : index
    %c0_95 = arith.constant 0 : index
    %137 = vector.load %arg9[%c0_94, %c0_95] : memref<1x128xf32, #tpu.memory_space<vmem>>, vector<1x128xf32>
    %c0_96 = arith.constant 0 : index
    %c0_97 = arith.constant 0 : index
    %138 = vector.load %arg10[%c0_96, %c0_97] : memref<1x128xf32, #tpu.memory_space<vmem>>, vector<1x128xf32>
    %cst_98 = arith.constant dense<0.000000e+00> : vector<128xf32>
    %139 = vector.multi_reduction <add>, %136, %cst_98 [1] : vector<128x128xf32> to vector<128xf32>
    %140 = vector.shape_cast %139 : vector<128xf32> to vector<128x1xf32>
    %cst_99 = arith.constant 1.280000e+02 : f32
    %141 = vector.broadcast %cst_99 : f32 to vector<128x1xf32>
    %142 = arith.divf %140, %141 : vector<128x1xf32>
    %143 = vector.broadcast %142 : vector<128x1xf32> to vector<128x128xf32>
    %144 = arith.subf %136, %143 : vector<128x128xf32>
    %145 = vector.broadcast %142 : vector<128x1xf32> to vector<128x128xf32>
    %146 = arith.subf %136, %145 : vector<128x128xf32>
    %147 = arith.mulf %144, %146 : vector<128x128xf32>
    %cst_100 = arith.constant dense<0.000000e+00> : vector<128xf32>
    %148 = vector.multi_reduction <add>, %147, %cst_100 [1] : vector<128x128xf32> to vector<128xf32>
    %149 = vector.shape_cast %148 : vector<128xf32> to vector<128x1xf32>
    %cst_101 = arith.constant 1.280000e+02 : f32
    %150 = vector.broadcast %cst_101 : f32 to vector<128x1xf32>
    %151 = arith.divf %149, %150 : vector<128x1xf32>
    %152 = vector.broadcast %142 : vector<128x1xf32> to vector<128x128xf32>
    %153 = arith.subf %136, %152 : vector<128x128xf32>
    %cst_102 = arith.constant 9.99999974E-6 : f32
    %154 = vector.broadcast %cst_102 : f32 to vector<128x1xf32>
    %155 = arith.addf %151, %154 : vector<128x1xf32>
    %156 = math.rsqrt %155 : vector<128x1xf32>
    %157 = vector.broadcast %156 : vector<128x1xf32> to vector<128x128xf32>
    %158 = arith.mulf %153, %157 : vector<128x128xf32>
    %159 = vector.broadcast %137 : vector<1x128xf32> to vector<128x128xf32>
    %160 = arith.mulf %158, %159 : vector<128x128xf32>
    %161 = vector.broadcast %138 : vector<1x128xf32> to vector<128x128xf32>
    %162 = arith.addf %160, %161 : vector<128x128xf32>
    %c0_103 = arith.constant 0 : index
    %c0_104 = arith.constant 0 : index
    %163 = vector.load %arg11[%c0_103, %c0_104] : memref<128x512xf32, #tpu.memory_space<vmem>>, vector<128x512xf32>
    %cst_105 = arith.constant dense<0.000000e+00> : vector<128x512xf32>
    %164 = tpu.matmul %162, %163, %cst_105 {dimension_numbers = #tpu.dot_dimension_numbers<[1], [0], [0], [1], [0, 0, 1, 1], [], []>} : vector<128x128xf32>, vector<128x512xf32>, vector<128x512xf32> -> vector<128x512xf32>
    %c0_106 = arith.constant 0 : index
    %c0_107 = arith.constant 0 : index
    %165 = vector.load %arg12[%c0_106, %c0_107] : memref<1x512xf32, #tpu.memory_space<vmem>>, vector<1x512xf32>
    %166 = vector.broadcast %165 : vector<1x512xf32> to vector<128x512xf32>
    %167 = arith.addf %164, %166 : vector<128x512xf32>
    %cst_108 = arith.constant 5.000000e-01 : f32
    %168 = vector.broadcast %cst_108 : f32 to vector<128x512xf32>
    %169 = arith.mulf %168, %167 : vector<128x512xf32>
    %cst_109 = arith.constant 4.471500e-02 : f32
    %170 = vector.broadcast %cst_109 : f32 to vector<128x512xf32>
    %171 = arith.mulf %170, %167 : vector<128x512xf32>
    %172 = arith.mulf %171, %167 : vector<128x512xf32>
    %173 = arith.mulf %172, %167 : vector<128x512xf32>
    %174 = arith.addf %167, %173 : vector<128x512xf32>
    %cst_110 = arith.constant 0.797884583 : f32
    %175 = vector.broadcast %cst_110 : f32 to vector<128x512xf32>
    %176 = arith.mulf %175, %174 : vector<128x512xf32>
    %177 = math.tanh %176 : vector<128x512xf32>
    %cst_111 = arith.constant 1.000000e+00 : f32
    %178 = vector.broadcast %cst_111 : f32 to vector<128x512xf32>
    %179 = arith.addf %178, %177 : vector<128x512xf32>
    %180 = arith.mulf %169, %179 : vector<128x512xf32>
    %c0_112 = arith.constant 0 : index
    %c0_113 = arith.constant 0 : index
    %181 = vector.load %arg13[%c0_112, %c0_113] : memref<512x128xf32, #tpu.memory_space<vmem>>, vector<512x128xf32>
    %cst_114 = arith.constant dense<0.000000e+00> : vector<128x128xf32>
    %182 = tpu.matmul %180, %181, %cst_114 {dimension_numbers = #tpu.dot_dimension_numbers<[1], [0], [0], [1], [0, 0, 1, 1], [], []>} : vector<128x512xf32>, vector<512x128xf32>, vector<128x128xf32> -> vector<128x128xf32>
    %c0_115 = arith.constant 0 : index
    %c0_116 = arith.constant 0 : index
    %183 = vector.load %arg14[%c0_115, %c0_116] : memref<1x128xf32, #tpu.memory_space<vmem>>, vector<1x128xf32>
    %184 = vector.broadcast %183 : vector<1x128xf32> to vector<128x128xf32>
    %185 = arith.addf %182, %184 : vector<128x128xf32>
    %186 = arith.addf %136, %185 : vector<128x128xf32>
    %c0_117 = arith.constant 0 : index
    %c0_118 = arith.constant 0 : index
    %c0_119 = arith.constant 0 : index
    %187 = vector.load %arg15[%c0_117, %c0_118, %c0_119] : memref<1x128x128xf32, #tpu.memory_space<vmem>>, vector<1x128x128xf32>
    %188 = vector.shape_cast %187 : vector<1x128x128xf32> to vector<128x128xf32>
    %189 = vector.shape_cast %186 : vector<128x128xf32> to vector<1x128x128xf32>
    tpu.vector_store %arg15[%c0_117, %c0_118, %c0_119], %189 {strides = array<i32>} : memref<1x128x128xf32, #tpu.memory_space<vmem>>, vector<1x128x128xf32>,
    return
  }
  func.func @transform_0(%arg0: i32) -> (i32, i32, i32) {
    %c0_i32 = arith.constant 0 : i32
    %c0_i32_0 = arith.constant 0 : i32
    %c0_i32_1 = arith.constant 0 : i32
    return %arg0, %c0_i32, %c0_i32_0 : i32, i32, i32
  }
  func.func @transform_1(%arg0: i32) -> (i32, i32) {
    %c0_i32 = arith.constant 0 : i32
    %c0_i32_0 = arith.constant 0 : i32
    %c0_i32_1 = arith.constant 0 : i32
    return %c0_i32, %c0_i32_0 : i32, i32
  }
  func.func @transform_2(%arg0: i32) -> (i32, i32) {
    %c0_i32 = arith.constant 0 : i32
    %c0_i32_0 = arith.constant 0 : i32
    %c0_i32_1 = arith.constant 0 : i32
    return %c0_i32, %c0_i32_0 : i32, i32
  }
  func.func @transform_3(%arg0: i32) -> (i32, i32, i32) {
    %c0_i32 = arith.constant 0 : i32
    %c0_i32_0 = arith.constant 0 : i32
    %c0_i32_1 = arith.constant 0 : i32
    %c0_i32_2 = arith.constant 0 : i32
    return %c0_i32, %c0_i32_0, %c0_i32_1 : i32, i32, i32
  }
  func.func @transform_4(%arg0: i32) -> (i32, i32, i32) {
    %c0_i32 = arith.constant 0 : i32
    %c0_i32_0 = arith.constant 0 : i32
    %c0_i32_1 = arith.constant 0 : i32
    %c0_i32_2 = arith.constant 0 : i32
    return %c0_i32, %c0_i32_0, %c0_i32_1 : i32, i32, i32
  }
  func.func @transform_5(%arg0: i32) -> (i32, i32, i32) {
    %c0_i32 = arith.constant 0 : i32
    %c0_i32_0 = arith.constant 0 : i32
    %c0_i32_1 = arith.constant 0 : i32
    %c0_i32_2 = arith.constant 0 : i32
    return %c0_i32, %c0_i32_0, %c0_i32_1 : i32, i32, i32
  }
  func.func @transform_6(%arg0: i32) -> (i32, i32, i32) {
    %c0_i32 = arith.constant 0 : i32
    %c0_i32_0 = arith.constant 0 : i32
    %c0_i32_1 = arith.constant 0 : i32
    %c0_i32_2 = arith.constant 0 : i32
    return %c0_i32, %c0_i32_0, %c0_i32_1 : i32, i32, i32
  }
  func.func @transform_7(%arg0: i32) -> (i32, i32) {
    %c0_i32 = arith.constant 0 : i32
    %c0_i32_0 = arith.constant 0 : i32
    %c0_i32_1 = arith.constant 0 : i32
    return %c0_i32, %c0_i32_0 : i32, i32
  }
  func.func @transform_8(%arg0: i32) -> (i32, i32) {
    %c0_i32 = arith.constant 0 : i32
    %c0_i32_0 = arith.constant 0 : i32
    %c0_i32_1 = arith.constant 0 : i32
    return %c0_i32, %c0_i32_0 : i32, i32
  }
  func.func @transform_9(%arg0: i32) -> (i32, i32) {
    %c0_i32 = arith.constant 0 : i32
    %c0_i32_0 = arith.constant 0 : i32
    %c0_i32_1 = arith.constant 0 : i32
    return %c0_i32, %c0_i32_0 : i32, i32
  }
  func.func @transform_10(%arg0: i32) -> (i32, i32) {
    %c0_i32 = arith.constant 0 : i32
    %c0_i32_0 = arith.constant 0 : i32
    %c0_i32_1 = arith.constant 0 : i32
    return %c0_i32, %c0_i32_0 : i32, i32
  }
  func.func @transform_11(%arg0: i32) -> (i32, i32) {
    %c0_i32 = arith.constant 0 : i32
    %c0_i32_0 = arith.constant 0 : i32
    %c0_i32_1 = arith.constant 0 : i32
    return %c0_i32, %c0_i32_0 : i32, i32
  }
  func.func @transform_12(%arg0: i32) -> (i32, i32) {
    %c0_i32 = arith.constant 0 : i32
    %c0_i32_0 = arith.constant 0 : i32
    %c0_i32_1 = arith.constant 0 : i32
    return %c0_i32, %c0_i32_0 : i32, i32
  }
  func.func @transform_13(%arg0: i32) -> (i32, i32) {
    %c0_i32 = arith.constant 0 : i32
    %c0_i32_0 = arith.constant 0 : i32
    %c0_i32_1 = arith.constant 0 : i32
    return %c0_i32, %c0_i32_0 : i32, i32
  }
  func.func @transform_14(%arg0: i32) -> (i32, i32, i32) {
    %c0_i32 = arith.constant 0 : i32
    %c0_i32_0 = arith.constant 0 : i32
    %c0_i32_1 = arith.constant 0 : i32
    return %arg0, %c0_i32, %c0_i32_0 : i32, i32, i32
  }
}

</mosaic_0001>

<bundles_post_ra>
// kernel: tpu_custom_call.1
= control target key start
LH: loop header
LB: loop body
LE: loop exit
PB: predicated region body
PF: predicated region fallthrough
CT: control target
= control target key end

     0   :  { %s11277_s0 = inlined_call_operand.vmem [shape: f32[2,128,128], index: 0, kind: input, shape index: {}]   ;;  %s11278_s1 = inlined_call_operand.vmem [shape: f32[1,128], index: 1, kind: input, shape index: {}]   ;;  %s11279_s2 = inlined_call_operand.vmem [shape: f32[1,128], index: 2, kind: input, shape index: {}]   ;;  %s11280_s3 = inlined_call_operand.vmem [shape: f32[4,128,32], index: 3, kind: input, shape index: {}]   ;;  %s11281_s4 = inlined_call_operand.vmem [shape: f32[4,128,32], index: 4, kind: input, shape index: {}]   ;;  %s11282_s5 = inlined_call_operand.vmem [shape: f32[4,128,32], index: 5, kind: input, shape index: {}]   ;;  %s11283_s6 = inlined_call_operand.vmem [shape: f32[4,32,128], index: 6, kind: input, shape index: {}]   ;;  %s11284_s7 = inlined_call_operand.vmem [shape: f32[1,128], index: 7, kind: input, shape index: {}]   ;;  %s11285_s8 = inlined_call_operand.vmem [shape: f32[1,128], index: 8, kind: input, shape index: {}]   ;;  %s11286_s9 = inlined_call_operand.vmem [shape: f32[1,128], index: 9, kind: input, shape index: {}]   ;;  %s11287_s10 = inlined_call_operand.vmem [shape: f32[128,512], index: 10, kind: input, shape index: {}]   ;;  %s11288_s11 = inlined_call_operand.vmem [shape: f32[1,512], index: 11, kind: input, shape index: {}]   ;;  %s11289_s12 = inlined_call_operand.vmem [shape: f32[512,128], index: 12, kind: input, shape index: {}]   ;;  %s11290_s13 = inlined_call_operand.vmem [shape: f32[1,128], index: 13, kind: input, shape index: {}]   ;;  %s11291_s14 = inlined_call_operand.hbm [shape: f32[2,128,128], index: 14, kind: output, shape index: {}]  }
   0x1   :  { %11318 = sst [smem:[#allocation37_spill]] %s11277_s0 }
   0x2   :  { %19 = vsyncpa [#allocation3], 0 }
   0x3   :  { %21 = vsyncpa [#allocation3 + $0x1], 0  ;;  %s7522_s29 = smov 0   ;;  %s7524_s30 = smov 0  }
   0x4   :  { %s7526_s15 = smov 0   ;;  %s7528_s16 = smov 0  }
   0x5 LB: > { %11319 = sst [smem:[#allocation5_spill]] %s7438_s15  ;;  %s7543_s17 = sadd.s32 4294967295, %s7442_s16   ;;  %s7442_s16 = sphi %s7528_s16, %s11437_s16   ;;  %s7438_s15 = sphi %s7526_s15, %s11439_s15   ;;  %s7434_s30 = sphi %s7524_s30, %s11441_s30   ;;  %s7430_s29 = sphi %s7522_s29, %s11440_s29  }
   0x6   : > { %s6454_s18 = sadd.s32 4294967294, %s7442_s16   ;;  %s7547_s19 = sadd.s32 1, %s7442_s16  }
   0x7   : > { %11320 = sst [smem:[#allocation6_spill]] %s7547_s19  ;;  %s333_s20 = sadd.s32 1, %s7438_s15 }
   0x8   : > { %s330_s21 = ssub.s32 %s7442_s16, %s7547_s19  ;;  %p343_p0 = scmp.ne.s32.totalorder %s7438_s15, %s7434_s30 }
   0x9   : > { %p331_p1 = scmp.eq.s32.totalorder %s330_s21, 0  ;;  %p344_p2 = scmp.eq.s32.totalorder %s7543_s17, 1 }
   0xa   : > { %p349_p3 = scmp.ne.s32.totalorder %s7434_s30, %s7430_s29  ;;  %p350_p4 = scmp.eq.s32.totalorder %s6454_s18, 1 }
   0xb   : > { %s7558_s22 = scalar_select %p331_p1, %s7438_s15, %s333_s20  }
   0xc   : > { %p7560_p5 = por %p344_p2, %p343_p0  ;;  %p7564_p6 = por %p350_p4, %p349_p3 }
   0xd   : > { %11321 = sst [smem:[#allocation7_spill]] %s7558_s22  ;;  %p6457_p7 = scmp.ge.s32.totalorder %s7442_s16, 1 }
   0xe   : > { %p415_p8 = scmp.lt.s32.totalorder %s7442_s16, 3 }
  0x10   : > { %p416_p9 = pnand %p6457_p7, %p415_p8 }
  0x12   : > { %419 = sbr.rel (%p416_p9) target bundleno = 4465 (0x1171), region = 76 }
  0x17   : > { %p461_p10 = scmp.lt.s32.totalorder %s7543_s17, 1  ;;  %s11324_s0 = sld [smem:[#allocation37_spill]]  ;;  %v7444_v7 = vmov 128.0   ;;  %v864_v35 = vld [vmem:[%s11280_s3 + $0x78] sm:$0xff]  ;;  %v863_v38 = vld [vmem:[%s11280_s3 + $0x70] sm:$0xff]  ;;  %v862_v55 = vld [vmem:[%s11280_s3 + $0x68] sm:$0xff] }
  0x18   : > { %6912 = vrcp.f32 %v7444_v7  ;;  %v945_v36 = vld [vmem:[%s11281_s4 + $0x78] sm:$0xff]  ;;  %865 = vmatpush.msra.mxu0 %v864_v35  ;;  %v944_v39 = vld [vmem:[%s11281_s4 + $0x70] sm:$0xff]  ;;  %v943_v56 = vld [vmem:[%s11281_s4 + $0x68] sm:$0xff]  ;;  %s6815_s20 = sshll.u32 %s7543_s17, 7  ;;  %s7400_s21 = scalar_lea.hbm %s11291_s14, 256 }
  0x19   : > { %s462_s25 = scalar_select %p461_p10, %s7543_s17, 1  ;;  %v1026_v37 = vld [vmem:[%s11282_s5 + $0x78] sm:$0xff]  ;;  %v1025_v40 = vld [vmem:[%s11282_s5 + $0x70] sm:$0xff]  ;;  %946 = vmatpush.msra.mxu1 %v945_v36  ;;  %v1024_v57 = vld [vmem:[%s11282_s5 + $0x68] sm:$0xff] }
  0x1a   : > { %1027 = vmatpush.msra.mxu2 %v1026_v37  ;;  %866 = vmatpush.msra.mxu0 %v863_v38  ;;  %v861_v58 = vld [vmem:[%s11280_s3 + $0x60] sm:$0xff]  ;;  %v860_v61 = vld [vmem:[%s11280_s3 + $0x58] sm:$0xff]  ;;  %v850_v35 = vld [vmem:[%s11280_s3 + $0x8] sm:$0xff]  ;;  %s6388_s15 = scalar_lea.hbm %s11291_s14, %s6815_s20 }
  0x1b   : > { %s6814_s26 = sshll.u32 %s462_s25, 7  ;;  %947 = vmatpush.msra.mxu1 %v944_v39  ;;  %v942_v59 = vld [vmem:[%s11281_s4 + $0x60] sm:$0xff]  ;;  %v941_v62 = vld [vmem:[%s11281_s4 + $0x58] sm:$0xff]  ;;  %v931_v36 = vld [vmem:[%s11281_s4 + $0x8] sm:$0xff]  ;;  %s6391_s19 = sshll.u32 %s6388_s15, 4  ;;  %s6392_s19 = int_to_ptr.hbm [resolvable:$true] %s6391_s19 }
  0x1c   : > { %1028 = vmatpush.msra.mxu2 %v1025_v40  ;;  %867 = vmatpush.msra.mxu0 %v862_v55  ;;  %v1023_v60 = vld [vmem:[%s11282_s5 + $0x60] sm:$0xff]  ;;  %v1022_v63 = vld [vmem:[%s11282_s5 + $0x58] sm:$0xff]  ;;  %v1012_v37 = vld [vmem:[%s11282_s5 + $0x8] sm:$0xff]  ;;  %s7394_s22 = sshra.s32 %s6392_s19, 4  ;;  %s7395_s22 = int_to_ptr.hbm [resolvable:$true] %s7394_s22 }
  0x1d   : > { %s7575_s18 = scalar_lea.vmem %s11324_s0, %s6814_s26  ;;  %948 = vmatpush.msra.mxu1 %v943_v56  ;;  %v938_v7 = vld [vmem:[%s11281_s4 + $0x40] sm:$0xff]  ;;  %s458_s26 = sand.u32 1, %s7434_s30  }
  0x1e   : > { %v468_v0 = vld [vmem:[%s7575_s18 + $0x10] sm:$0xff]  ;;  %v466_v1 = vld [vmem:[%s7575_s18] sm:$0xff]  ;;  %v467_v3 = vld [vmem:[%s7575_s18 + $0x8] sm:$0xff]  ;;  %v6913_v8 = vpop.eup %6912  ;;  %1029 = vmatpush.msra.mxu2 %v1024_v57  ;;  %868 = vmatpush.msra.mxu0 %v861_v58  ;;  %s6458_s27 = sshll.u32 %s458_s26, 7  ;;  %s6377_s17 = scalar_lea.sflag [#allocation3], %s458_s26 }
  0x1f   : > { %v7580_v2 = vld [vmem:[%s7575_s18 + $0x20] sm:$0xff]  ;;  %488 = vadd.xlane.f32.xlu1 %v468_v0  ;;  %484 = vadd.xlane.f32.xlu0 %v466_v1  ;;  %v469_v4 = vld [vmem:[%s7575_s18 + $0x18] sm:$0xff]  ;;  %v471_v5 = vld [vmem:[%s7575_s18 + $0x28] sm:$0xff]  ;;  %v517_v9 = vmul.f32 128.0, %v6913_v8  ;;  %vm521_vm0 = vweird.f32 %v6913_v8  ;;  %s11196_s28 = scalar_lea.vmem [#allocation2], %s6458_s27  ;;  %s7396_s25 = scalar_lea.hbm %s7395_s22, 128 }
  0x20   : > { %492 = vadd.xlane.f32.xlu2 %v7580_v2  ;;  %v7587_v6 = vld [vmem:[%s7575_s18 + $0x30] sm:$0xff]  ;;  %v7608_v30 = vld [vmem:[%s7575_s18 + $0x48] sm:$0xff]  ;;  %v7611_v31 = vld [vmem:[%s7575_s18 + $0x38] sm:$0xff]  ;;  %949 = vmatpush.msra.mxu1 %v942_v59  ;;  %p7397_p11 = scmp.ne.s32.totalorder %s7395_s22, %s7396_s25  ;;  %p7401_p0 = scmp.lt.s32.totalorder %s7395_s22, %s11291_s14 }
  0x21   : > { %v518_v10 = vsub.f32 1.0, %v517_v9  ;;  %v7645_v44 = vld [vmem:[%s7575_s18 + $0x40] sm:$0xff]  ;;  %v7653_v48 = vld [vmem:[%s7575_s18 + $0x50] sm:$0xff]  ;;  %v7668_v53 = vld [vmem:[%s7575_s18 + $0x58] sm:$0xff]  ;;  %1030 = vmatpush.msra.mxu2 %v1023_v60  ;;  %869 = vmatpush.msra.mxu0 %v860_v61  ;;  %p7402_p1 = scmp.lt.s32.totalorder %s7400_s21, %s7396_s25 }
  0x22   : > { %v7658_v50 = vld [vmem:[%s7575_s18 + $0x60] sm:$0xff]  ;;  %v7672_v54 = vld [vmem:[%s7575_s18 + $0x68] sm:$0xff]  ;;  %950 = vmatpush.msra.mxu1 %v941_v62  ;;  %v856_v9 = vld [vmem:[%s11280_s3 + $0x38] sm:$0xff]  ;;  %p7398_p12 = pnand %p7397_p11, %p7560_p5 }
  0x23   : > { %v519_v11 = vmul.f32 %v6913_v8, %v518_v10  ;;  %1031 = vmatpush.msra.mxu2 %v1022_v63  ;;  %v937_v10 = vld [vmem:[%s11281_s4 + $0x38] sm:$0xff]  ;;  %v849_v38 = vld [vmem:[%s11280_s3] sm:$0xff]  ;;  %p7403_p2 = por %p7402_p1, %p7401_p0 }
  0x24   : > { %v930_v39 = vld [vmem:[%s11281_s4] sm:$0xff]  ;;  %p7399_p13 = pneg %p7398_p12 }
  0x25   : > { %v520_v12 = vadd.f32 %v6913_v8, %v519_v11  ;;  %v1018_v11 = vld [vmem:[%s11282_s5 + $0x38] sm:$0xff]  ;;  %v1011_v40 = vld [vmem:[%s11282_s5] sm:$0xff] }
  0x26   : > { %p7404_p3 = pnand %p7403_p2, %p7399_p13 }
  0x27   : > { %486 = vadd.xlane.f32.xlu0 %v467_v3  ;;  %490 = vadd.xlane.f32.xlu1 %v469_v4  ;;  %v7590_v13 = vsel %vm521_vm0, %v6913_v8, %v520_v12  ;;  %v1019_v8 = vld [vmem:[%s11282_s5 + $0x40] sm:$0xff]  ;;  %v855_v12 = vld [vmem:[%s11280_s3 + $0x30] sm:$0xff] }
  0x28   : > { %494 = vadd.xlane.f32.xlu2 %v471_v5  ;;  %11325 = vst [vmem:[#allocation8_spill] sm:$0xff] %v7590_v13 }
  0x2f   : > { %496 = vadd.xlane.f32.xlu1 %v7587_v6 }
  0x92   : > { %v489_v14 = vpop.xlane.xlu1 %488  ;;  %v485_v15 = vpop.xlane.xlu0 %484 }
  0x93   : > { %v525_v16 = vmul.f32 %v7590_v13, %v489_v14  ;;  %v523_v17 = vmul.f32 %v7590_v13, %v485_v15  ;;  %v493_v18 = vpop.xlane.xlu2 %492  ;;  %v936_v14 = vld [vmem:[%s11281_s4 + $0x30] sm:$0xff] }
  0x94   : > { %v527_v43 = vmul.f32 %v7590_v13, %v493_v18  ;;  %v1017_v15 = vld [vmem:[%s11282_s5 + $0x30] sm:$0xff]  ;;  %v1016_v18 = vld [vmem:[%s11282_s5 + $0x28] sm:$0xff] }
  0x95   : > { %v7594_v19 = vsub.f32 %v468_v0, %v525_v16  ;;  %v7596_v20 = vsub.f32 %v466_v1, %v523_v17  ;;  %v859_v0 = vld [vmem:[%s11280_s3 + $0x50] sm:$0xff]  ;;  %v854_v16 = vld [vmem:[%s11280_s3 + $0x28] sm:$0xff] }
  0x96   : > { %v7649_v45 = vsub.f32 %v7580_v2, %v527_v43  ;;  %v940_v1 = vld [vmem:[%s11281_s4 + $0x50] sm:$0xff]  ;;  %870 = vmatpush.msra.mxu0 %v859_v0  ;;  %v935_v17 = vld [vmem:[%s11281_s4 + $0x28] sm:$0xff] }
  0x97   : > { %v557_v21 = vmul.f32 %v7594_v19, %v7594_v19  ;;  %v555_v22 = vmul.f32 %v7596_v20, %v7596_v20  ;;  %v1021_v2 = vld [vmem:[%s11282_s5 + $0x50] sm:$0xff]  ;;  %951 = vmatpush.msra.mxu1 %v940_v1 }
  0x98   : > { %v559_v49 = vmul.f32 %v7649_v45, %v7649_v45  ;;  %1032 = vmatpush.msra.mxu2 %v1021_v2 }
  0x99   : > { %575 = vadd.xlane.f32.xlu1 %v557_v21  ;;  %571 = vadd.xlane.f32.xlu0 %v555_v22  ;;  %v853_v21 = vld [vmem:[%s11280_s3 + $0x20] sm:$0xff] }
  0x9a   : > { %v487_v23 = vpop.xlane.xlu0 %486  ;;  %v491_v24 = vpop.xlane.xlu1 %490  ;;  %v934_v22 = vld [vmem:[%s11281_s4 + $0x20] sm:$0xff] }
  0x9b   : > { %v524_v25 = vmul.f32 %v7590_v13, %v487_v23  ;;  %v495_v26 = vpop.xlane.xlu2 %494  ;;  %v526_v29 = vmul.f32 %v7590_v13, %v491_v24  ;;  %v1015_v23 = vld [vmem:[%s11282_s5 + $0x20] sm:$0xff]  ;;  %v852_v24 = vld [vmem:[%s11280_s3 + $0x18] sm:$0xff] }
  0x9c   : > { %v528_v28 = vmul.f32 %v7590_v13, %v495_v26  ;;  %v1014_v26 = vld [vmem:[%s11282_s5 + $0x18] sm:$0xff] }
  0x9d   : > { %v7603_v27 = vsub.f32 %v467_v3, %v524_v25  ;;  %v7619_v34 = vsub.f32 %v469_v4, %v526_v29  ;;  %v858_v3 = vld [vmem:[%s11280_s3 + $0x48] sm:$0xff]  ;;  %v933_v25 = vld [vmem:[%s11281_s4 + $0x18] sm:$0xff]  ;;  %v932_v29 = vld [vmem:[%s11281_s4 + $0x10] sm:$0xff] }
  0x9e   : > { %v7617_v33 = vsub.f32 %v471_v5, %v528_v28  ;;  %v939_v4 = vld [vmem:[%s11281_s4 + $0x48] sm:$0xff]  ;;  %871 = vmatpush.msra.mxu0 %v858_v3  ;;  %v851_v28 = vld [vmem:[%s11280_s3 + $0x10] sm:$0xff] }
  0x9f   : > { %v556_v32 = vmul.f32 %v7603_v27, %v7603_v27  ;;  %v558_v42 = vmul.f32 %v7619_v34, %v7619_v34  ;;  %v1020_v5 = vld [vmem:[%s11282_s5 + $0x48] sm:$0xff]  ;;  %952 = vmatpush.msra.mxu1 %v939_v4 }
  0xa0   : > { %v560_v41 = vmul.f32 %v7617_v33, %v7617_v33  ;;  %1033 = vmatpush.msra.mxu2 %v1020_v5 }
  0xa1   : > { %502 = vadd.xlane.f32.xlu1 %v7608_v30  ;;  %498 = vadd.xlane.f32.xlu0 %v7611_v31 }
  0xa2   : > { %573 = vadd.xlane.f32.xlu2 %v556_v32  ;;  %v497_v46 = vpop.xlane.xlu1 %496  ;;  %953 = vmatpush.msra.mxu1 %v938_v7  ;;  %v1013_v32 = vld [vmem:[%s11282_s5 + $0x10] sm:$0xff] }
  0xa3   : > { %v529_v47 = vmul.f32 %v7590_v13, %v497_v46  ;;  %1034 = vmatpush.msra.mxu2 %v1019_v8 }
  0xa4   : > { %954 = vmatpush.msra.mxu1 %v937_v10 }
  0xa5   : > { %v7663_v51 = vsub.f32 %v7587_v6, %v529_v47  ;;  %v857_v6 = vld [vmem:[%s11280_s3 + $0x40] sm:$0xff]  ;;  %1035 = vmatpush.msra.mxu2 %v1018_v11 }
  0xa6   : > { %872 = vmatpush.msra.mxu0 %v857_v6  ;;  %955 = vmatpush.msra.mxu1 %v936_v14 }
  0xa7   : > { %v561_v52 = vmul.f32 %v7663_v51, %v7663_v51  ;;  %1036 = vmatpush.msra.mxu2 %v1017_v15 }
  0xa8   : > { %873 = vmatpush.msra.mxu0 %v856_v9  ;;  %956 = vmatpush.msra.mxu1 %v935_v17 }
  0xa9   : > { %581 = vadd.xlane.f32.xlu1 %v560_v41  ;;  %577 = vadd.xlane.f32.xlu0 %v558_v42 }
  0xaa   : > { %500 = vadd.xlane.f32.xlu2 %v7645_v44  ;;  %874 = vmatpush.msra.mxu0 %v855_v12 }
  0xab   : > { %1037 = vmatpush.msra.mxu2 %v1016_v18  ;;  %957 = vmatpush.msra.mxu1 %v934_v22  ;;  %v7833_v18 = vld [vmem:[%s7575_s18 + $0x70] sm:$0xff] }
  0xac   : > { %875 = vmatpush.msra.mxu0 %v854_v16 }
  0xad   : > { %1038 = vmatpush.msra.mxu2 %v1015_v23  ;;  %958 = vmatpush.msra.mxu1 %v933_v25  ;;  %v7838_v23 = vld [vmem:[%s11278_s1] ss:$0 sm:$0xff] }
  0xae   : > { %876 = vmatpush.msra.mxu0 %v853_v21 }
  0xaf   : > { %1039 = vmatpush.msra.mxu2 %v1014_v26  ;;  %959 = vmatpush.msra.mxu1 %v932_v29 }
  0xb0   : > { %877 = vmatpush.msra.mxu0 %v852_v24 }
  0xb1   : > { %504 = vadd.xlane.f32.xlu0 %v7653_v48  ;;  %508 = vadd.xlane.f32.xlu1 %v7658_v50 }
  0xb2   : > { %579 = vadd.xlane.f32.xlu2 %v559_v49  ;;  %878 = vmatpush.msra.mxu0 %v851_v28  ;;  %v7849_v28 = vld [vmem:[%s11279_s2] ss:$0 sm:$0xff] }
  0xb3   : > { %1040 = vmatpush.msra.mxu2 %v1013_v32  ;;  %960 = vmatpush.msra.mxu1 %v931_v36 }
  0xb4   : > { %879 = vmatpush.msra.mxu0 %v850_v35 }
  0xb5   : > { %1041 = vmatpush.msra.mxu2 %v1012_v37  ;;  %961 = vmatpush.msra.mxu1 %v930_v39 }
  0xb6   : > { %880 = vmatpush.msra.mxu0 %v849_v38 }
  0xb7   : > { %1042 = vmatpush.msra.mxu2 %v1011_v40 }
  0xb9   : > { %583 = vadd.xlane.f32.xlu0 %v561_v52 }
  0xba   : > { %506 = vadd.xlane.f32.xlu2 %v7668_v53 }
  0xc1   : > { %510 = vadd.xlane.f32.xlu0 %v7672_v54 }
 0x10c   : > { %v576_v41 = vpop.xlane.xlu1 %575  ;;  %v572_v42 = vpop.xlane.xlu0 %571 }
 0x10d   : > { %v605_v43 = vmul.f32 %v576_v41, %v7590_v13  ;;  %v603_v46 = vmul.f32 %v572_v42, %v7590_v13 }
 0x10f   : > { %v7803_v47 = vadd.f32 1e-05, %v605_v43  ;;  %v619_v49 = vadd.f32 1e-05, %v603_v46 }
 0x111   : > { %6914 = vrsqrt.f32 %v7803_v47  ;;  %vm641_vm2 = vweird.f32 %v619_v49  ;;  %vm661_vm4 = vweird.f32 %v7803_v47 }
 0x112   : > { %6916 = vrsqrt.f32 %v619_v49 }
 0x114   : > { %v503_v52 = vpop.xlane.xlu1 %502  ;;  %v499_v55 = vpop.xlane.xlu0 %498 }
 0x115   : > { %v532_v56 = vmul.f32 %v7590_v13, %v503_v52  ;;  %v574_v57 = vpop.xlane.xlu2 %573  ;;  %v530_v58 = vmul.f32 %v7590_v13, %v499_v55 }
 0x116   : > { %v604_v59 = vmul.f32 %v574_v57, %v7590_v13 }
 0x117   : > { %v7809_v60 = vpop.eup %6914  ;;  %v7812_v61 = vsub.f32 %v7608_v30, %v532_v56  ;;  %v7815_v62 = vsub.f32 %v7611_v31, %v530_v58  ;;  %v7882_v58 = vld [vmem:[%s7575_s18 + $0x78] sm:$0xff] }
 0x118   : > { %v6917_v63 = vpop.eup %6916  ;;  %v656_v0 = vmul.f32 %v7809_v60, %v7803_v47  ;;  %v620_v1 = vadd.f32 1e-05, %v604_v59  ;;  %vm662_vm5 = vweird.f32 %v7809_v60 }
 0x119   : > { %v636_v2 = vmul.f32 %v6917_v63, %v619_v49  ;;  %v564_v3 = vmul.f32 %v7812_v61, %v7812_v61  ;;  %v562_v4 = vmul.f32 %v7815_v62, %v7815_v62  ;;  %vm642_vm1 = vweird.f32 %v6917_v63  ;;  %vm7869_vm8 = vmor %vm661_vm4, %vm662_vm5 }
 0x11a   : > { %6918 = vrsqrt.f32 %v620_v1  ;;  %v657_v30 = vmul.f32 %v7809_v60, %v656_v0  ;;  %vm643_vm3 = vmor %vm641_vm2, %vm642_vm1  ;;  %vm651_vm7 = vweird.f32 %v620_v1 }
 0x11b   : > { %v637_v5 = vmul.f32 %v6917_v63, %v636_v2  ;;  %589 = vadd.xlane.f32.xlu0 %v564_v3  ;;  %585 = vadd.xlane.f32.xlu2 %v562_v4 }
 0x11c   : > { %v582_v31 = vpop.xlane.xlu1 %581  ;;  %v578_v6 = vpop.xlane.xlu0 %577  ;;  %v658_v16 = vmul.f32 0.5, %v657_v30 }
 0x11d   : > { %v638_v7 = vmul.f32 0.5, %v637_v5  ;;  %v501_v8 = vpop.xlane.xlu2 %500  ;;  %v606_v9 = vmul.f32 %v578_v6, %v7590_v13  ;;  %v608_v12 = vmul.f32 %v582_v31, %v7590_v13 }
 0x11e   : > { %v531_v10 = vmul.f32 %v7590_v13, %v501_v8  ;;  %v659_v29 = vsub.f32 1.5, %v658_v16 }
 0x11f   : > { %v639_v11 = vsub.f32 1.5, %v638_v7  ;;  %v7827_v14 = vadd.f32 1e-05, %v606_v9  ;;  %v7841_v26 = vadd.f32 1e-05, %v608_v12 }
 0x120   : > { %v6919_v15 = vpop.eup %6918  ;;  %v7830_v17 = vsub.f32 %v7645_v44, %v531_v10  ;;  %v660_v46 = vmul.f32 %v7809_v60, %v659_v29 }
 0x121   : > { %v640_v21 = vmul.f32 %v6917_v63, %v639_v11  ;;  %v646_v22 = vmul.f32 %v6919_v15, %v620_v1  ;;  %6920 = vrsqrt.f32 %v7827_v14  ;;  %vm652_vm6 = vweird.f32 %v6919_v15 }
 0x122   : > { %v563_v44 = vmul.f32 %v7830_v17, %v7830_v17  ;;  %6922 = vrsqrt.f32 %v7841_v26  ;;  %vm653_vm9 = vmor %vm651_vm7, %vm652_vm6  ;;  %v664_v3 = vsel %vm7869_vm8, %v7809_v60, %v660_v46  ;;  %vm671_vm10 = vweird.f32 %v7827_v14 }
 0x123   : > { %v644_v24 = vsel %vm643_vm3, %v6917_v63, %v640_v21  ;;  %v647_v25 = vmul.f32 %v6919_v15, %v646_v22  ;;  %512 = vadd.xlane.f32.xlu2 %v7833_v18  ;;  %v797_v9 = vmul.f32 %v664_v3, %v7594_v19  ;;  %vm691_vm0 = vweird.f32 %v7841_v26 }
 0x124   : > { %v795_v32 = vmul.f32 %v644_v24, %v7596_v20  ;;  %v505_v35 = vpop.xlane.xlu0 %504  ;;  %587 = vadd.xlane.f32.xlu1 %v563_v44  ;;  %v509_v41 = vpop.xlane.xlu1 %508 }
 0x125   : > { %v648_v36 = vmul.f32 0.5, %v647_v25  ;;  %v580_v37 = vpop.xlane.xlu2 %579  ;;  %v533_v38 = vmul.f32 %v7590_v13, %v505_v35  ;;  %v535_v57 = vmul.f32 %v7590_v13, %v509_v41  ;;  %v816_v21 = vmul.f32 %v7838_v23, %v797_v9 }
 0x126   : > { %v814_v39 = vmul.f32 %v7838_v23, %v795_v32  ;;  %v607_v40 = vmul.f32 %v580_v37, %v7590_v13 }
 0x127   : > { %v649_v42 = vsub.f32 1.5, %v648_v36  ;;  %v7859_v20 = vsub.f32 %v7653_v48, %v533_v38  ;;  %v7861_v43 = vpop.eup %6920  ;;  %v7895_v31 = vsub.f32 %v7658_v50, %v535_v57  ;;  %v7934_v37 = vadd.f32 %v7849_v28, %v816_v21 }
 0x128   : > { %v7865_v47 = vadd.f32 %v7849_v28, %v814_v39  ;;  %v7867_v49 = vadd.f32 1e-05, %v607_v40  ;;  %v666_v56 = vmul.f32 %v7861_v43, %v7827_v14  ;;  %v7887_v2 = vpop.eup %6922  ;;  %vm672_vm11 = vweird.f32 %v7861_v43 }
 0x129   : > { %v650_v55 = vmul.f32 %v6919_v15, %v649_v42  ;;  %v565_v48 = vmul.f32 %v7859_v20, %v7859_v20  ;;  %v686_v50 = vmul.f32 %v7887_v2, %v7841_v26  ;;  %v567_v14 = vmul.f32 %v7895_v31, %v7895_v31  ;;  %vm7914_vm12 = vmor %vm671_vm10, %vm672_vm11 }
 0x12a   : > { %6924 = vrsqrt.f32 %v7867_v49  ;;  %881 = vmatmul.f32.vlgmr.msra.gmra.mxu0 %v7865_v47  ;;  %962 = vmatmul.f32.vlgmr.msra.gmra.mxu1 %v7865_v47  ;;  %v667_v63 = vmul.f32 %v7861_v43, %v666_v56  ;;  %vm681_vm13 = vweird.f32 %v7867_v49  ;;  %vm692_vm1 = vweird.f32 %v7887_v2 }
 0x12b   : > { %v654_v59 = vsel %vm653_vm9, %v6919_v15, %v650_v55  ;;  %1043 = vmatmul.f32.vlgmr.msra.gmra.mxu2 %v7865_v47  ;;  %591 = vadd.xlane.f32.xlu2 %v565_v48  ;;  %v687_v24 = vmul.f32 %v7887_v2, %v686_v50  ;;  %vm693_vm2 = vmor %vm691_vm0, %vm692_vm1 }
 0x12c   : > { %v796_v0 = vmul.f32 %v654_v59, %v7603_v27  ;;  %v584_v1 = vpop.xlane.xlu0 %583  ;;  %v668_v4 = vmul.f32 0.5, %v667_v63  ;;  %514 = vadd.xlane.f32.xlu1 %v7882_v58 }
 0x12d   : > { %v507_v5 = vpop.xlane.xlu2 %506  ;;  %v609_v30 = vmul.f32 %v584_v1, %v7590_v13  ;;  %v688_v39 = vmul.f32 0.5, %v687_v24 }
 0x12e   : > { %v815_v6 = vmul.f32 %v7838_v23, %v796_v0  ;;  %v534_v27 = vmul.f32 %v7590_v13, %v507_v5  ;;  %v669_v7 = vsub.f32 1.5, %v668_v4 }
 0x12f   : > { %v625_v8 = vadd.f32 1e-05, %v609_v30 }
 0x130   : > { %v6925_v60 = vpop.eup %6924  ;;  %v7903_v10 = vadd.f32 %v7849_v28, %v815_v6  ;;  %v7908_v11 = vsub.f32 %v7668_v53, %v534_v27  ;;  %v670_v12 = vmul.f32 %v7861_v43, %v669_v7 }
 0x131   : > { %v676_v15 = vmul.f32 %v6925_v60, %v7867_v49  ;;  %6926 = vrsqrt.f32 %v625_v8  ;;  %vm682_vm14 = vweird.f32 %v6925_v60  ;;  %vm701_vm3 = vweird.f32 %v625_v8 }
 0x132   : > { %884 = vmatmul.f32.gmra.mxu0 %v7903_v10  ;;  %965 = vmatmul.f32.gmra.mxu1 %v7903_v10  ;;  %v566_v19 = vmul.f32 %v7908_v11, %v7908_v11  ;;  %v674_v25 = vsel %vm7914_vm12, %v7861_v43, %v670_v12  ;;  %vm683_vm15 = vmor %vm681_vm13, %vm682_vm14  ;;  %v689_v43 = vsub.f32 1.5, %v688_v39 }
 0x133   : > { %v677_v53 = vmul.f32 %v6925_v60, %v676_v15  ;;  %1046 = vmatmul.f32.gmra.mxu2 %v7903_v10  ;;  %v798_v38 = vmul.f32 %v674_v25, %v7619_v34 }
 0x134   : > { %593 = vadd.xlane.f32.xlu0 %v566_v19  ;;  %v511_v22 = vpop.xlane.xlu0 %510  ;;  %595 = vadd.xlane.f32.xlu1 %v567_v14  ;;  %v690_v55 = vmul.f32 %v7887_v2, %v689_v43 }
 0x135   : > { %v678_v44 = vmul.f32 0.5, %v677_v53  ;;  %v536_v29 = vmul.f32 %v7590_v13, %v511_v22 }
 0x136   : > { %v694_v26 = vsel %vm693_vm2, %v7887_v2, %v690_v55 }
 0x137   : > { %v6927_v32 = vpop.eup %6926  ;;  %v679_v35 = vsub.f32 1.5, %v678_v44  ;;  %v7931_v36 = vsub.f32 %v7672_v54, %v536_v29  ;;  %v817_v54 = vmul.f32 %v7838_v23, %v798_v38  ;;  %v800_v59 = vmul.f32 %v694_v26, %v7617_v33 }
 0x138   : > { %v696_v41 = vmul.f32 %v6927_v32, %v625_v8  ;;  %vm702_vm4 = vweird.f32 %v6927_v32 }
 0x139   : > { %v680_v40 = vmul.f32 %v6925_v60, %v679_v35  ;;  %v568_v42 = vmul.f32 %v7931_v36, %v7931_v36  ;;  %v7946_v34 = vadd.f32 %v7849_v28, %v817_v54  ;;  %vm703_vm5 = vmor %vm701_vm3, %vm702_vm4  ;;  %v819_v0 = vmul.f32 %v7838_v23, %v800_v59 }
 0x13a   : > { %887 = vmatmul.f32.gmra.mxu0 %v7934_v37  ;;  %968 = vmatmul.f32.gmra.mxu1 %v7934_v37  ;;  %v697_v49 = vmul.f32 %v6927_v32, %v696_v41 }
 0x13b   : > { %1049 = vmatmul.f32.gmra.mxu2 %v7934_v37  ;;  %597 = vadd.xlane.f32.xlu2 %v568_v42  ;;  %v684_v46 = vsel %vm683_vm15, %v6925_v60, %v680_v40  ;;  %v7964_v2 = vadd.f32 %v7849_v28, %v819_v0 }
 0x13c   : > { %v799_v52 = vmul.f32 %v684_v46, %v7649_v45  ;;  %v698_v56 = vmul.f32 0.5, %v697_v49 }
 0x13e   : > { %v818_v48 = vmul.f32 %v7838_v23, %v799_v52  ;;  %v699_v57 = vsub.f32 1.5, %v698_v56 }
 0x140   : > { %v7957_v45 = vadd.f32 %v7849_v28, %v818_v48  ;;  %v700_v63 = vmul.f32 %v6927_v32, %v699_v57 }
 0x142   : > { %890 = vmatmul.f32.gmra.mxu0 %v7946_v34  ;;  %971 = vmatmul.f32.gmra.mxu1 %v7946_v34  ;;  %v704_v1 = vsel %vm703_vm5, %v6927_v32, %v700_v63 }
 0x143   : > { %1052 = vmatmul.f32.gmra.mxu2 %v7946_v34  ;;  %v801_v3 = vmul.f32 %v704_v1, %v7663_v51 }
 0x145   : > { %v820_v33 = vmul.f32 %v7838_v23, %v801_v3 }
 0x147   : > { %v7972_v4 = vadd.f32 %v7849_v28, %v820_v33 }
 0x14a   : > { %893 = vmatmul.f32.gmra.mxu0 %v7957_v45  ;;  %974 = vmatmul.f32.gmra.mxu1 %v7957_v45 }
 0x14b   : > { %1055 = vmatmul.f32.gmra.mxu2 %v7957_v45 }
 0x152   : > { %896 = vmatmul.f32.gmra.mxu0 %v7964_v2  ;;  %977 = vmatmul.f32.gmra.mxu1 %v7964_v2 }
 0x153   : > { %1058 = vmatmul.f32.gmra.mxu2 %v7964_v2 }
 0x15a   : > { %899 = vmatmul.f32.gmra.mxu0 %v7972_v4  ;;  %980 = vmatmul.f32.gmra.mxu1 %v7972_v4 }
 0x15b   : > { %1061 = vmatmul.f32.gmra.mxu2 %v7972_v4 }
 0x18e   : > { %v586_v5 = vpop.xlane.xlu2 %585  ;;  %v590_v30 = vpop.xlane.xlu0 %589 }
 0x18f   : > { %v610_v51 = vmul.f32 %v586_v5, %v7590_v13  ;;  %v612_v6 = vmul.f32 %v590_v30, %v7590_v13 }
 0x191   : > { %v626_v27 = vadd.f32 1e-05, %v610_v51  ;;  %v628_v7 = vadd.f32 1e-05, %v612_v6 }
 0x193   : > { %6928 = vrsqrt.f32 %v626_v27  ;;  %vm711_vm7 = vweird.f32 %v626_v27  ;;  %vm731_vm9 = vweird.f32 %v628_v7 }
 0x194   : > { %6930 = vrsqrt.f32 %v628_v7 }
 0x196   : > { %v513_v8 = vpop.xlane.xlu2 %512 }
 0x197   : > { %v537_v60 = vmul.f32 %v7590_v13, %v513_v8  ;;  %v588_v9 = vpop.xlane.xlu1 %587 }
 0x198   : > { %v611_v12 = vmul.f32 %v588_v9, %v7590_v13 }
 0x199   : > { %v6929_v50 = vpop.eup %6928  ;;  %v7982_v15 = vsub.f32 %v7833_v18, %v537_v60 }
 0x19a   : > { %v7984_v14 = vpop.eup %6930  ;;  %v706_v16 = vmul.f32 %v6929_v50, %v626_v27  ;;  %v627_v19 = vadd.f32 1e-05, %v611_v12  ;;  %vm712_vm6 = vweird.f32 %v6929_v50 }
 0x19b   : > { %v569_v53 = vmul.f32 %v7982_v15, %v7982_v15  ;;  %v726_v22 = vmul.f32 %v7984_v14, %v628_v7  ;;  %vm713_vm8 = vmor %vm711_vm7, %vm712_vm6  ;;  %vm732_vm10 = vweird.f32 %v7984_v14 }
 0x19c   : > { %v707_v21 = vmul.f32 %v6929_v50, %v706_v16  ;;  %6932 = vrsqrt.f32 %v627_v19  ;;  %vm8011_vm12 = vmor %vm731_vm9, %vm732_vm10  ;;  %vm721_vm13 = vweird.f32 %v627_v19 }
 0x19d   : > { %599 = vadd.xlane.f32.xlu0 %v569_v53  ;;  %v727_v18 = vmul.f32 %v7984_v14, %v726_v22 }
 0x19e   : > { %v708_v24 = vmul.f32 0.5, %v707_v21  ;;  %v592_v25 = vpop.xlane.xlu2 %591 }
 0x19f   : > { %v613_v44 = vmul.f32 %v592_v25, %v7590_v13  ;;  %v515_v32 = vpop.xlane.xlu1 %514  ;;  %v728_v54 = vmul.f32 0.5, %v727_v18 }
 0x1a0   : > { %v709_v29 = vsub.f32 1.5, %v708_v24  ;;  %v538_v35 = vmul.f32 %v7590_v13, %v515_v32 }
 0x1a1   : > { %v629_v38 = vadd.f32 1e-05, %v613_v44  ;;  %v729_v56 = vsub.f32 1.5, %v728_v54 }
 0x1a2   : > { %v710_v39 = vmul.f32 %v6929_v50, %v709_v29  ;;  %v6933_v40 = vpop.eup %6932  ;;  %v7993_v41 = vsub.f32 %v7882_v58, %v538_v35 }
 0x1a3   : > { %6934 = vrsqrt.f32 %v629_v38  ;;  %v716_v43 = vmul.f32 %v6933_v40, %v627_v19  ;;  %vm722_vm11 = vweird.f32 %v6933_v40  ;;  %v730_v5 = vmul.f32 %v7984_v14, %v729_v56 }
 0x1a4   : > { %v714_v42 = vsel %vm713_vm8, %v6929_v50, %v710_v39  ;;  %v570_v49 = vmul.f32 %v7993_v41, %v7993_v41  ;;  %vm723_vm14 = vmor %vm721_vm13, %vm722_vm11  ;;  %vm741_vm15 = vweird.f32 %v629_v38 }
 0x1a5   : > { %v802_v46 = vmul.f32 %v714_v42, %v7815_v62  ;;  %v717_v52 = vmul.f32 %v6933_v40, %v716_v43  ;;  %v734_v50 = vsel %vm8011_vm12, %v7984_v14, %v730_v5 }
 0x1a6   : > { %601 = vadd.xlane.f32.xlu1 %v570_v49  ;;  %v804_v21 = vmul.f32 %v734_v50, %v7812_v61  ;;  %v6504_v50 = vld [vmem:[%s11280_s3 + $0xd8] sm:$0xff] }
 0x1a7   : > { %v821_v55 = vmul.f32 %v7838_v23, %v802_v46  ;;  %v718_v48 = vmul.f32 0.5, %v717_v52  ;;  %v596_v26 = vpop.xlane.xlu1 %595  ;;  %v594_v57 = vpop.xlane.xlu0 %593 }
 0x1a8   : > { %v615_v62 = vmul.f32 %v596_v26, %v7590_v13  ;;  %v614_v63 = vmul.f32 %v594_v57, %v7590_v13  ;;  %v823_v14 = vmul.f32 %v7838_v23, %v804_v21  ;;  %v6518_v21 = vld [vmem:[%s11281_s4 + $0xc8] sm:$0xff] }
 0x1a9   : > { %v6935_v59 = vpop.eup %6934  ;;  %v8000_v58 = vadd.f32 %v7849_v28, %v821_v55  ;;  %v719_v0 = vsub.f32 1.5, %v718_v48 }
 0x1aa   : > { %v736_v1 = vmul.f32 %v6935_v59, %v629_v38  ;;  %v8005_v3 = vadd.f32 1e-05, %v615_v62  ;;  %v630_v33 = vadd.f32 1e-05, %v614_v63  ;;  %vm742_vm0 = vweird.f32 %v6935_v59 }
 0x1ab   : > { %902 = vmatmul.f32.gmra.mxu0 %v8000_v58  ;;  %983 = vmatmul.f32.gmra.mxu1 %v8000_v58  ;;  %v720_v51 = vmul.f32 %v6933_v40, %v719_v0  ;;  %vm743_vm1 = vmor %vm741_vm15, %vm742_vm0  ;;  %v8033_v38 = vadd.f32 %v7849_v28, %v823_v14  ;;  %v6516_v14 = vld [vmem:[%s11281_s4 + $0xb8] sm:$0xff] }
 0x1ac   : > { %v737_v6 = vmul.f32 %v6935_v59, %v736_v1  ;;  %1064 = vmatmul.f32.gmra.mxu2 %v8000_v58  ;;  %6936 = vrsqrt.f32 %v8005_v3  ;;  %vm751_vm2 = vweird.f32 %v630_v33  ;;  %vm761_vm5 = vweird.f32 %v8005_v3 }
 0x1ad   : > { %v724_v27 = vsel %vm723_vm14, %v6933_v40, %v720_v51  ;;  %6938 = vrsqrt.f32 %v630_v33  ;;  %v6524_v51 = vld [vmem:[%s11281_s4 + $0xf8] sm:$0xff] }
 0x1ae   : > { %v738_v8 = vmul.f32 0.5, %v737_v6  ;;  %v598_v60 = vpop.xlane.xlu2 %597  ;;  %v803_v9 = vmul.f32 %v724_v27, %v7830_v17  ;;  %1790 = vmatpush.msrb.mxu2 %v6524_v51  ;;  %v6507_v6 = vld [vmem:[%s11280_s3 + $0xf0] sm:$0xff] }
 0x1af   : > { %v616_v7 = vmul.f32 %v598_v60, %v7590_v13  ;;  %v6523_v27 = vld [vmem:[%s11281_s4 + $0xf0] sm:$0xff]  ;;  %v6522_v60 = vld [vmem:[%s11281_s4 + $0xe8] sm:$0xff] }
 0x1b0   : > { %v739_v12 = vsub.f32 1.5, %v738_v8  ;;  %v822_v16 = vmul.f32 %v7838_v23, %v803_v9  ;;  %1791 = vmatpush.msrb.mxu2 %v6523_v27  ;;  %v6506_v8 = vld [vmem:[%s11280_s3 + $0xe8] sm:$0xff]  ;;  %v6505_v9 = vld [vmem:[%s11280_s3 + $0xe0] sm:$0xff] }
 0x1b1   : > { %v632_v19 = vadd.f32 1e-05, %v616_v7  ;;  %v6521_v7 = vld [vmem:[%s11281_s4 + $0xe0] sm:$0xff] }
 0x1b2   : > { %v6937_v53 = vpop.eup %6936  ;;  %v8025_v22 = vadd.f32 %v7849_v28, %v822_v16  ;;  %v740_v24 = vmul.f32 %v6935_v59, %v739_v12  ;;  %1792 = vmatpush.msrb.mxu2 %v6522_v60  ;;  %v6520_v12 = vld [vmem:[%s11281_s4 + $0xd8] sm:$0xff]  ;;  %v6503_v16 = vld [vmem:[%s11280_s3 + $0xd0] sm:$0xff]  ;;  %v8172_v60 = vpop.f32.mrf.mxu2 }
 0x1b3   : > { %6940 = vrsqrt.f32 %v632_v19  ;;  %v6939_v17 = vpop.eup %6938  ;;  %v756_v25 = vmul.f32 %v6937_v53, %v8005_v3  ;;  %vm762_vm6 = vweird.f32 %v6937_v53  ;;  %vm771_vm8 = vweird.f32 %v632_v19 }
 0x1b4   : > { %v746_v44 = vmul.f32 %v6939_v17, %v630_v33  ;;  %905 = vmatmul.f32.gmra.mxu0 %v8025_v22  ;;  %986 = vmatmul.f32.gmra.mxu1 %v8025_v22  ;;  %v744_v61 = vsel %vm743_vm1, %v6935_v59, %v740_v24  ;;  %vm752_vm3 = vweird.f32 %v6939_v17  ;;  %vm763_vm7 = vmor %vm761_vm5, %vm762_vm6  ;;  %v6517_v24 = vld [vmem:[%s11281_s4 + $0xc0] sm:$0xff]  ;;  %vm1092_vm1 = vcmask 261120  }
 0x1b5   : > { %1067 = vmatmul.f32.gmra.mxu2 %v8025_v22  ;;  %v757_v18 = vmul.f32 %v6937_v53, %v756_v25  ;;  %v805_v39 = vmul.f32 %v744_v61, %v7859_v20  ;;  %vm753_vm4 = vmor %vm751_vm2, %vm752_vm3  ;;  %v6499_v61 = vld [vmem:[%s11280_s3 + $0xb0] sm:$0xff] }
 0x1b6   : > { %v747_v29 = vmul.f32 %v6939_v17, %v746_v44  ;;  %1793 = vmatpush.msrb.mxu2 %v6521_v7  ;;  %v6500_v44 = vld [vmem:[%s11280_s3 + $0xb8] sm:$0xff] }
 0x1b7   : > { %v758_v42 = vmul.f32 0.5, %v757_v18  ;;  %v824_v46 = vmul.f32 %v7838_v23, %v805_v39  ;;  %v6515_v18 = vld [vmem:[%s11281_s4 + $0xb0] sm:$0xff]  ;;  %v6514_v39 = vld [vmem:[%s11281_s4 + $0xa8] sm:$0xff] }
 0x1b8   : > { %v748_v35 = vmul.f32 0.5, %v747_v29  ;;  %1794 = vmatpush.msrb.mxu2 %v6520_v12 }
 0x1b9   : > { %v6941_v32 = vpop.eup %6940  ;;  %v759_v49 = vsub.f32 1.5, %v758_v42  ;;  %v8042_v20 = vadd.f32 %v7849_v28, %v824_v46  ;;  %v6513_v42 = vld [vmem:[%s11281_s4 + $0xa0] sm:$0xff] }
 0x1ba   : > { %v749_v40 = vsub.f32 1.5, %v748_v35  ;;  %v766_v54 = vmul.f32 %v6941_v32, %v632_v19  ;;  %vm772_vm9 = vweird.f32 %v6941_v32  ;;  %v6519_v19 = vld [vmem:[%s11281_s4 + $0xd0] sm:$0xff]  ;;  %v6498_v35 = vld [vmem:[%s11280_s3 + $0xa8] sm:$0xff] }
 0x1bb   : > { %v760_v48 = vmul.f32 %v6937_v53, %v759_v49  ;;  %vm773_vm10 = vmor %vm771_vm8, %vm772_vm9  ;;  %1795 = vmatpush.msrb.mxu2 %v6519_v19  ;;  %v6495_v49 = vld [vmem:[%s11280_s3 + $0x90] sm:$0xff] }
 0x1bc   : > { %v750_v43 = vmul.f32 %v6939_v17, %v749_v40  ;;  %908 = vmatmul.f32.gmra.mxu0 %v8033_v38  ;;  %989 = vmatmul.f32.gmra.mxu1 %v8033_v38  ;;  %v767_v55 = vmul.f32 %v6941_v32, %v766_v54  ;;  %v6497_v40 = vld [vmem:[%s11280_s3 + $0xa0] sm:$0xff]  ;;  %v6496_v54 = vld [vmem:[%s11280_s3 + $0x98] sm:$0xff] }
 0x1bd   : > { %1070 = vmatmul.f32.gmra.mxu2 %v8033_v38  ;;  %v764_v59 = vsel %vm763_vm7, %v6937_v53, %v760_v48  ;;  %v6502_v53 = vld [vmem:[%s11280_s3 + $0xc8] sm:$0xff] }
 0x1be   : > { %v754_v52 = vsel %vm753_vm4, %v6939_v17, %v750_v43  ;;  %v768_v26 = vmul.f32 0.5, %v767_v55  ;;  %v807_v63 = vmul.f32 %v764_v59, %v7895_v31  ;;  %1796 = vmatpush.msrb.mxu2 %v6518_v21  ;;  %v6501_v17 = vld [vmem:[%s11280_s3 + $0xc0] sm:$0xff]  ;;  %v6512_v43 = vld [vmem:[%s11281_s4 + $0x98] sm:$0xff]  ;;  %v6494_v55 = vld [vmem:[%s11280_s3 + $0x88] sm:$0xff]  ;;  %v8184_v21 = vpop.f32.mrf.mxu2 }
 0x1bf   : > { %v806_v56 = vmul.f32 %v754_v52, %v7908_v11  ;;  %v6511_v52 = vld [vmem:[%s11281_s4 + $0x90] sm:$0xff]  ;;  %v6493_v59 = vld [vmem:[%s11280_s3 + $0x80] sm:$0xff] }
 0x1c0   : > { %v769_v62 = vsub.f32 1.5, %v768_v26  ;;  %v826_v1 = vmul.f32 %v7838_v23, %v807_v63  ;;  %1797 = vmatpush.msrb.mxu2 %v6517_v24  ;;  %v6510_v26 = vld [vmem:[%s11281_s4 + $0x88] sm:$0xff] }
 0x1c1   : > { %v825_v57 = vmul.f32 %v7838_v23, %v806_v56 }
 0x1c2   : > { %v770_v11 = vmul.f32 %v6941_v32, %v769_v62  ;;  %v8058_v33 = vadd.f32 %v7849_v28, %v826_v1  ;;  %1798 = vmatpush.msrb.mxu2 %v6516_v14  ;;  %v6509_v62 = vld [vmem:[%s11281_s4 + $0x80] sm:$0xff] }
 0x1c3   : > { %v8051_v0 = vadd.f32 %v7849_v28, %v825_v57 }
 0x1c4   : > { %911 = vmatmul.f32.gmra.mxu0 %v8042_v20  ;;  %992 = vmatmul.f32.gmra.mxu1 %v8042_v20  ;;  %v774_v3 = vsel %vm773_vm10, %v6941_v32, %v770_v11 }
 0x1c5   : > { %1073 = vmatmul.f32.gmra.mxu2 %v8042_v20  ;;  %v808_v5 = vmul.f32 %v774_v3, %v7931_v36  ;;  %v6508_v36 = vld [vmem:[%s11280_s3 + $0xf8] sm:$0xff]  ;;  %v8169_v3 = vpop.f32.mrf.mxu1 }
 0x1c6   : > { %1708 = vmatpush.msrb.mxu1 %v6508_v36  ;;  %1799 = vmatpush.msrb.mxu2 %v6515_v18 }
 0x1c7   : > { %v827_v31 = vmul.f32 %v7838_v23, %v808_v5 }
 0x1c8   : > { %1709 = vmatpush.msrb.mxu1 %v6507_v6  ;;  %1800 = vmatpush.msrb.mxu2 %v6514_v39 }
 0x1c9   : > { %v8066_v30 = vadd.f32 %v7849_v28, %v827_v31 }
 0x1ca   : > { %1710 = vmatpush.msrb.mxu1 %v6506_v8  ;;  %1801 = vmatpush.msrb.mxu2 %v6513_v42 }
 0x1cc   : > { %914 = vmatmul.f32.gmra.mxu0 %v8051_v0  ;;  %995 = vmatmul.f32.gmra.mxu1 %v8051_v0 }
 0x1cd   : > { %1076 = vmatmul.f32.gmra.mxu2 %v8051_v0  ;;  %1711 = vmatpush.msrb.mxu1 %v6505_v9  ;;  %v8178_v12 = vpop.f32.mrf.mxu1 }
 0x1ce   : > { %1802 = vmatpush.msrb.mxu2 %v6512_v43 }
 0x1cf   : > { %1712 = vmatpush.msrb.mxu1 %v6504_v50 }
 0x1d0   : > { %1803 = vmatpush.msrb.mxu2 %v6511_v52 }
 0x1d1   : > { %1713 = vmatpush.msrb.mxu1 %v6503_v16 }
 0x1d2   : > { %1804 = vmatpush.msrb.mxu2 %v6510_v26 }
 0x1d3   : > { %1714 = vmatpush.msrb.mxu1 %v6502_v53 }
 0x1d4   : > { %917 = vmatmul.f32.gmra.mxu0 %v8058_v33  ;;  %998 = vmatmul.f32.gmra.mxu1 %v8058_v33 }
 0x1d5   : > { %1079 = vmatmul.f32.gmra.mxu2 %v8058_v33  ;;  %1715 = vmatpush.msrb.mxu1 %v6501_v17 }
 0x1d6   : > { %1805 = vmatpush.msrb.mxu2 %v6509_v62 }
 0x1d7   : > { %1716 = vmatpush.msrb.mxu1 %v6500_v44  ;;  %v8195_v44 = vpop.f32.mrf.mxu2 }
 0x1d9   : > { %1717 = vmatpush.msrb.mxu1 %v6499_v61 }
 0x1db   : > { %1718 = vmatpush.msrb.mxu1 %v6498_v35 }
 0x1dc   : > { %920 = vmatmul.f32.gmra.mxu0 %v8066_v30  ;;  %1001 = vmatmul.f32.gmra.mxu1 %v8066_v30 }
 0x1dd   : > { %1082 = vmatmul.f32.gmra.mxu2 %v8066_v30  ;;  %1719 = vmatpush.msrb.mxu1 %v6497_v40 }
 0x1df   : > { %1720 = vmatpush.msrb.mxu1 %v6496_v54 }
 0x1e1   : > { %1721 = vmatpush.msrb.mxu1 %v6495_v49 }
 0x1e3   : > { %1722 = vmatpush.msrb.mxu1 %v6494_v55 }
 0x1e5   : > { %1723 = vmatpush.msrb.mxu1 %v6493_v59 }
 0x210   : > { %v600_v25 = vpop.xlane.xlu0 %599 }
 0x211   : > { %v617_v29 = vmul.f32 %v600_v25, %v7590_v13  ;;  %v8190_v25 = vpop.f32.mrf.mxu1 }
 0x213   : > { %v633_v32 = vadd.f32 1e-05, %v617_v29 }
 0x215   : > { %6942 = vrsqrt.f32 %v633_v32  ;;  %vm781_vm12 = vweird.f32 %v633_v32 }
 0x219   : > { %v602_v46 = vpop.xlane.xlu1 %601 }
 0x21a   : > { %v618_v48 = vmul.f32 %v602_v46, %v7590_v13 }
 0x21b   : > { %v6943_v56 = vpop.eup %6942 }
 0x21c   : > { %v776_v57 = vmul.f32 %v6943_v56, %v633_v32  ;;  %v634_v63 = vadd.f32 1e-05, %v618_v48  ;;  %vm782_vm11 = vweird.f32 %v6943_v56 }
 0x21d   : > { %vm783_vm13 = vmor %vm781_vm12, %vm782_vm11 }
 0x21e   : > { %v777_v11 = vmul.f32 %v6943_v56, %v776_v57  ;;  %6944 = vrsqrt.f32 %v634_v63  ;;  %vm791_vm15 = vweird.f32 %v634_v63 }
 0x220   : > { %v778_v1 = vmul.f32 0.5, %v777_v11 }
 0x222   : > { %v779_v5 = vsub.f32 1.5, %v778_v1 }
 0x224   : > { %v780_v31 = vmul.f32 %v6943_v56, %v779_v5  ;;  %v6945_v36 = vpop.eup %6944 }
 0x225   : > { %v786_v6 = vmul.f32 %v6945_v36, %v634_v63  ;;  %vm792_vm14 = vweird.f32 %v6945_v36 }
 0x226   : > { %v784_v51 = vsel %vm783_vm13, %v6943_v56, %v780_v31  ;;  %vm793_vm0 = vmor %vm791_vm15, %vm792_vm14 }
 0x227   : > { %v809_v27 = vmul.f32 %v784_v51, %v7982_v15  ;;  %v787_v8 = vmul.f32 %v6945_v36, %v786_v6 }
 0x229   : > { %v828_v9 = vmul.f32 %v7838_v23, %v809_v27  ;;  %v788_v7 = vmul.f32 0.5, %v787_v8 }
 0x22b   : > { %v8176_v50 = vadd.f32 %v7849_v28, %v828_v9  ;;  %v789_v16 = vsub.f32 1.5, %v788_v7 }
 0x22d   : > { %923 = vmatmul.f32.gmra.mxu0 %v8176_v50  ;;  %1004 = vmatmul.f32.gmra.mxu1 %v8176_v50  ;;  %v790_v19 = vmul.f32 %v6945_v36, %v789_v16 }
 0x22e   : > { %1085 = vmatmul.f32.gmra.mxu2 %v8176_v50 }
 0x22f   : > { %v794_v15 = vsel %vm793_vm0, %v6945_v36, %v790_v19  ;;  %v882_v36 = vpop.f32.mrf.mxu0 }
 0x230   : > { %v810_v53 = vmul.f32 %v794_v15, %v7993_v41  ;;  %v8198_v41 = vpop.f32.mrf.mxu1 }
 0x232   : > { %v829_v17 = vmul.f32 %v7838_v23, %v810_v53  ;;  %v8201_v23 = vpop.f32.mrf.mxu2 }
 0x234   : > { %v8188_v24 = vadd.f32 %v7849_v28, %v829_v17 }
 0x236   : > { %926 = vmatmul.f32.gmra.mxu0 %v8188_v24  ;;  %1007 = vmatmul.f32.gmra.mxu1 %v8188_v24 }
 0x237   : > { %1088 = vmatmul.f32.gmra.mxu2 %v8188_v24  ;;  %v885_v6 = vpop.f32.mrf.mxu0 }
 0x238   : > { %v8205_v28 = vpop.f32.mrf.mxu1 }
 0x23a   : > { %v8209_v14 = vpop.f32.mrf.mxu2 }
 0x23e   : > { %1724 = vmatmul.f32.vlgmr.msrb.gmra.mxu1 %v7865_v47 }
 0x23f   : > { %1806 = vmatmul.f32.vlgmr.msrb.gmra.mxu2 %v7865_v47 }
 0x240   : > { %v8211_v29 = vpop.f32.mrf.mxu1 }
 0x242   : > { %v8215_v61 = vpop.f32.mrf.mxu2 }
 0x246   : > { %1727 = vmatmul.f32.gmra.mxu1 %v7903_v10 }
 0x247   : > { %1809 = vmatmul.f32.gmra.mxu2 %v7903_v10 }
 0x248   : > { %v8217_v18 = vpop.f32.mrf.mxu1 }
 0x24a   : > { %v1062_v32 = vpop.f32.mrf.mxu2 }
 0x24e   : > { %1730 = vmatmul.f32.gmra.mxu1 %v7934_v37 }
 0x24f   : > { %1812 = vmatmul.f32.gmra.mxu2 %v7934_v37 }
 0x250   : > { %v8221_v35 = vpop.f32.mrf.mxu1 }
 0x252   : > { %v1065_v39 = vpop.f32.mrf.mxu2 }
 0x256   : > { %1733 = vmatmul.f32.gmra.mxu1 %v7946_v34 }
 0x257   : > { %1815 = vmatmul.f32.gmra.mxu2 %v7946_v34 }
 0x258   : > { %v987_v40 = vpop.f32.mrf.mxu1 }
 0x25a   : > { %v1068_v42 = vpop.f32.mrf.mxu2 }
 0x25e   : > { %1736 = vmatmul.f32.gmra.mxu1 %v7957_v45 }
 0x25f   : > { %1818 = vmatmul.f32.gmra.mxu2 %v7957_v45 }
 0x260   : > { %v990_v54 = vpop.f32.mrf.mxu1 }
 0x262   : > { %v1071_v43 = vpop.f32.mrf.mxu2 }
 0x266   : > { %1739 = vmatmul.f32.gmra.mxu1 %v7964_v2 }
 0x267   : > { %1821 = vmatmul.f32.gmra.mxu2 %v7964_v2 }
 0x268   : > { %v993_v46 = vpop.f32.mrf.mxu1 }
 0x26a   : > { %v1074_v49 = vpop.f32.mrf.mxu2 }
 0x26e   : > { %1742 = vmatmul.f32.gmra.mxu1 %v7972_v4 }
 0x26f   : > { %1824 = vmatmul.f32.gmra.mxu2 %v7972_v4 }
 0x270   : > { %v996_v52 = vpop.f32.mrf.mxu1 }
 0x272   : > { %v1077_v55 = vpop.f32.mrf.mxu2 }
 0x276   : > { %1745 = vmatmul.f32.gmra.mxu1 %v8000_v58 }
 0x277   : > { %1827 = vmatmul.f32.gmra.mxu2 %v8000_v58 }
 0x278   : > { %v999_v56 = vpop.f32.mrf.mxu1 }
 0x27a   : > { %v1080_v48 = vpop.f32.mrf.mxu2 }
 0x27e   : > { %1748 = vmatmul.f32.gmra.mxu1 %v8025_v22 }
 0x27f   : > { %1830 = vmatmul.f32.gmra.mxu2 %v8025_v22 }
 0x280   : > { %v1002_v26 = vpop.f32.mrf.mxu1 }
 0x282   : > { %v1083_v57 = vpop.f32.mrf.mxu2 }
 0x286   : > { %1751 = vmatmul.f32.gmra.mxu1 %v8033_v38 }
 0x287   : > { %1833 = vmatmul.f32.gmra.mxu2 %v8033_v38 }
 0x28e   : > { %1754 = vmatmul.f32.gmra.mxu1 %v8042_v20 }
 0x28f   : > { %1836 = vmatmul.f32.gmra.mxu2 %v8042_v20 }
 0x296   : > { %1757 = vmatmul.f32.gmra.mxu1 %v8051_v0 }
 0x297   : > { %1839 = vmatmul.f32.gmra.mxu2 %v8051_v0 }
 0x29e   : > { %1760 = vmatmul.f32.gmra.mxu1 %v8058_v33 }
 0x29f   : > { %1842 = vmatmul.f32.gmra.mxu2 %v8058_v33 }
 0x2a6   : > { %1763 = vmatmul.f32.gmra.mxu1 %v8066_v30 }
 0x2a7   : > { %1845 = vmatmul.f32.gmra.mxu2 %v8066_v30 }
 0x2aa   : > { %v1005_v59 = vpop.f32.mrf.mxu1 }
 0x2ae   : > { %1766 = vmatmul.f32.gmra.mxu1 %v8176_v50 }
 0x2af   : > { %1848 = vmatmul.f32.gmra.mxu2 %v8176_v50 }
 0x2b1   : > { %v1086_v62 = vpop.f32.mrf.mxu2 }
 0x2b3   : > { %v1008_v63 = vpop.f32.mrf.mxu1 }
 0x2b4   : > { %6461 = vmatpush.xpose.msk.msra.mxu3 %vm1092_vm1, %v1008_v63 }
 0x2b6   : > { %1769 = vmatmul.f32.gmra.mxu1 %v8188_v24 }
 0x2b7   : > { %1851 = vmatmul.f32.gmra.mxu2 %v8188_v24 }
 0x2b8   : > { %6462 = vmatpush.xpose.msk.msra.mxu3 %vm1092_vm1, %v1005_v59  ;;  %v6526_v59 = vld [vmem:[%s11282_s5 + $0x88] sm:$0xff] }
 0x2ba   : > { %v1089_v11 = vpop.f32.mrf.mxu2 }
 0x2bb   : > { %1622 = vmatpush.msrb.mxu0 %v1089_v11 }
 0x2bc   : > { %6463 = vmatpush.xpose.msk.msra.mxu3 %vm1092_vm1, %v1002_v26  ;;  %v6527_v26 = vld [vmem:[%s11282_s5 + $0x90] sm:$0xff] }
 0x2bd   : > { %1623 = vmatpush.msrb.mxu0 %v1086_v62  ;;  %v6525_v62 = vld [vmem:[%s11282_s5 + $0x80] sm:$0xff] }
 0x2bf   : > { %1624 = vmatpush.msrb.mxu0 %v1083_v57 }
 0x2c0   : > { %6464 = vmatpush.xpose.msk.msra.mxu3 %vm1092_vm1, %v999_v56  ;;  %v6529_v56 = vld [vmem:[%s11282_s5 + $0xa0] sm:$0xff] }
 0x2c1   : > { %1625 = vmatpush.msrb.mxu0 %v1080_v48  ;;  %v6528_v48 = vld [vmem:[%s11282_s5 + $0x98] sm:$0xff] }
 0x2c2   : > { %v8249_v1 = vpop.f32.mrf.mxu2 }
 0x2c3   : > { %1626 = vmatpush.msrb.mxu0 %v1077_v55  ;;  %v6530_v55 = vld [vmem:[%s11282_s5 + $0xa8] sm:$0xff] }
 0x2c4   : > { %6465 = vmatpush.xpose.msk.msra.mxu3 %vm1092_vm1, %v996_v52 }
 0x2c5   : > { %1627 = vmatpush.msrb.mxu0 %v1074_v49  ;;  %v6531_v49 = vld [vmem:[%s11282_s5 + $0xb0] sm:$0xff] }
 0x2c7   : > { %1628 = vmatpush.msrb.mxu0 %v1071_v43  ;;  %v6533_v43 = vld [vmem:[%s11282_s5 + $0xc0] sm:$0xff] }
 0x2c8   : > { %6466 = vmatpush.xpose.msk.msra.mxu3 %vm1092_vm1, %v993_v46  ;;  %v6532_v46 = vld [vmem:[%s11282_s5 + $0xb8] sm:$0xff] }
 0x2c9   : > { %1629 = vmatpush.msrb.mxu0 %v1068_v42  ;;  %v6535_v42 = vld [vmem:[%s11282_s5 + $0xd0] sm:$0xff] }
 0x2ca   : > { %v8253_v5 = vpop.f32.mrf.mxu2 }
 0x2cb   : > { %1630 = vmatpush.msrb.mxu0 %v1065_v39 }
 0x2cc   : > { %6467 = vmatpush.xpose.msk.msra.mxu3 %vm1092_vm1, %v990_v54  ;;  %v6534_v54 = vld [vmem:[%s11282_s5 + $0xc8] sm:$0xff] }
 0x2cd   : > { %1631 = vmatpush.msrb.mxu0 %v1062_v32  ;;  %v6537_v32 = vld [vmem:[%s11282_s5 + $0xe0] sm:$0xff] }
 0x2cf   : > { %1632 = vmatpush.msrb.mxu0 %v8215_v61  ;;  %v6539_v61 = vld [vmem:[%s11282_s5 + $0xf0] sm:$0xff] }
 0x2d0   : > { %6468 = vmatpush.xpose.msk.msra.mxu3 %vm1092_vm1, %v987_v40  ;;  %v6536_v40 = vld [vmem:[%s11282_s5 + $0xd8] sm:$0xff] }
 0x2d1   : > { %1633 = vmatpush.msrb.mxu0 %v8209_v14 }
 0x2d2   : > { %v8259_v31 = vpop.f32.mrf.mxu2 }
 0x2d3   : > { %1634 = vmatpush.msrb.mxu0 %v8201_v23 }
 0x2d4   : > { %6469 = vmatpush.xpose.msk.msra.mxu3 %vm1092_vm1, %v8221_v35 }
 0x2d5   : > { %1635 = vmatpush.msrb.mxu0 %v8195_v44 }
 0x2d7   : > { %1636 = vmatpush.msrb.mxu0 %v8184_v21 }
 0x2d8   : > { %6470 = vmatpush.xpose.msk.msra.mxu3 %vm1092_vm1, %v8217_v18  ;;  %v6538_v18 = vld [vmem:[%s11282_s5 + $0xe8] sm:$0xff] }
 0x2d9   : > { %1637 = vmatpush.msrb.mxu0 %v8172_v60  ;;  %v888_v60 = vpop.f32.mrf.mxu0 }
 0x2da   : > { %v8269_v51 = vpop.f32.mrf.mxu2 }
 0x2dc   : > { %6471 = vmatpush.xpose.msk.msra.mxu3 %vm1092_vm1, %v8211_v29  ;;  %v6540_v29 = vld [vmem:[%s11282_s5 + $0xf8] sm:$0xff] }
 0x2e0   : > { %6472 = vmatpush.xpose.msk.msra.mxu3 %vm1092_vm1, %v8205_v28 }
 0x2e1   : > { %v891_v7 = vpop.f32.mrf.mxu0 }
 0x2e2   : > { %v8275_v27 = vpop.f32.mrf.mxu2 }
 0x2e4   : > { %6473 = vmatpush.xpose.msk.msra.mxu3 %vm1092_vm1, %v8198_v41 }
 0x2e8   : > { %6474 = vmatpush.xpose.msk.msra.mxu3 %vm1092_vm1, %v8190_v25 }
 0x2e9   : > { %v894_v19 = vpop.f32.mrf.mxu0 }
 0x2ea   : > { %v8281_v8 = vpop.f32.mrf.mxu2 }
 0x2ec   : > { %6475 = vmatpush.xpose.msk.msra.mxu3 %vm1092_vm1, %v8178_v12 }
 0x2f0   : > { %6476 = vmatpush.xpose.msk.msra.mxu3 %vm1092_vm1, %v8169_v3 }
 0x2f1   : > { %v897_v53 = vpop.f32.mrf.mxu0 }
 0x2f2   : > { %v8287_v9 = vpop.f32.mrf.mxu2 }
 0x2f3   : > { %6477 = vmatmul.msk.f32.vlgmr.msra.gmra.mxu3 %vm1092_vm1, %v882_v36 }
 0x2f4   : > { %1872 = vmatpush.msrb.mxu3 %v6540_v29 }
 0x2f6   : > { %1873 = vmatpush.msrb.mxu3 %v6539_v61 }
 0x2f8   : > { %1874 = vmatpush.msrb.mxu3 %v6538_v18 }
 0x2f9   : > { %v900_v3 = vpop.f32.mrf.mxu0 }
 0x2fa   : > { %v8290_v16 = vpop.f32.mrf.mxu2  ;;  %1875 = vmatpush.msrb.mxu3 %v6537_v32 }
 0x2fb   : > { %6478 = vmatmul.msk.f32.gmra.mxu3 %vm1092_vm1, %v885_v6 }
 0x2fc   : > { %1876 = vmatpush.msrb.mxu3 %v6536_v40 }
 0x2fe   : > { %1877 = vmatpush.msrb.mxu3 %v6535_v42 }
 0x300   : > { %1878 = vmatpush.msrb.mxu3 %v6534_v54 }
 0x301   : > { %v903_v25 = vpop.f32.mrf.mxu0 }
 0x302   : > { %v8293_v15 = vpop.f32.mrf.mxu2  ;;  %1879 = vmatpush.msrb.mxu3 %v6533_v43 }
 0x303   : > { %6479 = vmatmul.msk.f32.gmra.mxu3 %vm1092_vm1, %v888_v60 }
 0x304   : > { %1880 = vmatpush.msrb.mxu3 %v6532_v46 }
 0x306   : > { %1881 = vmatpush.msrb.mxu3 %v6531_v49 }
 0x308   : > { %1882 = vmatpush.msrb.mxu3 %v6530_v55 }
 0x309   : > { %v906_v41 = vpop.f32.mrf.mxu0 }
 0x30a   : > { %v1834_v21 = vpop.f32.mrf.mxu2  ;;  %1883 = vmatpush.msrb.mxu3 %v6529_v56 }
 0x30b   : > { %6480 = vmatmul.msk.f32.gmra.mxu3 %vm1092_vm1, %v891_v7 }
 0x30c   : > { %1884 = vmatpush.msrb.mxu3 %v6528_v48 }
 0x30e   : > { %1885 = vmatpush.msrb.mxu3 %v6527_v26 }
 0x310   : > { %1886 = vmatpush.msrb.mxu3 %v6526_v59 }
 0x311   : > { %v909_v28 = vpop.f32.mrf.mxu0 }
 0x312   : > { %v1837_v12 = vpop.f32.mrf.mxu2  ;;  %1887 = vmatpush.msrb.mxu3 %v6525_v62 }
 0x313   : > { %6481 = vmatmul.msk.f32.gmra.mxu3 %vm1092_vm1, %v894_v19 }
 0x319   : > { %v912_v35 = vpop.f32.mrf.mxu0 }
 0x31a   : > { %v1840_v17 = vpop.f32.mrf.mxu2 }
 0x31b   : > { %6482 = vmatmul.msk.f32.gmra.mxu3 %vm1092_vm1, %v897_v53 }
 0x321   : > { %v915_v52 = vpop.f32.mrf.mxu0 }
 0x322   : > { %v1843_v44 = vpop.f32.mrf.mxu2 }
 0x323   : > { %6483 = vmatmul.msk.f32.gmra.mxu3 %vm1092_vm1, %v900_v3 }
 0x329   : > { %v918_v57 = vpop.f32.mrf.mxu0 }
 0x32a   : > { %v1846_v23 = vpop.f32.mrf.mxu2 }
 0x32b   : > { %6484 = vmatmul.msk.f32.gmra.mxu3 %vm1092_vm1, %v903_v25 }
 0x331   : > { %v921_v63 = vpop.f32.mrf.mxu0 }
 0x332   : > { %v1849_v14 = vpop.f32.mrf.mxu2 }
 0x333   : > { %6485 = vmatmul.msk.f32.gmra.mxu3 %vm1092_vm1, %v906_v41 }
 0x339   : > { %v924_v11 = vpop.f32.mrf.mxu0 }
 0x33a   : > { %v1852_v39 = vpop.f32.mrf.mxu2 }
 0x33b   : > { %6541 = vmatpush.xpose.msk.msra.mxu0 %vm1092_vm1, %v1852_v39  ;;  %6486 = vmatmul.msk.f32.gmra.mxu3 %vm1092_vm1, %v909_v28 }
 0x33f   : > { %6542 = vmatpush.xpose.msk.msra.mxu0 %vm1092_vm1, %v1849_v14 }
 0x341   : > { %v927_v36 = vpop.f32.mrf.mxu0 }
 0x343   : > { %6543 = vmatpush.xpose.msk.msra.mxu0 %vm1092_vm1, %v1846_v23  ;;  %6487 = vmatmul.msk.f32.gmra.mxu3 %vm1092_vm1, %v912_v35 }
 0x347   : > { %6544 = vmatpush.xpose.msk.msra.mxu0 %vm1092_vm1, %v1843_v44 }
 0x34b   : > { %6545 = vmatpush.xpose.msk.msra.mxu0 %vm1092_vm1, %v1840_v17  ;;  %6488 = vmatmul.msk.f32.gmra.mxu3 %vm1092_vm1, %v915_v52 }
 0x34f   : > { %6546 = vmatpush.xpose.msk.msra.mxu0 %vm1092_vm1, %v1837_v12 }
 0x353   : > { %6547 = vmatpush.xpose.msk.msra.mxu0 %vm1092_vm1, %v1834_v21  ;;  %6489 = vmatmul.msk.f32.gmra.mxu3 %vm1092_vm1, %v918_v57 }
 0x357   : > { %6548 = vmatpush.xpose.msk.msra.mxu0 %vm1092_vm1, %v8293_v15 }
 0x35b   : > { %6549 = vmatpush.xpose.msk.msra.mxu0 %vm1092_vm1, %v8290_v16  ;;  %6490 = vmatmul.msk.f32.gmra.mxu3 %vm1092_vm1, %v921_v63 }
 0x35f   : > { %6550 = vmatpush.xpose.msk.msra.mxu0 %vm1092_vm1, %v8287_v9 }
 0x363   : > { %6551 = vmatpush.xpose.msk.msra.mxu0 %vm1092_vm1, %v8281_v8  ;;  %6491 = vmatmul.msk.f32.gmra.mxu3 %vm1092_vm1, %v924_v11 }
 0x367   : > { %6552 = vmatpush.xpose.msk.msra.mxu0 %vm1092_vm1, %v8275_v27 }
 0x36b   : > { %6553 = vmatpush.xpose.msk.msra.mxu0 %vm1092_vm1, %v8269_v51  ;;  %6492 = vmatmul.msk.f32.gmra.mxu3 %vm1092_vm1, %v927_v36 }
 0x36f   : > { %6554 = vmatpush.xpose.msk.msra.mxu0 %vm1092_vm1, %v8259_v31 }
 0x373   : > { %6555 = vmatpush.xpose.msk.msra.mxu0 %vm1092_vm1, %v8253_v5  ;;  %1888 = vmatmul.f32.vlgmr.msrb.gmra.mxu3 %v7865_v47 }
 0x376   : > { %v1206_v6 = vpop.f32.mrf.mxu3 }
 0x377   : > { %6556 = vmatpush.xpose.msk.msra.mxu0 %vm1092_vm1, %v8249_v1  ;;  %v1254_v8 = vmul.f32 0.17677669, %v1206_v6 }
 0x379   : > { %1270 = vmax.xlane.f32.xlu2 %v1254_v8 }
 0x37b   : > { %1891 = vmatmul.f32.gmra.mxu3 %v7903_v10 }
 0x37e   : > { %v1209_v27 = vpop.f32.mrf.mxu3 }
 0x37f   : > { %v1255_v51 = vmul.f32 0.17677669, %v1209_v27 }
 0x381   : > { %1272 = vmax.xlane.f32.xlu0 %v1255_v51 }
 0x383   : > { %1894 = vmatmul.f32.gmra.mxu3 %v7934_v37 }
 0x386   : > { %v1212_v60 = vpop.f32.mrf.mxu3 }
 0x387   : > { %v1256_v31 = vmul.f32 0.17677669, %v1212_v60 }
 0x389   : > { %1274 = vmax.xlane.f32.xlu1 %v1256_v31 }
 0x38b   : > { %1897 = vmatmul.f32.gmra.mxu3 %v7946_v34 }
 0x38e   : > { %v1215_v5 = vpop.f32.mrf.mxu3 }
 0x38f   : > { %v1257_v9 = vmul.f32 0.17677669, %v1215_v5 }
 0x391   : > { %1276 = vmax.xlane.f32.xlu2 %v1257_v9 }
 0x393   : > { %1900 = vmatmul.f32.gmra.mxu3 %v7957_v45 }
 0x396   : > { %v1218_v1 = vpop.f32.mrf.mxu3 }
 0x397   : > { %v8387_v7 = vmul.f32 0.17677669, %v1218_v1 }
 0x399   : > { %1278 = vmax.xlane.f32.xlu0 %v8387_v7 }
 0x39b   : > { %1903 = vmatmul.f32.gmra.mxu3 %v7964_v2 }
 0x39e   : > { %v1221_v16 = vpop.f32.mrf.mxu3 }
 0x39f   : > { %v8391_v19 = vmul.f32 0.17677669, %v1221_v16 }
 0x3a1   : > { %1280 = vmax.xlane.f32.xlu1 %v8391_v19 }
 0x3a3   : > { %1906 = vmatmul.f32.gmra.mxu3 %v7972_v4 }
 0x3a6   : > { %v1224_v15 = vpop.f32.mrf.mxu3 }
 0x3a7   : > { %v8395_v53 = vmul.f32 0.17677669, %v1224_v15 }
 0x3a9   : > { %1282 = vmax.xlane.f32.xlu2 %v8395_v53 }
 0x3ab   : > { %1909 = vmatmul.f32.gmra.mxu3 %v8000_v58 }
 0x3ae   : > { %v1227_v21 = vpop.f32.mrf.mxu3 }
 0x3af   : > { %v8399_v12 = vmul.f32 0.17677669, %v1227_v21 }
 0x3b1   : > { %1284 = vmax.xlane.f32.xlu1 %v8399_v12 }
 0x3b3   : > { %1912 = vmatmul.f32.gmra.mxu3 %v8025_v22 }
 0x3b6   : > { %v1230_v3 = vpop.f32.mrf.mxu3 }
 0x3b7   : > { %v8423_v49 = vmul.f32 0.17677669, %v1230_v3 }
 0x3bb   : > { %1915 = vmatmul.f32.gmra.mxu3 %v8033_v38 }
 0x3be   : > { %v1233_v17 = vpop.f32.mrf.mxu3 }
 0x3bf   : > { %v8431_v57 = vmul.f32 0.17677669, %v1233_v17 }
 0x3c3   : > { %1918 = vmatmul.f32.gmra.mxu3 %v8042_v20 }
 0x3c6   : > { %v1236_v25 = vpop.f32.mrf.mxu3 }
 0x3c7   : > { %v8440_v6 = vmul.f32 0.17677669, %v1236_v25 }
 0x3cb   : > { %1921 = vmatmul.f32.gmra.mxu3 %v8051_v0 }
 0x3ce   : > { %v1239_v44 = vpop.f32.mrf.mxu3 }
 0x3cf   : > { %v8449_v5 = vmul.f32 0.17677669, %v1239_v44 }
 0x3d3   : > { %1924 = vmatmul.f32.gmra.mxu3 %v8058_v33 }
 0x3d6   : > { %v1242_v41 = vpop.f32.mrf.mxu3 }
 0x3d7   : > { %v8458_v21 = vmul.f32 0.17677669, %v1242_v41 }
 0x3db   : > { %1927 = vmatmul.f32.gmra.mxu3 %v8066_v30 }
 0x3de   : > { %v8408_v23 = vpop.f32.mrf.mxu3 }
 0x3e3   : > { %1930 = vmatmul.f32.gmra.mxu3 %v8176_v50 }
 0x3e6   : > { %v8411_v28 = vpop.f32.mrf.mxu3 }
 0x3eb   : > { %1933 = vmatmul.f32.gmra.mxu3 %v8188_v24 }
 0x3ec   : > { %v1271_v14 = vpop.xlane.xlu2 %1270 }
 0x3ed   : > { %v1302_v29 = vsub.f32 %v1254_v8, %v1271_v14  ;;  %v8468_v14 = vmul.f32 0.17677669, %v8408_v23 }
 0x3ee   : > { %v8414_v61 = vpop.f32.mrf.mxu3 }
 0x3ef   : > { %v1318_v18 = vmul.f32 1.442695, %v1302_v29  ;;  %v8484_v23 = vmul.f32 0.17677669, %v8414_v61 }
 0x3f1   : > { %6946 = vpow2.f32 %v1318_v18  ;;  %v8477_v18 = vmul.f32 0.17677669, %v8411_v28 }
 0x3f4   : > { %v1273_v32 = vpop.xlane.xlu0 %1272 }
 0x3f5   : > { %v1303_v35 = vsub.f32 %v1255_v51, %v1273_v32 }
 0x3f6   : > { %v8416_v39 = vpop.f32.mrf.mxu3 }
 0x3f7   : > { %v8418_v40 = vpop.eup %6946  ;;  %v1320_v42 = vmul.f32 1.442695, %v1303_v35 }
 0x3f8   : > { %1350 = vadd.xlane.f32.xlu0 %v8418_v40 }
 0x3f9   : > { %6948 = vpow2.f32 %v1320_v42 }
 0x3fc   : > { %v1275_v54 = vpop.xlane.xlu1 %1274 }
 0x3fd   : > { %v1304_v43 = vsub.f32 %v1256_v31, %v1275_v54 }
 0x3fe   : > { %v8421_v46 = vpop.f32.mrf.mxu3 }
 0x3ff   : > { %v8425_v52 = vpop.eup %6948  ;;  %v1322_v55 = vmul.f32 1.442695, %v1304_v43 }
 0x400   : > { %1352 = vadd.xlane.f32.xlu2 %v8425_v52  ;;  %1286 = vmax.xlane.f32.xlu0 %v8423_v49 }
 0x401   : > { %6950 = vpow2.f32 %v1322_v55 }
 0x404   : > { %v1277_v56 = vpop.xlane.xlu2 %1276 }
 0x405   : > { %v1305_v48 = vsub.f32 %v1257_v9, %v1277_v56 }
 0x406   : > { %v8429_v26 = vpop.f32.mrf.mxu3 }
 0x407   : > { %v8433_v59 = vpop.eup %6950  ;;  %v1324_v62 = vmul.f32 1.442695, %v1305_v48 }
 0x408   : > { %1354 = vadd.xlane.f32.xlu1 %v8433_v59  ;;  %1288 = vmax.xlane.f32.xlu2 %v8431_v57 }
 0x409   : > { %6952 = vpow2.f32 %v1324_v62 }
 0x40c   : > { %v1279_v63 = vpop.xlane.xlu0 %1278 }
 0x40d   : > { %v1306_v11 = vsub.f32 %v8387_v7, %v1279_v63 }
 0x40e   : > { %v8438_v36 = vpop.f32.mrf.mxu3 }
 0x40f   : > { %v8442_v8 = vpop.eup %6952  ;;  %v1326_v27 = vmul.f32 1.442695, %v1306_v11 }
 0x410   : > { %1356 = vadd.xlane.f32.xlu0 %v8442_v8  ;;  %1290 = vmax.xlane.f32.xlu1 %v8440_v6 }
 0x411   : > { %6954 = vpow2.f32 %v1326_v27 }
 0x414   : > { %v1281_v51 = vpop.xlane.xlu1 %1280 }
 0x415   : > { %v1307_v60 = vsub.f32 %v8391_v19, %v1281_v51 }
 0x416   : > { %v8447_v31 = vpop.f32.mrf.mxu3 }
 0x417   : > { %v8451_v9 = vpop.eup %6954  ;;  %v1328_v1 = vmul.f32 1.442695, %v1307_v60 }
 0x418   : > { %1358 = vadd.xlane.f32.xlu2 %v8451_v9  ;;  %1292 = vmax.xlane.f32.xlu0 %v8449_v5 }
 0x419   : > { %6956 = vpow2.f32 %v1328_v1 }
 0x41c   : > { %v1283_v7 = vpop.xlane.xlu2 %1282 }
 0x41d   : > { %v1308_v16 = vsub.f32 %v8395_v53, %v1283_v7 }
 0x41e   : > { %v8456_v15 = vpop.f32.mrf.mxu3 }
 0x41f   : > { %v8460_v19 = vpop.eup %6956  ;;  %v1330_v3 = vmul.f32 1.442695, %v1308_v16 }
 0x420   : > { %1360 = vadd.xlane.f32.xlu1 %v8460_v19  ;;  %1294 = vmax.xlane.f32.xlu2 %v8458_v21 }
 0x421   : > { %6958 = vpow2.f32 %v1330_v3 }
 0x424   : > { %v1285_v17 = vpop.xlane.xlu1 %1284 }
 0x425   : > { %v1309_v25 = vsub.f32 %v8399_v12, %v1285_v17 }
 0x426   : > { %v8465_v44 = vpop.f32.mrf.mxu3 }
 0x427   : > { %v8470_v53 = vpop.eup %6958  ;;  %v1332_v41 = vmul.f32 1.442695, %v1309_v25 }
 0x428   : > { %1362 = vadd.xlane.f32.xlu0 %v8470_v53  ;;  %1296 = vmax.xlane.f32.xlu1 %v8468_v14 }
 0x429   : > { %6960 = vpow2.f32 %v1332_v41 }
 0x42e   : > { %v8474_v29 = vpop.f32.mrf.mxu3 }
 0x42f   : > { %v8479_v32 = vpop.eup %6960 }
 0x430   : > { %1364 = vadd.xlane.f32.xlu2 %v8479_v32  ;;  %1298 = vmax.xlane.f32.xlu0 %v8477_v18 }
 0x436   : > { %v1913_v12 = vpop.f32.mrf.mxu3 }
 0x438   : > { %1300 = vmax.xlane.f32.xlu2 %v8484_v23 }
 0x43e   : > { %v1916_v35 = vpop.f32.mrf.mxu3 }
 0x446   : > { %v1919_v42 = vpop.f32.mrf.mxu3 }
 0x44e   : > { %v1922_v54 = vpop.f32.mrf.mxu3 }
 0x456   : > { %v1925_v43 = vpop.f32.mrf.mxu3 }
 0x45e   : > { %v1928_v55 = vpop.f32.mrf.mxu3 }
 0x466   : > { %v1931_v56 = vpop.f32.mrf.mxu3 }
 0x46b   : > { %v1351_v28 = vpop.xlane.xlu0 %1350 }
 0x46c   : > { %6962 = vrcp.f32 %v1351_v28  ;;  %v1393_v1 = vand.u32 2147483648, %v1351_v28  ;;  %v1391_v16 = vand.u32 2147483647, %v1351_v28  ;;  %vm1387_vm3 = vweird.f32 %v1351_v28 }
 0x46e   : > { %v1934_v48 = vpop.f32.mrf.mxu3  ;;  %v1394_v25 = vor.u32 1.1754944e-38, %v1393_v1  ;;  %vm1392_vm5 = vcmp.eq.f32.partialorder %v1391_v16, 8.507059e+37 }
 0x46f   : > { %2466 = vmatpush.msra.mxu1 %v1934_v48  ;;  %6816 = vmatpush.msra.mxu2 %v1934_v48 }
 0x471   : > { %2467 = vmatpush.msra.mxu1 %v1931_v56  ;;  %6817 = vmatpush.msra.mxu2 %v1931_v56 }
 0x472   : > { %v6963_v62 = vpop.eup %6962 }
 0x473   : > { %v1383_v63 = vmul.f32 %v6963_v62, %v1351_v28  ;;  %v1353_v11 = vpop.xlane.xlu2 %1352  ;;  %v1287_v61 = vpop.xlane.xlu0 %1286  ;;  %2468 = vmatpush.msra.mxu1 %v1928_v55  ;;  %6818 = vmatpush.msra.mxu2 %v1928_v55  ;;  %vm1388_vm2 = vweird.f32 %v6963_v62 }
 0x474   : > { %6964 = vrcp.f32 %v1353_v11  ;;  %v1310_v27 = vsub.f32 %v8423_v49, %v1287_v61  ;;  %vm1389_vm4 = vmor %vm1387_vm3, %vm1388_vm2  ;;  %v1408_v61 = vand.u32 2147483648, %v1353_v11  ;;  %vm1402_vm7 = vweird.f32 %v1353_v11 }
 0x475   : > { %v1384_v51 = vsub.f32 1.0, %v1383_v63  ;;  %2469 = vmatpush.msra.mxu1 %v1925_v43  ;;  %6819 = vmatpush.msra.mxu2 %v1925_v43 }
 0x476   : > { %v1334_v60 = vmul.f32 1.442695, %v1310_v27 }
 0x477   : > { %2470 = vmatpush.msra.mxu1 %v1922_v54  ;;  %6820 = vmatpush.msra.mxu2 %v1922_v54  ;;  %v1385_v7 = vmul.f32 %v6963_v62, %v1384_v51 }
 0x478   : > { %6966 = vpow2.f32 %v1334_v60 }
 0x479   : > { %2471 = vmatpush.msra.mxu1 %v1919_v42  ;;  %6821 = vmatpush.msra.mxu2 %v1919_v42  ;;  %v1386_v3 = vadd.f32 %v6963_v62, %v1385_v7 }
 0x47a   : > { %v6965_v17 = vpop.eup %6964 }
 0x47b   : > { %v1398_v41 = vmul.f32 %v6965_v17, %v1353_v11  ;;  %v8488_v49 = vpop.xlane.xlu1 %1354  ;;  %v1289_v55 = vpop.xlane.xlu2 %1288  ;;  %2472 = vmatpush.msra.mxu1 %v1916_v35  ;;  %6822 = vmatpush.msra.mxu2 %v1916_v35  ;;  %v1390_v43 = vsel %vm1389_vm4, %v6963_v62, %v1386_v3  ;;  %vm1403_vm6 = vweird.f32 %v6965_v17  ;;  %v1406_v62 = vand.u32 2147483647, %v1353_v11 }
 0x47c   : > { %6968 = vrcp.f32 %v8488_v49  ;;  %v1311_v54 = vsub.f32 %v8431_v57, %v1289_v55  ;;  %v1395_v56 = vsel %vm1392_vm5, %v1394_v25, %v1390_v43  ;;  %vm1404_vm8 = vmor %vm1402_vm7, %vm1403_vm6  ;;  %vm1417_vm11 = vweird.f32 %v8488_v49 }
 0x47d   : > { %v1399_v48 = vsub.f32 1.0, %v1398_v41  ;;  %2473 = vmatpush.msra.mxu1 %v1913_v12  ;;  %6823 = vmatpush.msra.mxu2 %v1913_v12  ;;  %v1396_v42 = vmul.f32 %v8418_v40, %v1395_v56  ;;  %v1409_v40 = vor.u32 1.1754944e-38, %v1408_v61  ;;  %vm1407_vm9 = vcmp.eq.f32.partialorder %v1406_v62, 8.507059e+37 }
 0x47e   : > { %v8493_v28 = vpop.eup %6966  ;;  %v1336_v63 = vmul.f32 1.442695, %v1311_v54 }
 0x47f   : > { %1366 = vadd.xlane.f32.xlu1 %v8493_v28  ;;  %1638 = vmatmul.f32.vlgmr.msrb.gmra.mxu0 %v1396_v42  ;;  %v1400_v35 = vmul.f32 %v6965_v17, %v1399_v48 }
 0x480   : > { %6970 = vpow2.f32 %v1336_v63  ;;  %2474 = vmatpush.msra.mxu1 %v8474_v29  ;;  %6824 = vmatpush.msra.mxu2 %v8474_v29 }
 0x481   : > { %v1401_v57 = vadd.f32 %v6965_v17, %v1400_v35 }
 0x482   : > { %v6969_v12 = vpop.eup %6968  ;;  %2475 = vmatpush.msra.mxu1 %v8465_v44  ;;  %6825 = vmatpush.msra.mxu2 %v8465_v44 }
 0x483   : > { %v1413_v27 = vmul.f32 %v6969_v12, %v8488_v49  ;;  %v8501_v51 = vpop.xlane.xlu0 %1356  ;;  %v1291_v60 = vpop.xlane.xlu1 %1290  ;;  %v1405_v1 = vsel %vm1404_vm8, %v6965_v17, %v1401_v57  ;;  %v1423_v17 = vand.u32 2147483648, %v8488_v49  ;;  %vm1418_vm10 = vweird.f32 %v6969_v12 }
 0x484   : > { %6972 = vrcp.f32 %v8501_v51  ;;  %v1312_v29 = vsub.f32 %v8440_v6, %v1291_v60  ;;  %2476 = vmatpush.msra.mxu1 %v8456_v15  ;;  %6826 = vmatpush.msra.mxu2 %v8456_v15  ;;  %v1410_v11 = vsel %vm1407_vm9, %v1409_v40, %v1405_v1  ;;  %v1421_v15 = vand.u32 2147483647, %v8488_v49  ;;  %vm1419_vm12 = vmor %vm1417_vm11, %vm1418_vm10 }
 0x485   : > { %v1414_v7 = vsub.f32 1.0, %v1413_v27  ;;  %v1411_v44 = vmul.f32 %v8425_v52, %v1410_v11  ;;  %v1438_v63 = vand.u32 2147483648, %v8501_v51  ;;  %vm1432_vm15 = vweird.f32 %v8501_v51 }
 0x486   : > { %v8508_v16 = vpop.eup %6970  ;;  %v1338_v3 = vmul.f32 1.442695, %v1312_v29  ;;  %2477 = vmatpush.msra.mxu1 %v8447_v31  ;;  %6827 = vmatpush.msra.mxu2 %v8447_v31  ;;  %v1424_v31 = vor.u32 1.1754944e-38, %v1423_v17  ;;  %vm1422_vm13 = vcmp.eq.f32.partialorder %v1421_v15, 8.507059e+37 }
 0x487   : > { %1641 = vmatmul.f32.gmra.mxu0 %v1411_v44  ;;  %1368 = vadd.xlane.f32.xlu0 %v8508_v16  ;;  %v1415_v6 = vmul.f32 %v6969_v12, %v1414_v7  ;;  %v1439_v35 = vor.u32 1.1754944e-38, %v1438_v63 }
 0x488   : > { %6974 = vpow2.f32 %v1338_v3  ;;  %2478 = vmatpush.msra.mxu1 %v8438_v36  ;;  %6828 = vmatpush.msra.mxu2 %v8438_v36 }
 0x489   : > { %v1416_v52 = vadd.f32 %v6969_v12, %v1415_v6 }
 0x48a   : > { %v6973_v25 = vpop.eup %6972  ;;  %2479 = vmatpush.msra.mxu1 %v8429_v26  ;;  %6829 = vmatpush.msra.mxu2 %v8429_v26 }
 0x48b   : > { %v1428_v41 = vmul.f32 %v6973_v25, %v8501_v51  ;;  %v1359_v55 = vpop.xlane.xlu2 %1358  ;;  %v1293_v43 = vpop.xlane.xlu0 %1292  ;;  %v1420_v54 = vsel %vm1419_vm12, %v6969_v12, %v1416_v52  ;;  %vm1433_vm14 = vweird.f32 %v6973_v25 }
 0x48c   : > { %6976 = vrcp.f32 %v1359_v55  ;;  %v1313_v56 = vsub.f32 %v8449_v5, %v1293_v43  ;;  %2480 = vmatpush.msra.mxu1 %v8421_v46  ;;  %6830 = vmatpush.msra.mxu2 %v8421_v46  ;;  %v1425_v36 = vsel %vm1422_vm13, %v1424_v31, %v1420_v54  ;;  %v1436_v46 = vand.u32 2147483647, %v8501_v51  ;;  %vm1434_vm0 = vmor %vm1432_vm15, %vm1433_vm14 }
 0x48d   : > { %v1429_v49 = vsub.f32 1.0, %v1428_v41  ;;  %v1426_v48 = vmul.f32 %v8433_v59, %v1425_v36  ;;  %v1453_v7 = vand.u32 2147483648, %v1359_v55  ;;  %v1451_v44 = vand.u32 2147483647, %v1359_v55 }
 0x48e   : > { %v8525_v26 = vpop.eup %6974  ;;  %v1340_v42 = vmul.f32 1.442695, %v1313_v56  ;;  %2481 = vmatpush.msra.mxu1 %v8416_v39  ;;  %6831 = vmatpush.msra.mxu2 %v8416_v39  ;;  %vm1437_vm2 = vcmp.eq.f32.partialorder %v1436_v46, 8.507059e+37  ;;  %vm1447_vm4 = vweird.f32 %v1359_v55 }
 0x48f   : > { %v1430_v61 = vmul.f32 %v6973_v25, %v1429_v49  ;;  %1370 = vadd.xlane.f32.xlu1 %v8525_v26  ;;  %1644 = vmatmul.f32.gmra.mxu0 %v1426_v48  ;;  %vm1452_vm6 = vcmp.eq.f32.partialorder %v1451_v44, 8.507059e+37 }
 0x490   : > { %6978 = vpow2.f32 %v1340_v42 }
 0x491   : > { %v1431_v5 = vadd.f32 %v6973_v25, %v1430_v61 }
 0x492   : > { %v6977_v59 = vpop.eup %6976 }
 0x493   : > { %v1443_v62 = vmul.f32 %v6977_v59, %v1359_v55  ;;  %v1361_v57 = vpop.xlane.xlu1 %1360  ;;  %v1295_v12 = vpop.xlane.xlu2 %1294  ;;  %v1435_v39 = vsel %vm1434_vm0, %v6973_v25, %v1431_v5  ;;  %vm1448_vm3 = vweird.f32 %v6977_v59 }
 0x494   : > { %6980 = vrcp.f32 %v1361_v57  ;;  %v1314_v40 = vsub.f32 %v8458_v21, %v1295_v12  ;;  %v1440_v27 = vsel %vm1437_vm2, %v1439_v35, %v1435_v39  ;;  %vm1449_vm5 = vmor %vm1447_vm4, %vm1448_vm3  ;;  %v1454_v21 = vor.u32 1.1754944e-38, %v1453_v7 }
 0x495   : > { %v1444_v60 = vsub.f32 1.0, %v1443_v62  ;;  %v1441_v1 = vmul.f32 %v8442_v8, %v1440_v27  ;;  %v1468_v36 = vand.u32 2147483648, %v1361_v57  ;;  %v1466_v49 = vand.u32 2147483647, %v1361_v57 }
 0x496   : > { %v8535_v29 = vpop.eup %6978  ;;  %v1342_v11 = vmul.f32 1.442695, %v1314_v40  ;;  %vm1462_vm8 = vweird.f32 %v1361_v57 }
 0x497   : > { %v1445_v51 = vmul.f32 %v6977_v59, %v1444_v60  ;;  %1647 = vmatmul.f32.gmra.mxu0 %v1441_v1  ;;  %1372 = vadd.xlane.f32.xlu2 %v8535_v29  ;;  %vm1467_vm10 = vcmp.eq.f32.partialorder %v1466_v49, 8.507059e+37 }
 0x498   : > { %6982 = vpow2.f32 %v1342_v11 }
 0x499   : > { %v1446_v3 = vadd.f32 %v6977_v59, %v1445_v51 }
 0x49a   : > { %v6981_v17 = vpop.eup %6980 }
 0x49b   : > { %v1458_v6 = vmul.f32 %v6981_v17, %v1361_v57  ;;  %v1363_v15 = vpop.xlane.xlu0 %1362  ;;  %v1297_v52 = vpop.xlane.xlu1 %1296  ;;  %v1450_v8 = vsel %vm1449_vm5, %v6977_v59, %v1446_v3  ;;  %vm1463_vm7 = vweird.f32 %v6981_v17 }
 0x49c   : > { %6984 = vrcp.f32 %v1363_v15  ;;  %v1315_v25 = vsub.f32 %v8468_v14, %v1297_v52  ;;  %v1455_v31 = vsel %vm1452_vm6, %v1454_v21, %v1450_v8  ;;  %vm1464_vm9 = vmor %vm1462_vm8, %vm1463_vm7  ;;  %v1469_v14 = vor.u32 1.1754944e-38, %v1468_v36  ;;  %v1689_v36 = vld [vmem:[%s11283_s6 + $0x10] sm:$0xff] }
 0x49d   : > { %v1459_v41 = vsub.f32 1.0, %v1458_v6  ;;  %v1456_v43 = vmul.f32 %v8451_v9, %v1455_v31  ;;  %v1483_v40 = vand.u32 2147483648, %v1363_v15  ;;  %v1481_v27 = vand.u32 2147483647, %v1363_v15 }
 0x49e   : > { %v8540_v54 = vpop.eup %6982  ;;  %v1344_v56 = vmul.f32 1.442695, %v1315_v25  ;;  %vm1477_vm12 = vweird.f32 %v1363_v15 }
 0x49f   : > { %v1460_v55 = vmul.f32 %v6981_v17, %v1459_v41  ;;  %1650 = vmatmul.f32.gmra.mxu0 %v1456_v43  ;;  %1374 = vadd.xlane.f32.xlu0 %v8540_v54  ;;  %vm1482_vm14 = vcmp.eq.f32.partialorder %v1481_v27, 8.507059e+37 }
 0x4a0   : > { %6986 = vpow2.f32 %v1344_v56  ;;  %v1690_v56 = vld [vmem:[%s11283_s6 + $0x18] sm:$0xff] }
 0x4a1   : > { %v1461_v48 = vadd.f32 %v6981_v17, %v1460_v55  ;;  %2709 = vmatpush.msra.mxu3 %v1690_v56  ;;  %v1688_v55 = vld [vmem:[%s11283_s6 + $0x8] sm:$0xff] }
 0x4a2   : > { %v6985_v42 = vpop.eup %6984 }
 0x4a3   : > { %v1473_v63 = vmul.f32 %v6985_v42, %v1363_v15  ;;  %v1365_v61 = vpop.xlane.xlu2 %1364  ;;  %v1299_v46 = vpop.xlane.xlu0 %1298  ;;  %v1465_v9 = vsel %vm1464_vm9, %v6981_v17, %v1461_v48  ;;  %vm1478_vm11 = vweird.f32 %v6985_v42  ;;  %2710 = vmatpush.msra.mxu3 %v1689_v36 }
 0x4a4   : > { %6988 = vrcp.f32 %v1365_v61  ;;  %v1316_v5 = vsub.f32 %v8477_v18, %v1299_v46  ;;  %v1470_v59 = vsel %vm1467_vm10, %v1469_v14, %v1465_v9  ;;  %vm1479_vm13 = vmor %vm1477_vm12, %vm1478_vm11  ;;  %v1484_v18 = vor.u32 1.1754944e-38, %v1483_v40 }
 0x4a5   : > { %v1474_v35 = vsub.f32 1.0, %v1473_v63  ;;  %v1471_v62 = vmul.f32 %v8460_v19, %v1470_v59  ;;  %v1498_v52 = vand.u32 2147483648, %v1365_v61  ;;  %v1496_v15 = vand.u32 2147483647, %v1365_v61  ;;  %2711 = vmatpush.msra.mxu3 %v1688_v55 }
 0x4a6   : > { %v8545_v12 = vpop.eup %6986  ;;  %v1346_v39 = vmul.f32 1.442695, %v1316_v5  ;;  %vm1492_vm0 = vweird.f32 %v1365_v61 }
 0x4a7   : > { %v1475_v57 = vmul.f32 %v6985_v42, %v1474_v35  ;;  %1376 = vadd.xlane.f32.xlu1 %v8545_v12  ;;  %1653 = vmatmul.f32.gmra.mxu0 %v1471_v62  ;;  %v1499_v31 = vor.u32 1.1754944e-38, %v1498_v52  ;;  %vm1497_vm3 = vcmp.eq.f32.partialorder %v1496_v15, 8.507059e+37 }
 0x4a8   : > { %6990 = vpow2.f32 %v1346_v39 }
 0x4a9   : > { %v1476_v60 = vadd.f32 %v6985_v42, %v1475_v57 }
 0x4aa   : > { %v6989_v1 = vpop.eup %6988 }
 0x4ab   : > { %v1488_v11 = vmul.f32 %v6989_v1, %v1365_v61  ;;  %v1301_v7 = vpop.xlane.xlu2 %1300  ;;  %v1480_v51 = vsel %vm1479_vm13, %v6985_v42, %v1476_v60  ;;  %vm1493_vm15 = vweird.f32 %v6989_v1 }
 0x4ac   : > { %v1317_v19 = vsub.f32 %v8484_v23, %v1301_v7  ;;  %v1485_v44 = vsel %vm1482_vm14, %v1484_v18, %v1480_v51  ;;  %vm1494_vm2 = vmor %vm1492_vm0, %vm1493_vm15 }
 0x4ad   : > { %v1489_v3 = vsub.f32 1.0, %v1488_v11  ;;  %v1486_v17 = vmul.f32 %v8470_v53, %v1485_v44 }
 0x4ae   : > { %v8550_v21 = vpop.eup %6990  ;;  %v1348_v6 = vmul.f32 1.442695, %v1317_v19 }
 0x4af   : > { %v1490_v8 = vmul.f32 %v6989_v1, %v1489_v3  ;;  %1656 = vmatmul.f32.gmra.mxu0 %v1486_v17  ;;  %1378 = vadd.xlane.f32.xlu2 %v8550_v21 }
 0x4b0   : > { %6992 = vpow2.f32 %v1348_v6 }
 0x4b1   : > { %v1491_v25 = vadd.f32 %v6989_v1, %v1490_v8 }
 0x4b3   : > { %v1495_v23 = vsel %vm1494_vm2, %v6989_v1, %v1491_v25 }
 0x4b4   : > { %v1500_v41 = vsel %vm1497_vm3, %v1499_v31, %v1495_v23 }
 0x4b5   : > { %v1501_v53 = vmul.f32 %v8479_v32, %v1500_v41  ;;  %v1687_v32 = vld [vmem:[%s11283_s6] sm:$0xff] }
 0x4b6   : > { %v8554_v43 = vpop.eup %6992  ;;  %2712 = vmatpush.msra.mxu3 %v1687_v32 }
 0x4b7   : > { %1659 = vmatmul.f32.gmra.mxu0 %v1501_v53  ;;  %1380 = vadd.xlane.f32.xlu0 %v8554_v43 }
 0x4f2   : > { %v1367_v49 = vpop.xlane.xlu1 %1366 }
 0x4f3   : > { %6994 = vrcp.f32 %v1367_v49  ;;  %v1513_v46 = vand.u32 2147483648, %v1367_v49  ;;  %v1511_v5 = vand.u32 2147483647, %v1367_v49  ;;  %vm1507_vm5 = vweird.f32 %v1367_v49 }
 0x4f5   : > { %v1514_v62 = vor.u32 1.1754944e-38, %v1513_v46  ;;  %vm1512_vm7 = vcmp.eq.f32.partialorder %v1511_v5, 8.507059e+37 }
 0x4f9   : > { %v6995_v48 = vpop.eup %6994 }
 0x4fa   : > { %v1503_v42 = vmul.f32 %v6995_v48, %v1367_v49  ;;  %v1369_v14 = vpop.xlane.xlu0 %1368  ;;  %vm1508_vm4 = vweird.f32 %v6995_v48 }
 0x4fb   : > { %6996 = vrcp.f32 %v1369_v14  ;;  %vm1509_vm6 = vmor %vm1507_vm5, %vm1508_vm4  ;;  %v1528_v11 = vand.u32 2147483648, %v1369_v14  ;;  %v1526_v51 = vand.u32 2147483647, %v1369_v14  ;;  %vm1522_vm9 = vweird.f32 %v1369_v14 }
 0x4fc   : > { %v1504_v63 = vsub.f32 1.0, %v1503_v42  ;;  %v1639_v61 = vpop.f32.mrf.mxu0 }
 0x4fd   : > { %6593 = vmatmul.msk.f32.vlgmr.msra.gmra.mxu3 %vm1092_vm1, %v1639_v61  ;;  %v1529_v3 = vor.u32 1.1754944e-38, %v1528_v11  ;;  %vm1527_vm11 = vcmp.eq.f32.partialorder %v1526_v51, 8.507059e+37 }
 0x4fe   : > { %v1505_v9 = vmul.f32 %v6995_v48, %v1504_v63 }
 0x500   : > { %v1506_v59 = vadd.f32 %v6995_v48, %v1505_v9 }
 0x501   : > { %v6997_v35 = vpop.eup %6996 }
 0x502   : > { %v1518_v39 = vmul.f32 %v6997_v35, %v1369_v14  ;;  %v1371_v40 = vpop.xlane.xlu1 %1370  ;;  %v1510_v57 = vsel %vm1509_vm6, %v6995_v48, %v1506_v59  ;;  %vm1523_vm8 = vweird.f32 %v6997_v35 }
 0x503   : > { %6998 = vrcp.f32 %v1371_v40  ;;  %v1515_v27 = vsel %vm1512_vm7, %v1514_v62, %v1510_v57  ;;  %vm1524_vm10 = vmor %vm1522_vm9, %vm1523_vm8  ;;  %v1543_v31 = vand.u32 2147483648, %v1371_v40  ;;  %v1541_v41 = vand.u32 2147483647, %v1371_v40 }
 0x504   : > { %v1519_v60 = vsub.f32 1.0, %v1518_v39  ;;  %v1642_v1 = vpop.f32.mrf.mxu0  ;;  %v1516_v18 = vmul.f32 %v8493_v28, %v1515_v27  ;;  %vm1537_vm13 = vweird.f32 %v1371_v40 }
 0x505   : > { %6594 = vmatmul.msk.f32.gmra.mxu3 %vm1092_vm1, %v1642_v1  ;;  %v1544_v36 = vor.u32 1.1754944e-38, %v1543_v31  ;;  %vm1542_vm15 = vcmp.eq.f32.partialorder %v1541_v41, 8.507059e+37 }
 0x506   : > { %v1520_v7 = vmul.f32 %v6997_v35, %v1519_v60  ;;  %1662 = vmatmul.f32.gmra.mxu0 %v1516_v18 }
 0x508   : > { %v1521_v19 = vadd.f32 %v6997_v35, %v1520_v7 }
 0x509   : > { %v6999_v44 = vpop.eup %6998 }
 0x50a   : > { %v1533_v17 = vmul.f32 %v6999_v44, %v1371_v40  ;;  %v1373_v6 = vpop.xlane.xlu2 %1372  ;;  %v1525_v52 = vsel %vm1524_vm10, %v6997_v35, %v1521_v19  ;;  %vm1538_vm12 = vweird.f32 %v6999_v44 }
 0x50b   : > { %7000 = vrcp.f32 %v1373_v6  ;;  %v1530_v8 = vsel %vm1527_vm11, %v1529_v3, %v1525_v52  ;;  %vm1539_vm14 = vmor %vm1537_vm13, %vm1538_vm12  ;;  %v1558_v63 = vand.u32 2147483648, %v1373_v6  ;;  %v1556_v46 = vand.u32 2147483647, %v1373_v6 }
 0x50c   : > { %v1534_v15 = vsub.f32 1.0, %v1533_v17  ;;  %v1645_v28 = vpop.f32.mrf.mxu0  ;;  %v1531_v25 = vmul.f32 %v8508_v16, %v1530_v8  ;;  %vm1552_vm2 = vweird.f32 %v1373_v6 }
 0x50d   : > { %6595 = vmatmul.msk.f32.gmra.mxu3 %vm1092_vm1, %v1645_v28  ;;  %v1559_v59 = vor.u32 1.1754944e-38, %v1558_v63  ;;  %vm1557_vm4 = vcmp.eq.f32.partialorder %v1556_v46, 8.507059e+37 }
 0x50e   : > { %v1535_v23 = vmul.f32 %v6999_v44, %v1534_v15  ;;  %1665 = vmatmul.f32.gmra.mxu0 %v1531_v25  ;;  %v1725_v25 = vpop.f32.mrf.mxu1 }
 0x510   : > { %v1536_v53 = vadd.f32 %v6999_v44, %v1535_v23 }
 0x511   : > { %v7001_v56 = vpop.eup %7000 }
 0x512   : > { %v1548_v55 = vmul.f32 %v7001_v56, %v1373_v6  ;;  %v1375_v32 = vpop.xlane.xlu0 %1374  ;;  %v1540_v49 = vsel %vm1539_vm14, %v6999_v44, %v1536_v53  ;;  %vm1553_vm0 = vweird.f32 %v7001_v56 }
 0x513   : > { %7002 = vrcp.f32 %v1375_v32  ;;  %v1545_v48 = vsel %vm1542_vm15, %v1544_v36, %v1540_v49  ;;  %vm1554_vm3 = vmor %vm1552_vm2, %vm1553_vm0  ;;  %v1573_v60 = vand.u32 2147483648, %v1375_v32  ;;  %v1571_v18 = vand.u32 2147483647, %v1375_v32 }
 0x514   : > { %v1549_v42 = vsub.f32 1.0, %v1548_v55  ;;  %v1648_v16 = vpop.f32.mrf.mxu0  ;;  %v1546_v14 = vmul.f32 %v8525_v26, %v1545_v48  ;;  %vm1567_vm6 = vweird.f32 %v1375_v32 }
 0x515   : > { %6596 = vmatmul.msk.f32.gmra.mxu3 %vm1092_vm1, %v1648_v16  ;;  %v1574_v51 = vor.u32 1.1754944e-38, %v1573_v60  ;;  %vm1572_vm8 = vcmp.eq.f32.partialorder %v1571_v18, 8.507059e+37 }
 0x516   : > { %v1550_v61 = vmul.f32 %v7001_v56, %v1549_v42  ;;  %1668 = vmatmul.f32.gmra.mxu0 %v1546_v14 }
 0x518   : > { %v1551_v9 = vadd.f32 %v7001_v56, %v1550_v61  ;;  %v1728_v61 = vpop.f32.mrf.mxu1 }
 0x519   : > { %v7003_v5 = vpop.eup %7002 }
 0x51a   : > { %v1563_v35 = vmul.f32 %v7003_v5, %v1375_v32  ;;  %v1377_v62 = vpop.xlane.xlu1 %1376  ;;  %v1555_v39 = vsel %vm1554_vm3, %v7001_v56, %v1551_v9  ;;  %vm1568_vm5 = vweird.f32 %v7003_v5 }
 0x51b   : > { %7004 = vrcp.f32 %v1377_v62  ;;  %v1560_v40 = vsel %vm1557_vm4, %v1559_v59, %v1555_v39  ;;  %vm1569_vm7 = vmor %vm1567_vm6, %vm1568_vm5  ;;  %v1588_v8 = vand.u32 2147483648, %v1377_v62  ;;  %v1586_v28 = vand.u32 2147483647, %v1377_v62 }
 0x51c   : > { %v1564_v57 = vsub.f32 1.0, %v1563_v35  ;;  %v1651_v26 = vpop.f32.mrf.mxu0  ;;  %v1561_v27 = vmul.f32 %v8535_v29, %v1560_v40  ;;  %vm1582_vm10 = vweird.f32 %v1377_v62 }
 0x51d   : > { %6597 = vmatmul.msk.f32.gmra.mxu3 %vm1092_vm1, %v1651_v26  ;;  %v1589_v41 = vor.u32 1.1754944e-38, %v1588_v8  ;;  %vm1587_vm12 = vcmp.eq.f32.partialorder %v1586_v28, 8.507059e+37  ;;  %v6621_v28 = vld [vmem:[%s11280_s3 + $0x160] sm:$0xff] }
 0x51e   : > { %v1565_v1 = vmul.f32 %v7003_v5, %v1564_v57  ;;  %1671 = vmatmul.f32.gmra.mxu0 %v1561_v27 }
 0x520   : > { %v1566_v11 = vadd.f32 %v7003_v5, %v1565_v1  ;;  %v1731_v1 = vpop.f32.mrf.mxu1 }
 0x521   : > { %v7005_v7 = vpop.eup %7004 }
 0x522   : > { %v1578_v19 = vmul.f32 %v7005_v7, %v1377_v62  ;;  %v1379_v44 = vpop.xlane.xlu2 %1378  ;;  %v1570_v3 = vsel %vm1569_vm7, %v7003_v5, %v1566_v11  ;;  %vm1583_vm9 = vweird.f32 %v7005_v7 }
 0x523   : > { %7006 = vrcp.f32 %v1379_v44  ;;  %v1575_v17 = vsel %vm1572_vm8, %v1574_v51, %v1570_v3  ;;  %vm1584_vm11 = vmor %vm1582_vm10, %vm1583_vm9  ;;  %v1603_v48 = vand.u32 2147483648, %v1379_v44  ;;  %v1601_v16 = vand.u32 2147483647, %v1379_v44 }
 0x524   : > { %v1579_v6 = vsub.f32 1.0, %v1578_v19  ;;  %v1654_v29 = vpop.f32.mrf.mxu0  ;;  %v1576_v52 = vmul.f32 %v8540_v54, %v1575_v17  ;;  %vm1597_vm14 = vweird.f32 %v1379_v44 }
 0x525   : > { %6598 = vmatmul.msk.f32.gmra.mxu3 %vm1092_vm1, %v1654_v29  ;;  %v1604_v46 = vor.u32 1.1754944e-38, %v1603_v48  ;;  %vm1602_vm0 = vcmp.eq.f32.partialorder %v1601_v16, 8.507059e+37  ;;  %v6623_v29 = vld [vmem:[%s11280_s3 + $0x170] sm:$0xff]  ;;  %v6612_v48 = vld [vmem:[%s11280_s3 + $0x118] sm:$0xff] }
 0x526   : > { %v1580_v15 = vmul.f32 %v7005_v7, %v1579_v6  ;;  %1674 = vmatmul.f32.gmra.mxu0 %v1576_v52  ;;  %v6624_v6 = vld [vmem:[%s11280_s3 + $0x178] sm:$0xff]  ;;  %v6611_v16 = vld [vmem:[%s11280_s3 + $0x110] sm:$0xff] }
 0x527   : > { %2779 = vmatpush.msrb.mxu0 %v6624_v6 }
 0x528   : > { %v1581_v31 = vadd.f32 %v7005_v7, %v1580_v15  ;;  %v6622_v15 = vld [vmem:[%s11280_s3 + $0x168] sm:$0xff] }
 0x529   : > { %v7007_v23 = vpop.eup %7006  ;;  %2780 = vmatpush.msrb.mxu0 %v6623_v29 }
 0x52a   : > { %v1593_v53 = vmul.f32 %v7007_v23, %v1379_v44  ;;  %v1381_v56 = vpop.xlane.xlu0 %1380  ;;  %v1585_v36 = vsel %vm1584_vm11, %v7005_v7, %v1581_v31  ;;  %vm1598_vm13 = vweird.f32 %v7007_v23  ;;  %v1734_v7 = vpop.f32.mrf.mxu1  ;;  %v6619_v31 = vld [vmem:[%s11280_s3 + $0x150] sm:$0xff] }
 0x52b   : > { %7008 = vrcp.f32 %v1381_v56  ;;  %v1590_v55 = vsel %vm1587_vm12, %v1589_v41, %v1585_v36  ;;  %vm1599_vm15 = vmor %vm1597_vm14, %vm1598_vm13  ;;  %v1618_v39 = vand.u32 2147483648, %v1381_v56  ;;  %v1616_v57 = vand.u32 2147483647, %v1381_v56  ;;  %2781 = vmatpush.msrb.mxu0 %v6622_v15  ;;  %v6618_v41 = vld [vmem:[%s11280_s3 + $0x148] sm:$0xff]  ;;  %v6616_v36 = vld [vmem:[%s11280_s3 + $0x138] sm:$0xff] }
 0x52c   : > { %v1594_v54 = vsub.f32 1.0, %v1593_v53  ;;  %v1657_v32 = vpop.f32.mrf.mxu0  ;;  %v1591_v49 = vmul.f32 %v8545_v12, %v1590_v55  ;;  %vm1612_vm3 = vweird.f32 %v1381_v56  ;;  %v6617_v53 = vld [vmem:[%s11280_s3 + $0x140] sm:$0xff]  ;;  %v6615_v55 = vld [vmem:[%s11280_s3 + $0x130] sm:$0xff] }
 0x52d   : > { %6599 = vmatmul.msk.f32.gmra.mxu3 %vm1092_vm1, %v1657_v32  ;;  %v1619_v27 = vor.u32 1.1754944e-38, %v1618_v39  ;;  %vm1617_vm5 = vcmp.eq.f32.partialorder %v1616_v57, 8.507059e+37  ;;  %2782 = vmatpush.msrb.mxu0 %v6621_v28  ;;  %v6614_v32 = vld [vmem:[%s11280_s3 + $0x128] sm:$0xff] }
 0x52e   : > { %v1595_v42 = vmul.f32 %v7007_v23, %v1594_v54  ;;  %1677 = vmatmul.f32.gmra.mxu0 %v1591_v49  ;;  %v6613_v49 = vld [vmem:[%s11280_s3 + $0x120] sm:$0xff] }
 0x530   : > { %v1596_v14 = vadd.f32 %v7007_v23, %v1595_v42 }
 0x531   : > { %v7009_v63 = vpop.eup %7008 }
 0x532   : > { %v1608_v9 = vmul.f32 %v7009_v63, %v1381_v56  ;;  %v1600_v5 = vsel %vm1599_vm15, %v7007_v23, %v1596_v14  ;;  %vm1613_vm2 = vweird.f32 %v7009_v63 }
 0x533   : > { %v1605_v59 = vsel %vm1602_vm0, %v1604_v46, %v1600_v5  ;;  %vm1614_vm4 = vmor %vm1612_vm3, %vm1613_vm2 }
 0x534   : > { %v1609_v35 = vsub.f32 1.0, %v1608_v9  ;;  %v1660_v62 = vpop.f32.mrf.mxu0  ;;  %v1606_v12 = vmul.f32 %v8550_v21, %v1605_v59  ;;  %v1737_v21 = vpop.f32.mrf.mxu1 }
 0x535   : > { %6600 = vmatmul.msk.f32.gmra.mxu3 %vm1092_vm1, %v1660_v62 }
 0x536   : > { %v1610_v40 = vmul.f32 %v7009_v63, %v1609_v35  ;;  %1680 = vmatmul.f32.gmra.mxu0 %v1606_v12 }
 0x538   : > { %v1611_v26 = vadd.f32 %v7009_v63, %v1610_v40 }
 0x53a   : > { %v1615_v60 = vsel %vm1614_vm4, %v7009_v63, %v1611_v26  ;;  %v6610_v63 = vld [vmem:[%s11280_s3 + $0x108] sm:$0xff] }
 0x53b   : > { %v1620_v18 = vsel %vm1617_vm5, %v1619_v27, %v1615_v60 }
 0x53c   : > { %v1621_v11 = vmul.f32 %v8554_v43, %v1620_v18  ;;  %v1740_v51 = vpop.f32.mrf.mxu1 }
 0x53e   : > { %1683 = vmatmul.f32.gmra.mxu0 %v1621_v11 }
 0x544   : > { %v1743_v19 = vpop.f32.mrf.mxu1 }
 0x546   : > { %6557 = vmatmul.msk.f32.vlgmr.msra.gmra.mxu0 %vm1092_vm1, %v1725_v25  ;;  %v6620_v25 = vld [vmem:[%s11280_s3 + $0x158] sm:$0xff] }
 0x547   : > { %2783 = vmatpush.msrb.mxu0 %v6620_v25 }
 0x549   : > { %2784 = vmatpush.msrb.mxu0 %v6619_v31 }
 0x54b   : > { %2785 = vmatpush.msrb.mxu0 %v6618_v41 }
 0x54c   : > { %v1746_v44 = vpop.f32.mrf.mxu1 }
 0x54d   : > { %2786 = vmatpush.msrb.mxu0 %v6617_v53 }
 0x54e   : > { %6558 = vmatmul.msk.f32.gmra.mxu0 %vm1092_vm1, %v1728_v61  ;;  %v6609_v61 = vld [vmem:[%s11280_s3 + $0x100] sm:$0xff] }
 0x54f   : > { %2787 = vmatpush.msrb.mxu0 %v6616_v36 }
 0x551   : > { %2788 = vmatpush.msrb.mxu0 %v6615_v55 }
 0x553   : > { %2789 = vmatpush.msrb.mxu0 %v6614_v32 }
 0x554   : > { %v1749_v43 = vpop.f32.mrf.mxu1 }
 0x555   : > { %2790 = vmatpush.msrb.mxu0 %v6613_v49 }
 0x556   : > { %6559 = vmatmul.msk.f32.gmra.mxu0 %vm1092_vm1, %v1731_v1 }
 0x557   : > { %2791 = vmatpush.msrb.mxu0 %v6612_v48 }
 0x559   : > { %2792 = vmatpush.msrb.mxu0 %v6611_v16 }
 0x55b   : > { %2793 = vmatpush.msrb.mxu0 %v6610_v63 }
 0x55c   : > { %v1752_v3 = vpop.f32.mrf.mxu1 }
 0x55d   : > { %2794 = vmatpush.msrb.mxu0 %v6609_v61 }
 0x55e   : > { %6560 = vmatmul.msk.f32.gmra.mxu0 %vm1092_vm1, %v1734_v7 }
 0x564   : > { %v1755_v52 = vpop.f32.mrf.mxu1 }
 0x566   : > { %6561 = vmatmul.msk.f32.gmra.mxu0 %vm1092_vm1, %v1737_v21 }
 0x56c   : > { %v1758_v56 = vpop.f32.mrf.mxu1 }
 0x56e   : > { %6562 = vmatmul.msk.f32.gmra.mxu0 %vm1092_vm1, %v1740_v51 }
 0x574   : > { %v1761_v42 = vpop.f32.mrf.mxu1 }
 0x576   : > { %6563 = vmatmul.msk.f32.gmra.mxu0 %vm1092_vm1, %v1743_v19 }
 0x57c   : > { %v1764_v46 = vpop.f32.mrf.mxu1 }
 0x57e   : > { %6564 = vmatmul.msk.f32.gmra.mxu0 %vm1092_vm1, %v1746_v44 }
 0x583   : > { %v1663_v17 = vpop.f32.mrf.mxu0 }
 0x584   : > { %6601 = vmatmul.msk.f32.gmra.mxu3 %vm1092_vm1, %v1663_v17  ;;  %v1767_v5 = vpop.f32.mrf.mxu1 }
 0x586   : > { %6565 = vmatmul.msk.f32.gmra.mxu0 %vm1092_vm1, %v1749_v43 }
 0x58b   : > { %v1666_v8 = vpop.f32.mrf.mxu0 }
 0x58c   : > { %6602 = vmatmul.msk.f32.gmra.mxu3 %vm1092_vm1, %v1666_v8  ;;  %v1770_v62 = vpop.f32.mrf.mxu1 }
 0x58e   : > { %6566 = vmatmul.msk.f32.gmra.mxu0 %vm1092_vm1, %v1752_v3 }
 0x593   : > { %v1669_v23 = vpop.f32.mrf.mxu0 }
 0x594   : > { %6603 = vmatmul.msk.f32.gmra.mxu3 %vm1092_vm1, %v1669_v23 }
 0x596   : > { %6567 = vmatmul.msk.f32.gmra.mxu0 %vm1092_vm1, %v1755_v52 }
 0x59b   : > { %v1672_v54 = vpop.f32.mrf.mxu0 }
 0x59c   : > { %6604 = vmatmul.msk.f32.gmra.mxu3 %vm1092_vm1, %v1672_v54 }
 0x59e   : > { %6568 = vmatmul.msk.f32.gmra.mxu0 %vm1092_vm1, %v1758_v56 }
 0x5a3   : > { %v1675_v14 = vpop.f32.mrf.mxu0 }
 0x5a4   : > { %6605 = vmatmul.msk.f32.gmra.mxu3 %vm1092_vm1, %v1675_v14 }
 0x5a6   : > { %6569 = vmatmul.msk.f32.gmra.mxu0 %vm1092_vm1, %v1761_v42 }
 0x5ab   : > { %v1678_v9 = vpop.f32.mrf.mxu0 }
 0x5ac   : > { %6606 = vmatmul.msk.f32.gmra.mxu3 %vm1092_vm1, %v1678_v9 }
 0x5ae   : > { %6570 = vmatmul.msk.f32.gmra.mxu0 %vm1092_vm1, %v1764_v46 }
 0x5b3   : > { %v1681_v59 = vpop.f32.mrf.mxu0 }
 0x5b4   : > { %6607 = vmatmul.msk.f32.gmra.mxu3 %vm1092_vm1, %v1681_v59 }
 0x5b6   : > { %6571 = vmatmul.msk.f32.gmra.mxu0 %vm1092_vm1, %v1767_v5 }
 0x5bb   : > { %v1684_v35 = vpop.f32.mrf.mxu0 }
 0x5bc   : > { %6608 = vmatmul.msk.f32.gmra.mxu3 %vm1092_vm1, %v1684_v35 }
 0x5be   : > { %6572 = vmatmul.msk.f32.gmra.mxu0 %vm1092_vm1, %v1770_v62 }
 0x5c3   : > { %v2050_v12 = vpop.f32.mrf.mxu0 }
 0x5c4   : > { %v2098_v39 = vmul.f32 0.17677669, %v2050_v12 }
 0x5c6   : > { %2795 = vmatmul.f32.vlgmr.msrb.gmra.mxu0 %v7865_v47  ;;  %2114 = vmax.xlane.f32.xlu1 %v2098_v39 }
 0x5cb   : > { %v2053_v40 = vpop.f32.mrf.mxu0 }
 0x5cc   : > { %v2099_v57 = vmul.f32 0.17677669, %v2053_v40 }
 0x5ce   : > { %2798 = vmatmul.f32.gmra.mxu0 %v7903_v10  ;;  %2116 = vmax.xlane.f32.xlu2 %v2099_v57 }
 0x5d3   : > { %v2056_v26 = vpop.f32.mrf.mxu0 }
 0x5d4   : > { %v2100_v27 = vmul.f32 0.17677669, %v2056_v26 }
 0x5d6   : > { %2801 = vmatmul.f32.gmra.mxu0 %v7934_v37  ;;  %2118 = vmax.xlane.f32.xlu0 %v2100_v27 }
 0x5db   : > { %v2059_v60 = vpop.f32.mrf.mxu0 }
 0x5dc   : > { %v2101_v1 = vmul.f32 0.17677669, %v2059_v60 }
 0x5de   : > { %2804 = vmatmul.f32.gmra.mxu0 %v7946_v34  ;;  %2120 = vmax.xlane.f32.xlu1 %v2101_v1 }
 0x5e3   : > { %v2062_v18 = vpop.f32.mrf.mxu0 }
 0x5e4   : > { %v2102_v11 = vmul.f32 0.17677669, %v2062_v18 }
 0x5e6   : > { %2807 = vmatmul.f32.gmra.mxu0 %v7957_v45  ;;  %2122 = vmax.xlane.f32.xlu2 %v2102_v11 }
 0x5eb   : > { %v2065_v7 = vpop.f32.mrf.mxu0 }
 0x5ec   : > { %v2103_v21 = vmul.f32 0.17677669, %v2065_v7 }
 0x5ee   : > { %2810 = vmatmul.f32.gmra.mxu0 %v7964_v2  ;;  %2124 = vmax.xlane.f32.xlu0 %v2103_v21 }
 0x5f3   : > { %v2068_v51 = vpop.f32.mrf.mxu0 }
 0x5f4   : > { %v8663_v19 = vmul.f32 0.17677669, %v2068_v51 }
 0x5f6   : > { %2813 = vmatmul.f32.gmra.mxu0 %v7972_v4  ;;  %2126 = vmax.xlane.f32.xlu1 %v8663_v19 }
 0x5fb   : > { %v2071_v44 = vpop.f32.mrf.mxu0 }
 0x5fc   : > { %v8667_v43 = vmul.f32 0.17677669, %v2071_v44 }
 0x5fe   : > { %2816 = vmatmul.f32.gmra.mxu0 %v8000_v58  ;;  %2128 = vmax.xlane.f32.xlu0 %v8667_v43 }
 0x603   : > { %v2074_v6 = vpop.f32.mrf.mxu0 }
 0x604   : > { %v8682_v41 = vmul.f32 0.17677669, %v2074_v6 }
 0x606   : > { %2819 = vmatmul.f32.gmra.mxu0 %v8025_v22 }
 0x60b   : > { %v2077_v25 = vpop.f32.mrf.mxu0 }
 0x60c   : > { %v8688_v32 = vmul.f32 0.17677669, %v2077_v25 }
 0x60e   : > { %2822 = vmatmul.f32.gmra.mxu0 %v8033_v38 }
 0x613   : > { %v2080_v36 = vpop.f32.mrf.mxu0 }
 0x614   : > { %v8694_v63 = vmul.f32 0.17677669, %v2080_v36 }
 0x616   : > { %2825 = vmatmul.f32.gmra.mxu0 %v8042_v20 }
 0x61b   : > { %v2083_v16 = vpop.f32.mrf.mxu0 }
 0x61c   : > { %v8700_v59 = vmul.f32 0.17677669, %v2083_v16 }
 0x61e   : > { %2828 = vmatmul.f32.gmra.mxu0 %v8051_v0 }
 0x623   : > { %v2086_v62 = vpop.f32.mrf.mxu0 }
 0x626   : > { %2831 = vmatmul.f32.gmra.mxu0 %v8058_v33 }
 0x62b   : > { %v2089_v60 = vpop.f32.mrf.mxu0 }
 0x62e   : > { %2834 = vmatmul.f32.gmra.mxu0 %v8066_v30 }
 0x633   : > { %v2092_v51 = vpop.f32.mrf.mxu0 }
 0x636   : > { %2837 = vmatmul.f32.gmra.mxu0 %v8176_v50 }
 0x639   : > { %v2115_v3 = vpop.xlane.xlu1 %2114 }
 0x63a   : > { %v2146_v17 = vsub.f32 %v2098_v39, %v2115_v3 }
 0x63c   : > { %v2162_v29 = vmul.f32 1.442695, %v2146_v17 }
 0x63e   : > { %7010 = vpow2.f32 %v2162_v29  ;;  %2840 = vmatmul.f32.gmra.mxu0 %v8188_v24 }
 0x641   : > { %v2117_v52 = vpop.xlane.xlu2 %2116 }
 0x642   : > { %v2147_v8 = vsub.f32 %v2099_v57, %v2117_v52  ;;  %v8707_v57 = vmul.f32 0.17677669, %v2086_v62 }
 0x644   : > { %v8679_v15 = vpop.eup %7010  ;;  %v2164_v28 = vmul.f32 1.442695, %v2147_v8 }
 0x645   : > { %2194 = vadd.xlane.f32.xlu2 %v8679_v15 }
 0x646   : > { %7012 = vpow2.f32 %v2164_v28 }
 0x649   : > { %v2119_v31 = vpop.xlane.xlu0 %2118 }
 0x64a   : > { %v2148_v23 = vsub.f32 %v2100_v27, %v2119_v31 }
 0x64c   : > { %v8684_v53 = vpop.eup %7012  ;;  %v2166_v56 = vmul.f32 1.442695, %v2148_v23 }
 0x64d   : > { %2196 = vadd.xlane.f32.xlu1 %v8684_v53  ;;  %2130 = vmax.xlane.f32.xlu2 %v8682_v41 }
 0x64e   : > { %7014 = vpow2.f32 %v2166_v56 }
 0x651   : > { %v2121_v55 = vpop.xlane.xlu1 %2120 }
 0x652   : > { %v2149_v54 = vsub.f32 %v2101_v1, %v2121_v55 }
 0x654   : > { %v8690_v49 = vpop.eup %7014  ;;  %v2168_v48 = vmul.f32 1.442695, %v2149_v54 }
 0x655   : > { %2198 = vadd.xlane.f32.xlu0 %v8690_v49  ;;  %2132 = vmax.xlane.f32.xlu1 %v8688_v32 }
 0x656   : > { %7016 = vpow2.f32 %v2168_v48 }
 0x659   : > { %v2123_v42 = vpop.xlane.xlu2 %2122 }
 0x65a   : > { %v2150_v14 = vsub.f32 %v2102_v11, %v2123_v42  ;;  %v8714_v11 = vmul.f32 0.17677669, %v2089_v60 }
 0x65c   : > { %v8696_v61 = vpop.eup %7016  ;;  %v2170_v46 = vmul.f32 1.442695, %v2150_v14 }
 0x65d   : > { %2200 = vadd.xlane.f32.xlu2 %v8696_v61  ;;  %2134 = vmax.xlane.f32.xlu0 %v8694_v63 }
 0x65e   : > { %7018 = vpow2.f32 %v2170_v46 }
 0x661   : > { %v2125_v9 = vpop.xlane.xlu0 %2124 }
 0x662   : > { %v2151_v5 = vsub.f32 %v2103_v21, %v2125_v9 }
 0x664   : > { %v8702_v35 = vpop.eup %7018  ;;  %v2172_v12 = vmul.f32 1.442695, %v2151_v5 }
 0x665   : > { %2202 = vadd.xlane.f32.xlu1 %v8702_v35  ;;  %2136 = vmax.xlane.f32.xlu2 %v8700_v59 }
 0x666   : > { %7020 = vpow2.f32 %v2172_v12 }
 0x669   : > { %v2127_v39 = vpop.xlane.xlu1 %2126 }
 0x66a   : > { %v2152_v40 = vsub.f32 %v8663_v19, %v2127_v39  ;;  %v8720_v19 = vmul.f32 0.17677669, %v2092_v51 }
 0x66c   : > { %v8709_v26 = vpop.eup %7020  ;;  %v2174_v27 = vmul.f32 1.442695, %v2152_v40 }
 0x66d   : > { %2204 = vadd.xlane.f32.xlu0 %v8709_v26  ;;  %2138 = vmax.xlane.f32.xlu1 %v8707_v57 }
 0x66e   : > { %7022 = vpow2.f32 %v2174_v27 }
 0x671   : > { %v2129_v1 = vpop.xlane.xlu0 %2128 }
 0x672   : > { %v2153_v18 = vsub.f32 %v8667_v43, %v2129_v1 }
 0x674   : > { %v8716_v7 = vpop.eup %7022  ;;  %v2176_v21 = vmul.f32 1.442695, %v2153_v18 }
 0x675   : > { %2206 = vadd.xlane.f32.xlu2 %v8716_v7  ;;  %2140 = vmax.xlane.f32.xlu0 %v8714_v11 }
 0x676   : > { %7024 = vpow2.f32 %v2176_v21 }
 0x67c   : > { %v8722_v44 = vpop.eup %7024 }
 0x67d   : > { %2208 = vadd.xlane.f32.xlu1 %v8722_v44  ;;  %2142 = vmax.xlane.f32.xlu2 %v8720_v19 }
 0x6b8   : > { %v2195_v43 = vpop.xlane.xlu2 %2194 }
 0x6b9   : > { %7026 = vrcp.f32 %v2195_v43  ;;  %v2237_v28 = vand.u32 2147483648, %v2195_v43  ;;  %v2235_v23 = vand.u32 2147483647, %v2195_v43  ;;  %vm2231_vm7 = vweird.f32 %v2195_v43 }
 0x6bb   : > { %v2238_v55 = vor.u32 1.1754944e-38, %v2237_v28  ;;  %vm2236_vm9 = vcmp.eq.f32.partialorder %v2235_v23, 8.507059e+37 }
 0x6bf   : > { %v7027_v3 = vpop.eup %7026 }
 0x6c0   : > { %v2227_v17 = vmul.f32 %v7027_v3, %v2195_v43  ;;  %v2197_v6 = vpop.xlane.xlu1 %2196  ;;  %v2131_v29 = vpop.xlane.xlu2 %2130  ;;  %vm2232_vm6 = vweird.f32 %v7027_v3 }
 0x6c1   : > { %7028 = vrcp.f32 %v2197_v6  ;;  %v2154_v52 = vsub.f32 %v8682_v41, %v2131_v29  ;;  %vm2233_vm8 = vmor %vm2231_vm7, %vm2232_vm6  ;;  %v2252_v12 = vand.u32 2147483648, %v2197_v6  ;;  %v2250_v40 = vand.u32 2147483647, %v2197_v6 }
 0x6c2   : > { %v2228_v8 = vsub.f32 1.0, %v2227_v17  ;;  %vm2246_vm11 = vweird.f32 %v2197_v6 }
 0x6c3   : > { %v2178_v25 = vmul.f32 1.442695, %v2154_v52  ;;  %v2253_v1 = vor.u32 1.1754944e-38, %v2252_v12  ;;  %vm2251_vm13 = vcmp.eq.f32.partialorder %v2250_v40, 8.507059e+37 }
 0x6c4   : > { %v2229_v31 = vmul.f32 %v7027_v3, %v2228_v8 }
 0x6c5   : > { %7030 = vpow2.f32 %v2178_v25 }
 0x6c6   : > { %v2230_v56 = vadd.f32 %v7027_v3, %v2229_v31 }
 0x6c7   : > { %v7029_v36 = vpop.eup %7028 }
 0x6c8   : > { %v2234_v54 = vsel %vm2233_vm8, %v7027_v3, %v2230_v56  ;;  %v2242_v48 = vmul.f32 %v7029_v36, %v2197_v6  ;;  %v2199_v42 = vpop.xlane.xlu0 %2198  ;;  %v2133_v16 = vpop.xlane.xlu1 %2132  ;;  %vm2247_vm10 = vweird.f32 %v7029_v36 }
 0x6c9   : > { %v2239_v14 = vsel %vm2236_vm9, %v2238_v55, %v2234_v54  ;;  %7032 = vrcp.f32 %v2199_v42  ;;  %v2155_v46 = vsub.f32 %v8688_v32, %v2133_v16  ;;  %vm2248_vm12 = vmor %vm2246_vm11, %vm2247_vm10  ;;  %v2267_v8 = vand.u32 2147483648, %v2199_v42 }
 0x6ca   : > { %v2243_v41 = vsub.f32 1.0, %v2242_v48  ;;  %v2240_v9 = vmul.f32 %v8679_v15, %v2239_v14  ;;  %v2265_v28 = vand.u32 2147483647, %v2199_v42  ;;  %vm2261_vm15 = vweird.f32 %v2199_v42 }
 0x6cb   : > { %v8729_v5 = vpop.eup %7030  ;;  %v2180_v39 = vmul.f32 1.442695, %v2155_v46 }
 0x6cc   : > { %v2244_v62 = vmul.f32 %v7029_v36, %v2243_v41  ;;  %2482 = vmatmul.f32.vlgmr.msra.gmra.mxu1 %v2240_v9  ;;  %2210 = vadd.xlane.f32.xlu0 %v8729_v5  ;;  %vm2266_vm2 = vcmp.eq.f32.partialorder %v2265_v28, 8.507059e+37 }
 0x6cd   : > { %7034 = vpow2.f32 %v2180_v39 }
 0x6ce   : > { %v2245_v27 = vadd.f32 %v7029_v36, %v2244_v62 }
 0x6cf   : > { %v7033_v60 = vpop.eup %7032 }
 0x6d0   : > { %v2257_v18 = vmul.f32 %v7033_v60, %v2199_v42  ;;  %v2201_v32 = vpop.xlane.xlu2 %2200  ;;  %v2135_v21 = vpop.xlane.xlu0 %2134  ;;  %v2249_v15 = vsel %vm2248_vm12, %v7029_v36, %v2245_v27  ;;  %vm2262_vm14 = vweird.f32 %v7033_v60 }
 0x6d1   : > { %7036 = vrcp.f32 %v2201_v32  ;;  %v2156_v51 = vsub.f32 %v8694_v63, %v2135_v21  ;;  %v2254_v3 = vsel %vm2251_vm13, %v2253_v1, %v2249_v15  ;;  %vm2263_vm0 = vmor %vm2261_vm15, %vm2262_vm14  ;;  %v2268_v63 = vor.u32 1.1754944e-38, %v2267_v8 }
 0x6d2   : > { %v2258_v43 = vsub.f32 1.0, %v2257_v18  ;;  %v2255_v29 = vmul.f32 %v8684_v53, %v2254_v3  ;;  %v2282_v46 = vand.u32 2147483648, %v2201_v32  ;;  %v2280_v9 = vand.u32 2147483647, %v2201_v32 }
 0x6d3   : > { %v2182_v17 = vmul.f32 1.442695, %v2156_v51  ;;  %v8734_v52 = vpop.eup %7034  ;;  %vm2276_vm4 = vweird.f32 %v2201_v32 }
 0x6d4   : > { %v2259_v6 = vmul.f32 %v7033_v60, %v2258_v43  ;;  %2485 = vmatmul.f32.gmra.mxu1 %v2255_v29  ;;  %2212 = vadd.xlane.f32.xlu1 %v8734_v52  ;;  %vm2281_vm6 = vcmp.eq.f32.partialorder %v2280_v9, 8.507059e+37 }
 0x6d5   : > { %7038 = vpow2.f32 %v2182_v17 }
 0x6d6   : > { %v2260_v25 = vadd.f32 %v7033_v60, %v2259_v6 }
 0x6d7   : > { %v7037_v31 = vpop.eup %7036 }
 0x6d8   : > { %v2272_v23 = vmul.f32 %v7037_v31, %v2201_v32  ;;  %v2203_v56 = vpop.xlane.xlu1 %2202  ;;  %v2137_v36 = vpop.xlane.xlu2 %2136  ;;  %v2264_v55 = vsel %vm2263_vm0, %v7033_v60, %v2260_v25  ;;  %vm2277_vm3 = vweird.f32 %v7037_v31 }
 0x6d9   : > { %7040 = vrcp.f32 %v2203_v56  ;;  %v2157_v53 = vsub.f32 %v8700_v59, %v2137_v36  ;;  %v2269_v48 = vsel %vm2266_vm2, %v2268_v63, %v2264_v55  ;;  %vm2278_vm5 = vmor %vm2276_vm4, %vm2277_vm3  ;;  %v2283_v59 = vor.u32 1.1754944e-38, %v2282_v46 }
 0x6da   : > { %v2273_v54 = vsub.f32 1.0, %v2272_v23  ;;  %v2270_v41 = vmul.f32 %v8690_v49, %v2269_v48  ;;  %v2297_v43 = vand.u32 2147483648, %v2203_v56  ;;  %v2295_v3 = vand.u32 2147483647, %v2203_v56 }
 0x6db   : > { %v8738_v16 = vpop.eup %7038  ;;  %v2184_v14 = vmul.f32 1.442695, %v2157_v53  ;;  %vm2291_vm8 = vweird.f32 %v2203_v56 }
 0x6dc   : > { %v2274_v42 = vmul.f32 %v7037_v31, %v2273_v54  ;;  %2214 = vadd.xlane.f32.xlu2 %v8738_v16  ;;  %2488 = vmatmul.f32.gmra.mxu1 %v2270_v41  ;;  %vm2296_vm10 = vcmp.eq.f32.partialorder %v2295_v3, 8.507059e+37 }
 0x6dd   : > { %7042 = vpow2.f32 %v2184_v14 }
 0x6de   : > { %v2275_v62 = vadd.f32 %v7037_v31, %v2274_v42 }
 0x6df   : > { %v7041_v12 = vpop.eup %7040 }
 0x6e0   : > { %v2287_v39 = vmul.f32 %v7041_v12, %v2203_v56  ;;  %v2205_v40 = vpop.xlane.xlu0 %2204  ;;  %v2139_v27 = vpop.xlane.xlu1 %2138  ;;  %v2279_v60 = vsel %vm2278_vm5, %v7037_v31, %v2275_v62  ;;  %vm2292_vm7 = vweird.f32 %v7041_v12 }
 0x6e1   : > { %7044 = vrcp.f32 %v2205_v40  ;;  %v2158_v49 = vsub.f32 %v8707_v57, %v2139_v27  ;;  %v2284_v18 = vsel %vm2281_vm6, %v2283_v59, %v2279_v60  ;;  %vm2293_vm9 = vmor %vm2291_vm8, %vm2292_vm7  ;;  %v2298_v57 = vor.u32 1.1754944e-38, %v2297_v43 }
 0x6e2   : > { %v2288_v1 = vsub.f32 1.0, %v2287_v39  ;;  %v2285_v51 = vmul.f32 %v8696_v61, %v2284_v18  ;;  %v2312_v53 = vand.u32 2147483648, %v2205_v40  ;;  %v2310_v54 = vand.u32 2147483647, %v2205_v40 }
 0x6e3   : > { %v8743_v21 = vpop.eup %7042  ;;  %v2186_v15 = vmul.f32 1.442695, %v2158_v49  ;;  %vm2306_vm12 = vweird.f32 %v2205_v40 }
 0x6e4   : > { %v2289_v32 = vmul.f32 %v7041_v12, %v2288_v1  ;;  %2216 = vadd.xlane.f32.xlu0 %v8743_v21  ;;  %2491 = vmatmul.f32.gmra.mxu1 %v2285_v51  ;;  %v2313_v41 = vor.u32 1.1754944e-38, %v2312_v53  ;;  %vm2311_vm14 = vcmp.eq.f32.partialorder %v2310_v54, 8.507059e+37 }
 0x6e5   : > { %7046 = vpow2.f32 %v2186_v15 }
 0x6e6   : > { %v2290_v17 = vadd.f32 %v7041_v12, %v2289_v32 }
 0x6e7   : > { %v7045_v29 = vpop.eup %7044 }
 0x6e8   : > { %v2302_v6 = vmul.f32 %v7045_v29, %v2205_v40  ;;  %v2207_v8 = vpop.xlane.xlu2 %2206  ;;  %v2141_v28 = vpop.xlane.xlu0 %2140  ;;  %v2294_v25 = vsel %vm2293_vm9, %v7041_v12, %v2290_v17  ;;  %vm2307_vm11 = vweird.f32 %v7045_v29 }
 0x6e9   : > { %7048 = vrcp.f32 %v2207_v8  ;;  %v2159_v61 = vsub.f32 %v8714_v11, %v2141_v28  ;;  %v2299_v63 = vsel %vm2296_vm10, %v2298_v57, %v2294_v25  ;;  %v2095_v11 = vpop.f32.mrf.mxu0  ;;  %vm2308_vm13 = vmor %vm2306_vm12, %vm2307_vm11  ;;  %v2327_v40 = vand.u32 2147483648, %v2207_v8 }
 0x6ea   : > { %v2303_v31 = vsub.f32 1.0, %v2302_v6  ;;  %v2300_v55 = vmul.f32 %v8702_v35, %v2299_v63  ;;  %v8753_v39 = vmul.f32 0.17677669, %v2095_v11  ;;  %v2325_v18 = vand.u32 2147483647, %v2207_v8  ;;  %v6638_v11 = vld [vmem:[%s11281_s4 + $0x168] sm:$0xff] }
 0x6eb   : > { %v8748_v23 = vpop.eup %7046  ;;  %v2188_v36 = vmul.f32 1.442695, %v2159_v61  ;;  %vm2321_vm0 = vweird.f32 %v2207_v8  ;;  %v2328_v51 = vor.u32 1.1754944e-38, %v2327_v40 }
 0x6ec   : > { %v2304_v56 = vmul.f32 %v7045_v29, %v2303_v31  ;;  %2218 = vadd.xlane.f32.xlu1 %v8748_v23  ;;  %2494 = vmatmul.f32.gmra.mxu1 %v2300_v55  ;;  %vm2326_vm3 = vcmp.eq.f32.partialorder %v2325_v18, 8.507059e+37  ;;  %v6639_v55 = vld [vmem:[%s11281_s4 + $0x170] sm:$0xff] }
 0x6ed   : > { %7050 = vpow2.f32 %v2188_v36 }
 0x6ee   : > { %v2305_v48 = vadd.f32 %v7045_v29, %v2304_v56 }
 0x6ef   : > { %v7049_v14 = vpop.eup %7048 }
 0x6f0   : > { %v2317_v42 = vmul.f32 %v7049_v14, %v2207_v8  ;;  %v2209_v46 = vpop.xlane.xlu1 %2208  ;;  %v2143_v9 = vpop.xlane.xlu2 %2142  ;;  %v2309_v62 = vsel %vm2308_vm13, %v7045_v29, %v2305_v48  ;;  %vm2322_vm15 = vweird.f32 %v7049_v14 }
 0x6f1   : > { %7052 = vrcp.f32 %v2209_v46  ;;  %v2160_v35 = vsub.f32 %v8720_v19, %v2143_v9  ;;  %v2314_v59 = vsel %vm2311_vm14, %v2313_v41, %v2309_v62  ;;  %vm2323_vm2 = vmor %vm2321_vm0, %vm2322_vm15  ;;  %v2342_v57 = vand.u32 2147483648, %v2209_v46 }
 0x6f2   : > { %v2318_v12 = vsub.f32 1.0, %v2317_v42  ;;  %v2315_v49 = vmul.f32 %v8709_v26, %v2314_v59  ;;  %v2340_v28 = vand.u32 2147483647, %v2209_v46  ;;  %vm2336_vm5 = vweird.f32 %v2209_v46 }
 0x6f3   : > { %v8755_v27 = vpop.eup %7050  ;;  %v2190_v60 = vmul.f32 1.442695, %v2160_v35  ;;  %v2343_v25 = vor.u32 1.1754944e-38, %v2342_v57 }
 0x6f4   : > { %v2319_v1 = vmul.f32 %v7049_v14, %v2318_v12  ;;  %2220 = vadd.xlane.f32.xlu2 %v8755_v27  ;;  %2144 = vmax.xlane.f32.xlu1 %v8753_v39  ;;  %vm2341_vm7 = vcmp.eq.f32.partialorder %v2340_v28, 8.507059e+37  ;;  %v6634_v28 = vld [vmem:[%s11281_s4 + $0x148] sm:$0xff] }
 0x6f5   : > { %7054 = vpow2.f32 %v2190_v60  ;;  %2497 = vmatmul.f32.gmra.mxu1 %v2315_v49 }
 0x6f6   : > { %v2320_v19 = vadd.f32 %v7049_v14, %v2319_v1  ;;  %v6637_v1 = vld [vmem:[%s11281_s4 + $0x160] sm:$0xff] }
 0x6f7   : > { %v7053_v15 = vpop.eup %7052 }
 0x6f8   : > { %v2332_v32 = vmul.f32 %v7053_v15, %v2209_v46  ;;  %v2324_v43 = vsel %vm2323_vm2, %v7049_v14, %v2320_v19  ;;  %vm2337_vm4 = vweird.f32 %v7053_v15 }
 0x6f9   : > { %v2329_v3 = vsel %vm2326_vm3, %v2328_v51, %v2324_v43  ;;  %vm2338_vm6 = vmor %vm2336_vm5, %vm2337_vm4 }
 0x6fa   : > { %v2333_v17 = vsub.f32 1.0, %v2332_v32  ;;  %v2330_v26 = vmul.f32 %v8716_v7, %v2329_v3  ;;  %v6640_v7 = vld [vmem:[%s11281_s4 + $0x178] sm:$0xff] }
 0x6fb   : > { %v8761_v29 = vpop.eup %7054  ;;  %2861 = vmatpush.msrb.mxu1 %v6640_v7  ;;  %v6632_v7 = vld [vmem:[%s11281_s4 + $0x138] sm:$0xff] }
 0x6fc   : > { %v2334_v6 = vmul.f32 %v7053_v15, %v2333_v17  ;;  %2222 = vadd.xlane.f32.xlu0 %v8761_v29  ;;  %v6635_v17 = vld [vmem:[%s11281_s4 + $0x150] sm:$0xff] }
 0x6fd   : > { %2500 = vmatmul.f32.gmra.mxu1 %v2330_v26 }
 0x6fe   : > { %v2335_v8 = vadd.f32 %v7053_v15, %v2334_v6  ;;  %2862 = vmatpush.msrb.mxu1 %v6639_v55 }
 0x700   : > { %v2339_v61 = vsel %vm2338_vm6, %v7053_v15, %v2335_v8  ;;  %2863 = vmatpush.msrb.mxu1 %v6638_v11  ;;  %v6636_v15 = vld [vmem:[%s11281_s4 + $0x158] sm:$0xff] }
 0x701   : > { %v2344_v31 = vsel %vm2341_vm7, %v2343_v25, %v2339_v61 }
 0x702   : > { %v2345_v63 = vmul.f32 %v8722_v44, %v2344_v31  ;;  %2864 = vmatpush.msrb.mxu1 %v6637_v1 }
 0x704   : > { %2865 = vmatpush.msrb.mxu1 %v6636_v15  ;;  %v6626_v15 = vld [vmem:[%s11281_s4 + $0x108] sm:$0xff] }
 0x705   : > { %2503 = vmatmul.f32.gmra.mxu1 %v2345_v63  ;;  %v6633_v63 = vld [vmem:[%s11281_s4 + $0x140] sm:$0xff] }
 0x706   : > { %2866 = vmatpush.msrb.mxu1 %v6635_v17  ;;  %v6625_v17 = vld [vmem:[%s11281_s4 + $0x100] sm:$0xff] }
 0x708   : > { %2867 = vmatpush.msrb.mxu1 %v6634_v28 }
 0x70a   : > { %2868 = vmatpush.msrb.mxu1 %v6633_v63 }
 0x70c   : > { %2869 = vmatpush.msrb.mxu1 %v6632_v7 }
 0x73f   : > { %v2211_v36 = vpop.xlane.xlu0 %2210 }
 0x740   : > { %7056 = vrcp.f32 %v2211_v36  ;;  %v2357_v44 = vand.u32 2147483648, %v2211_v36  ;;  %v2355_v41 = vand.u32 2147483647, %v2211_v36  ;;  %vm2351_vm9 = vweird.f32 %v2211_v36 }
 0x742   : > { %v2358_v9 = vor.u32 1.1754944e-38, %v2357_v44  ;;  %vm2356_vm11 = vcmp.eq.f32.partialorder %v2355_v41, 8.507059e+37  ;;  %v6630_v44 = vld [vmem:[%s11281_s4 + $0x128] sm:$0xff] }
 0x746   : > { %v7057_v56 = vpop.eup %7056 }
 0x747   : > { %v2347_v53 = vmul.f32 %v7057_v56, %v2211_v36  ;;  %v2213_v54 = vpop.xlane.xlu1 %2212  ;;  %vm2352_vm8 = vweird.f32 %v7057_v56 }
 0x748   : > { %7058 = vrcp.f32 %v2213_v54  ;;  %vm2353_vm10 = vmor %vm2351_vm9, %vm2352_vm8  ;;  %v2372_v49 = vand.u32 2147483648, %v2213_v54  ;;  %v2370_v19 = vand.u32 2147483647, %v2213_v54  ;;  %vm2366_vm13 = vweird.f32 %v2213_v54 }
 0x749   : > { %v2348_v48 = vsub.f32 1.0, %v2347_v53 }
 0x74a   : > { %v2373_v43 = vor.u32 1.1754944e-38, %v2372_v49  ;;  %vm2371_vm15 = vcmp.eq.f32.partialorder %v2370_v19, 8.507059e+37 }
 0x74b   : > { %v2349_v14 = vmul.f32 %v7057_v56, %v2348_v48 }
 0x74d   : > { %v2350_v42 = vadd.f32 %v7057_v56, %v2349_v14 }
 0x74e   : > { %v7059_v46 = vpop.eup %7058 }
 0x74f   : > { %v2215_v62 = vpop.xlane.xlu2 %2214  ;;  %v2354_v35 = vsel %vm2353_vm10, %v7057_v56, %v2350_v42  ;;  %v2362_v12 = vmul.f32 %v7059_v46, %v2213_v54  ;;  %vm2367_vm12 = vweird.f32 %v7059_v46  ;;  %v6629_v42 = vld [vmem:[%s11281_s4 + $0x120] sm:$0xff] }
 0x750   : > { %7060 = vrcp.f32 %v2215_v62  ;;  %v2359_v59 = vsel %vm2356_vm11, %v2358_v9, %v2354_v35  ;;  %vm2368_vm14 = vmor %vm2366_vm13, %vm2367_vm12  ;;  %v2387_v8 = vand.u32 2147483648, %v2215_v62  ;;  %v2385_v31 = vand.u32 2147483647, %v2215_v62  ;;  %v6628_v35 = vld [vmem:[%s11281_s4 + $0x118] sm:$0xff] }
 0x751   : > { %v2363_v40 = vsub.f32 1.0, %v2362_v12  ;;  %v2360_v60 = vmul.f32 %v8729_v5, %v2359_v59  ;;  %vm2381_vm2 = vweird.f32 %v2215_v62 }
 0x752   : > { %v2388_v56 = vor.u32 1.1754944e-38, %v2387_v8  ;;  %vm2386_vm4 = vcmp.eq.f32.partialorder %v2385_v31, 8.507059e+37 }
 0x753   : > { %v2364_v18 = vmul.f32 %v7059_v46, %v2363_v40  ;;  %2506 = vmatmul.f32.gmra.mxu1 %v2360_v60 }
 0x755   : > { %v2365_v32 = vadd.f32 %v7059_v46, %v2364_v18 }
 0x756   : > { %v7061_v51 = vpop.eup %7060 }
 0x757   : > { %v2377_v3 = vmul.f32 %v7061_v51, %v2215_v62  ;;  %v2217_v5 = vpop.xlane.xlu0 %2216  ;;  %v2369_v26 = vsel %vm2368_vm14, %v7059_v46, %v2365_v32  ;;  %vm2382_vm0 = vweird.f32 %v7061_v51 }
 0x758   : > { %7062 = vrcp.f32 %v2217_v5  ;;  %v2374_v6 = vsel %vm2371_vm15, %v2373_v43, %v2369_v26  ;;  %vm2383_vm3 = vmor %vm2381_vm2, %vm2382_vm0  ;;  %v2402_v9 = vand.u32 2147483648, %v2217_v5  ;;  %v2400_v62 = vand.u32 2147483647, %v2217_v5 }
 0x759   : > { %v2378_v57 = vsub.f32 1.0, %v2377_v3  ;;  %v2375_v25 = vmul.f32 %v8734_v52, %v2374_v6  ;;  %v6631_v52 = vld [vmem:[%s11281_s4 + $0x130] sm:$0xff]  ;;  %vm2396_vm6 = vweird.f32 %v2217_v5 }
 0x75a   : > { %2870 = vmatpush.msrb.mxu1 %v6631_v52  ;;  %v2403_v40 = vor.u32 1.1754944e-38, %v2402_v9  ;;  %vm2401_vm8 = vcmp.eq.f32.partialorder %v2400_v62, 8.507059e+37 }
 0x75b   : > { %v2379_v61 = vmul.f32 %v7061_v51, %v2378_v57  ;;  %2509 = vmatmul.f32.gmra.mxu1 %v2375_v25 }
 0x75c   : > { %2871 = vmatpush.msrb.mxu1 %v6630_v44 }
 0x75d   : > { %v2380_v36 = vadd.f32 %v7061_v51, %v2379_v61 }
 0x75e   : > { %v7063_v55 = vpop.eup %7062  ;;  %2872 = vmatpush.msrb.mxu1 %v6629_v42 }
 0x75f   : > { %v2392_v53 = vmul.f32 %v7063_v55, %v2217_v5  ;;  %v2219_v54 = vpop.xlane.xlu1 %2218  ;;  %v2384_v48 = vsel %vm2383_vm3, %v7061_v51, %v2380_v36  ;;  %vm2397_vm5 = vweird.f32 %v7063_v55 }
 0x760   : > { %7064 = vrcp.f32 %v2219_v54  ;;  %v2389_v14 = vsel %vm2386_vm4, %v2388_v56, %v2384_v48  ;;  %vm2398_vm7 = vmor %vm2396_vm6, %vm2397_vm5  ;;  %2873 = vmatpush.msrb.mxu1 %v6628_v35  ;;  %v2417_v43 = vand.u32 2147483648, %v2219_v54  ;;  %v2415_v57 = vand.u32 2147483647, %v2219_v54 }
 0x761   : > { %v2393_v11 = vsub.f32 1.0, %v2392_v53  ;;  %v2390_v41 = vmul.f32 %v8738_v16, %v2389_v14  ;;  %v6627_v16 = vld [vmem:[%s11281_s4 + $0x110] sm:$0xff]  ;;  %vm2411_vm10 = vweird.f32 %v2219_v54 }
 0x762   : > { %2874 = vmatpush.msrb.mxu1 %v6627_v16  ;;  %v2418_v28 = vor.u32 1.1754944e-38, %v2417_v43  ;;  %vm2416_vm12 = vcmp.eq.f32.partialorder %v2415_v57, 8.507059e+37  ;;  %v2483_v16 = vpop.f32.mrf.mxu1  ;;  %v6574_v43 = vld [vmem:[%s11283_s6 + $0x28] sm:$0xff] }
 0x763   : > { %v2394_v46 = vmul.f32 %v7063_v55, %v2393_v11  ;;  %2512 = vmatmul.f32.gmra.mxu1 %v2390_v41 }
 0x764   : > { %2875 = vmatpush.msrb.mxu1 %v6626_v15 }
 0x765   : > { %v2395_v12 = vadd.f32 %v7063_v55, %v2394_v46 }
 0x766   : > { %v7065_v59 = vpop.eup %7064  ;;  %2876 = vmatpush.msrb.mxu1 %v6625_v17 }
 0x767   : > { %v2407_v60 = vmul.f32 %v7065_v59, %v2219_v54  ;;  %v2221_v49 = vpop.xlane.xlu2 %2220  ;;  %v2145_v1 = vpop.xlane.xlu1 %2144  ;;  %v2399_v18 = vsel %vm2398_vm7, %v7063_v55, %v2395_v12  ;;  %vm2412_vm9 = vweird.f32 %v7065_v59 }
 0x768   : > { %7066 = vrcp.f32 %v2221_v49  ;;  %v2161_v19 = vsub.f32 %v8753_v39, %v2145_v1  ;;  %v2404_v32 = vsel %vm2401_vm8, %v2403_v40, %v2399_v18  ;;  %vm2413_vm11 = vmor %vm2411_vm10, %vm2412_vm9  ;;  %v2432_v36 = vand.u32 2147483648, %v2221_v49 }
 0x769   : > { %v2408_v51 = vsub.f32 1.0, %v2407_v60  ;;  %v2405_v5 = vmul.f32 %v8743_v21, %v2404_v32  ;;  %v2430_v56 = vand.u32 2147483647, %v2221_v49  ;;  %vm2426_vm14 = vweird.f32 %v2221_v49  ;;  %v6575_v32 = vld [vmem:[%s11283_s6 + $0x30] sm:$0xff] }
 0x76a   : > { %v2192_v3 = vmul.f32 1.442695, %v2161_v19  ;;  %v2433_v54 = vor.u32 1.1754944e-38, %v2432_v36  ;;  %v2486_v40 = vpop.f32.mrf.mxu1 }
 0x76b   : > { %v2409_v26 = vmul.f32 %v7065_v59, %v2408_v51  ;;  %2515 = vmatmul.f32.gmra.mxu1 %v2405_v5  ;;  %vm2431_vm0 = vcmp.eq.f32.partialorder %v2430_v56, 8.507059e+37  ;;  %v6576_v51 = vld [vmem:[%s11283_s6 + $0x38] sm:$0xff]  ;;  %v6573_v5 = vld [vmem:[%s11283_s6 + $0x20] sm:$0xff] }
 0x76c   : > { %7068 = vpow2.f32 %v2192_v3  ;;  %2596 = vmatpush.msrb.mxu2 %v6576_v51  ;;  %v6642_v51 = vld [vmem:[%s11282_s5 + $0x108] sm:$0xff] }
 0x76d   : > { %v2410_v39 = vadd.f32 %v7065_v59, %v2409_v26 }
 0x76e   : > { %v7067_v6 = vpop.eup %7066  ;;  %2597 = vmatpush.msrb.mxu2 %v6575_v32  ;;  %v6641_v32 = vld [vmem:[%s11282_s5 + $0x100] sm:$0xff] }
 0x76f   : > { %v2422_v8 = vmul.f32 %v7067_v6, %v2221_v49  ;;  %v2223_v25 = vpop.xlane.xlu0 %2222  ;;  %v2414_v61 = vsel %vm2413_vm11, %v7065_v59, %v2410_v39  ;;  %vm2427_vm13 = vweird.f32 %v7067_v6 }
 0x770   : > { %7070 = vrcp.f32 %v2223_v25  ;;  %v2419_v21 = vsel %vm2416_vm12, %v2418_v28, %v2414_v61  ;;  %vm2428_vm15 = vmor %vm2426_vm14, %vm2427_vm13  ;;  %v2447_v41 = vand.u32 2147483648, %v2223_v25  ;;  %v2445_v46 = vand.u32 2147483647, %v2223_v25  ;;  %2598 = vmatpush.msrb.mxu2 %v6574_v43 }
 0x771   : > { %v2423_v31 = vsub.f32 1.0, %v2422_v8  ;;  %v2420_v63 = vmul.f32 %v8748_v23, %v2419_v21  ;;  %vm2441_vm3 = vweird.f32 %v2223_v25 }
 0x772   : > { %v8819_v7 = vpop.eup %7068  ;;  %v2448_v62 = vor.u32 1.1754944e-38, %v2447_v41  ;;  %vm2446_vm5 = vcmp.eq.f32.partialorder %v2445_v46, 8.507059e+37  ;;  %2599 = vmatpush.msrb.mxu2 %v6573_v5  ;;  %v6656_v41 = vld [vmem:[%s11282_s5 + $0x178] sm:$0xff]  ;;  %v6655_v46 = vld [vmem:[%s11282_s5 + $0x170] sm:$0xff] }
 0x773   : > { %v2424_v55 = vmul.f32 %v7067_v6, %v2423_v31  ;;  %2224 = vadd.xlane.f32.xlu2 %v8819_v7  ;;  %2518 = vmatmul.f32.gmra.mxu1 %v2420_v63 }
 0x775   : > { %v2425_v52 = vadd.f32 %v7067_v6, %v2424_v55 }
 0x776   : > { %v7071_v53 = vpop.eup %7070 }
 0x777   : > { %v2437_v48 = vmul.f32 %v7071_v53, %v2223_v25  ;;  %v2429_v14 = vsel %vm2428_vm15, %v7067_v6, %v2425_v52  ;;  %vm2442_vm2 = vweird.f32 %v7071_v53 }
 0x778   : > { %v2434_v44 = vsel %vm2431_vm0, %v2433_v54, %v2429_v14  ;;  %vm2443_vm4 = vmor %vm2441_vm3, %vm2442_vm2 }
 0x779   : > { %v2438_v11 = vsub.f32 1.0, %v2437_v48  ;;  %v2435_v23 = vmul.f32 %v8755_v27, %v2434_v44  ;;  %v2489_v27 = vpop.f32.mrf.mxu1 }
 0x77b   : > { %v2439_v42 = vmul.f32 %v7071_v53, %v2438_v11  ;;  %2521 = vmatmul.f32.gmra.mxu1 %v2435_v23 }
 0x77d   : > { %v2440_v9 = vadd.f32 %v7071_v53, %v2439_v42 }
 0x77f   : > { %v2444_v35 = vsel %vm2443_vm4, %v7071_v53, %v2440_v9  ;;  %v6654_v9 = vld [vmem:[%s11282_s5 + $0x168] sm:$0xff] }
 0x780   : > { %v2449_v12 = vsel %vm2446_vm5, %v2448_v62, %v2444_v35  ;;  %v6653_v62 = vld [vmem:[%s11282_s5 + $0x160] sm:$0xff]  ;;  %v6652_v35 = vld [vmem:[%s11282_s5 + $0x158] sm:$0xff] }
 0x781   : > { %v2450_v59 = vmul.f32 %v8761_v29, %v2449_v12  ;;  %v2492_v60 = vpop.f32.mrf.mxu1 }
 0x783   : > { %2524 = vmatmul.f32.gmra.mxu1 %v2450_v59  ;;  %v6651_v59 = vld [vmem:[%s11282_s5 + $0x150] sm:$0xff] }
 0x789   : > { %v2495_v49 = vpop.f32.mrf.mxu1 }
 0x78b   : > { %2877 = vmatmul.f32.vlgmr.msrb.gmra.mxu1 %v7865_v47 }
 0x791   : > { %v2498_v1 = vpop.f32.mrf.mxu1 }
 0x793   : > { %2880 = vmatmul.f32.gmra.mxu1 %v7903_v10 }
 0x799   : > { %v2501_v29 = vpop.f32.mrf.mxu1 }
 0x79b   : > { %2883 = vmatmul.f32.gmra.mxu1 %v7934_v37 }
 0x7a1   : > { %v2504_v18 = vpop.f32.mrf.mxu1 }
 0x7a3   : > { %2886 = vmatmul.f32.gmra.mxu1 %v7946_v34 }
 0x7ab   : > { %2889 = vmatmul.f32.gmra.mxu1 %v7957_v45 }
 0x7b3   : > { %2892 = vmatmul.f32.gmra.mxu1 %v7964_v2 }
 0x7bb   : > { %2895 = vmatmul.f32.gmra.mxu1 %v7972_v4 }
 0x7c3   : > { %2898 = vmatmul.f32.gmra.mxu1 %v8000_v58 }
 0x7cb   : > { %2901 = vmatmul.f32.gmra.mxu1 %v8025_v22 }
 0x7d0   : > { %v2507_v19 = vpop.f32.mrf.mxu1 }
 0x7d3   : > { %2904 = vmatmul.f32.gmra.mxu1 %v8033_v38 }
 0x7d8   : > { %v2510_v15 = vpop.f32.mrf.mxu1 }
 0x7db   : > { %2907 = vmatmul.f32.gmra.mxu1 %v8042_v20 }
 0x7e0   : > { %v2513_v3 = vpop.f32.mrf.mxu1 }
 0x7e3   : > { %2910 = vmatmul.f32.gmra.mxu1 %v8051_v0 }
 0x7e6   : > { %v2225_v17 = vpop.xlane.xlu2 %2224 }
 0x7e7   : > { %7072 = vrcp.f32 %v2225_v17  ;;  %v2462_v28 = vand.u32 2147483648, %v2225_v17  ;;  %v2460_v61 = vand.u32 2147483647, %v2225_v17  ;;  %vm2456_vm7 = vweird.f32 %v2225_v17 }
 0x7e8   : > { %v8848_v26 = vpop.f32.mrf.mxu1 }
 0x7e9   : > { %v2463_v31 = vor.u32 1.1754944e-38, %v2462_v28  ;;  %vm2461_vm9 = vcmp.eq.f32.partialorder %v2460_v61, 8.507059e+37  ;;  %v8969_v61 = vpop.f32.mrf.mxu3 }
 0x7eb   : > { %2913 = vmatmul.f32.gmra.mxu1 %v8058_v33 }
 0x7ed   : > { %v7073_v57 = vpop.eup %7072 }
 0x7ee   : > { %v2452_v39 = vmul.f32 %v7073_v57, %v2225_v17  ;;  %vm2457_vm6 = vweird.f32 %v7073_v57 }
 0x7ef   : > { %vm2458_vm8 = vmor %vm2456_vm7, %vm2457_vm6 }
 0x7f0   : > { %v2453_v6 = vsub.f32 1.0, %v2452_v39  ;;  %v8851_v8 = vpop.f32.mrf.mxu1 }
 0x7f2   : > { %v2454_v25 = vmul.f32 %v7073_v57, %v2453_v6 }
 0x7f3   : > { %2916 = vmatmul.f32.gmra.mxu1 %v8066_v30 }
 0x7f4   : > { %v2455_v21 = vadd.f32 %v7073_v57, %v2454_v25 }
 0x7f6   : > { %v2459_v63 = vsel %vm2458_vm8, %v7073_v57, %v2455_v21 }
 0x7f7   : > { %v2464_v36 = vsel %vm2461_vm9, %v2463_v31, %v2459_v63  ;;  %v8978_v63 = vpop.f32.mrf.mxu3 }
 0x7f8   : > { %v2465_v55 = vmul.f32 %v8819_v7, %v2464_v36  ;;  %v8855_v56 = vpop.f32.mrf.mxu1 }
 0x7fa   : > { %2527 = vmatmul.f32.vlgmr.msra.gmra.mxu2 %v2465_v55 }
 0x7fb   : > { %2919 = vmatmul.f32.gmra.mxu1 %v8176_v50  ;;  %2943 = vmatpush.msra.mxu2 %v6656_v41  ;;  %v6721_v41 = vld [vmem:[%s11280_s3 + $0x1e0] sm:$0xff] }
 0x7fd   : > { %2944 = vmatpush.msra.mxu2 %v6655_v46 }
 0x7ff   : > { %2945 = vmatpush.msra.mxu2 %v6654_v9  ;;  %v6719_v9 = vld [vmem:[%s11280_s3 + $0x1d0] sm:$0xff] }
 0x800   : > { %v2525_v52 = vpop.f32.mrf.mxu1 }
 0x801   : > { %2946 = vmatpush.msra.mxu2 %v6653_v62  ;;  %v6718_v62 = vld [vmem:[%s11280_s3 + $0x1c8] sm:$0xff] }
 0x802   : > { %6577 = vmatmul.msk.f32.vlgmr.msrb.gmra.mxu2 %vm1092_vm1, %v2483_v16  ;;  %v6650_v16 = vld [vmem:[%s11282_s5 + $0x148] sm:$0xff] }
 0x803   : > { %2922 = vmatmul.f32.gmra.mxu1 %v8188_v24  ;;  %2947 = vmatpush.msra.mxu2 %v6652_v35 }
 0x805   : > { %2948 = vmatpush.msra.mxu2 %v6651_v59  ;;  %v6717_v59 = vld [vmem:[%s11280_s3 + $0x1c0] sm:$0xff] }
 0x807   : > { %2949 = vmatpush.msra.mxu2 %v6650_v16  ;;  %v6716_v16 = vld [vmem:[%s11280_s3 + $0x1b8] sm:$0xff] }
 0x808   : > { %v8860_v53 = vpop.f32.mrf.mxu1 }
 0x80a   : > { %6578 = vmatmul.msk.f32.gmra.mxu2 %vm1092_vm1, %v2486_v40  ;;  %v6649_v40 = vld [vmem:[%s11282_s5 + $0x140] sm:$0xff] }
 0x80b   : > { %2950 = vmatpush.msra.mxu2 %v6649_v40  ;;  %v6715_v40 = vld [vmem:[%s11280_s3 + $0x1b0] sm:$0xff] }
 0x810   : > { %v8863_v54 = vpop.f32.mrf.mxu1 }
 0x812   : > { %6579 = vmatmul.msk.f32.gmra.mxu2 %vm1092_vm1, %v2489_v27  ;;  %v6648_v27 = vld [vmem:[%s11282_s5 + $0x138] sm:$0xff] }
 0x813   : > { %2951 = vmatpush.msra.mxu2 %v6648_v27 }
 0x818   : > { %v8866_v48 = vpop.f32.mrf.mxu1 }
 0x81a   : > { %6580 = vmatmul.msk.f32.gmra.mxu2 %vm1092_vm1, %v2492_v60 }
 0x820   : > { %v8869_v7 = vpop.f32.mrf.mxu1 }
 0x822   : > { %6581 = vmatmul.msk.f32.gmra.mxu2 %vm1092_vm1, %v2495_v49  ;;  %v6647_v49 = vld [vmem:[%s11282_s5 + $0x130] sm:$0xff] }
 0x823   : > { %2952 = vmatpush.msra.mxu2 %v6647_v49  ;;  %v6713_v49 = vld [vmem:[%s11280_s3 + $0x1a0] sm:$0xff] }
 0x828   : > { %v8872_v14 = vpop.f32.mrf.mxu1 }
 0x82a   : > { %6582 = vmatmul.msk.f32.gmra.mxu2 %vm1092_vm1, %v2498_v1  ;;  %v6646_v1 = vld [vmem:[%s11282_s5 + $0x128] sm:$0xff] }
 0x82b   : > { %2953 = vmatpush.msra.mxu2 %v6646_v1 }
 0x830   : > { %v8875_v44 = vpop.f32.mrf.mxu1 }
 0x832   : > { %6583 = vmatmul.msk.f32.gmra.mxu2 %vm1092_vm1, %v2501_v29  ;;  %v6645_v29 = vld [vmem:[%s11282_s5 + $0x120] sm:$0xff] }
 0x833   : > { %2954 = vmatpush.msra.mxu2 %v6645_v29 }
 0x838   : > { %v8878_v11 = vpop.f32.mrf.mxu1 }
 0x83a   : > { %6584 = vmatmul.msk.f32.gmra.mxu2 %vm1092_vm1, %v2504_v18  ;;  %v6644_v18 = vld [vmem:[%s11282_s5 + $0x118] sm:$0xff] }
 0x83b   : > { %2955 = vmatpush.msra.mxu2 %v6644_v18  ;;  %v6712_v18 = vld [vmem:[%s11280_s3 + $0x198] sm:$0xff] }
 0x840   : > { %v8881_v23 = vpop.f32.mrf.mxu1 }
 0x842   : > { %6585 = vmatmul.msk.f32.gmra.mxu2 %vm1092_vm1, %v2507_v19 }
 0x848   : > { %v2902_v42 = vpop.f32.mrf.mxu1 }
 0x84a   : > { %6586 = vmatmul.msk.f32.gmra.mxu2 %vm1092_vm1, %v2510_v15  ;;  %v6643_v15 = vld [vmem:[%s11282_s5 + $0x110] sm:$0xff] }
 0x84b   : > { %2956 = vmatpush.msra.mxu2 %v6643_v15  ;;  %v6710_v15 = vld [vmem:[%s11280_s3 + $0x188] sm:$0xff] }
 0x84d   : > { %2957 = vmatpush.msra.mxu2 %v6642_v51 }
 0x84f   : > { %2958 = vmatpush.msra.mxu2 %v6641_v32  ;;  %v6709_v32 = vld [vmem:[%s11280_s3 + $0x180] sm:$0xff] }
 0x850   : > { %v2905_v12 = vpop.f32.mrf.mxu1 }
 0x852   : > { %6587 = vmatmul.msk.f32.gmra.mxu2 %vm1092_vm1, %v2513_v3 }
 0x858   : > { %v2908_v60 = vpop.f32.mrf.mxu1 }
 0x85a   : > { %6588 = vmatmul.msk.f32.gmra.mxu2 %vm1092_vm1, %v8848_v26 }
 0x860   : > { %v2911_v19 = vpop.f32.mrf.mxu1 }
 0x862   : > { %6589 = vmatmul.msk.f32.gmra.mxu2 %vm1092_vm1, %v8851_v8  ;;  %v2796_v8 = vpop.f32.mrf.mxu0 }
 0x868   : > { %v2914_v43 = vpop.f32.mrf.mxu1 }
 0x86a   : > { %6590 = vmatmul.msk.f32.gmra.mxu2 %vm1092_vm1, %v8855_v56  ;;  %v2799_v21 = vpop.f32.mrf.mxu0  ;;  %v8989_v56 = vpop.f32.mrf.mxu3 }
 0x870   : > { %v2917_v3 = vpop.f32.mrf.mxu1 }
 0x872   : > { %6591 = vmatmul.msk.f32.gmra.mxu2 %vm1092_vm1, %v2525_v52  ;;  %v2802_v55 = vpop.f32.mrf.mxu0 }
 0x878   : > { %v2920_v5 = vpop.f32.mrf.mxu1 }
 0x87d   : > { %v2528_v17 = vpop.f32.mrf.mxu2 }
 0x87e   : > { %6592 = vmatmul.msk.f32.gmra.mxu2 %vm1092_vm1, %v2528_v17 }
 0x880   : > { %v2923_v26 = vpop.f32.mrf.mxu1 }
 0x881   : > { %6657 = vmatpush.xpose.msk.msrb.mxu3 %vm1092_vm1, %v2923_v26 }
 0x885   : > { %v8943_v57 = vpop.f32.mrf.mxu2  ;;  %6658 = vmatpush.xpose.msk.msrb.mxu3 %vm1092_vm1, %v2920_v5 }
 0x886   : > { %2959 = vmatmul.f32.vlgmr.msra.gmra.mxu2 %v7865_v47 }
 0x889   : > { %6659 = vmatpush.xpose.msk.msrb.mxu3 %vm1092_vm1, %v2917_v3 }
 0x88d   : > { %v8948_v39 = vpop.f32.mrf.mxu2  ;;  %6660 = vmatpush.xpose.msk.msrb.mxu3 %vm1092_vm1, %v2914_v43 }
 0x88e   : > { %2962 = vmatmul.f32.gmra.mxu2 %v7903_v10 }
 0x891   : > { %6661 = vmatpush.xpose.msk.msrb.mxu3 %vm1092_vm1, %v2911_v19  ;;  %v6711_v19 = vld [vmem:[%s11280_s3 + $0x190] sm:$0xff] }
 0x895   : > { %v8953_v6 = vpop.f32.mrf.mxu2  ;;  %6662 = vmatpush.xpose.msk.msrb.mxu3 %vm1092_vm1, %v2908_v60  ;;  %v6714_v60 = vld [vmem:[%s11280_s3 + $0x1a8] sm:$0xff] }
 0x896   : > { %2965 = vmatmul.f32.gmra.mxu2 %v7934_v37 }
 0x899   : > { %6663 = vmatpush.xpose.msk.msrb.mxu3 %vm1092_vm1, %v2905_v12 }
 0x89d   : > { %v8958_v28 = vpop.f32.mrf.mxu2  ;;  %6664 = vmatpush.xpose.msk.msrb.mxu3 %vm1092_vm1, %v2902_v42  ;;  %v6720_v42 = vld [vmem:[%s11280_s3 + $0x1d8] sm:$0xff] }
 0x89e   : > { %2968 = vmatmul.f32.gmra.mxu2 %v7946_v34 }
 0x8a1   : > { %6665 = vmatpush.xpose.msk.msrb.mxu3 %vm1092_vm1, %v8881_v23 }
 0x8a5   : > { %v8964_v25 = vpop.f32.mrf.mxu2  ;;  %6666 = vmatpush.xpose.msk.msrb.mxu3 %vm1092_vm1, %v8878_v11 }
 0x8a6   : > { %2971 = vmatmul.f32.gmra.mxu2 %v7957_v45 }
 0x8a9   : > { %6667 = vmatpush.xpose.msk.msrb.mxu3 %vm1092_vm1, %v8875_v44  ;;  %v6722_v44 = vld [vmem:[%s11280_s3 + $0x1e8] sm:$0xff] }
 0x8ad   : > { %v8973_v31 = vpop.f32.mrf.mxu2  ;;  %6668 = vmatpush.xpose.msk.msrb.mxu3 %vm1092_vm1, %v8872_v14 }
 0x8ae   : > { %11332 = vst [vmem:[#allocation9_spill] sm:$0xff] %v8973_v31  ;;  %2974 = vmatmul.f32.gmra.mxu2 %v7964_v2 }
 0x8b1   : > { %6669 = vmatpush.xpose.msk.msrb.mxu3 %vm1092_vm1, %v8869_v7  ;;  %v2805_v7 = vpop.f32.mrf.mxu0 }
 0x8b5   : > { %v8982_v36 = vpop.f32.mrf.mxu2  ;;  %6670 = vmatpush.xpose.msk.msrb.mxu3 %vm1092_vm1, %v8866_v48  ;;  %v8999_v48 = vpop.f32.mrf.mxu3 }
 0x8b6   : > { %11333 = vst [vmem:[#allocation10_spill] sm:$0xff] %v8982_v36  ;;  %2977 = vmatmul.f32.gmra.mxu2 %v7972_v4 }
 0x8b9   : > { %6671 = vmatpush.xpose.msk.msrb.mxu3 %vm1092_vm1, %v8863_v54  ;;  %v6724_v54 = vld [vmem:[%s11280_s3 + $0x1f8] sm:$0xff]  ;;  %v2808_v11 = vpop.f32.mrf.mxu0 }
 0x8ba   : > { %3753 = vmatpush.msrb.mxu2 %v6724_v54 }
 0x8bd   : > { %v8991_v52 = vpop.f32.mrf.mxu2  ;;  %6672 = vmatpush.xpose.msk.msrb.mxu3 %vm1092_vm1, %v8860_v53  ;;  %v6723_v53 = vld [vmem:[%s11280_s3 + $0x1f0] sm:$0xff]  ;;  %v9021_v46 = vpop.f32.mrf.mxu3 }
 0x8be   : > { %11334 = vst [vmem:[#allocation11_spill] sm:$0xff] %v8991_v52  ;;  %2980 = vmatmul.f32.gmra.mxu2 %v8000_v58 }
 0x8bf   : > { %3754 = vmatpush.msrb.mxu2 %v6723_v53  ;;  %11337 = vst [vmem:[#allocation14_spill] sm:$0xff] %v9021_v46  ;;  %v6740_v53 = vld [vmem:[%s11281_s4 + $0x1f8] sm:$0xff] }
 0x8c0   : > { %6673 = vmatmul.msk.f32.vlgmr.msrb.gmra.mxu3 %vm1092_vm1, %v2796_v8 }
 0x8c1   : > { %3755 = vmatpush.msrb.mxu2 %v6722_v44  ;;  %v2811_v35 = vpop.f32.mrf.mxu0  ;;  %v6739_v44 = vld [vmem:[%s11281_s4 + $0x1f0] sm:$0xff]  ;;  %3835 = vmatpush.msra.mxu3 %v6740_v53 }
 0x8c3   : > { %3756 = vmatpush.msrb.mxu2 %v6721_v41  ;;  %3836 = vmatpush.msra.mxu3 %v6739_v44  ;;  %v6726_v44 = vld [vmem:[%s11281_s4 + $0x188] sm:$0xff] }
 0x8c5   : > { %v8997_v14 = vpop.f32.mrf.mxu2  ;;  %3757 = vmatpush.msrb.mxu2 %v6720_v42  ;;  %v9043_v27 = vpop.f32.mrf.mxu3  ;;  %v6737_v42 = vld [vmem:[%s11281_s4 + $0x1e0] sm:$0xff] }
 0x8c6   : > { %11335 = vst [vmem:[#allocation12_spill] sm:$0xff] %v8997_v14  ;;  %2983 = vmatmul.f32.gmra.mxu2 %v8025_v22 }
 0x8c7   : > { %3758 = vmatpush.msrb.mxu2 %v6719_v9  ;;  %11339 = vst [vmem:[#allocation16_spill] sm:$0xff] %v9043_v27 }
 0x8c8   : > { %6674 = vmatmul.msk.f32.gmra.mxu3 %vm1092_vm1, %v2799_v21 }
 0x8c9   : > { %3759 = vmatpush.msrb.mxu2 %v6718_v62  ;;  %v2814_v29 = vpop.f32.mrf.mxu0  ;;  %v6736_v62 = vld [vmem:[%s11281_s4 + $0x1d8] sm:$0xff] }
 0x8cb   : > { %3760 = vmatpush.msrb.mxu2 %v6717_v59 }
 0x8cd   : > { %v9012_v23 = vpop.f32.mrf.mxu2  ;;  %3761 = vmatpush.msrb.mxu2 %v6716_v16  ;;  %v9064_v51 = vpop.f32.mrf.mxu3  ;;  %v6734_v16 = vld [vmem:[%s11281_s4 + $0x1c8] sm:$0xff] }
 0x8ce   : > { %11336 = vst [vmem:[#allocation13_spill] sm:$0xff] %v9012_v23  ;;  %2986 = vmatmul.f32.gmra.mxu2 %v8033_v38 }
 0x8cf   : > { %3762 = vmatpush.msrb.mxu2 %v6715_v40  ;;  %11341 = vst [vmem:[#allocation18_spill] sm:$0xff] %v9064_v51  ;;  %v6733_v40 = vld [vmem:[%s11281_s4 + $0x1c0] sm:$0xff] }
 0x8d0   : > { %6675 = vmatmul.msk.f32.gmra.mxu3 %vm1092_vm1, %v2802_v55 }
 0x8d1   : > { %3763 = vmatpush.msrb.mxu2 %v6714_v60  ;;  %v2817_v3 = vpop.f32.mrf.mxu0 }
 0x8d3   : > { %3764 = vmatpush.msrb.mxu2 %v6713_v49 }
 0x8d5   : > { %v9030_v12 = vpop.f32.mrf.mxu2  ;;  %3765 = vmatpush.msrb.mxu2 %v6712_v18  ;;  %v9073_v5 = vpop.f32.mrf.mxu3  ;;  %v6731_v18 = vld [vmem:[%s11281_s4 + $0x1b0] sm:$0xff] }
 0x8d6   : > { %11338 = vst [vmem:[#allocation15_spill] sm:$0xff] %v9030_v12  ;;  %2989 = vmatmul.f32.gmra.mxu2 %v8042_v20 }
 0x8d7   : > { %3766 = vmatpush.msrb.mxu2 %v6711_v19  ;;  %11343 = vst [vmem:[#allocation20_spill] sm:$0xff] %v9073_v5  ;;  %v6730_v19 = vld [vmem:[%s11281_s4 + $0x1a8] sm:$0xff] }
 0x8d8   : > { %6676 = vmatmul.msk.f32.gmra.mxu3 %vm1092_vm1, %v2805_v7 }
 0x8d9   : > { %3767 = vmatpush.msrb.mxu2 %v6710_v15  ;;  %v2820_v26 = vpop.f32.mrf.mxu0 }
 0x8db   : > { %3768 = vmatpush.msrb.mxu2 %v6709_v32  ;;  %v6729_v32 = vld [vmem:[%s11281_s4 + $0x1a0] sm:$0xff] }
 0x8dd   : > { %v9051_v1 = vpop.f32.mrf.mxu2  ;;  %v9079_v8 = vpop.f32.mrf.mxu3 }
 0x8de   : > { %11340 = vst [vmem:[#allocation17_spill] sm:$0xff] %v9051_v1  ;;  %2992 = vmatmul.f32.gmra.mxu2 %v8051_v0 }
 0x8df   : > { %11345 = vst [vmem:[#allocation22_spill] sm:$0xff] %v9079_v8 }
 0x8e0   : > { %6677 = vmatmul.msk.f32.gmra.mxu3 %vm1092_vm1, %v2808_v11  ;;  %v6738_v11 = vld [vmem:[%s11281_s4 + $0x1e8] sm:$0xff] }
 0x8e1   : > { %v2823_v55 = vpop.f32.mrf.mxu0  ;;  %3837 = vmatpush.msra.mxu3 %v6738_v11 }
 0x8e3   : > { %3838 = vmatpush.msra.mxu3 %v6737_v42 }
 0x8e5   : > { %v9069_v43 = vpop.f32.mrf.mxu2  ;;  %v9086_v7 = vpop.f32.mrf.mxu3  ;;  %3839 = vmatpush.msra.mxu3 %v6736_v62 }
 0x8e6   : > { %11342 = vst [vmem:[#allocation19_spill] sm:$0xff] %v9069_v43  ;;  %2995 = vmatmul.f32.gmra.mxu2 %v8058_v33 }
 0x8e7   : > { %11347 = vst [vmem:[#allocation24_spill] sm:$0xff] %v9086_v7 }
 0x8e8   : > { %6678 = vmatmul.msk.f32.gmra.mxu3 %vm1092_vm1, %v2811_v35  ;;  %v6735_v35 = vld [vmem:[%s11281_s4 + $0x1d0] sm:$0xff] }
 0x8e9   : > { %v2826_v41 = vpop.f32.mrf.mxu0  ;;  %3840 = vmatpush.msra.mxu3 %v6735_v35 }
 0x8eb   : > { %3841 = vmatpush.msra.mxu3 %v6734_v16 }
 0x8ed   : > { %v9076_v17 = vpop.f32.mrf.mxu2  ;;  %v9113_v59 = vpop.f32.mrf.mxu3  ;;  %3842 = vmatpush.msra.mxu3 %v6733_v40 }
 0x8ee   : > { %2998 = vmatmul.f32.gmra.mxu2 %v8066_v30  ;;  %11344 = vst [vmem:[#allocation21_spill] sm:$0xff] %v9076_v17 }
 0x8ef   : > { %11349 = vst [vmem:[#allocation26_spill] sm:$0xff] %v9113_v59 }
 0x8f0   : > { %6679 = vmatmul.msk.f32.gmra.mxu3 %vm1092_vm1, %v2814_v29  ;;  %v6732_v29 = vld [vmem:[%s11281_s4 + $0x1b8] sm:$0xff] }
 0x8f1   : > { %v2829_v60 = vpop.f32.mrf.mxu0  ;;  %3843 = vmatpush.msra.mxu3 %v6732_v29 }
 0x8f3   : > { %3844 = vmatpush.msra.mxu3 %v6731_v18 }
 0x8f5   : > { %v9082_v21 = vpop.f32.mrf.mxu2  ;;  %v9134_v15 = vpop.f32.mrf.mxu3  ;;  %3845 = vmatpush.msra.mxu3 %v6730_v19 }
 0x8f6   : > { %3001 = vmatmul.f32.gmra.mxu2 %v8176_v50  ;;  %11346 = vst [vmem:[#allocation23_spill] sm:$0xff] %v9082_v21 }
 0x8f7   : > { %11350 = vst [vmem:[#allocation27_spill] sm:$0xff] %v9134_v15  ;;  %3846 = vmatpush.msra.mxu3 %v6729_v32 }
 0x8f8   : > { %6680 = vmatmul.msk.f32.gmra.mxu3 %vm1092_vm1, %v2817_v3 }
 0x8f9   : > { %v2832_v53 = vpop.f32.mrf.mxu0 }
 0x8fd   : > { %v9152_v11 = vpop.f32.mrf.mxu3 }
 0x8fe   : > { %3004 = vmatmul.f32.gmra.mxu2 %v8188_v24  ;;  %11351 = vst [vmem:[#allocation28_spill] sm:$0xff] %v9152_v11 }
 0x900   : > { %6681 = vmatmul.msk.f32.gmra.mxu3 %vm1092_vm1, %v2820_v26  ;;  %v6728_v26 = vld [vmem:[%s11281_s4 + $0x198] sm:$0xff] }
 0x901   : > { %v9089_v54 = vpop.f32.mrf.mxu2  ;;  %3847 = vmatpush.msra.mxu3 %v6728_v26  ;;  %v2835_v62 = vpop.f32.mrf.mxu0 }
 0x902   : > { %11348 = vst [vmem:[#allocation25_spill] sm:$0xff] %v9089_v54 }
 0x905   : > { %v9162_v35 = vpop.f32.mrf.mxu3 }
 0x906   : > { %3769 = vmatmul.f32.vlgmr.msrb.gmra.mxu2 %v7865_v47  ;;  %11352 = vst [vmem:[#allocation29_spill] sm:$0xff] %v9162_v35 }
 0x908   : > { %6682 = vmatmul.msk.f32.gmra.mxu3 %vm1092_vm1, %v2823_v55  ;;  %v6727_v55 = vld [vmem:[%s11281_s4 + $0x190] sm:$0xff] }
 0x909   : > { %v9105_v9 = vpop.f32.mrf.mxu2  ;;  %3848 = vmatpush.msra.mxu3 %v6727_v55  ;;  %v2838_v40 = vpop.f32.mrf.mxu0 }
 0x90b   : > { %3849 = vmatpush.msra.mxu3 %v6726_v44 }
 0x90d   : > { %v9171_v29 = vpop.f32.mrf.mxu3 }
 0x90e   : > { %3772 = vmatmul.f32.gmra.mxu2 %v7903_v10  ;;  %11353 = vst [vmem:[#allocation30_spill] sm:$0xff] %v9171_v29 }
 0x910   : > { %6683 = vmatmul.msk.f32.gmra.mxu3 %vm1092_vm1, %v2826_v41  ;;  %v6725_v41 = vld [vmem:[%s11281_s4 + $0x180] sm:$0xff] }
 0x911   : > { %v9123_v49 = vpop.f32.mrf.mxu2  ;;  %3850 = vmatpush.msra.mxu3 %v6725_v41  ;;  %v2841_v18 = vpop.f32.mrf.mxu0 }
 0x915   : > { %v9177_v32 = vpop.f32.mrf.mxu3 }
 0x916   : > { %3775 = vmatmul.f32.gmra.mxu2 %v7934_v37  ;;  %11354 = vst [vmem:[#allocation31_spill] sm:$0xff] %v9177_v32 }
 0x918   : > { %6684 = vmatmul.msk.f32.gmra.mxu3 %vm1092_vm1, %v2829_v60 }
 0x919   : > { %v9141_v3 = vpop.f32.mrf.mxu2 }
 0x91e   : > { %3778 = vmatmul.f32.gmra.mxu2 %v7946_v34 }
 0x920   : > { %6685 = vmatmul.msk.f32.gmra.mxu3 %vm1092_vm1, %v2832_v53 }
 0x921   : > { %v9159_v42 = vpop.f32.mrf.mxu2 }
 0x926   : > { %3781 = vmatmul.f32.gmra.mxu2 %v7957_v45 }
 0x928   : > { %6686 = vmatmul.msk.f32.gmra.mxu3 %vm1092_vm1, %v2835_v62 }
 0x929   : > { %v9165_v16 = vpop.f32.mrf.mxu2 }
 0x92e   : > { %3784 = vmatmul.f32.gmra.mxu2 %v7964_v2 }
 0x930   : > { %6687 = vmatmul.msk.f32.gmra.mxu3 %vm1092_vm1, %v2838_v40 }
 0x931   : > { %v9169_v60 = vpop.f32.mrf.mxu2 }
 0x936   : > { %3787 = vmatmul.f32.gmra.mxu2 %v7972_v4 }
 0x938   : > { %6688 = vmatmul.msk.f32.gmra.mxu3 %vm1092_vm1, %v2841_v18 }
 0x939   : > { %v9175_v19 = vpop.f32.mrf.mxu2 }
 0x93e   : > { %3790 = vmatmul.f32.gmra.mxu2 %v8000_v58 }
 0x940   : > { %3851 = vmatmul.f32.vlgmr.msra.gmra.mxu3 %v7865_v47 }
 0x941   : > { %v9181_v26 = vpop.f32.mrf.mxu2 }
 0x943   : > { %v3121_v55 = vpop.f32.mrf.mxu3 }
 0x944   : > { %v9183_v53 = vmul.f32 0.17677669, %v3121_v55 }
 0x946   : > { %3793 = vmatmul.f32.gmra.mxu2 %v8025_v22  ;;  %3185 = vmax.xlane.f32.xlu0 %v9183_v53 }
 0x948   : > { %3854 = vmatmul.f32.gmra.mxu3 %v7903_v10 }
 0x949   : > { %v2984_v44 = vpop.f32.mrf.mxu2 }
 0x94b   : > { %v3124_v41 = vpop.f32.mrf.mxu3 }
 0x94c   : > { %v9188_v62 = vmul.f32 0.17677669, %v3124_v41 }
 0x94e   : > { %3796 = vmatmul.f32.gmra.mxu2 %v8033_v38  ;;  %3187 = vmax.xlane.f32.xlu1 %v9188_v62 }
 0x950   : > { %3857 = vmatmul.f32.gmra.mxu3 %v7934_v37 }
 0x951   : > { %v2987_v40 = vpop.f32.mrf.mxu2 }
 0x953   : > { %v3127_v18 = vpop.f32.mrf.mxu3 }
 0x954   : > { %v9193_v55 = vmul.f32 0.17677669, %v3127_v18 }
 0x956   : > { %3799 = vmatmul.f32.gmra.mxu2 %v8042_v20  ;;  %3189 = vmax.xlane.f32.xlu2 %v9193_v55 }
 0x958   : > { %3860 = vmatmul.f32.gmra.mxu3 %v7946_v34 }
 0x959   : > { %v2990_v32 = vpop.f32.mrf.mxu2 }
 0x95b   : > { %v3130_v54 = vpop.f32.mrf.mxu3 }
 0x95c   : > { %v9198_v41 = vmul.f32 0.17677669, %v3130_v54 }
 0x95e   : > { %3802 = vmatmul.f32.gmra.mxu2 %v8051_v0  ;;  %3191 = vmax.xlane.f32.xlu0 %v9198_v41 }
 0x960   : > { %3863 = vmatmul.f32.gmra.mxu3 %v7957_v45 }
 0x961   : > { %v2993_v29 = vpop.f32.mrf.mxu2 }
 0x963   : > { %v3133_v21 = vpop.f32.mrf.mxu3 }
 0x964   : > { %v9203_v18 = vmul.f32 0.17677669, %v3133_v21 }
 0x966   : > { %3805 = vmatmul.f32.gmra.mxu2 %v8058_v33  ;;  %3193 = vmax.xlane.f32.xlu1 %v9203_v18 }
 0x968   : > { %3866 = vmatmul.f32.gmra.mxu3 %v7964_v2 }
 0x969   : > { %v2996_v35 = vpop.f32.mrf.mxu2 }
 0x96b   : > { %v3136_v17 = vpop.f32.mrf.mxu3 }
 0x96c   : > { %v9208_v54 = vmul.f32 0.17677669, %v3136_v17 }
 0x96e   : > { %3808 = vmatmul.f32.gmra.mxu2 %v8066_v30  ;;  %3195 = vmax.xlane.f32.xlu2 %v9208_v54 }
 0x970   : > { %3869 = vmatmul.f32.gmra.mxu3 %v7972_v4 }
 0x971   : > { %v2999_v11 = vpop.f32.mrf.mxu2 }
 0x973   : > { %v3139_v43 = vpop.f32.mrf.mxu3 }
 0x974   : > { %v9213_v21 = vmul.f32 0.17677669, %v3139_v43 }
 0x976   : > { %3811 = vmatmul.f32.gmra.mxu2 %v8176_v50  ;;  %3197 = vmax.xlane.f32.xlu0 %v9213_v21 }
 0x978   : > { %3872 = vmatmul.f32.gmra.mxu3 %v8000_v58 }
 0x979   : > { %v3002_v15 = vpop.f32.mrf.mxu2 }
 0x97b   : > { %v3142_v1 = vpop.f32.mrf.mxu3 }
 0x97c   : > { %v9218_v17 = vmul.f32 0.17677669, %v3142_v1 }
 0x97e   : > { %3814 = vmatmul.f32.gmra.mxu2 %v8188_v24  ;;  %3199 = vmax.xlane.f32.xlu2 %v9218_v17 }
 0x980   : > { %3875 = vmatmul.f32.gmra.mxu3 %v8025_v22 }
 0x981   : > { %v3005_v59 = vpop.f32.mrf.mxu2 }
 0x982   : > { %3537 = vmatpush.msra.mxu0 %v3005_v59  ;;  %6832 = vmatpush.msra.mxu1 %v3005_v59 }
 0x983   : > { %v3145_v43 = vpop.f32.mrf.mxu3 }
 0x984   : > { %3538 = vmatpush.msra.mxu0 %v3002_v15  ;;  %6833 = vmatpush.msra.mxu1 %v3002_v15 }
 0x986   : > { %3539 = vmatpush.msra.mxu0 %v2999_v11  ;;  %6834 = vmatpush.msra.mxu1 %v2999_v11 }
 0x988   : > { %3540 = vmatpush.msra.mxu0 %v2996_v35  ;;  %6835 = vmatpush.msra.mxu1 %v2996_v35 }
 0x989   : > { %3878 = vmatmul.f32.gmra.mxu3 %v8033_v38 }
 0x98a   : > { %3541 = vmatpush.msra.mxu0 %v2993_v29  ;;  %6836 = vmatpush.msra.mxu1 %v2993_v29 }
 0x98c   : > { %3542 = vmatpush.msra.mxu0 %v2990_v32  ;;  %6837 = vmatpush.msra.mxu1 %v2990_v32 }
 0x98e   : > { %3543 = vmatpush.msra.mxu0 %v2987_v40  ;;  %6838 = vmatpush.msra.mxu1 %v2987_v40 }
 0x990   : > { %3544 = vmatpush.msra.mxu0 %v2984_v44  ;;  %6839 = vmatpush.msra.mxu1 %v2984_v44 }
 0x991   : > { %3881 = vmatmul.f32.gmra.mxu3 %v8042_v20 }
 0x992   : > { %3545 = vmatpush.msra.mxu0 %v9181_v26  ;;  %6840 = vmatpush.msra.mxu1 %v9181_v26 }
 0x994   : > { %3546 = vmatpush.msra.mxu0 %v9175_v19  ;;  %6841 = vmatpush.msra.mxu1 %v9175_v19 }
 0x996   : > { %3547 = vmatpush.msra.mxu0 %v9169_v60  ;;  %6842 = vmatpush.msra.mxu1 %v9169_v60  ;;  %v9252_v60 = vmul.f32 0.17677669, %v3145_v43 }
 0x998   : > { %3548 = vmatpush.msra.mxu0 %v9165_v16  ;;  %6843 = vmatpush.msra.mxu1 %v9165_v16 }
 0x999   : > { %3884 = vmatmul.f32.gmra.mxu3 %v8051_v0 }
 0x99a   : > { %3549 = vmatpush.msra.mxu0 %v9159_v42  ;;  %6844 = vmatpush.msra.mxu1 %v9159_v42 }
 0x99c   : > { %3550 = vmatpush.msra.mxu0 %v9141_v3  ;;  %6845 = vmatpush.msra.mxu1 %v9141_v3 }
 0x99e   : > { %3551 = vmatpush.msra.mxu0 %v9123_v49  ;;  %6846 = vmatpush.msra.mxu1 %v9123_v49 }
 0x9a0   : > { %3552 = vmatpush.msra.mxu0 %v9105_v9  ;;  %6847 = vmatpush.msra.mxu1 %v9105_v9  ;;  %v3148_v9 = vpop.f32.mrf.mxu3 }
 0x9a1   : > { %3887 = vmatmul.f32.gmra.mxu3 %v8058_v33  ;;  %v9259_v44 = vmul.f32 0.17677669, %v3148_v9 }
 0x9a8   : > { %v3151_v32 = vpop.f32.mrf.mxu3 }
 0x9a9   : > { %3890 = vmatmul.f32.gmra.mxu3 %v8066_v30 }
 0x9b1   : > { %3893 = vmatmul.f32.gmra.mxu3 %v8176_v50 }
 0x9b9   : > { %3896 = vmatmul.f32.gmra.mxu3 %v8188_v24  ;;  %v3186_v1 = vpop.xlane.xlu0 %3185 }
 0x9ba   : > { %v3217_v59 = vsub.f32 %v9183_v53, %v3186_v1 }
 0x9bc   : > { %v3233_v15 = vmul.f32 1.442695, %v3217_v59  ;;  %v9266_v59 = vmul.f32 0.17677669, %v3151_v32 }
 0x9be   : > { %7074 = vpow2.f32 %v3233_v15 }
 0x9c1   : > { %v3188_v3 = vpop.xlane.xlu1 %3187 }
 0x9c2   : > { %v3218_v49 = vsub.f32 %v9188_v62, %v3188_v3 }
 0x9c4   : > { %v9248_v11 = vpop.eup %7074  ;;  %v3235_v42 = vmul.f32 1.442695, %v3218_v49 }
 0x9c5   : > { %3265 = vadd.xlane.f32.xlu1 %v9248_v11 }
 0x9c6   : > { %7076 = vpow2.f32 %v3235_v42 }
 0x9c9   : > { %v3190_v35 = vpop.xlane.xlu2 %3189 }
 0x9ca   : > { %v3219_v16 = vsub.f32 %v9193_v55, %v3190_v35  ;;  %v3154_v55 = vpop.f32.mrf.mxu3 }
 0x9cb   : > { %v9273_v42 = vmul.f32 0.17677669, %v3154_v55 }
 0x9cc   : > { %v9254_v29 = vpop.eup %7076  ;;  %v3237_v19 = vmul.f32 1.442695, %v3219_v16 }
 0x9cd   : > { %3201 = vmax.xlane.f32.xlu1 %v9252_v60  ;;  %3267 = vadd.xlane.f32.xlu0 %v9254_v29 }
 0x9ce   : > { %7078 = vpow2.f32 %v3237_v19 }
 0x9d1   : > { %v3192_v26 = vpop.xlane.xlu0 %3191 }
 0x9d2   : > { %v3220_v53 = vsub.f32 %v9198_v41, %v3192_v26  ;;  %v3157_v49 = vpop.f32.mrf.mxu3 }
 0x9d3   : > { %v9280_v32 = vmul.f32 0.17677669, %v3157_v49 }
 0x9d4   : > { %v9261_v62 = vpop.eup %7078  ;;  %v3239_v40 = vmul.f32 1.442695, %v3220_v53 }
 0x9d5   : > { %3269 = vadd.xlane.f32.xlu2 %v9261_v62  ;;  %3203 = vmax.xlane.f32.xlu0 %v9259_v44 }
 0x9d6   : > { %7080 = vpow2.f32 %v3239_v40 }
 0x9d9   : > { %v3194_v1 = vpop.xlane.xlu1 %3193 }
 0x9da   : > { %v3221_v43 = vsub.f32 %v9203_v18, %v3194_v1  ;;  %v3160_v53 = vpop.f32.mrf.mxu3 }
 0x9db   : > { %v9287_v1 = vmul.f32 0.17677669, %v3160_v53 }
 0x9dc   : > { %v9268_v15 = vpop.eup %7080  ;;  %v3241_v3 = vmul.f32 1.442695, %v3221_v43 }
 0x9dd   : > { %3271 = vadd.xlane.f32.xlu1 %v9268_v15  ;;  %3205 = vmax.xlane.f32.xlu2 %v9266_v59 }
 0x9de   : > { %7082 = vpow2.f32 %v3241_v3 }
 0x9e1   : > { %v3196_v41 = vpop.xlane.xlu2 %3195 }
 0x9e2   : > { %v3222_v9 = vsub.f32 %v9208_v54, %v3196_v41 }
 0x9e4   : > { %v9275_v35 = vpop.eup %7082  ;;  %v3243_v16 = vmul.f32 1.442695, %v3222_v9 }
 0x9e5   : > { %3207 = vmax.xlane.f32.xlu1 %v9273_v42  ;;  %3273 = vadd.xlane.f32.xlu0 %v9275_v35 }
 0x9e6   : > { %7084 = vpow2.f32 %v3243_v16 }
 0x9e9   : > { %v3198_v18 = vpop.xlane.xlu0 %3197 }
 0x9ea   : > { %v3223_v19 = vsub.f32 %v9213_v21, %v3198_v18  ;;  %v3163_v21 = vpop.f32.mrf.mxu3 }
 0x9eb   : > { %v9293_v41 = vmul.f32 0.17677669, %v3163_v21 }
 0x9ec   : > { %v9282_v26 = vpop.eup %7084  ;;  %v3245_v40 = vmul.f32 1.442695, %v3223_v19 }
 0x9ed   : > { %3275 = vadd.xlane.f32.xlu2 %v9282_v26  ;;  %3209 = vmax.xlane.f32.xlu0 %v9280_v32 }
 0x9ee   : > { %7086 = vpow2.f32 %v3245_v40 }
 0x9f1   : > { %v3200_v54 = vpop.xlane.xlu2 %3199 }
 0x9f2   : > { %v3224_v55 = vsub.f32 %v9218_v17, %v3200_v54  ;;  %v3166_v17 = vpop.f32.mrf.mxu3 }
 0x9f3   : > { %v9299_v9 = vmul.f32 0.17677669, %v3166_v17 }
 0x9f4   : > { %v9289_v43 = vpop.eup %7086  ;;  %v3247_v3 = vmul.f32 1.442695, %v3224_v55 }
 0x9f5   : > { %3277 = vadd.xlane.f32.xlu1 %v9289_v43  ;;  %3211 = vmax.xlane.f32.xlu2 %v9287_v1 }
 0x9f6   : > { %7088 = vpow2.f32 %v3247_v3 }
 0x9fc   : > { %v9295_v49 = vpop.eup %7088 }
 0x9fd   : > { %3213 = vmax.xlane.f32.xlu1 %v9293_v41  ;;  %3279 = vadd.xlane.f32.xlu0 %v9295_v49 }
 0xa05   : > { %3215 = vmax.xlane.f32.xlu0 %v9299_v9 }
 0xa38   : > { %v3266_v16 = vpop.xlane.xlu1 %3265 }
 0xa39   : > { %7090 = vrcp.f32 %v3266_v16  ;;  %v3308_v3 = vand.u32 2147483648, %v3266_v16  ;;  %v3306_v7 = vand.u32 2147483647, %v3266_v16  ;;  %vm3302_vm11 = vweird.f32 %v3266_v16 }
 0xa3b   : > { %v3309_v8 = vor.u32 1.1754944e-38, %v3308_v3  ;;  %vm3307_vm13 = vcmp.eq.f32.partialorder %v3306_v7, 8.507059e+37 }
 0xa3f   : > { %v7091_v18 = vpop.eup %7090 }
 0xa40   : > { %v3298_v19 = vmul.f32 %v7091_v18, %v3266_v16  ;;  %v3268_v53 = vpop.xlane.xlu0 %3267  ;;  %v3202_v40 = vpop.xlane.xlu1 %3201  ;;  %vm3303_vm10 = vweird.f32 %v7091_v18 }
 0xa41   : > { %7092 = vrcp.f32 %v3268_v53  ;;  %v3225_v54 = vsub.f32 %v9252_v60, %v3202_v40  ;;  %vm3304_vm12 = vmor %vm3302_vm11, %vm3303_vm10  ;;  %v3321_v7 = vand.u32 2147483647, %v3268_v53  ;;  %vm3317_vm15 = vweird.f32 %v3268_v53 }
 0xa42   : > { %v3299_v55 = vsub.f32 1.0, %v3298_v19 }
 0xa43   : > { %v3249_v21 = vmul.f32 1.442695, %v3225_v54  ;;  %vm3322_vm2 = vcmp.eq.f32.partialorder %v3321_v7, 8.507059e+37 }
 0xa44   : > { %v3300_v12 = vmul.f32 %v7091_v18, %v3299_v55 }
 0xa45   : > { %7094 = vpow2.f32 %v3249_v21 }
 0xa46   : > { %v3301_v17 = vadd.f32 %v7091_v18, %v3300_v12  ;;  %v3323_v12 = vand.u32 2147483648, %v3268_v53 }
 0xa47   : > { %v7093_v23 = vpop.eup %7092 }
 0xa48   : > { %v3305_v14 = vsel %vm3304_vm12, %v7091_v18, %v3301_v17  ;;  %v3313_v13 = vmul.f32 %v7093_v23, %v3268_v53  ;;  %v3270_v5 = vpop.xlane.xlu2 %3269  ;;  %v3204_v52 = vpop.xlane.xlu0 %3203  ;;  %vm3318_vm14 = vweird.f32 %v7093_v23 }
 0xa49   : > { %v3310_v51 = vsel %vm3307_vm13, %v3309_v8, %v3305_v14  ;;  %7096 = vrcp.f32 %v3270_v5  ;;  %v3226_v19 = vsub.f32 %v9259_v44, %v3204_v52  ;;  %vm3319_vm0 = vmor %vm3317_vm15, %vm3318_vm14  ;;  %vm3332_vm4 = vweird.f32 %v3270_v5 }
 0xa4a   : > { %v3314_v60 = vsub.f32 1.0, %v3313_v13  ;;  %v3311_v40 = vmul.f32 %v9248_v11, %v3310_v51  ;;  %v3324_v13 = vor.u32 1.1754944e-38, %v3323_v12 }
 0xa4b   : > { %v9305_v54 = vpop.eup %7094  ;;  %v3251_v16 = vmul.f32 1.442695, %v3226_v19 }
 0xa4c   : > { %v3315_v55 = vmul.f32 %v7093_v23, %v3314_v60  ;;  %3553 = vmatmul.f32.vlgmr.msra.gmra.mxu0 %v3311_v40  ;;  %3281 = vadd.xlane.f32.xlu2 %v9305_v54  ;;  %v3338_v40 = vand.u32 2147483648, %v3270_v5 }
 0xa4d   : > { %7098 = vpow2.f32 %v3251_v16 }
 0xa4e   : > { %v3316_v18 = vadd.f32 %v7093_v23, %v3315_v55  ;;  %v3336_v55 = vand.u32 2147483647, %v3270_v5  ;;  %v3339_v12 = vor.u32 1.1754944e-38, %v3338_v40 }
 0xa4f   : > { %v7097_v14 = vpop.eup %7096 }
 0xa50   : > { %v3328_v8 = vmul.f32 %v7097_v14, %v3270_v5  ;;  %v3206_v52 = vpop.xlane.xlu2 %3205  ;;  %v3272_v44 = vpop.xlane.xlu1 %3271  ;;  %v3320_v51 = vsel %vm3319_vm0, %v7093_v23, %v3316_v18  ;;  %vm3333_vm3 = vweird.f32 %v7097_v14  ;;  %vm3337_vm6 = vcmp.eq.f32.partialorder %v3336_v55, 8.507059e+37 }
 0xa51   : > { %v3227_v11 = vsub.f32 %v9266_v59, %v3206_v52  ;;  %7100 = vrcp.f32 %v3272_v44  ;;  %v3325_v21 = vsel %vm3322_vm2, %v3324_v13, %v3320_v51  ;;  %vm3334_vm5 = vmor %vm3332_vm4, %vm3333_vm3  ;;  %vm3347_vm8 = vweird.f32 %v3272_v44 }
 0xa52   : > { %v3329_v3 = vsub.f32 1.0, %v3328_v8  ;;  %v3326_v60 = vmul.f32 %v9254_v29, %v3325_v21  ;;  %v3353_v21 = vand.u32 2147483648, %v3272_v44 }
 0xa53   : > { %v3253_v17 = vmul.f32 1.442695, %v3227_v11  ;;  %v9310_v19 = vpop.eup %7098 }
 0xa54   : > { %v3330_v53 = vmul.f32 %v7097_v14, %v3329_v3  ;;  %3283 = vadd.xlane.f32.xlu1 %v9310_v19  ;;  %3556 = vmatmul.f32.gmra.mxu0 %v3326_v60 }
 0xa55   : > { %7102 = vpow2.f32 %v3253_v17  ;;  %v3351_v17 = vand.u32 2147483647, %v3272_v44 }
 0xa56   : > { %v3331_v23 = vadd.f32 %v7097_v14, %v3330_v53 }
 0xa57   : > { %v7101_v59 = vpop.eup %7100  ;;  %vm3352_vm10 = vcmp.eq.f32.partialorder %v3351_v17, 8.507059e+37 }
 0xa58   : > { %v3343_v16 = vmul.f32 %v7101_v59, %v3272_v44  ;;  %v3274_v7 = vpop.xlane.xlu0 %3273  ;;  %v3208_v18 = vpop.xlane.xlu1 %3207  ;;  %v3335_v13 = vsel %vm3334_vm5, %v7097_v14, %v3331_v23  ;;  %vm3348_vm7 = vweird.f32 %v7101_v59 }
 0xa59   : > { %7104 = vrcp.f32 %v3274_v7  ;;  %v3228_v29 = vsub.f32 %v9273_v42, %v3208_v18  ;;  %v3340_v52 = vsel %vm3337_vm6, %v3339_v12, %v3335_v13  ;;  %vm3349_vm9 = vmor %vm3347_vm8, %vm3348_vm7  ;;  %v3354_v42 = vor.u32 1.1754944e-38, %v3353_v21 }
 0xa5a   : > { %v3344_v8 = vsub.f32 1.0, %v3343_v16  ;;  %v3341_v3 = vmul.f32 %v9261_v62, %v3340_v52  ;;  %v3366_v52 = vand.u32 2147483647, %v3274_v7  ;;  %vm3362_vm12 = vweird.f32 %v3274_v7 }
 0xa5b   : > { %v9314_v51 = vpop.eup %7102  ;;  %v3255_v11 = vmul.f32 1.442695, %v3228_v29 }
 0xa5c   : > { %v3345_v5 = vmul.f32 %v7101_v59, %v3344_v8  ;;  %3285 = vadd.xlane.f32.xlu2 %v9314_v51  ;;  %3559 = vmatmul.f32.gmra.mxu0 %v3341_v3  ;;  %v3368_v8 = vand.u32 2147483648, %v3274_v7  ;;  %vm3367_vm14 = vcmp.eq.f32.partialorder %v3366_v52, 8.507059e+37 }
 0xa5d   : > { %7106 = vpow2.f32 %v3255_v11 }
 0xa5e   : > { %v3346_v14 = vadd.f32 %v7101_v59, %v3345_v5 }
 0xa5f   : > { %v7105_v60 = vpop.eup %7104 }
 0xa60   : > { %v3358_v53 = vmul.f32 %v7105_v60, %v3274_v7  ;;  %v3276_v40 = vpop.xlane.xlu2 %3275  ;;  %v3210_v55 = vpop.xlane.xlu0 %3209  ;;  %v3350_v23 = vsel %vm3349_vm9, %v7101_v59, %v3346_v14  ;;  %vm3363_vm11 = vweird.f32 %v7105_v60 }
 0xa61   : > { %7108 = vrcp.f32 %v3276_v40  ;;  %v3229_v62 = vsub.f32 %v9280_v32, %v3210_v55  ;;  %v3355_v16 = vsel %vm3352_vm10, %v3354_v42, %v3350_v23  ;;  %vm3364_vm13 = vmor %vm3362_vm12, %vm3363_vm11  ;;  %v3369_v32 = vor.u32 1.1754944e-38, %v3368_v8 }
 0xa62   : > { %v3359_v12 = vsub.f32 1.0, %v3358_v53  ;;  %v3356_v29 = vmul.f32 %v9268_v15, %v3355_v16  ;;  %vm3377_vm0 = vweird.f32 %v3276_v40 }
 0xa63   : > { %v9319_v18 = vpop.eup %7106  ;;  %v3257_v13 = vmul.f32 1.442695, %v3229_v62  ;;  %v3383_v62 = vand.u32 2147483648, %v3276_v40 }
 0xa64   : > { %v3360_v44 = vmul.f32 %v7105_v60, %v3359_v12  ;;  %3287 = vadd.xlane.f32.xlu0 %v9319_v18  ;;  %3562 = vmatmul.f32.gmra.mxu0 %v3356_v29  ;;  %v9328_v12 = vpop.f32.mrf.mxu3 }
 0xa65   : > { %7110 = vpow2.f32 %v3257_v13  ;;  %v3384_v13 = vor.u32 1.1754944e-38, %v3383_v62 }
 0xa66   : > { %v3361_v59 = vadd.f32 %v7105_v60, %v3360_v44 }
 0xa67   : > { %v7109_v11 = vpop.eup %7108 }
 0xa68   : > { %v3373_v3 = vmul.f32 %v7109_v11, %v3276_v40  ;;  %v3212_v5 = vpop.xlane.xlu2 %3211  ;;  %v3278_v21 = vpop.xlane.xlu1 %3277  ;;  %v3365_v17 = vsel %vm3364_vm13, %v7105_v60, %v3361_v59  ;;  %vm3378_vm15 = vweird.f32 %v7109_v11  ;;  %v3381_v60 = vand.u32 2147483647, %v3276_v40 }
 0xa69   : > { %v3230_v14 = vsub.f32 %v9287_v1, %v3212_v5  ;;  %7112 = vrcp.f32 %v3278_v21  ;;  %v3370_v42 = vsel %vm3367_vm14, %v3369_v32, %v3365_v17  ;;  %vm3379_vm2 = vmor %vm3377_vm0, %vm3378_vm15  ;;  %v3398_v5 = vand.u32 2147483648, %v3278_v21 }
 0xa6a   : > { %v3374_v15 = vsub.f32 1.0, %v3373_v3  ;;  %v3371_v23 = vmul.f32 %v9275_v35, %v3370_v42  ;;  %vm3382_vm3 = vcmp.eq.f32.partialorder %v3381_v60, 8.507059e+37  ;;  %vm3392_vm5 = vweird.f32 %v3278_v21 }
 0xa6b   : > { %v9324_v53 = vpop.eup %7110  ;;  %v3259_v55 = vmul.f32 1.442695, %v3230_v14 }
 0xa6c   : > { %v3375_v7 = vmul.f32 %v7109_v11, %v3374_v15  ;;  %3289 = vadd.xlane.f32.xlu1 %v9324_v53  ;;  %3565 = vmatmul.f32.gmra.mxu0 %v3371_v23  ;;  %v3396_v15 = vand.u32 2147483647, %v3278_v21 }
 0xa6d   : > { %7114 = vpow2.f32 %v3259_v55  ;;  %v3399_v55 = vor.u32 1.1754944e-38, %v3398_v5 }
 0xa6e   : > { %v3376_v1 = vadd.f32 %v7109_v11, %v3375_v7  ;;  %vm3397_vm7 = vcmp.eq.f32.partialorder %v3396_v15, 8.507059e+37 }
 0xa6f   : > { %v7113_v16 = vpop.eup %7112 }
 0xa70   : > { %v3388_v29 = vmul.f32 %v7113_v16, %v3278_v21  ;;  %v3280_v44 = vpop.xlane.xlu0 %3279  ;;  %v3214_v8 = vpop.xlane.xlu1 %3213  ;;  %v3380_v52 = vsel %vm3379_vm2, %v7109_v11, %v3376_v1  ;;  %vm3393_vm4 = vweird.f32 %v7113_v16 }
 0xa71   : > { %7116 = vrcp.f32 %v3280_v44  ;;  %v3231_v35 = vsub.f32 %v9293_v41, %v3214_v8  ;;  %v3385_v32 = vsel %vm3382_vm3, %v3384_v13, %v3380_v52  ;;  %v9335_v41 = vpop.f32.mrf.mxu3  ;;  %vm3394_vm6 = vmor %vm3392_vm5, %vm3393_vm4  ;;  %v3413_v8 = vand.u32 2147483648, %v3280_v44 }
 0xa72   : > { %v3389_v59 = vsub.f32 1.0, %v3388_v29  ;;  %v3386_v40 = vmul.f32 %v9282_v26, %v3385_v32  ;;  %vm3407_vm9 = vweird.f32 %v3280_v44 }
 0xa73   : > { %v9331_v3 = vpop.eup %7114  ;;  %v3261_v17 = vmul.f32 1.442695, %v3231_v35  ;;  %v3411_v35 = vand.u32 2147483647, %v3280_v44 }
 0xa74   : > { %v3390_v14 = vmul.f32 %v7113_v16, %v3389_v59  ;;  %3291 = vadd.xlane.f32.xlu2 %v9331_v3  ;;  %3568 = vmatmul.f32.gmra.mxu0 %v3386_v40  ;;  %v3414_v59 = vor.u32 1.1754944e-38, %v3413_v8 }
 0xa75   : > { %7118 = vpow2.f32 %v3261_v17  ;;  %vm3412_vm11 = vcmp.eq.f32.partialorder %v3411_v35, 8.507059e+37 }
 0xa76   : > { %v3391_v11 = vadd.f32 %v7113_v16, %v3390_v14 }
 0xa77   : > { %v7117_v42 = vpop.eup %7116 }
 0xa78   : > { %v3403_v23 = vmul.f32 %v7117_v42, %v3280_v44  ;;  %v3216_v7 = vpop.xlane.xlu0 %3215  ;;  %v3395_v62 = vsel %vm3394_vm6, %v7113_v16, %v3391_v11  ;;  %vm3408_vm8 = vweird.f32 %v7117_v42 }
 0xa79   : > { %v3232_v26 = vsub.f32 %v9299_v9, %v3216_v7  ;;  %v3400_v60 = vsel %vm3397_vm7, %v3399_v55, %v3395_v62  ;;  %vm3409_vm10 = vmor %vm3407_vm9, %vm3408_vm8  ;;  %v9342_v32 = vpop.f32.mrf.mxu3 }
 0xa7a   : > { %v3404_v1 = vsub.f32 1.0, %v3403_v23  ;;  %v3401_v13 = vmul.f32 %v9289_v43, %v3400_v60 }
 0xa7b   : > { %v9339_v29 = vpop.eup %7118  ;;  %v3263_v21 = vmul.f32 1.442695, %v3232_v26  ;;  %v6755_v26 = vld [vmem:[%s11282_s5 + $0x1f0] sm:$0xff] }
 0xa7c   : > { %v3405_v52 = vmul.f32 %v7117_v42, %v3404_v1  ;;  %3293 = vadd.xlane.f32.xlu0 %v9339_v29  ;;  %3571 = vmatmul.f32.gmra.mxu0 %v3401_v13  ;;  %v6754_v13 = vld [vmem:[%s11282_s5 + $0x1e8] sm:$0xff] }
 0xa7d   : > { %7120 = vpow2.f32 %v3263_v21 }
 0xa7e   : > { %v3406_v16 = vadd.f32 %v7117_v42, %v3405_v52  ;;  %v6753_v52 = vld [vmem:[%s11282_s5 + $0x1e0] sm:$0xff] }
 0xa80   : > { %v3410_v9 = vsel %vm3409_vm10, %v7117_v42, %v3406_v16 }
 0xa81   : > { %v3415_v43 = vsel %vm3412_vm11, %v3414_v59, %v3410_v9  ;;  %v9348_v40 = vpop.f32.mrf.mxu3  ;;  %v6752_v59 = vld [vmem:[%s11282_s5 + $0x1d8] sm:$0xff] }
 0xa82   : > { %v3416_v5 = vmul.f32 %v9295_v49, %v3415_v43  ;;  %v6756_v49 = vld [vmem:[%s11282_s5 + $0x1f8] sm:$0xff] }
 0xa83   : > { %v9345_v17 = vpop.eup %7120  ;;  %3917 = vmatpush.msrb.mxu0 %v6756_v49 }
 0xa84   : > { %3295 = vadd.xlane.f32.xlu1 %v9345_v17  ;;  %3574 = vmatmul.f32.gmra.mxu0 %v3416_v5 }
 0xa85   : > { %3918 = vmatpush.msrb.mxu0 %v6755_v26 }
 0xa87   : > { %3919 = vmatpush.msrb.mxu0 %v6754_v13  ;;  %v6750_v13 = vld [vmem:[%s11282_s5 + $0x1c8] sm:$0xff] }
 0xa89   : > { %v9350_v14 = vpop.f32.mrf.mxu3  ;;  %3920 = vmatpush.msrb.mxu0 %v6753_v52  ;;  %v6749_v52 = vld [vmem:[%s11282_s5 + $0x1c0] sm:$0xff] }
 0xa8b   : > { %3921 = vmatpush.msrb.mxu0 %v6752_v59  ;;  %v6748_v59 = vld [vmem:[%s11282_s5 + $0x1b8] sm:$0xff] }
 0xa91   : > { %v9352_v44 = vpop.f32.mrf.mxu3 }
 0xa99   : > { %v9354_v15 = vpop.f32.mrf.mxu3 }
 0xaa1   : > { %v9356_v11 = vpop.f32.mrf.mxu3 }
 0xaa9   : > { %v9358_v42 = vpop.f32.mrf.mxu3 }
 0xab1   : > { %v9363_v7 = vpop.f32.mrf.mxu3 }
 0xabf   : > { %v3282_v55 = vpop.xlane.xlu2 %3281 }
 0xac0   : > { %7122 = vrcp.f32 %v3282_v55  ;;  %v3428_v21 = vand.u32 2147483648, %v3282_v55  ;;  %v3426_v35 = vand.u32 2147483647, %v3282_v55  ;;  %vm3422_vm13 = vweird.f32 %v3282_v55 }
 0xac2   : > { %v3429_v43 = vor.u32 1.1754944e-38, %v3428_v21  ;;  %vm3427_vm15 = vcmp.eq.f32.partialorder %v3426_v35, 8.507059e+37 }
 0xac6   : > { %v7123_v23 = vpop.eup %7122 }
 0xac7   : > { %v3418_v62 = vmul.f32 %v7123_v23, %v3282_v55  ;;  %v3284_v60 = vpop.xlane.xlu1 %3283  ;;  %vm3423_vm12 = vweird.f32 %v7123_v23  ;;  %v9380_v55 = vpop.f32.mrf.mxu3 }
 0xac8   : > { %7124 = vrcp.f32 %v3284_v60  ;;  %vm3424_vm14 = vmor %vm3422_vm13, %vm3423_vm12  ;;  %v3441_v35 = vand.u32 2147483647, %v3284_v60  ;;  %vm3437_vm2 = vweird.f32 %v3284_v60 }
 0xac9   : > { %v3419_v1 = vsub.f32 1.0, %v3418_v62  ;;  %v6751_v62 = vld [vmem:[%s11282_s5 + $0x1d0] sm:$0xff] }
 0xaca   : > { %3922 = vmatpush.msrb.mxu0 %v6751_v62  ;;  %vm3442_vm4 = vcmp.eq.f32.partialorder %v3441_v35, 8.507059e+37 }
 0xacb   : > { %v3420_v8 = vmul.f32 %v7123_v23, %v3419_v1 }
 0xacc   : > { %3923 = vmatpush.msrb.mxu0 %v6750_v13 }
 0xacd   : > { %v3421_v16 = vadd.f32 %v7123_v23, %v3420_v8 }
 0xace   : > { %v7125_v9 = vpop.eup %7124  ;;  %3924 = vmatpush.msrb.mxu0 %v6749_v52 }
 0xacf   : > { %v3286_v5 = vpop.xlane.xlu2 %3285  ;;  %v3425_v49 = vsel %vm3424_vm14, %v7123_v23, %v3421_v16  ;;  %v3433_v26 = vmul.f32 %v7125_v9, %v3284_v60  ;;  %v3443_v23 = vand.u32 2147483648, %v3284_v60  ;;  %vm3438_vm0 = vweird.f32 %v7125_v9  ;;  %v6746_v60 = vld [vmem:[%s11282_s5 + $0x1a8] sm:$0xff] }
 0xad0   : > { %7126 = vrcp.f32 %v3286_v5  ;;  %v3430_v1 = vsel %vm3427_vm15, %v3429_v43, %v3425_v49  ;;  %vm3439_vm3 = vmor %vm3437_vm2, %vm3438_vm0  ;;  %3925 = vmatpush.msrb.mxu0 %v6748_v59  ;;  %v3456_v36 = vand.u32 2147483647, %v3286_v5  ;;  %vm3452_vm6 = vweird.f32 %v3286_v5 }
 0xad1   : > { %v3434_v8 = vsub.f32 1.0, %v3433_v26  ;;  %v3431_v21 = vmul.f32 %v9305_v54, %v3430_v1  ;;  %v3444_v62 = vor.u32 1.1754944e-38, %v3443_v23  ;;  %v6747_v1 = vld [vmem:[%s11282_s5 + $0x1b0] sm:$0xff]  ;;  %v3458_v23 = vand.u32 2147483648, %v3286_v5 }
 0xad2   : > { %3926 = vmatpush.msrb.mxu0 %v6747_v1  ;;  %vm3457_vm8 = vcmp.eq.f32.partialorder %v3456_v36, 8.507059e+37  ;;  %v6690_v36 = vld [vmem:[%s11283_s6 + $0x48] sm:$0xff] }
 0xad3   : > { %v3435_v16 = vmul.f32 %v7125_v9, %v3434_v8  ;;  %3577 = vmatmul.f32.gmra.mxu0 %v3431_v21 }
 0xad4   : > { %3927 = vmatpush.msrb.mxu0 %v6746_v60 }
 0xad5   : > { %v3436_v49 = vadd.f32 %v7125_v9, %v3435_v16  ;;  %v9402_v16 = vpop.f32.mrf.mxu3 }
 0xad6   : > { %v7127_v43 = vpop.eup %7126 }
 0xad7   : > { %v3448_v54 = vmul.f32 %v7127_v43, %v3286_v5  ;;  %v9392_v26 = vpop.xlane.xlu0 %3287  ;;  %v3440_v13 = vsel %vm3439_vm3, %v7125_v9, %v3436_v49  ;;  %vm3453_vm5 = vweird.f32 %v7127_v43  ;;  %v6745_v9 = vld [vmem:[%s11282_s5 + $0x1a0] sm:$0xff]  ;;  %v6692_v49 = vld [vmem:[%s11283_s6 + $0x58] sm:$0xff]  ;;  %v6691_v5 = vld [vmem:[%s11283_s6 + $0x50] sm:$0xff] }
 0xad8   : > { %7128 = vrcp.f32 %v9392_v26  ;;  %v3445_v21 = vsel %vm3442_vm4, %v3444_v62, %v3440_v13  ;;  %3928 = vmatpush.msrb.mxu0 %v6745_v9  ;;  %vm3454_vm7 = vmor %vm3452_vm6, %vm3453_vm5  ;;  %3667 = vmatpush.msrb.mxu1 %v6692_v49  ;;  %v6741_v49 = vld [vmem:[%s11282_s5 + $0x180] sm:$0xff]  ;;  %vm3467_vm10 = vweird.f32 %v9392_v26 }
 0xad9   : > { %v3449_v8 = vsub.f32 1.0, %v3448_v54  ;;  %v3446_v52 = vmul.f32 %v9310_v19, %v3445_v21  ;;  %v6744_v19 = vld [vmem:[%s11282_s5 + $0x198] sm:$0xff]  ;;  %v3459_v54 = vor.u32 1.1754944e-38, %v3458_v23  ;;  %v6743_v21 = vld [vmem:[%s11282_s5 + $0x190] sm:$0xff] }
 0xada   : > { %3929 = vmatpush.msrb.mxu0 %v6744_v19  ;;  %3668 = vmatpush.msrb.mxu1 %v6691_v5 }
 0xadb   : > { %v3450_v59 = vmul.f32 %v7127_v43, %v3449_v8  ;;  %3580 = vmatmul.f32.gmra.mxu0 %v3446_v52 }
 0xadc   : > { %3930 = vmatpush.msrb.mxu0 %v6743_v21  ;;  %3669 = vmatpush.msrb.mxu1 %v6690_v36 }
 0xadd   : > { %v3451_v35 = vadd.f32 %v7127_v43, %v3450_v59  ;;  %v3473_v59 = vand.u32 2147483648, %v9392_v26  ;;  %v9435_v19 = vpop.f32.mrf.mxu3 }
 0xade   : > { %v7129_v62 = vpop.eup %7128 }
 0xadf   : > { %v3463_v1 = vmul.f32 %v7129_v62, %v9392_v26  ;;  %v3290_v13 = vpop.xlane.xlu1 %3289  ;;  %v3455_v8 = vsel %vm3454_vm7, %v7127_v43, %v3451_v35  ;;  %v6742_v43 = vld [vmem:[%s11282_s5 + $0x188] sm:$0xff]  ;;  %vm3468_vm9 = vweird.f32 %v7129_v62  ;;  %v3471_v35 = vand.u32 2147483647, %v9392_v26 }
 0xae0   : > { %7130 = vrcp.f32 %v3290_v13  ;;  %v3460_v60 = vsel %vm3457_vm8, %v3459_v54, %v3455_v8  ;;  %3931 = vmatpush.msrb.mxu0 %v6742_v43  ;;  %v3474_v8 = vor.u32 1.1754944e-38, %v3473_v59  ;;  %vm3469_vm11 = vmor %vm3467_vm10, %vm3468_vm9  ;;  %v3486_v27 = vand.u32 2147483647, %v3290_v13 }
 0xae1   : > { %v3464_v23 = vsub.f32 1.0, %v3463_v1  ;;  %v3461_v52 = vmul.f32 %v9314_v51, %v3460_v60  ;;  %v6689_v51 = vld [vmem:[%s11283_s6 + $0x40] sm:$0xff]  ;;  %vm3472_vm12 = vcmp.eq.f32.partialorder %v3471_v35, 8.507059e+37  ;;  %vm3482_vm14 = vweird.f32 %v3290_v13 }
 0xae2   : > { %3670 = vmatpush.msrb.mxu1 %v6689_v51  ;;  %3932 = vmatpush.msrb.mxu0 %v6741_v49  ;;  %v3488_v51 = vand.u32 2147483648, %v3290_v13  ;;  %vm3487_vm0 = vcmp.eq.f32.partialorder %v3486_v27, 8.507059e+37 }
 0xae3   : > { %v3465_v9 = vmul.f32 %v7129_v62, %v3464_v23  ;;  %3583 = vmatmul.f32.gmra.mxu0 %v3461_v52 }
 0xae4   : > { %v3489_v49 = vor.u32 1.1754944e-38, %v3488_v51 }
 0xae5   : > { %v3466_v54 = vadd.f32 %v7129_v62, %v3465_v9  ;;  %v9439_v59 = vpop.f32.mrf.mxu3 }
 0xae6   : > { %v7131_v1 = vpop.eup %7130 }
 0xae7   : > { %v3478_v5 = vmul.f32 %v7131_v1, %v3290_v13  ;;  %v3292_v21 = vpop.xlane.xlu2 %3291  ;;  %v3470_v60 = vsel %vm3469_vm11, %v7129_v62, %v3466_v54  ;;  %vm3483_vm13 = vweird.f32 %v7131_v1 }
 0xae8   : > { %7132 = vrcp.f32 %v3292_v21  ;;  %v3475_v23 = vsel %vm3472_vm12, %v3474_v8, %v3470_v60  ;;  %vm3484_vm15 = vmor %vm3482_vm14, %vm3483_vm13  ;;  %vm3497_vm3 = vweird.f32 %v3292_v21 }
 0xae9   : > { %v3479_v36 = vsub.f32 1.0, %v3478_v5  ;;  %v3476_v43 = vmul.f32 %v9319_v18, %v3475_v23  ;;  %v3503_v18 = vand.u32 2147483648, %v3292_v21  ;;  %v3501_v23 = vand.u32 2147483647, %v3292_v21 }
 0xaeb   : > { %v3480_v52 = vmul.f32 %v7131_v1, %v3479_v36  ;;  %3586 = vmatmul.f32.gmra.mxu0 %v3476_v43  ;;  %v3504_v43 = vor.u32 1.1754944e-38, %v3503_v18  ;;  %vm3502_vm5 = vcmp.eq.f32.partialorder %v3501_v23, 8.507059e+37 }
 0xaed   : > { %v3481_v26 = vadd.f32 %v7131_v1, %v3480_v52 }
 0xaee   : > { %v7133_v9 = vpop.eup %7132 }
 0xaef   : > { %v3493_v31 = vmul.f32 %v7133_v9, %v3292_v21  ;;  %v3294_v62 = vpop.xlane.xlu0 %3293  ;;  %v3485_v35 = vsel %vm3484_vm15, %v7131_v1, %v3481_v26  ;;  %vm3498_vm2 = vweird.f32 %v7133_v9 }
 0xaf0   : > { %7134 = vrcp.f32 %v3294_v62  ;;  %v3490_v8 = vsel %vm3487_vm0, %v3489_v49, %v3485_v35  ;;  %vm3499_vm4 = vmor %vm3497_vm3, %vm3498_vm2  ;;  %v3516_v35 = vand.u32 2147483647, %v3294_v62  ;;  %vm3512_vm7 = vweird.f32 %v3294_v62 }
 0xaf1   : > { %v3494_v54 = vsub.f32 1.0, %v3493_v31  ;;  %v3491_v5 = vmul.f32 %v9324_v53, %v3490_v8  ;;  %v3894_v31 = vpop.f32.mrf.mxu3  ;;  %v3518_v53 = vand.u32 2147483648, %v3294_v62 }
 0xaf2   : > { %vm3517_vm9 = vcmp.eq.f32.partialorder %v3516_v35, 8.507059e+37 }
 0xaf3   : > { %v3495_v60 = vmul.f32 %v7133_v9, %v3494_v54  ;;  %3589 = vmatmul.f32.gmra.mxu0 %v3491_v5  ;;  %v3519_v8 = vor.u32 1.1754944e-38, %v3518_v53 }
 0xaf5   : > { %v3496_v13 = vadd.f32 %v7133_v9, %v3495_v60 }
 0xaf6   : > { %v7135_v36 = vpop.eup %7134 }
 0xaf7   : > { %v3508_v52 = vmul.f32 %v7135_v36, %v3294_v62  ;;  %v3296_v51 = vpop.xlane.xlu1 %3295  ;;  %v3500_v46 = vsel %vm3499_vm4, %v7133_v9, %v3496_v13  ;;  %vm3513_vm6 = vweird.f32 %v7135_v36 }
 0xaf8   : > { %7136 = vrcp.f32 %v3296_v51  ;;  %v3505_v27 = vsel %vm3502_vm5, %v3504_v43, %v3500_v46  ;;  %vm3514_vm8 = vmor %vm3512_vm7, %vm3513_vm6  ;;  %v3533_v23 = vand.u32 2147483648, %v3296_v51  ;;  %vm3527_vm11 = vweird.f32 %v3296_v51 }
 0xaf9   : > { %v3509_v1 = vsub.f32 1.0, %v3508_v52  ;;  %v3506_v26 = vmul.f32 %v9331_v3, %v3505_v27  ;;  %v3897_v13 = vpop.f32.mrf.mxu3  ;;  %v3554_v3 = vpop.f32.mrf.mxu0  ;;  %v3531_v52 = vand.u32 2147483647, %v3296_v51 }
 0xafb   : > { %v3510_v49 = vmul.f32 %v7135_v36, %v3509_v1  ;;  %3592 = vmatmul.f32.gmra.mxu0 %v3506_v26  ;;  %vm3532_vm13 = vcmp.eq.f32.partialorder %v3531_v52, 8.507059e+37 }
 0xafd   : > { %v3511_v21 = vadd.f32 %v7135_v36, %v3510_v49 }
 0xafe   : > { %v7137_v54 = vpop.eup %7136 }
 0xaff   : > { %v3515_v18 = vsel %vm3514_vm8, %v7135_v36, %v3511_v21  ;;  %v3523_v9 = vmul.f32 %v7137_v54, %v3296_v51  ;;  %vm3528_vm10 = vweird.f32 %v7137_v54  ;;  %v3534_v36 = vor.u32 1.1754944e-38, %v3533_v23 }
 0xb00   : > { %v3520_v5 = vsel %vm3517_vm9, %v3519_v8, %v3515_v18  ;;  %vm3529_vm12 = vmor %vm3527_vm11, %vm3528_vm10 }
 0xb01   : > { %v3524_v60 = vsub.f32 1.0, %v3523_v9  ;;  %v3521_v46 = vmul.f32 %v9339_v29, %v3520_v5 }
 0xb03   : > { %v3525_v43 = vmul.f32 %v7137_v54, %v3524_v60  ;;  %3595 = vmatmul.f32.vlgmr.msra.gmra.mxu1 %v3521_v46  ;;  %3933 = vmatmul.f32.vlgmr.msrb.gmra.mxu0 %v7865_v47  ;;  %v3557_v47 = vpop.f32.mrf.mxu0 }
 0xb04   : > { %6757 = vmatpush.xpose.msk.msra.mxu1 %vm1092_vm1, %v3897_v13 }
 0xb05   : > { %v3526_v62 = vadd.f32 %v7137_v54, %v3525_v43 }
 0xb07   : > { %v3530_v27 = vsel %vm3529_vm12, %v7137_v54, %v3526_v62 }
 0xb08   : > { %6758 = vmatpush.xpose.msk.msra.mxu1 %vm1092_vm1, %v3894_v31  ;;  %v3535_v29 = vsel %vm3532_vm13, %v3534_v36, %v3530_v27 }
 0xb09   : > { %v3536_v1 = vmul.f32 %v9345_v17, %v3535_v29 }
 0xb0b   : > { %3598 = vmatmul.f32.gmra.mxu1 %v3536_v1  ;;  %3936 = vmatmul.f32.gmra.mxu0 %v7903_v10  ;;  %v3560_v51 = vpop.f32.mrf.mxu0 }
 0xb0c   : > { %6759 = vmatpush.xpose.msk.msra.mxu1 %vm1092_vm1, %v9439_v59 }
 0xb10   : > { %6760 = vmatpush.xpose.msk.msra.mxu1 %vm1092_vm1, %v9435_v19 }
 0xb13   : > { %6693 = vmatmul.msk.f32.vlgmr.msrb.gmra.mxu1 %vm1092_vm1, %v3554_v3  ;;  %3939 = vmatmul.f32.gmra.mxu0 %v7934_v37  ;;  %v3563_v10 = vpop.f32.mrf.mxu0 }
 0xb14   : > { %6761 = vmatpush.xpose.msk.msra.mxu1 %vm1092_vm1, %v9402_v16 }
 0xb18   : > { %6762 = vmatpush.xpose.msk.msra.mxu1 %vm1092_vm1, %v9380_v55 }
 0xb1b   : > { %6694 = vmatmul.msk.f32.gmra.mxu1 %vm1092_vm1, %v3557_v47  ;;  %3942 = vmatmul.f32.gmra.mxu0 %v7946_v34  ;;  %v3566_v37 = vpop.f32.mrf.mxu0 }
 0xb1c   : > { %6763 = vmatpush.xpose.msk.msra.mxu1 %vm1092_vm1, %v9363_v7 }
 0xb20   : > { %6764 = vmatpush.xpose.msk.msra.mxu1 %vm1092_vm1, %v9358_v42 }
 0xb23   : > { %6695 = vmatmul.msk.f32.gmra.mxu1 %vm1092_vm1, %v3560_v51  ;;  %3945 = vmatmul.f32.gmra.mxu0 %v7957_v45  ;;  %v3569_v34 = vpop.f32.mrf.mxu0 }
 0xb24   : > { %6765 = vmatpush.xpose.msk.msra.mxu1 %vm1092_vm1, %v9356_v11 }
 0xb28   : > { %6766 = vmatpush.xpose.msk.msra.mxu1 %vm1092_vm1, %v9354_v15 }
 0xb2b   : > { %6696 = vmatmul.msk.f32.gmra.mxu1 %vm1092_vm1, %v3563_v10  ;;  %3948 = vmatmul.f32.gmra.mxu0 %v7964_v2  ;;  %v3572_v45 = vpop.f32.mrf.mxu0 }
 0xb2c   : > { %6767 = vmatpush.xpose.msk.msra.mxu1 %vm1092_vm1, %v9352_v44 }
 0xb30   : > { %6768 = vmatpush.xpose.msk.msra.mxu1 %vm1092_vm1, %v9350_v14 }
 0xb33   : > { %6697 = vmatmul.msk.f32.gmra.mxu1 %vm1092_vm1, %v3566_v37  ;;  %3951 = vmatmul.f32.gmra.mxu0 %v7972_v4  ;;  %v3575_v2 = vpop.f32.mrf.mxu0 }
 0xb34   : > { %6769 = vmatpush.xpose.msk.msra.mxu1 %vm1092_vm1, %v9348_v40 }
 0xb38   : > { %6770 = vmatpush.xpose.msk.msra.mxu1 %vm1092_vm1, %v9342_v32 }
 0xb3b   : > { %6698 = vmatmul.msk.f32.gmra.mxu1 %vm1092_vm1, %v3569_v34  ;;  %3954 = vmatmul.f32.gmra.mxu0 %v8000_v58 }
 0xb3c   : > { %6771 = vmatpush.xpose.msk.msra.mxu1 %vm1092_vm1, %v9335_v41  ;;  %v3770_v41 = vpop.f32.mrf.mxu2 }
 0xb40   : > { %6772 = vmatpush.xpose.msk.msra.mxu1 %vm1092_vm1, %v9328_v12 }
 0xb43   : > { %6699 = vmatmul.msk.f32.gmra.mxu1 %vm1092_vm1, %v3572_v45  ;;  %3957 = vmatmul.f32.gmra.mxu0 %v8025_v22 }
 0xb4b   : > { %6700 = vmatmul.msk.f32.gmra.mxu1 %vm1092_vm1, %v3575_v2  ;;  %3960 = vmatmul.f32.gmra.mxu0 %v8033_v38 }
 0xb50   : > { %v3578_v4 = vpop.f32.mrf.mxu0 }
 0xb53   : > { %6701 = vmatmul.msk.f32.gmra.mxu1 %vm1092_vm1, %v3578_v4  ;;  %3963 = vmatmul.f32.gmra.mxu0 %v8042_v20 }
 0xb58   : > { %v3581_v58 = vpop.f32.mrf.mxu0 }
 0xb5b   : > { %6702 = vmatmul.msk.f32.gmra.mxu1 %vm1092_vm1, %v3581_v58  ;;  %3966 = vmatmul.f32.gmra.mxu0 %v8051_v0  ;;  %v3773_v0 = vpop.f32.mrf.mxu2 }
 0xb60   : > { %v3584_v12 = vpop.f32.mrf.mxu0 }
 0xb63   : > { %6703 = vmatmul.msk.f32.gmra.mxu1 %vm1092_vm1, %v3584_v12  ;;  %3969 = vmatmul.f32.gmra.mxu0 %v8058_v33  ;;  %v3776_v33 = vpop.f32.mrf.mxu2 }
 0xb68   : > { %v3587_v22 = vpop.f32.mrf.mxu0 }
 0xb6b   : > { %6704 = vmatmul.msk.f32.gmra.mxu1 %vm1092_vm1, %v3587_v22  ;;  %3972 = vmatmul.f32.gmra.mxu0 %v8066_v30  ;;  %v3779_v44 = vpop.f32.mrf.mxu2 }
 0xb70   : > { %v3590_v38 = vpop.f32.mrf.mxu0 }
 0xb73   : > { %6705 = vmatmul.msk.f32.gmra.mxu1 %vm1092_vm1, %v3590_v38  ;;  %3975 = vmatmul.f32.gmra.mxu0 %v8176_v50  ;;  %v3782_v11 = vpop.f32.mrf.mxu2 }
 0xb78   : > { %v3593_v20 = vpop.f32.mrf.mxu0 }
 0xb7b   : > { %6706 = vmatmul.msk.f32.gmra.mxu1 %vm1092_vm1, %v3593_v20  ;;  %3978 = vmatmul.f32.gmra.mxu0 %v8188_v24  ;;  %v3785_v55 = vpop.f32.mrf.mxu2 }
 0xb80   : > { %v3596_v32 = vpop.f32.mrf.mxu1  ;;  %v9505_v17 = vpop.f32.mrf.mxu0 }
 0xb83   : > { %6707 = vmatmul.msk.f32.gmra.mxu1 %vm1092_vm1, %v3596_v32  ;;  %v3788_v59 = vpop.f32.mrf.mxu2 }
 0xb88   : > { %v3599_v40 = vpop.f32.mrf.mxu1  ;;  %v9508_v30 = vpop.f32.mrf.mxu0 }
 0xb8b   : > { %6708 = vmatmul.msk.f32.gmra.mxu1 %vm1092_vm1, %v3599_v40  ;;  %v3791_v35 = vpop.f32.mrf.mxu2 }
 0xb90   : > { %v9511_v14 = vpop.f32.mrf.mxu1  ;;  %v9513_v50 = vpop.f32.mrf.mxu0 }
 0xb93   : > { %6773 = vmatmul.msk.f32.vlgmr.msra.gmra.mxu1 %vm1092_vm1, %v3770_v41  ;;  %v3794_v8 = vpop.f32.mrf.mxu2 }
 0xb98   : > { %v9516_v24 = vpop.f32.mrf.mxu1  ;;  %v9518_v15 = vpop.f32.mrf.mxu0 }
 0xb9b   : > { %6774 = vmatmul.msk.f32.gmra.mxu1 %vm1092_vm1, %v3773_v0  ;;  %v3797_v5 = vpop.f32.mrf.mxu2 }
 0xba0   : > { %v9521_v42 = vpop.f32.mrf.mxu1  ;;  %v3946_v7 = vpop.f32.mrf.mxu0 }
 0xba3   : > { %6775 = vmatmul.msk.f32.gmra.mxu1 %vm1092_vm1, %v3776_v33  ;;  %v3800_v23 = vpop.f32.mrf.mxu2 }
 0xba8   : > { %v9524_v16 = vpop.f32.mrf.mxu1  ;;  %v3949_v19 = vpop.f32.mrf.mxu0 }
 0xbab   : > { %6776 = vmatmul.msk.f32.gmra.mxu1 %vm1092_vm1, %v3779_v44  ;;  %v3803_v62 = vpop.f32.mrf.mxu2 }
 0xbb0   : > { %v9527_v31 = vpop.f32.mrf.mxu1  ;;  %v3952_v26 = vpop.f32.mrf.mxu0 }
 0xbb3   : > { %6777 = vmatmul.msk.f32.gmra.mxu1 %vm1092_vm1, %v3782_v11  ;;  %v3806_v29 = vpop.f32.mrf.mxu2 }
 0xbb8   : > { %v9530_v53 = vpop.f32.mrf.mxu1  ;;  %v3955_v49 = vpop.f32.mrf.mxu0 }
 0xbbb   : > { %6778 = vmatmul.msk.f32.gmra.mxu1 %vm1092_vm1, %v3785_v55  ;;  %v3809_v51 = vpop.f32.mrf.mxu2 }
 0xbc0   : > { %v9533_v21 = vpop.f32.mrf.mxu1  ;;  %v3958_v54 = vpop.f32.mrf.mxu0 }
 0xbc3   : > { %6779 = vmatmul.msk.f32.gmra.mxu1 %vm1092_vm1, %v3788_v59  ;;  %v3812_v34 = vpop.f32.mrf.mxu2 }
 0xbc8   : > { %v9536_v18 = vpop.f32.mrf.mxu1  ;;  %v3961_v9 = vpop.f32.mrf.mxu0 }
 0xbcb   : > { %6780 = vmatmul.msk.f32.gmra.mxu1 %vm1092_vm1, %v3791_v35  ;;  %v3815_v4 = vpop.f32.mrf.mxu2 }
 0xbd0   : > { %v9539_v60 = vpop.f32.mrf.mxu1  ;;  %v3964_v46 = vpop.f32.mrf.mxu0 }
 0xbd3   : > { %6781 = vmatmul.msk.f32.gmra.mxu1 %vm1092_vm1, %v3794_v8 }
 0xbd8   : > { %v9542_v13 = vpop.f32.mrf.mxu1  ;;  %v3967_v3 = vpop.f32.mrf.mxu0 }
 0xbdb   : > { %6782 = vmatmul.msk.f32.gmra.mxu1 %vm1092_vm1, %v3797_v5 }
 0xbe0   : > { %v9545_v43 = vpop.f32.mrf.mxu1  ;;  %v3970_v52 = vpop.f32.mrf.mxu0 }
 0xbe3   : > { %6783 = vmatmul.msk.f32.gmra.mxu1 %vm1092_vm1, %v3800_v23 }
 0xbe8   : > { %v9548_v36 = vpop.f32.mrf.mxu1  ;;  %v3973_v27 = vpop.f32.mrf.mxu0 }
 0xbeb   : > { %6784 = vmatmul.msk.f32.gmra.mxu1 %vm1092_vm1, %v3803_v62 }
 0xbf0   : > { %v9551_v1 = vpop.f32.mrf.mxu1  ;;  %v3976_v47 = vpop.f32.mrf.mxu0 }
 0xbf3   : > { %6785 = vmatmul.msk.f32.gmra.mxu1 %vm1092_vm1, %v3806_v29 }
 0xbf8   : > { %v9554_v10 = vpop.f32.mrf.mxu1  ;;  %v3979_v37 = vpop.f32.mrf.mxu0 }
 0xbf9   : > { %4511 = vmatpush.msra.mxu2 %v3979_v37 }
 0xbfb   : > { %6786 = vmatmul.msk.f32.gmra.mxu1 %vm1092_vm1, %v3809_v51  ;;  %4512 = vmatpush.msra.mxu2 %v3976_v47 }
 0xbfd   : > { %4513 = vmatpush.msra.mxu2 %v3973_v27 }
 0xbff   : > { %4514 = vmatpush.msra.mxu2 %v3970_v52 }
 0xc00   : > { %v9557_v45 = vpop.f32.mrf.mxu1 }
 0xc01   : > { %4515 = vmatpush.msra.mxu2 %v3967_v3 }
 0xc03   : > { %6787 = vmatmul.msk.f32.gmra.mxu1 %vm1092_vm1, %v3812_v34  ;;  %4516 = vmatpush.msra.mxu2 %v3964_v46 }
 0xc05   : > { %4517 = vmatpush.msra.mxu2 %v3961_v9 }
 0xc07   : > { %4518 = vmatpush.msra.mxu2 %v3958_v54 }
 0xc08   : > { %v9560_v2 = vpop.f32.mrf.mxu1 }
 0xc09   : > { %4519 = vmatpush.msra.mxu2 %v3955_v49 }
 0xc0b   : > { %6788 = vmatmul.msk.f32.gmra.mxu1 %vm1092_vm1, %v3815_v4  ;;  %4520 = vmatpush.msra.mxu2 %v3952_v26 }
 0xc0d   : > { %4521 = vmatpush.msra.mxu2 %v3949_v19 }
 0xc0f   : > { %4522 = vmatpush.msra.mxu2 %v3946_v7 }
 0xc10   : > { %v4095_v58 = vpop.f32.mrf.mxu1 }
 0xc11   : > { %v4143_v12 = vmul.f32 0.17677669, %v4095_v58  ;;  %4523 = vmatpush.msra.mxu2 %v9518_v15 }
 0xc13   : > { %4159 = vmax.xlane.f32.xlu2 %v4143_v12  ;;  %4524 = vmatpush.msra.mxu2 %v9513_v50 }
 0xc15   : > { %4525 = vmatpush.msra.mxu2 %v9508_v30 }
 0xc17   : > { %4526 = vmatpush.msra.mxu2 %v9505_v17 }
 0xc18   : > { %v4098_v22 = vpop.f32.mrf.mxu1 }
 0xc19   : > { %v4144_v38 = vmul.f32 0.17677669, %v4098_v22 }
 0xc1b   : > { %4161 = vmax.xlane.f32.xlu0 %v4144_v38 }
 0xc20   : > { %v4101_v41 = vpop.f32.mrf.mxu1 }
 0xc21   : > { %v4145_v20 = vmul.f32 0.17677669, %v4101_v41 }
 0xc23   : > { %4163 = vmax.xlane.f32.xlu1 %v4145_v20 }
 0xc28   : > { %v4104_v0 = vpop.f32.mrf.mxu1 }
 0xc29   : > { %v4146_v32 = vmul.f32 0.17677669, %v4104_v0 }
 0xc2b   : > { %4165 = vmax.xlane.f32.xlu2 %v4146_v32 }
 0xc30   : > { %v4107_v33 = vpop.f32.mrf.mxu1 }
 0xc31   : > { %v4147_v40 = vmul.f32 0.17677669, %v4107_v33 }
 0xc33   : > { %4167 = vmax.xlane.f32.xlu0 %v4147_v40 }
 0xc38   : > { %v4110_v44 = vpop.f32.mrf.mxu1 }
 0xc39   : > { %v4148_v15 = vmul.f32 0.17677669, %v4110_v44 }
 0xc3b   : > { %4169 = vmax.xlane.f32.xlu1 %v4148_v15 }
 0xc40   : > { %v4113_v50 = vpop.f32.mrf.mxu1 }
 0xc41   : > { %v4149_v11 = vmul.f32 0.17677669, %v4113_v50 }
 0xc43   : > { %4171 = vmax.xlane.f32.xlu2 %v4149_v11 }
 0xc48   : > { %v4116_v30 = vpop.f32.mrf.mxu1 }
 0xc49   : > { %v4150_v17 = vmul.f32 0.17677669, %v4116_v30 }
 0xc4b   : > { %4173 = vmax.xlane.f32.xlu1 %v4150_v17 }
 0xc50   : > { %v4119_v55 = vpop.f32.mrf.mxu1 }
 0xc51   : > { %v9570_v46 = vmul.f32 0.17677669, %v4119_v55 }
 0xc58   : > { %v4122_v54 = vpop.f32.mrf.mxu1 }
 0xc59   : > { %v9576_v29 = vmul.f32 0.17677669, %v4122_v54 }
 0xc60   : > { %v4125_v52 = vpop.f32.mrf.mxu1 }
 0xc61   : > { %v9582_v58 = vmul.f32 0.17677669, %v4125_v52 }
 0xc68   : > { %v4128_v37 = vpop.f32.mrf.mxu1 }
 0xc69   : > { %v9588_v0 = vmul.f32 0.17677669, %v4128_v37 }
 0xc70   : > { %v4131_v41 = vpop.f32.mrf.mxu1 }
 0xc71   : > { %v9594_v50 = vmul.f32 0.17677669, %v4131_v41 }
 0xc86   : > { %v4160_v7 = vpop.xlane.xlu2 %4159 }
 0xc87   : > { %v4191_v19 = vsub.f32 %v4143_v12, %v4160_v7  ;;  %v4134_v7 = vpop.f32.mrf.mxu1 }
 0xc89   : > { %v4207_v59 = vmul.f32 1.442695, %v4191_v19 }
 0xc8b   : > { %7138 = vpow2.f32 %v4207_v59  ;;  %v9600_v59 = vmul.f32 0.17677669, %v4134_v7 }
 0xc8e   : > { %v4162_v26 = vpop.xlane.xlu0 %4161 }
 0xc8f   : > { %v4192_v49 = vsub.f32 %v4144_v38, %v4162_v26 }
 0xc91   : > { %v9567_v35 = vpop.eup %7138  ;;  %v4209_v8 = vmul.f32 1.442695, %v4192_v49 }
 0xc92   : > { %4239 = vadd.xlane.f32.xlu0 %v9567_v35 }
 0xc93   : > { %7140 = vpow2.f32 %v4209_v8 }
 0xc96   : > { %v4164_v9 = vpop.xlane.xlu1 %4163 }
 0xc97   : > { %v4193_v5 = vsub.f32 %v4145_v20, %v4164_v9 }
 0xc99   : > { %v9572_v23 = vpop.eup %7140  ;;  %v4211_v3 = vmul.f32 1.442695, %v4193_v5 }
 0xc9a   : > { %4241 = vadd.xlane.f32.xlu2 %v9572_v23  ;;  %4175 = vmax.xlane.f32.xlu0 %v9570_v46 }
 0xc9b   : > { %7142 = vpow2.f32 %v4211_v3 }
 0xc9e   : > { %v4166_v62 = vpop.xlane.xlu2 %4165 }
 0xc9f   : > { %v4194_v27 = vsub.f32 %v4146_v32, %v4166_v62 }
 0xca1   : > { %v9578_v47 = vpop.eup %7142  ;;  %v4213_v51 = vmul.f32 1.442695, %v4194_v27 }
 0xca2   : > { %4243 = vadd.xlane.f32.xlu1 %v9578_v47  ;;  %4177 = vmax.xlane.f32.xlu2 %v9576_v29 }
 0xca3   : > { %7144 = vpow2.f32 %v4213_v51 }
 0xca6   : > { %v4168_v34 = vpop.xlane.xlu0 %4167 }
 0xca7   : > { %v4195_v4 = vsub.f32 %v4147_v40, %v4168_v34 }
 0xca9   : > { %v9584_v12 = vpop.eup %7144  ;;  %v4215_v22 = vmul.f32 1.442695, %v4195_v4 }
 0xcaa   : > { %4245 = vadd.xlane.f32.xlu0 %v9584_v12  ;;  %4179 = vmax.xlane.f32.xlu1 %v9582_v58 }
 0xcab   : > { %7146 = vpow2.f32 %v4215_v22 }
 0xcae   : > { %v4170_v38 = vpop.xlane.xlu1 %4169 }
 0xcaf   : > { %v4196_v20 = vsub.f32 %v4148_v15, %v4170_v38 }
 0xcb1   : > { %v9590_v32 = vpop.eup %7146  ;;  %v4217_v33 = vmul.f32 1.442695, %v4196_v20 }
 0xcb2   : > { %4247 = vadd.xlane.f32.xlu2 %v9590_v32  ;;  %4181 = vmax.xlane.f32.xlu0 %v9588_v0 }
 0xcb3   : > { %7148 = vpow2.f32 %v4217_v33 }
 0xcb6   : > { %v4172_v40 = vpop.xlane.xlu2 %4171 }
 0xcb7   : > { %v4197_v44 = vsub.f32 %v4149_v11, %v4172_v40  ;;  %v4137_v11 = vpop.f32.mrf.mxu1 }
 0xcb8   : > { %v9606_v54 = vmul.f32 0.17677669, %v4137_v11 }
 0xcb9   : > { %v9596_v30 = vpop.eup %7148  ;;  %v4219_v55 = vmul.f32 1.442695, %v4197_v44 }
 0xcba   : > { %4249 = vadd.xlane.f32.xlu1 %v9596_v30  ;;  %4183 = vmax.xlane.f32.xlu2 %v9594_v50 }
 0xcbb   : > { %7150 = vpow2.f32 %v4219_v55 }
 0xcbe   : > { %v4174_v15 = vpop.xlane.xlu1 %4173 }
 0xcbf   : > { %v4198_v19 = vsub.f32 %v4150_v17, %v4174_v15  ;;  %v4140_v17 = vpop.f32.mrf.mxu1 }
 0xcc0   : > { %v9612_v9 = vmul.f32 0.17677669, %v4140_v17 }
 0xcc1   : > { %v9602_v26 = vpop.eup %7150  ;;  %v4221_v49 = vmul.f32 1.442695, %v4198_v19 }
 0xcc2   : > { %4251 = vadd.xlane.f32.xlu0 %v9602_v26  ;;  %4185 = vmax.xlane.f32.xlu1 %v9600_v59 }
 0xcc3   : > { %7152 = vpow2.f32 %v4221_v49 }
 0xcc9   : > { %v9608_v8 = vpop.eup %7152 }
 0xcca   : > { %4253 = vadd.xlane.f32.xlu2 %v9608_v8  ;;  %4187 = vmax.xlane.f32.xlu0 %v9606_v54 }
 0xcd2   : > { %4189 = vmax.xlane.f32.xlu2 %v9612_v9 }
 0xd05   : > { %v4240_v5 = vpop.xlane.xlu0 %4239 }
 0xd06   : > { %7154 = vrcp.f32 %v4240_v5  ;;  %v4282_v34 = vand.u32 2147483648, %v4240_v5  ;;  %v4280_v38 = vand.u32 2147483647, %v4240_v5  ;;  %vm4276_vm15 = vweird.f32 %v4240_v5 }
 0xd08   : > { %v4283_v33 = vor.u32 1.1754944e-38, %v4282_v34  ;;  %vm4281_vm2 = vcmp.eq.f32.partialorder %v4280_v38, 8.507059e+37 }
 0xd0c   : > { %v7155_v3 = vpop.eup %7154 }
 0xd0d   : > { %v4272_v52 = vmul.f32 %v7155_v3, %v4240_v5  ;;  %v4242_v62 = vpop.xlane.xlu2 %4241  ;;  %v4176_v27 = vpop.xlane.xlu0 %4175  ;;  %vm4277_vm14 = vweird.f32 %v7155_v3 }
 0xd0e   : > { %7156 = vrcp.f32 %v4242_v62  ;;  %v4199_v51 = vsub.f32 %v9570_v46, %v4176_v27  ;;  %vm4278_vm0 = vmor %vm4276_vm15, %vm4277_vm14  ;;  %vm4291_vm4 = vweird.f32 %v4242_v62 }
 0xd0f   : > { %v4273_v37 = vsub.f32 1.0, %v4272_v52  ;;  %v4297_v52 = vand.u32 2147483648, %v4242_v62 }
 0xd10   : > { %v4223_v4 = vmul.f32 1.442695, %v4199_v51 }
 0xd11   : > { %v4274_v22 = vmul.f32 %v7155_v3, %v4273_v37  ;;  %v4298_v37 = vor.u32 1.1754944e-38, %v4297_v52 }
 0xd12   : > { %7158 = vpow2.f32 %v4223_v4 }
 0xd13   : > { %v4275_v41 = vadd.f32 %v7155_v3, %v4274_v22 }
 0xd14   : > { %v7157_v20 = vpop.eup %7156 }
 0xd15   : > { %v4279_v40 = vsel %vm4278_vm0, %v7155_v3, %v4275_v41  ;;  %v4287_v44 = vmul.f32 %v7157_v20, %v4242_v62  ;;  %v4244_v7 = vpop.xlane.xlu1 %4243  ;;  %v4178_v55 = vpop.xlane.xlu2 %4177  ;;  %vm4292_vm3 = vweird.f32 %v7157_v20  ;;  %v4295_v3 = vand.u32 2147483647, %v4242_v62 }
 0xd16   : > { %v4284_v15 = vsel %vm4281_vm2, %v4283_v33, %v4279_v40  ;;  %7160 = vrcp.f32 %v4244_v7  ;;  %v4200_v19 = vsub.f32 %v9576_v29, %v4178_v55  ;;  %vm4293_vm5 = vmor %vm4291_vm4, %vm4292_vm3  ;;  %v4312_v55 = vand.u32 2147483648, %v4244_v7 }
 0xd17   : > { %v4288_v46 = vsub.f32 1.0, %v4287_v44  ;;  %v4285_v49 = vmul.f32 %v9567_v35, %v4284_v15  ;;  %vm4296_vm6 = vcmp.eq.f32.partialorder %v4295_v3, 8.507059e+37  ;;  %v4310_v15 = vand.u32 2147483647, %v4244_v7 }
 0xd18   : > { %v9618_v11 = vpop.eup %7158  ;;  %v4225_v5 = vmul.f32 1.442695, %v4200_v19  ;;  %vm4306_vm8 = vweird.f32 %v4244_v7 }
 0xd19   : > { %v4289_v17 = vmul.f32 %v7157_v20, %v4288_v46  ;;  %4527 = vmatmul.f32.vlgmr.msra.gmra.mxu2 %v4285_v49  ;;  %4255 = vadd.xlane.f32.xlu1 %v9618_v11  ;;  %vm4311_vm10 = vcmp.eq.f32.partialorder %v4310_v15, 8.507059e+37 }
 0xd1a   : > { %7162 = vpow2.f32 %v4225_v5 }
 0xd1b   : > { %v4290_v27 = vadd.f32 %v7157_v20, %v4289_v17 }
 0xd1c   : > { %v7161_v51 = vpop.eup %7160 }
 0xd1d   : > { %v4302_v34 = vmul.f32 %v7161_v51, %v4244_v7  ;;  %v4246_v29 = vpop.xlane.xlu0 %4245  ;;  %v4180_v4 = vpop.xlane.xlu1 %4179  ;;  %v4294_v35 = vsel %vm4293_vm5, %v7157_v20, %v4290_v27  ;;  %vm4307_vm7 = vweird.f32 %v7161_v51 }
 0xd1e   : > { %7164 = vrcp.f32 %v4246_v29  ;;  %v4201_v22 = vsub.f32 %v9582_v58, %v4180_v4  ;;  %v4299_v41 = vsel %vm4296_vm6, %v4298_v37, %v4294_v35  ;;  %vm4308_vm9 = vmor %vm4306_vm8, %vm4307_vm7  ;;  %v4313_v58 = vor.u32 1.1754944e-38, %v4312_v55 }
 0xd1f   : > { %v4303_v38 = vsub.f32 1.0, %v4302_v34  ;;  %v4300_v40 = vmul.f32 %v9572_v23, %v4299_v41  ;;  %v4327_v4 = vand.u32 2147483648, %v4246_v29  ;;  %v4325_v35 = vand.u32 2147483647, %v4246_v29 }
 0xd20   : > { %v4227_v33 = vmul.f32 1.442695, %v4201_v22  ;;  %v9623_v44 = vpop.eup %7162  ;;  %vm4321_vm12 = vweird.f32 %v4246_v29 }
 0xd21   : > { %v4304_v62 = vmul.f32 %v7161_v51, %v4303_v38  ;;  %4530 = vmatmul.f32.gmra.mxu2 %v4300_v40  ;;  %4257 = vadd.xlane.f32.xlu0 %v9623_v44  ;;  %vm4326_vm14 = vcmp.eq.f32.partialorder %v4325_v35, 8.507059e+37 }
 0xd22   : > { %7166 = vpow2.f32 %v4227_v33 }
 0xd23   : > { %v4305_v20 = vadd.f32 %v7161_v51, %v4304_v62 }
 0xd24   : > { %v7165_v46 = vpop.eup %7164 }
 0xd25   : > { %v4317_v19 = vmul.f32 %v7165_v46, %v4246_v29  ;;  %v4248_v49 = vpop.xlane.xlu2 %4247  ;;  %v4182_v17 = vpop.xlane.xlu0 %4181  ;;  %v4309_v52 = vsel %vm4308_vm9, %v7161_v51, %v4305_v20  ;;  %vm4322_vm11 = vweird.f32 %v7165_v46 }
 0xd26   : > { %7168 = vrcp.f32 %v4248_v49  ;;  %v4202_v23 = vsub.f32 %v9588_v0, %v4182_v17  ;;  %v4314_v3 = vsel %vm4311_vm10, %v4313_v58, %v4309_v52  ;;  %vm4323_vm13 = vmor %vm4321_vm12, %vm4322_vm11  ;;  %v4328_v0 = vor.u32 1.1754944e-38, %v4327_v4 }
 0xd27   : > { %v4318_v5 = vsub.f32 1.0, %v4317_v19  ;;  %v4315_v34 = vmul.f32 %v9578_v47, %v4314_v3  ;;  %v4342_v19 = vand.u32 2147483648, %v4248_v49  ;;  %v4340_v17 = vand.u32 2147483647, %v4248_v49 }
 0xd28   : > { %v9627_v27 = vpop.eup %7166  ;;  %v4229_v37 = vmul.f32 1.442695, %v4202_v23  ;;  %vm4336_vm0 = vweird.f32 %v4248_v49 }
 0xd29   : > { %v4319_v7 = vmul.f32 %v7165_v46, %v4318_v5  ;;  %4259 = vadd.xlane.f32.xlu1 %v9627_v27  ;;  %4533 = vmatmul.f32.gmra.mxu2 %v4315_v34  ;;  %v4343_v23 = vor.u32 1.1754944e-38, %v4342_v19  ;;  %vm4341_vm3 = vcmp.eq.f32.partialorder %v4340_v17, 8.507059e+37 }
 0xd2a   : > { %7170 = vpow2.f32 %v4229_v37 }
 0xd2b   : > { %v4320_v51 = vadd.f32 %v7165_v46, %v4319_v7 }
 0xd2c   : > { %v7169_v22 = vpop.eup %7168 }
 0xd2d   : > { %v4332_v38 = vmul.f32 %v7169_v22, %v4248_v49  ;;  %v4250_v41 = vpop.xlane.xlu1 %4249  ;;  %v4184_v33 = vpop.xlane.xlu2 %4183  ;;  %v4324_v40 = vsel %vm4323_vm13, %v7165_v46, %v4320_v51  ;;  %vm4337_vm15 = vweird.f32 %v7169_v22  ;;  %v6791_v46 = vld [vmem:[%s11283_s6 + $0x70] sm:$0xff] }
 0xd2e   : > { %7172 = vrcp.f32 %v4250_v41  ;;  %v4203_v47 = vsub.f32 %v9594_v50, %v4184_v33  ;;  %v4329_v55 = vsel %vm4326_vm14, %v4328_v0, %v4324_v40  ;;  %v6792_v50 = vld [vmem:[%s11283_s6 + $0x78] sm:$0xff]  ;;  %vm4338_vm2 = vmor %vm4336_vm0, %vm4337_vm15  ;;  %v4357_v33 = vand.u32 2147483648, %v4250_v41 }
 0xd2f   : > { %v4333_v62 = vsub.f32 1.0, %v4332_v38  ;;  %v4330_v58 = vmul.f32 %v9584_v12, %v4329_v55  ;;  %4641 = vmatpush.msrb.mxu3 %v6792_v50  ;;  %vm4351_vm5 = vweird.f32 %v4250_v41 }
 0xd30   : > { %v9632_v15 = vpop.eup %7170  ;;  %v4231_v20 = vmul.f32 1.442695, %v4203_v47 }
 0xd31   : > { %v4334_v29 = vmul.f32 %v7169_v22, %v4333_v62  ;;  %4261 = vadd.xlane.f32.xlu2 %v9632_v15  ;;  %4536 = vmatmul.f32.gmra.mxu2 %v4330_v58 }
 0xd32   : > { %7174 = vpow2.f32 %v4231_v20  ;;  %4642 = vmatpush.msrb.mxu3 %v6791_v46 }
 0xd33   : > { %v4335_v52 = vadd.f32 %v7169_v22, %v4334_v29 }
 0xd34   : > { %v7173_v12 = vpop.eup %7172 }
 0xd35   : > { %v4347_v5 = vmul.f32 %v7173_v12, %v4250_v41  ;;  %v4252_v3 = vpop.xlane.xlu0 %4251  ;;  %v4186_v37 = vpop.xlane.xlu1 %4185  ;;  %v4339_v34 = vsel %vm4338_vm2, %v7169_v22, %v4335_v52  ;;  %vm4352_vm4 = vweird.f32 %v7173_v12  ;;  %v4355_v22 = vand.u32 2147483647, %v4250_v41 }
 0xd36   : > { %7176 = vrcp.f32 %v4252_v3  ;;  %v4204_v7 = vsub.f32 %v9600_v59, %v4186_v37  ;;  %v4344_v35 = vsel %vm4341_vm3, %v4343_v23, %v4339_v34  ;;  %vm4353_vm6 = vmor %vm4351_vm5, %vm4352_vm4  ;;  %v4358_v59 = vor.u32 1.1754944e-38, %v4357_v33 }
 0xd37   : > { %v4348_v4 = vsub.f32 1.0, %v4347_v5  ;;  %v4345_v49 = vmul.f32 %v9590_v32, %v4344_v35  ;;  %vm4356_vm7 = vcmp.eq.f32.partialorder %v4355_v22, 8.507059e+37  ;;  %v4372_v50 = vand.u32 2147483648, %v4252_v3 }
 0xd38   : > { %v9643_v51 = vpop.eup %7174  ;;  %v4233_v0 = vmul.f32 1.442695, %v4204_v7  ;;  %v4370_v23 = vand.u32 2147483647, %v4252_v3  ;;  %vm4366_vm9 = vweird.f32 %v4252_v3 }
 0xd39   : > { %v4349_v38 = vmul.f32 %v7173_v12, %v4348_v4  ;;  %4263 = vadd.xlane.f32.xlu0 %v9643_v51  ;;  %4539 = vmatmul.f32.gmra.mxu2 %v4345_v49 }
 0xd3a   : > { %7178 = vpow2.f32 %v4233_v0  ;;  %vm4371_vm11 = vcmp.eq.f32.partialorder %v4370_v23, 8.507059e+37 }
 0xd3b   : > { %v4350_v40 = vadd.f32 %v7173_v12, %v4349_v38 }
 0xd3c   : > { %v7177_v47 = vpop.eup %7176 }
 0xd3d   : > { %v4362_v62 = vmul.f32 %v7177_v47, %v4252_v3  ;;  %v4254_v55 = vpop.xlane.xlu2 %4253  ;;  %v4188_v20 = vpop.xlane.xlu0 %4187  ;;  %v4354_v58 = vsel %vm4353_vm6, %v7173_v12, %v4350_v40  ;;  %vm4367_vm8 = vweird.f32 %v7177_v47 }
 0xd3e   : > { %7180 = vrcp.f32 %v4254_v55  ;;  %v4205_v32 = vsub.f32 %v9606_v54, %v4188_v20  ;;  %v4359_v19 = vsel %vm4356_vm7, %v4358_v59, %v4354_v58  ;;  %v4373_v54 = vor.u32 1.1754944e-38, %v4372_v50  ;;  %vm4368_vm10 = vmor %vm4366_vm9, %vm4367_vm8  ;;  %v6790_v20 = vld [vmem:[%s11283_s6 + $0x68] sm:$0xff] }
 0xd3f   : > { %v4363_v29 = vsub.f32 1.0, %v4362_v62  ;;  %v4360_v41 = vmul.f32 %v9596_v30, %v4359_v19  ;;  %v4387_v38 = vand.u32 2147483648, %v4254_v55  ;;  %v4385_v3 = vand.u32 2147483647, %v4254_v55  ;;  %4643 = vmatpush.msrb.mxu3 %v6790_v20 }
 0xd40   : > { %v9648_v17 = vpop.eup %7178  ;;  %v4235_v46 = vmul.f32 1.442695, %v4205_v32  ;;  %vm4381_vm13 = vweird.f32 %v4254_v55 }
 0xd41   : > { %v4364_v52 = vmul.f32 %v7177_v47, %v4363_v29  ;;  %4265 = vadd.xlane.f32.xlu1 %v9648_v17  ;;  %4542 = vmatmul.f32.gmra.mxu2 %v4360_v41  ;;  %vm4386_vm15 = vcmp.eq.f32.partialorder %v4385_v3, 8.507059e+37 }
 0xd42   : > { %7182 = vpow2.f32 %v4235_v46 }
 0xd43   : > { %v4365_v12 = vadd.f32 %v7177_v47, %v4364_v52 }
 0xd44   : > { %v7181_v5 = vpop.eup %7180 }
 0xd45   : > { %v4377_v37 = vmul.f32 %v7181_v5, %v4254_v55  ;;  %v4190_v34 = vpop.xlane.xlu2 %4189  ;;  %v4369_v7 = vsel %vm4368_vm10, %v7177_v47, %v4365_v12  ;;  %vm4382_vm12 = vweird.f32 %v7181_v5  ;;  %v4388_v47 = vor.u32 1.1754944e-38, %v4387_v38  ;;  %v6789_v55 = vld [vmem:[%s11283_s6 + $0x60] sm:$0xff] }
 0xd46   : > { %v4206_v4 = vsub.f32 %v9612_v9, %v4190_v34  ;;  %v4374_v35 = vsel %vm4371_vm11, %v4373_v54, %v4369_v7  ;;  %vm4383_vm14 = vmor %vm4381_vm13, %vm4382_vm12  ;;  %4644 = vmatpush.msrb.mxu3 %v6789_v55 }
 0xd47   : > { %v4378_v30 = vsub.f32 1.0, %v4377_v37  ;;  %v4375_v0 = vmul.f32 %v9602_v26, %v4374_v35 }
 0xd48   : > { %v9654_v49 = vpop.eup %7182  ;;  %v4237_v33 = vmul.f32 1.442695, %v4206_v4 }
 0xd49   : > { %v4379_v22 = vmul.f32 %v7181_v5, %v4378_v30  ;;  %4267 = vadd.xlane.f32.xlu2 %v9654_v49  ;;  %4545 = vmatmul.f32.gmra.mxu2 %v4375_v0 }
 0xd4a   : > { %7184 = vpow2.f32 %v4237_v33 }
 0xd4b   : > { %v4380_v40 = vadd.f32 %v7181_v5, %v4379_v22 }
 0xd4d   : > { %v4384_v9 = vsel %vm4383_vm14, %v7181_v5, %v4380_v40 }
 0xd4e   : > { %v4389_v59 = vsel %vm4386_vm15, %v4388_v47, %v4384_v9 }
 0xd4f   : > { %v4390_v26 = vmul.f32 %v9608_v8, %v4389_v59 }
 0xd50   : > { %v9658_v62 = vpop.eup %7184 }
 0xd51   : > { %4269 = vadd.xlane.f32.xlu0 %v9658_v62  ;;  %4548 = vmatmul.f32.gmra.mxu2 %v4390_v26 }
 0xd8c   : > { %v4256_v58 = vpop.xlane.xlu1 %4255 }
 0xd8d   : > { %7186 = vrcp.f32 %v4256_v58  ;;  %v4402_v46 = vand.u32 2147483648, %v4256_v58  ;;  %v4400_v41 = vand.u32 2147483647, %v4256_v58  ;;  %vm4396_vm2 = vweird.f32 %v4256_v58 }
 0xd8f   : > { %v4403_v12 = vor.u32 1.1754944e-38, %v4402_v46  ;;  %vm4401_vm4 = vcmp.eq.f32.partialorder %v4400_v41, 8.507059e+37 }
 0xd93   : > { %v7187_v32 = vpop.eup %7186 }
 0xd94   : > { %v4392_v29 = vmul.f32 %v7187_v32, %v4256_v58  ;;  %v4258_v8 = vpop.xlane.xlu0 %4257  ;;  %vm4397_vm0 = vweird.f32 %v7187_v32 }
 0xd95   : > { %7188 = vrcp.f32 %v4258_v8  ;;  %vm4398_vm3 = vmor %vm4396_vm2, %vm4397_vm0  ;;  %v4417_v30 = vand.u32 2147483648, %v4258_v8  ;;  %v4415_v38 = vand.u32 2147483647, %v4258_v8  ;;  %vm4411_vm6 = vweird.f32 %v4258_v8 }
 0xd96   : > { %v4393_v19 = vsub.f32 1.0, %v4392_v29 }
 0xd97   : > { %v4418_v3 = vor.u32 1.1754944e-38, %v4417_v30  ;;  %vm4416_vm8 = vcmp.eq.f32.partialorder %v4415_v38, 8.507059e+37 }
 0xd98   : > { %v4394_v50 = vmul.f32 %v7187_v32, %v4393_v19 }
 0xd9a   : > { %v4395_v52 = vadd.f32 %v7187_v32, %v4394_v50 }
 0xd9b   : > { %v7189_v23 = vpop.eup %7188 }
 0xd9c   : > { %v4528_v5 = vpop.f32.mrf.mxu2  ;;  %v4260_v54 = vpop.xlane.xlu1 %4259  ;;  %v4399_v37 = vsel %vm4398_vm3, %v7187_v32, %v4395_v52  ;;  %v4407_v34 = vmul.f32 %v7189_v23, %v4258_v8  ;;  %vm4412_vm5 = vweird.f32 %v7189_v23 }
 0xd9d   : > { %7190 = vrcp.f32 %v4260_v54  ;;  %6793 = vmatmul.msk.f32.vlgmr.msrb.gmra.mxu3 %vm1092_vm1, %v4528_v5  ;;  %v4404_v7 = vsel %vm4401_vm4, %v4403_v12, %v4399_v37  ;;  %vm4413_vm7 = vmor %vm4411_vm6, %vm4412_vm5  ;;  %v4432_v20 = vand.u32 2147483648, %v4260_v54  ;;  %v4430_v32 = vand.u32 2147483647, %v4260_v54 }
 0xd9e   : > { %v4408_v4 = vsub.f32 1.0, %v4407_v34  ;;  %v4405_v35 = vmul.f32 %v9618_v11, %v4404_v7  ;;  %vm4426_vm10 = vweird.f32 %v4260_v54 }
 0xd9f   : > { %v4433_v19 = vor.u32 1.1754944e-38, %v4432_v20  ;;  %vm4431_vm12 = vcmp.eq.f32.partialorder %v4430_v32, 8.507059e+37 }
 0xda0   : > { %v4409_v0 = vmul.f32 %v7189_v23, %v4408_v4  ;;  %4551 = vmatmul.f32.gmra.mxu2 %v4405_v35 }
 0xda2   : > { %v4410_v22 = vadd.f32 %v7189_v23, %v4409_v0 }
 0xda3   : > { %v7191_v33 = vpop.eup %7190 }
 0xda4   : > { %v4422_v40 = vmul.f32 %v7191_v33, %v4260_v54  ;;  %v4262_v47 = vpop.xlane.xlu2 %4261  ;;  %v4531_v9 = vpop.f32.mrf.mxu2  ;;  %v4414_v59 = vsel %vm4413_vm7, %v7189_v23, %v4410_v22  ;;  %vm4427_vm9 = vweird.f32 %v7191_v33 }
 0xda5   : > { %7192 = vrcp.f32 %v4262_v47  ;;  %6794 = vmatmul.msk.f32.gmra.mxu3 %vm1092_vm1, %v4531_v9  ;;  %v4419_v11 = vsel %vm4416_vm8, %v4418_v3, %v4414_v59  ;;  %vm4428_vm11 = vmor %vm4426_vm10, %vm4427_vm9  ;;  %v4447_v5 = vand.u32 2147483648, %v4262_v47  ;;  %v4445_v54 = vand.u32 2147483647, %v4262_v47 }
 0xda6   : > { %v4423_v26 = vsub.f32 1.0, %v4422_v40  ;;  %v4420_v55 = vmul.f32 %v9623_v44, %v4419_v11  ;;  %vm4441_vm14 = vweird.f32 %v4262_v47 }
 0xda7   : > { %v4448_v4 = vor.u32 1.1754944e-38, %v4447_v5  ;;  %vm4446_vm0 = vcmp.eq.f32.partialorder %v4445_v54, 8.507059e+37 }
 0xda8   : > { %v4424_v58 = vmul.f32 %v7191_v33, %v4423_v26  ;;  %4554 = vmatmul.f32.gmra.mxu2 %v4420_v55 }
 0xdaa   : > { %v4425_v29 = vadd.f32 %v7191_v33, %v4424_v58 }
 0xdab   : > { %v7193_v8 = vpop.eup %7192 }
 0xdac   : > { %v4437_v50 = vmul.f32 %v7193_v8, %v4262_v47  ;;  %v4264_v46 = vpop.xlane.xlu0 %4263  ;;  %v4429_v41 = vsel %vm4428_vm11, %v7191_v33, %v4425_v29  ;;  %v4534_v52 = vpop.f32.mrf.mxu2  ;;  %vm4442_vm13 = vweird.f32 %v7193_v8 }
 0xdad   : > { %7194 = vrcp.f32 %v4264_v46  ;;  %v4434_v23 = vsel %vm4431_vm12, %v4433_v19, %v4429_v41  ;;  %6795 = vmatmul.msk.f32.gmra.mxu3 %vm1092_vm1, %v4534_v52  ;;  %vm4443_vm15 = vmor %vm4441_vm14, %vm4442_vm13  ;;  %v4462_v3 = vand.u32 2147483648, %v4264_v46  ;;  %v4460_v47 = vand.u32 2147483647, %v4264_v46 }
 0xdae   : > { %v4438_v12 = vsub.f32 1.0, %v4437_v50  ;;  %v4435_v44 = vmul.f32 %v9627_v27, %v4434_v23  ;;  %vm4456_vm3 = vweird.f32 %v4264_v46 }
 0xdaf   : > { %v4463_v26 = vor.u32 1.1754944e-38, %v4462_v3  ;;  %vm4461_vm5 = vcmp.eq.f32.partialorder %v4460_v47, 8.507059e+37 }
 0xdb0   : > { %v4439_v37 = vmul.f32 %v7193_v8, %v4438_v12  ;;  %4557 = vmatmul.f32.gmra.mxu2 %v4435_v44 }
 0xdb2   : > { %v4440_v34 = vadd.f32 %v7193_v8, %v4439_v37 }
 0xdb3   : > { %v7195_v7 = vpop.eup %7194 }
 0xdb4   : > { %v4452_v35 = vmul.f32 %v7195_v7, %v4264_v46  ;;  %v4266_v30 = vpop.xlane.xlu1 %4265  ;;  %v4444_v0 = vsel %vm4443_vm15, %v7193_v8, %v4440_v34  ;;  %v4537_v38 = vpop.f32.mrf.mxu2  ;;  %vm4457_vm2 = vweird.f32 %v7195_v7 }
 0xdb5   : > { %7196 = vrcp.f32 %v4266_v30  ;;  %v4449_v33 = vsel %vm4446_vm0, %v4448_v4, %v4444_v0  ;;  %6796 = vmatmul.msk.f32.gmra.mxu3 %vm1092_vm1, %v4537_v38  ;;  %vm4458_vm4 = vmor %vm4456_vm3, %vm4457_vm2  ;;  %v4477_v8 = vand.u32 2147483648, %v4266_v30  ;;  %v4475_v50 = vand.u32 2147483647, %v4266_v30 }
 0xdb6   : > { %v4453_v22 = vsub.f32 1.0, %v4452_v35  ;;  %v4450_v27 = vmul.f32 %v9632_v15, %v4449_v33  ;;  %vm4471_vm7 = vweird.f32 %v4266_v30 }
 0xdb7   : > { %v4478_v52 = vor.u32 1.1754944e-38, %v4477_v8  ;;  %vm4476_vm9 = vcmp.eq.f32.partialorder %v4475_v50, 8.507059e+37  ;;  %v9689_v8 = vld [vmem:[%s11284_s7] ss:$0 sm:$0xff] }
 0xdb8   : > { %v4454_v40 = vmul.f32 %v7195_v7, %v4453_v22  ;;  %4560 = vmatmul.f32.gmra.mxu2 %v4450_v27 }
 0xdba   : > { %v4455_v9 = vadd.f32 %v7195_v7, %v4454_v40 }
 0xdbb   : > { %v7197_v59 = vpop.eup %7196 }
 0xdbc   : > { %v4467_v11 = vmul.f32 %v7197_v59, %v4266_v30  ;;  %v4268_v20 = vpop.xlane.xlu2 %4267  ;;  %v4459_v55 = vsel %vm4458_vm4, %v7195_v7, %v4455_v9  ;;  %v4540_v58 = vpop.f32.mrf.mxu2  ;;  %vm4472_vm6 = vweird.f32 %v7197_v59 }
 0xdbd   : > { %7198 = vrcp.f32 %v4268_v20  ;;  %v4464_v32 = vsel %vm4461_vm5, %v4463_v26, %v4459_v55  ;;  %6797 = vmatmul.msk.f32.gmra.mxu3 %vm1092_vm1, %v4540_v58  ;;  %vm4473_vm8 = vmor %vm4471_vm7, %vm4472_vm6  ;;  %v4492_v34 = vand.u32 2147483648, %v4268_v20  ;;  %v4490_v4 = vand.u32 2147483647, %v4268_v20 }
 0xdbe   : > { %v4468_v29 = vsub.f32 1.0, %v4467_v11  ;;  %v4465_v15 = vmul.f32 %v9643_v51, %v4464_v32  ;;  %vm4486_vm11 = vweird.f32 %v4268_v20 }
 0xdbf   : > { %v4493_v0 = vor.u32 1.1754944e-38, %v4492_v34  ;;  %vm4491_vm13 = vcmp.eq.f32.partialorder %v4490_v4, 8.507059e+37  ;;  %v2724_v34 = vadd.f32 %v8999_v48, %v8958_v28  ;;  %v7365_v4 = vld [vmem:[%s7575_s18 + $0x18] sm:$0xff] }
 0xdc0   : > { %v4469_v19 = vmul.f32 %v7197_v59, %v4468_v29  ;;  %4563 = vmatmul.f32.gmra.mxu2 %v4465_v15 }
 0xdc2   : > { %v4470_v46 = vadd.f32 %v7197_v59, %v4469_v19  ;;  %v7362_v19 = vld [vmem:[%s7575_s18] sm:$0xff] }
 0xdc3   : > { %v7199_v41 = vpop.eup %7198 }
 0xdc4   : > { %v4482_v23 = vmul.f32 %v7199_v41, %v4268_v20  ;;  %v4270_v12 = vpop.xlane.xlu0 %4269  ;;  %v4474_v44 = vsel %vm4473_vm8, %v7197_v59, %v4470_v46  ;;  %v4543_v5 = vpop.f32.mrf.mxu2  ;;  %vm4487_vm10 = vweird.f32 %v7199_v41 }
 0xdc5   : > { %7200 = vrcp.f32 %v4270_v12  ;;  %v4479_v37 = vsel %vm4476_vm9, %v4478_v52, %v4474_v44  ;;  %6798 = vmatmul.msk.f32.gmra.mxu3 %vm1092_vm1, %v4543_v5  ;;  %vm4488_vm12 = vmor %vm4486_vm11, %vm4487_vm10  ;;  %v4507_v40 = vand.u32 2147483648, %v4270_v12  ;;  %v4505_v9 = vand.u32 2147483647, %v4270_v12  ;;  %v7363_v52 = vld [vmem:[%s7575_s18 + $0x8] sm:$0xff] }
 0xdc6   : > { %v4483_v54 = vsub.f32 1.0, %v4482_v23  ;;  %v4480_v51 = vmul.f32 %v9648_v17, %v4479_v37  ;;  %vm4501_vm15 = vweird.f32 %v4270_v12  ;;  %v2721_v44 = vadd.f32 %v8989_v56, %v8953_v6  ;;  %v7364_v37 = vld [vmem:[%s7575_s18 + $0x10] sm:$0xff] }
 0xdc7   : > { %v4508_v26 = vor.u32 1.1754944e-38, %v4507_v40  ;;  %vm4506_vm2 = vcmp.eq.f32.partialorder %v4505_v9, 8.507059e+37  ;;  %v3723_v56 = vadd.f32 %v9524_v16, %v2724_v34  ;;  %v11361_v40 = vld [vmem:[#allocation16_spill] sm:$0xff] }
 0xdc8   : > { %v4484_v7 = vmul.f32 %v7199_v41, %v4483_v54  ;;  %4566 = vmatmul.f32.gmra.mxu2 %v4480_v51 }
 0xdca   : > { %v4485_v35 = vadd.f32 %v7199_v41, %v4484_v7 }
 0xdcb   : > { %v7201_v30 = vpop.eup %7200 }
 0xdcc   : > { %v4497_v38 = vmul.f32 %v7201_v30, %v4270_v12  ;;  %v4489_v33 = vsel %vm4488_vm12, %v7199_v41, %v4485_v35  ;;  %v4546_v22 = vpop.f32.mrf.mxu2  ;;  %vm4502_vm14 = vweird.f32 %v7201_v30 }
 0xdcd   : > { %v4494_v27 = vsel %vm4491_vm13, %v4493_v0, %v4489_v33  ;;  %6799 = vmatmul.msk.f32.gmra.mxu3 %vm1092_vm1, %v4546_v22  ;;  %vm4503_vm0 = vmor %vm4501_vm15, %vm4502_vm14  ;;  %v11358_v0 = vld [vmem:[#allocation14_spill] sm:$0xff]  ;;  %v7366_v22 = vld [vmem:[%s7575_s18 + $0x20] sm:$0xff] }
 0xdce   : > { %v4498_v3 = vsub.f32 1.0, %v4497_v38  ;;  %v4495_v17 = vmul.f32 %v9654_v49, %v4494_v27  ;;  %v2715_v49 = vadd.f32 %v8969_v61, %v8943_v57  ;;  %v2718_v57 = vadd.f32 %v8978_v63, %v8948_v39 }
 0xdcf   : > { %v3722_v39 = vadd.f32 %v9521_v42, %v2721_v44  ;;  %v2727_v38 = vadd.f32 %v11358_v0, %v8964_v25 }
 0xdd0   : > { %v4499_v47 = vmul.f32 %v7201_v30, %v4498_v3  ;;  %4569 = vmatmul.f32.gmra.mxu2 %v4495_v17  ;;  %v3720_v32 = vadd.f32 %v9511_v14, %v2715_v49  ;;  %v3721_v61 = vadd.f32 %v9516_v24, %v2718_v57  ;;  %v11360_v17 = vld [vmem:[#allocation9_spill] sm:$0xff] }
 0xdd1   : > { %v3724_v48 = vadd.f32 %v9527_v31, %v2727_v38 }
 0xdd2   : > { %v4500_v59 = vadd.f32 %v7201_v30, %v4499_v47  ;;  %v2730_v47 = vadd.f32 %v11361_v40, %v11360_v17  ;;  %v11374_v17 = vld [vmem:[#allocation24_spill] sm:$0xff] }
 0xdd4   : > { %v4504_v11 = vsel %vm4503_vm0, %v7201_v30, %v4500_v59  ;;  %v4549_v20 = vpop.f32.mrf.mxu2  ;;  %v3725_v9 = vadd.f32 %v9530_v53, %v2730_v47 }
 0xdd5   : > { %v4509_v55 = vsel %vm4506_vm2, %v4508_v26, %v4504_v11  ;;  %6800 = vmatmul.msk.f32.gmra.mxu3 %vm1092_vm1, %v4549_v20  ;;  %v7367_v26 = vld [vmem:[%s7575_s18 + $0x28] sm:$0xff] }
 0xdd6   : > { %v4510_v58 = vmul.f32 %v9658_v62, %v4509_v55  ;;  %v11363_v55 = vld [vmem:[#allocation10_spill] sm:$0xff] }
 0xdd8   : > { %4572 = vmatmul.f32.gmra.mxu2 %v4510_v58  ;;  %v11364_v58 = vld [vmem:[#allocation18_spill] sm:$0xff] }
 0xdd9   : > { %v2733_v49 = vadd.f32 %v11364_v58, %v11363_v55 }
 0xe20   : > { %v4646_v29 = vpop.f32.mrf.mxu3 }
 0xe21   : > { %v4694_v15 = vadd.f32 %v4646_v29, %v3720_v32  ;;  %v3726_v29 = vadd.f32 %v9533_v21, %v2733_v49  ;;  %v11367_v21 = vld [vmem:[#allocation11_spill] sm:$0xff] }
 0xe22   : > { %v11376_v49 = vld [vmem:[#allocation15_spill] sm:$0xff] }
 0xe23   : > { %v4710_v50 = vadd.f32 %v7362_v19, %v4694_v15  ;;  %v4552_v46 = vpop.f32.mrf.mxu2  ;;  %v7368_v19 = vld [vmem:[%s7575_s18 + $0x30] sm:$0xff] }
 0xe24   : > { %6801 = vmatmul.msk.f32.gmra.mxu3 %vm1092_vm1, %v4552_v46 }
 0xe25   : > { %v9694_v62 = vadd.f32 %v9689_v8, %v4710_v50 }
 0xe27   : > { %11355 = vst [vmem:[#allocation32_spill] sm:$0xff] %v9694_v62  ;;  %4748 = vadd.xlane.f32.xlu1 %v9694_v62 }
 0xe28   : > { %v4649_v14 = vpop.f32.mrf.mxu3 }
 0xe29   : > { %v4695_v41 = vadd.f32 %v4649_v14, %v3721_v61 }
 0xe2b   : > { %v4711_v23 = vadd.f32 %v7363_v52, %v4695_v41  ;;  %v4555_v12 = vpop.f32.mrf.mxu2  ;;  %v11368_v41 = vld [vmem:[#allocation20_spill] sm:$0xff] }
 0xe2c   : > { %6802 = vmatmul.msk.f32.gmra.mxu3 %vm1092_vm1, %v4555_v12  ;;  %v2736_v52 = vadd.f32 %v11368_v41, %v11367_v21  ;;  %v7372_v21 = vld [vmem:[%s7575_s18 + $0x50] sm:$0xff] }
 0xe2d   : > { %v9705_v5 = vadd.f32 %v9689_v8, %v4711_v23  ;;  %v11369_v23 = vld [vmem:[#allocation8_spill] sm:$0xff] }
 0xe2f   : > { %11356 = vst [vmem:[#allocation33_spill] sm:$0xff] %v9705_v5  ;;  %4750 = vadd.xlane.f32.xlu2 %v9705_v5 }
 0xe30   : > { %v4652_v63 = vpop.f32.mrf.mxu3 }
 0xe31   : > { %v4696_v24 = vadd.f32 %v4652_v63, %v3722_v39  ;;  %v3727_v39 = vadd.f32 %v9536_v18, %v2736_v52 }
 0xe33   : > { %v4712_v54 = vadd.f32 %v7364_v37, %v4696_v24  ;;  %v4558_v51 = vpop.f32.mrf.mxu2 }
 0xe34   : > { %6803 = vmatmul.msk.f32.gmra.mxu3 %vm1092_vm1, %v4558_v51 }
 0xe35   : > { %v9714_v6 = vadd.f32 %v9689_v8, %v4712_v54  ;;  %v7369_v54 = vld [vmem:[%s7575_s18 + $0x38] sm:$0xff] }
 0xe37   : > { %11357 = vst [vmem:[#allocation34_spill] sm:$0xff] %v9714_v6  ;;  %4752 = vadd.xlane.f32.xlu0 %v9714_v6 }
 0xe38   : > { %v4655_v42 = vpop.f32.mrf.mxu3 }
 0xe39   : > { %v4697_v7 = vadd.f32 %v4655_v42, %v3723_v56  ;;  %v11370_v42 = vld [vmem:[#allocation12_spill] sm:$0xff] }
 0xe3b   : > { %v4713_v35 = vadd.f32 %v7365_v4, %v4697_v7  ;;  %v4561_v30 = vpop.f32.mrf.mxu2  ;;  %v11371_v7 = vld [vmem:[#allocation22_spill] sm:$0xff] }
 0xe3c   : > { %6804 = vmatmul.msk.f32.gmra.mxu3 %vm1092_vm1, %v4561_v30  ;;  %v2739_v4 = vadd.f32 %v11371_v7, %v11370_v42  ;;  %v5166_v42 = vld [vmem:[%s11287_s10 + $0x1e0] sm:$0xff]  ;;  %v5168_v7 = vld [vmem:[%s11287_s10 + $0x1f0] sm:$0xff] }
 0xe3d   : > { %v9723_v28 = vadd.f32 %v9689_v8, %v4713_v35  ;;  %5180 = vmatpush.msra.mxu0 %v5166_v42  ;;  %5310 = vmatpush.msrb.mxu2 %v5168_v7  ;;  %v5150_v42 = vld [vmem:[%s11287_s10 + $0x160] sm:$0xff]  ;;  %v5152_v7 = vld [vmem:[%s11287_s10 + $0x170] sm:$0xff] }
 0xe3e   : > { %v3728_v18 = vadd.f32 %v9539_v60, %v2739_v4  ;;  %v7373_v4 = vld [vmem:[%s7575_s18 + $0x58] sm:$0xff] }
 0xe3f   : > { %11359 = vst [vmem:[#allocation14_spill] sm:$0xff] %v9723_v28  ;;  %4754 = vadd.xlane.f32.xlu1 %v9723_v28 }
 0xe40   : > { %v4658_v16 = vpop.f32.mrf.mxu3 }
 0xe41   : > { %v4698_v33 = vadd.f32 %v4658_v16, %v3724_v48 }
 0xe43   : > { %v4714_v27 = vadd.f32 %v7366_v22, %v4698_v33  ;;  %v4564_v3 = vpop.f32.mrf.mxu2  ;;  %v7370_v33 = vld [vmem:[%s7575_s18 + $0x40] sm:$0xff] }
 0xe44   : > { %6805 = vmatmul.msk.f32.gmra.mxu3 %vm1092_vm1, %v4564_v3  ;;  %v11373_v3 = vld [vmem:[#allocation13_spill] sm:$0xff] }
 0xe45   : > { %v9732_v25 = vadd.f32 %v9689_v8, %v4714_v27  ;;  %v2742_v60 = vadd.f32 %v11374_v17, %v11373_v3  ;;  %v5164_v3 = vld [vmem:[%s11287_s10 + $0x1d0] sm:$0xff]  ;;  %v5165_v17 = vld [vmem:[%s11287_s10 + $0x1d8] sm:$0xff] }
 0xe46   : > { %5311 = vmatpush.msrb.mxu2 %v5164_v3  ;;  %v5138_v3 = vld [vmem:[%s11287_s10 + $0x100] sm:$0xff] }
 0xe47   : > { %11362 = vst [vmem:[#allocation9_spill] sm:$0xff] %v9732_v25  ;;  %4756 = vadd.xlane.f32.xlu2 %v9732_v25  ;;  %v3729_v47 = vadd.f32 %v9542_v13, %v2742_v60 }
 0xe48   : > { %v4661_v31 = vpop.f32.mrf.mxu3 }
 0xe49   : > { %v4699_v59 = vadd.f32 %v4661_v31, %v3725_v9 }
 0xe4b   : > { %v4715_v11 = vadd.f32 %v7367_v26, %v4699_v59  ;;  %v4567_v20 = vpop.f32.mrf.mxu2 }
 0xe4c   : > { %6806 = vmatmul.msk.f32.gmra.mxu3 %vm1092_vm1, %v4567_v20  ;;  %v7371_v20 = vld [vmem:[%s7575_s18 + $0x48] sm:$0xff] }
 0xe4d   : > { %v9741_v32 = vadd.f32 %v9689_v8, %v4715_v11 }
 0xe4f   : > { %11365 = vst [vmem:[#allocation16_spill] sm:$0xff] %v9741_v32  ;;  %4758 = vadd.xlane.f32.xlu0 %v9741_v32 }
 0xe50   : > { %v4664_v53 = vpop.f32.mrf.mxu3 }
 0xe51   : > { %v4700_v15 = vadd.f32 %v4664_v53, %v3726_v29  ;;  %v11377_v29 = vld [vmem:[#allocation26_spill] sm:$0xff] }
 0xe52   : > { %v2745_v13 = vadd.f32 %v11377_v29, %v11376_v49  ;;  %v11386_v29 = vld [vmem:[#allocation29_spill] sm:$0xff] }
 0xe53   : > { %v4716_v50 = vadd.f32 %v7368_v19, %v4700_v15  ;;  %v4570_v46 = vpop.f32.mrf.mxu2 }
 0xe54   : > { %6807 = vmatmul.msk.f32.gmra.mxu3 %vm1092_vm1, %v4570_v46  ;;  %v3730_v15 = vadd.f32 %v9545_v43, %v2745_v13 }
 0xe55   : > { %v9748_v57 = vadd.f32 %v9689_v8, %v4716_v50 }
 0xe57   : > { %11366 = vst [vmem:[#allocation10_spill] sm:$0xff] %v9748_v57  ;;  %4760 = vadd.xlane.f32.xlu2 %v9748_v57 }
 0xe58   : > { %v4667_v44 = vpop.f32.mrf.mxu3 }
 0xe59   : > { %v4701_v24 = vadd.f32 %v4667_v44, %v3727_v39  ;;  %v11380_v44 = vld [vmem:[#allocation27_spill] sm:$0xff] }
 0xe5b   : > { %v4573_v61 = vpop.f32.mrf.mxu2  ;;  %v4717_v51 = vadd.f32 %v7369_v54, %v4701_v24 }
 0xe5c   : > { %6808 = vmatmul.msk.f32.gmra.mxu3 %vm1092_vm1, %v4573_v61 }
 0xe5d   : > { %v9770_v30 = vadd.f32 %v9689_v8, %v4717_v51 }
 0xe5f   : > { %11372 = vst [vmem:[#allocation18_spill] sm:$0xff] %v9770_v30 }
 0xe9a   : > { %v4749_v14 = vpop.xlane.xlu1 %4748 }
 0xe9b   : > { %v4780_v12 = vmul.f32 %v4749_v14, %v11369_v23 }
 0xe9d   : > { %v9757_v63 = vsub.f32 %v9694_v62, %v4780_v12  ;;  %v11379_v12 = vld [vmem:[#allocation17_spill] sm:$0xff] }
 0xe9e   : > { %v2748_v43 = vadd.f32 %v11380_v44, %v11379_v12  ;;  %v5159_v44 = vld [vmem:[%s11287_s10 + $0x1a8] sm:$0xff] }
 0xe9f   : > { %v4812_v37 = vmul.f32 %v9757_v63, %v9757_v63 }
 0xea0   : > { %v3731_v24 = vadd.f32 %v9548_v36, %v2748_v43  ;;  %v5167_v36 = vld [vmem:[%s11287_s10 + $0x1e8] sm:$0xff]  ;;  %v5160_v43 = vld [vmem:[%s11287_s10 + $0x1b0] sm:$0xff] }
 0xea1   : > { %4828 = vadd.xlane.f32.xlu1 %v4812_v37  ;;  %5245 = vmatpush.msrb.mxu1 %v5167_v36  ;;  %v5151_v36 = vld [vmem:[%s11287_s10 + $0x168] sm:$0xff] }
 0xea2   : > { %v4751_v34 = vpop.xlane.xlu2 %4750  ;;  %5312 = vmatpush.msrb.mxu2 %v5160_v43  ;;  %v5119_v43 = vld [vmem:[%s11287_s10 + $0x68] sm:$0xff] }
 0xea3   : > { %v4781_v56 = vmul.f32 %v4751_v34, %v11369_v23 }
 0xea5   : > { %v9766_v35 = vsub.f32 %v9705_v5, %v4781_v56 }
 0xea7   : > { %v4670_v0 = vpop.f32.mrf.mxu3  ;;  %v4813_v38 = vmul.f32 %v9766_v35, %v9766_v35 }
 0xea8   : > { %v4702_v48 = vadd.f32 %v4670_v0, %v3728_v18 }
 0xea9   : > { %4762 = vadd.xlane.f32.xlu1 %v9770_v30  ;;  %4830 = vadd.xlane.f32.xlu0 %v4813_v38  ;;  %v5169_v38 = vld [vmem:[%s11287_s10 + $0x1f8] sm:$0xff] }
 0xeaa   : > { %v4753_v16 = vpop.xlane.xlu0 %4752  ;;  %v4718_v22 = vadd.f32 %v7370_v33, %v4702_v48  ;;  %v5162_v48 = vld [vmem:[%s11287_s10 + $0x1c0] sm:$0xff]  ;;  %v11382_v33 = vld [vmem:[#allocation19_spill] sm:$0xff]  ;;  %5375 = vmatpush.msra.mxu3 %v5169_v38  ;;  %v5148_v38 = vld [vmem:[%s11287_s10 + $0x150] sm:$0xff] }
 0xeab   : > { %v4782_v27 = vmul.f32 %v4753_v16, %v11369_v23  ;;  %v5163_v16 = vld [vmem:[%s11287_s10 + $0x1c8] sm:$0xff]  ;;  %5181 = vmatpush.msra.mxu0 %v5162_v48  ;;  %v5149_v48 = vld [vmem:[%s11287_s10 + $0x158] sm:$0xff] }
 0xeac   : > { %v9786_v59 = vadd.f32 %v9689_v8, %v4718_v22  ;;  %v11383_v22 = vld [vmem:[#allocation28_spill] sm:$0xff]  ;;  %5246 = vmatpush.msrb.mxu1 %v5163_v16  ;;  %5376 = vmatpush.msra.mxu3 %v5165_v17  ;;  %v5139_v17 = vld [vmem:[%s11287_s10 + $0x108] sm:$0xff] }
 0xead   : > { %v9780_v40 = vsub.f32 %v9714_v6, %v4782_v27  ;;  %v2751_v27 = vadd.f32 %v11383_v22, %v11382_v33  ;;  %v5142_v16 = vld [vmem:[%s11287_s10 + $0x120] sm:$0xff]  ;;  %v5143_v33 = vld [vmem:[%s11287_s10 + $0x128] sm:$0xff]  ;;  %v5144_v22 = vld [vmem:[%s11287_s10 + $0x130] sm:$0xff] }
 0xeae   : > { %11375 = vst [vmem:[#allocation11_spill] sm:$0xff] %v9786_v59  ;;  %5247 = vmatpush.msrb.mxu1 %v5159_v44  ;;  %v5118_v44 = vld [vmem:[%s11287_s10 + $0x60] sm:$0xff] }
 0xeaf   : > { %v4673_v9 = vpop.f32.mrf.mxu3  ;;  %v4814_v31 = vmul.f32 %v9780_v40, %v9780_v40 }
 0xeb0   : > { %v4703_v26 = vadd.f32 %v4673_v9, %v3729_v47  ;;  %v3732_v47 = vadd.f32 %v9551_v1, %v2751_v27  ;;  %v11385_v1 = vld [vmem:[#allocation21_spill] sm:$0xff]  ;;  %v5145_v27 = vld [vmem:[%s11287_s10 + $0x138] sm:$0xff] }
 0xeb1   : > { %4832 = vadd.xlane.f32.xlu2 %v4814_v31  ;;  %4764 = vadd.xlane.f32.xlu0 %v9786_v59  ;;  %v2754_v13 = vadd.f32 %v11386_v29, %v11385_v1  ;;  %v5132_v1 = vld [vmem:[%s11287_s10 + $0xd0] sm:$0xff]  ;;  %v5133_v29 = vld [vmem:[%s11287_s10 + $0xd8] sm:$0xff] }
 0xeb2   : > { %v4755_v11 = vpop.xlane.xlu1 %4754  ;;  %v4719_v55 = vadd.f32 %v7371_v20, %v4703_v26 }
 0xeb3   : > { %v4783_v58 = vmul.f32 %v4755_v11, %v11369_v23 }
 0xeb4   : > { %v9800_v46 = vadd.f32 %v9689_v8, %v4719_v55  ;;  %v7374_v55 = vld [vmem:[%s7575_s18 + $0x60] sm:$0xff] }
 0xeb5   : > { %v9794_v53 = vsub.f32 %v9723_v28, %v4783_v58 }
 0xeb6   : > { %11378 = vst [vmem:[#allocation20_spill] sm:$0xff] %v9800_v46 }
 0xeb7   : > { %v4676_v19 = vpop.f32.mrf.mxu3  ;;  %v4815_v50 = vmul.f32 %v9794_v53, %v9794_v53 }
 0xeb8   : > { %v4704_v61 = vadd.f32 %v4676_v19, %v3730_v15  ;;  %v3733_v19 = vadd.f32 %v9554_v10, %v2754_v13  ;;  %v5158_v10 = vld [vmem:[%s11287_s10 + $0x1a0] sm:$0xff] }
 0xeb9   : > { %4834 = vadd.xlane.f32.xlu1 %v4815_v50  ;;  %4766 = vadd.xlane.f32.xlu2 %v9800_v46  ;;  %v5126_v13 = vld [vmem:[%s11287_s10 + $0xa0] sm:$0xff] }
 0xeba   : > { %v4757_v14 = vpop.xlane.xlu2 %4756  ;;  %v4720_v41 = vadd.f32 %v7372_v21, %v4704_v61  ;;  %5182 = vmatpush.msra.mxu0 %v5158_v10  ;;  %v5125_v10 = vld [vmem:[%s11287_s10 + $0x98] sm:$0xff] }
 0xebb   : > { %v4784_v52 = vmul.f32 %v4757_v14, %v11369_v23 }
 0xebc   : > { %v9812_v54 = vadd.f32 %v9689_v8, %v4720_v41  ;;  %v7375_v41 = vld [vmem:[%s7575_s18 + $0x68] sm:$0xff] }
 0xebd   : > { %v9808_v39 = vsub.f32 %v9732_v25, %v4784_v52 }
 0xebe   : > { %11381 = vst [vmem:[#allocation8_spill] sm:$0xff] %v9812_v54 }
 0xebf   : > { %v4679_v37 = vpop.f32.mrf.mxu3  ;;  %v4816_v51 = vmul.f32 %v9808_v39, %v9808_v39 }
 0xec0   : > { %v4705_v34 = vadd.f32 %v4679_v37, %v3731_v24  ;;  %v5161_v24 = vld [vmem:[%s11287_s10 + $0x1b8] sm:$0xff]  ;;  %v5154_v37 = vld [vmem:[%s11287_s10 + $0x180] sm:$0xff] }
 0xec1   : > { %4768 = vadd.xlane.f32.xlu1 %v9812_v54  ;;  %4836 = vadd.xlane.f32.xlu0 %v4816_v51  ;;  %v5155_v51 = vld [vmem:[%s11287_s10 + $0x188] sm:$0xff] }
 0xec2   : > { %v4759_v56 = vpop.xlane.xlu0 %4758  ;;  %v4721_v18 = vadd.f32 %v7373_v4, %v4705_v34  ;;  %5377 = vmatpush.msra.mxu3 %v5161_v24  ;;  %v5156_v34 = vld [vmem:[%s11287_s10 + $0x190] sm:$0xff]  ;;  %5183 = vmatpush.msra.mxu0 %v5154_v37  ;;  %v5153_v4 = vld [vmem:[%s11287_s10 + $0x178] sm:$0xff] }
 0xec3   : > { %v4785_v0 = vmul.f32 %v4759_v56, %v11369_v23  ;;  %5248 = vmatpush.msrb.mxu1 %v5155_v51  ;;  %v5157_v56 = vld [vmem:[%s11287_s10 + $0x198] sm:$0xff]  ;;  %5313 = vmatpush.msrb.mxu2 %v5156_v34  ;;  %v5120_v24 = vld [vmem:[%s11287_s10 + $0x70] sm:$0xff]  ;;  %v5114_v51 = vld [vmem:[%s11287_s10 + $0x40] sm:$0xff] }
 0xec4   : > { %v9852_v26 = vadd.f32 %v9689_v8, %v4721_v18  ;;  %5378 = vmatpush.msra.mxu3 %v5157_v56  ;;  %5184 = vmatpush.msra.mxu0 %v5150_v42  ;;  %v5146_v18 = vld [vmem:[%s11287_s10 + $0x140] sm:$0xff]  ;;  %v5121_v37 = vld [vmem:[%s11287_s10 + $0x78] sm:$0xff]  ;;  %v5115_v34 = vld [vmem:[%s11287_s10 + $0x48] sm:$0xff] }
 0xec5   : > { %v9846_v60 = vsub.f32 %v9741_v32, %v4785_v0  ;;  %5249 = vmatpush.msrb.mxu1 %v5151_v36  ;;  %5314 = vmatpush.msrb.mxu2 %v5152_v7  ;;  %v5147_v0 = vld [vmem:[%s11287_s10 + $0x148] sm:$0xff]  ;;  %v5116_v56 = vld [vmem:[%s11287_s10 + $0x50] sm:$0xff]  ;;  %v5117_v42 = vld [vmem:[%s11287_s10 + $0x58] sm:$0xff] }
 0xec6   : > { %11384 = vst [vmem:[#allocation12_spill] sm:$0xff] %v9852_v26  ;;  %5379 = vmatpush.msra.mxu3 %v5153_v4  ;;  %5185 = vmatpush.msra.mxu0 %v5146_v18  ;;  %v5110_v36 = vld [vmem:[%s11287_s10 + $0x20] sm:$0xff]  ;;  %v5111_v7 = vld [vmem:[%s11287_s10 + $0x28] sm:$0xff]  ;;  %v5112_v4 = vld [vmem:[%s11287_s10 + $0x30] sm:$0xff] }
 0xec7   : > { %v4682_v9 = vpop.f32.mrf.mxu3  ;;  %v4817_v31 = vmul.f32 %v9846_v60, %v9846_v60  ;;  %5250 = vmatpush.msrb.mxu1 %v5147_v0  ;;  %5315 = vmatpush.msrb.mxu2 %v5148_v38  ;;  %v5113_v18 = vld [vmem:[%s11287_s10 + $0x38] sm:$0xff]  ;;  %v5106_v0 = vld [vmem:[%s11287_s10] sm:$0xff]  ;;  %v5107_v38 = vld [vmem:[%s11287_s10 + $0x8] sm:$0xff] }
 0xec8   : > { %v4706_v11 = vadd.f32 %v4682_v9, %v3732_v47  ;;  %5380 = vmatpush.msra.mxu3 %v5149_v48  ;;  %5186 = vmatpush.msra.mxu0 %v5142_v16  ;;  %v5140_v47 = vld [vmem:[%s11287_s10 + $0x110] sm:$0xff]  ;;  %v5141_v9 = vld [vmem:[%s11287_s10 + $0x118] sm:$0xff] }
 0xec9   : > { %4838 = vadd.xlane.f32.xlu2 %v4817_v31  ;;  %4770 = vadd.xlane.f32.xlu0 %v9852_v26  ;;  %v5134_v31 = vld [vmem:[%s11287_s10 + $0xe0] sm:$0xff]  ;;  %v5108_v48 = vld [vmem:[%s11287_s10 + $0x10] sm:$0xff]  ;;  %v5109_v16 = vld [vmem:[%s11287_s10 + $0x18] sm:$0xff] }
 0xeca   : > { %v4761_v20 = vpop.xlane.xlu2 %4760  ;;  %v4722_v58 = vadd.f32 %v7374_v55, %v4706_v11  ;;  %5251 = vmatpush.msrb.mxu1 %v5143_v33  ;;  %5316 = vmatpush.msrb.mxu2 %v5144_v22  ;;  %v5135_v11 = vld [vmem:[%s11287_s10 + $0xe8] sm:$0xff]  ;;  %v5137_v55 = vld [vmem:[%s11287_s10 + $0xf8] sm:$0xff] }
 0xecb   : > { %v4786_v49 = vmul.f32 %v4761_v20, %v11369_v23  ;;  %5381 = vmatpush.msra.mxu3 %v5145_v27  ;;  %5187 = vmatpush.msra.mxu0 %v5138_v3  ;;  %v5136_v20 = vld [vmem:[%s11287_s10 + $0xf0] sm:$0xff] }
 0xecc   : > { %v9864_v61 = vadd.f32 %v9689_v8, %v4722_v58  ;;  %5252 = vmatpush.msrb.mxu1 %v5139_v17  ;;  %5317 = vmatpush.msrb.mxu2 %v5140_v47  ;;  %v5130_v58 = vld [vmem:[%s11287_s10 + $0xc0] sm:$0xff]  ;;  %v11389_v17 = vld [vmem:[#allocation23_spill] sm:$0xff]  ;;  %v11390_v47 = vld [vmem:[#allocation30_spill] sm:$0xff] }
 0xecd   : > { %v9860_v15 = vsub.f32 %v9748_v57, %v4786_v49  ;;  %5382 = vmatpush.msra.mxu3 %v5141_v9  ;;  %5188 = vmatpush.msra.mxu0 %v5134_v31  ;;  %v5131_v49 = vld [vmem:[%s11287_s10 + $0xc8] sm:$0xff]  ;;  %v2757_v9 = vadd.f32 %v11390_v47, %v11389_v17 }
 0xece   : > { %11387 = vst [vmem:[#allocation22_spill] sm:$0xff] %v9864_v61  ;;  %5253 = vmatpush.msrb.mxu1 %v5135_v11  ;;  %5318 = vmatpush.msrb.mxu2 %v5136_v20 }
 0xecf   : > { %v4685_v50 = vpop.f32.mrf.mxu3  ;;  %v4818_v14 = vmul.f32 %v9860_v15, %v9860_v15  ;;  %5383 = vmatpush.msra.mxu3 %v5137_v55  ;;  %5189 = vmatpush.msra.mxu0 %v5130_v58 }
 0xed0   : > { %v4707_v21 = vadd.f32 %v4685_v50, %v3733_v19  ;;  %5254 = vmatpush.msrb.mxu1 %v5131_v49  ;;  %5319 = vmatpush.msrb.mxu2 %v5132_v1  ;;  %v5127_v19 = vld [vmem:[%s11287_s10 + $0xa8] sm:$0xff]  ;;  %v5128_v50 = vld [vmem:[%s11287_s10 + $0xb0] sm:$0xff]  ;;  %v3734_v49 = vadd.f32 %v9557_v45, %v2757_v9 }
 0xed1   : > { %4772 = vadd.xlane.f32.xlu2 %v9864_v61  ;;  %4840 = vadd.xlane.f32.xlu1 %v4818_v14  ;;  %v5129_v14 = vld [vmem:[%s11287_s10 + $0xb8] sm:$0xff] }
 0xed2   : > { %v4723_v52 = vadd.f32 %v7375_v41, %v4707_v21  ;;  %5384 = vmatpush.msra.mxu3 %v5133_v29  ;;  %5190 = vmatpush.msra.mxu0 %v5126_v13  ;;  %v5122_v21 = vld [vmem:[%s11287_s10 + $0x80] sm:$0xff]  ;;  %v5123_v41 = vld [vmem:[%s11287_s10 + $0x88] sm:$0xff] }
 0xed3   : > { %5255 = vmatpush.msrb.mxu1 %v5127_v19  ;;  %5320 = vmatpush.msrb.mxu2 %v5128_v50 }
 0xed4   : > { %v9871_v12 = vadd.f32 %v9689_v8, %v4723_v52  ;;  %5385 = vmatpush.msra.mxu3 %v5129_v14  ;;  %v5124_v52 = vld [vmem:[%s11287_s10 + $0x90] sm:$0xff]  ;;  %5191 = vmatpush.msra.mxu0 %v5122_v21 }
 0xed5   : > { %5256 = vmatpush.msrb.mxu1 %v5123_v41  ;;  %5321 = vmatpush.msrb.mxu2 %v5124_v52  ;;  %v11391_v41 = vld [vmem:[#allocation25_spill] sm:$0xff]  ;;  %v11392_v52 = vld [vmem:[#allocation31_spill] sm:$0xff] }
 0xed6   : > { %11388 = vst [vmem:[#allocation13_spill] sm:$0xff] %v9871_v12  ;;  %5386 = vmatpush.msra.mxu3 %v5125_v10  ;;  %5192 = vmatpush.msra.mxu0 %v5118_v44  ;;  %v2760_v10 = vadd.f32 %v11392_v52, %v11391_v41  ;;  %v7376_v44 = vld [vmem:[%s7575_s18 + $0x70] sm:$0xff] }
 0xed7   : > { %5257 = vmatpush.msrb.mxu1 %v5119_v43  ;;  %5322 = vmatpush.msrb.mxu2 %v5120_v24  ;;  %v4688_v31 = vpop.f32.mrf.mxu3 }
 0xed8   : > { %5387 = vmatpush.msra.mxu3 %v5121_v37  ;;  %5193 = vmatpush.msra.mxu0 %v5114_v51  ;;  %v4708_v19 = vadd.f32 %v4688_v31, %v3734_v49 }
 0xed9   : > { %4774 = vadd.xlane.f32.xlu1 %v9871_v12  ;;  %5258 = vmatpush.msrb.mxu1 %v5115_v34 }
 0xeda   : > { %5323 = vmatpush.msrb.mxu2 %v5116_v56  ;;  %5388 = vmatpush.msra.mxu3 %v5117_v42  ;;  %v4724_v43 = vadd.f32 %v7376_v44, %v4708_v19  ;;  %v3735_v56 = vadd.f32 %v9560_v2, %v2760_v10 }
 0xedb   : > { %5194 = vmatpush.msra.mxu0 %v5110_v36  ;;  %5259 = vmatpush.msrb.mxu1 %v5111_v7 }
 0xedc   : > { %5324 = vmatpush.msrb.mxu2 %v5112_v4  ;;  %5389 = vmatpush.msra.mxu3 %v5113_v18 }
 0xedd   : > { %5195 = vmatpush.msra.mxu0 %v5106_v0  ;;  %5260 = vmatpush.msrb.mxu1 %v5107_v38  ;;  %v10065_v0 = vld [vmem:[%s11285_s8] ss:$0 sm:$0xff] }
 0xede   : > { %5325 = vmatpush.msrb.mxu2 %v5108_v48  ;;  %5390 = vmatpush.msra.mxu3 %v5109_v16  ;;  %v10068_v48 = vadd.f32 %v9689_v8, %v4724_v43 }
 0xedf   : > { %v4691_v42 = vpop.f32.mrf.mxu3 }
 0xee0   : > { %11393 = vst [vmem:[#allocation24_spill] sm:$0xff] %v10068_v48  ;;  %v4709_v2 = vadd.f32 %v4691_v42, %v3735_v56 }
 0xf14   : > { %v4829_v33 = vpop.xlane.xlu1 %4828 }
 0xf15   : > { %v4860_v22 = vmul.f32 %v4829_v33, %v11369_v23 }
 0xf17   : > { %v4876_v27 = vadd.f32 1e-05, %v4860_v22 }
 0xf19   : > { %7202 = vrsqrt.f32 %v4876_v27  ;;  %vm4898_vm3 = vweird.f32 %v4876_v27 }
 0xf1c   : > { %v4763_v3 = vpop.xlane.xlu1 %4762  ;;  %v4831_v20 = vpop.xlane.xlu0 %4830 }
 0xf1d   : > { %v4787_v11 = vmul.f32 %v4763_v3, %v11369_v23  ;;  %v4861_v55 = vmul.f32 %v4831_v20, %v11369_v23  ;;  %v10077_v3 = vld [vmem:[%s11286_s9] ss:$0 sm:$0xff] }
 0xf1f   : > { %v7203_v58 = vpop.eup %7202  ;;  %v10049_v1 = vsub.f32 %v9770_v30, %v4787_v11  ;;  %v4877_v13 = vadd.f32 1e-05, %v4861_v55  ;;  %v7377_v11 = vld [vmem:[%s7575_s18 + $0x78] sm:$0xff]  ;;  %s6389_s18 = sshll.u32 %s11196_s28, 4  ;;  %s6390_s18 = int_to_ptr.vmem [resolvable:$true] %s6389_s18 }
 0xf20   : > { %v4893_v29 = vmul.f32 %v7203_v58, %v4876_v27  ;;  %vm4899_vm1 = vweird.f32 %v7203_v58  ;;  %v4725_v20 = vadd.f32 %v7377_v11, %v4709_v2 }
 0xf21   : > { %v4819_v50 = vmul.f32 %v10049_v1, %v10049_v1  ;;  %7204 = vrsqrt.f32 %v4877_v13  ;;  %vm4900_vm4 = vmor %vm4898_vm3, %vm4899_vm1  ;;  %vm4908_vm6 = vweird.f32 %v4877_v13 }
 0xf22   : > { %v4894_v14 = vmul.f32 %v7203_v58, %v4893_v29  ;;  %v10090_v52 = vadd.f32 %v9689_v8, %v4725_v20 }
 0xf23   : > { %4842 = vadd.xlane.f32.xlu0 %v4819_v50 }
 0xf24   : > { %v4895_v21 = vmul.f32 0.5, %v4894_v14  ;;  %v4765_v24 = vpop.xlane.xlu0 %4764  ;;  %v4833_v45 = vpop.xlane.xlu2 %4832  ;;  %11394 = vst [vmem:[#allocation15_spill] sm:$0xff] %v10090_v52 }
 0xf25   : > { %v4788_v51 = vmul.f32 %v4765_v24, %v11369_v23  ;;  %v4862_v34 = vmul.f32 %v4833_v45, %v11369_v23 }
 0xf26   : > { %v4896_v37 = vsub.f32 1.5, %v4895_v21 }
 0xf27   : > { %v7205_v36 = vpop.eup %7204  ;;  %v10060_v4 = vsub.f32 %v9786_v59, %v4788_v51  ;;  %v4878_v18 = vadd.f32 1e-05, %v4862_v34 }
 0xf28   : > { %v4897_v7 = vmul.f32 %v7203_v58, %v4896_v37  ;;  %v4903_v38 = vmul.f32 %v7205_v36, %v4877_v13  ;;  %vm4909_vm5 = vweird.f32 %v7205_v36 }
 0xf29   : > { %7206 = vrsqrt.f32 %v4878_v18  ;;  %v4820_v33 = vmul.f32 %v10060_v4, %v10060_v4  ;;  %vm4910_vm7 = vmor %vm4908_vm6, %vm4909_vm5  ;;  %vm4918_vm9 = vweird.f32 %v4878_v18 }
 0xf2a   : > { %v4901_v16 = vsel %vm4900_vm4, %v7203_v58, %v4897_v7  ;;  %v4904_v27 = vmul.f32 %v7205_v36, %v4903_v38 }
 0xf2b   : > { %v5052_v22 = vmul.f32 %v4901_v16, %v9757_v63  ;;  %4776 = vadd.xlane.f32.xlu0 %v10068_v48  ;;  %4844 = vadd.xlane.f32.xlu2 %v4820_v33 }
 0xf2c   : > { %v4905_v47 = vmul.f32 0.5, %v4904_v27  ;;  %v4835_v9 = vpop.xlane.xlu1 %4834  ;;  %v4767_v31 = vpop.xlane.xlu2 %4766 }
 0xf2d   : > { %v5071_v17 = vmul.f32 %v10065_v0, %v5052_v22  ;;  %v4863_v55 = vmul.f32 %v4835_v9, %v11369_v23  ;;  %v4789_v63 = vmul.f32 %v4767_v31, %v11369_v23 }
 0xf2e   : > { %v4906_v58 = vsub.f32 1.5, %v4905_v47 }
 0xf2f   : > { %v5090_v49 = vadd.f32 %v10077_v3, %v5071_v17  ;;  %v7207_v29 = vpop.eup %7206  ;;  %v4879_v19 = vadd.f32 1e-05, %v4863_v55  ;;  %v10085_v50 = vsub.f32 %v9800_v46, %v4789_v63  ;;  %v10485_v46 = vld [vmem:[%s11289_s12 + $0x1a0] sm:$0xff] }
 0xf30   : > { %v4907_v14 = vmul.f32 %v7205_v36, %v4906_v58  ;;  %v4913_v21 = vmul.f32 %v7207_v29, %v4878_v18  ;;  %vm4919_vm8 = vweird.f32 %v7207_v29  ;;  %11399 = vst [vmem:[#allocation28_spill] sm:$0xff] %v10485_v46 }
 0xf31   : > { %5196 = vmatmul.f32.vlgmr.msra.gmra.mxu0 %v5090_v49  ;;  %5261 = vmatmul.f32.vlgmr.msrb.gmra.mxu1 %v5090_v49  ;;  %7208 = vrsqrt.f32 %v4879_v19  ;;  %v4821_v41 = vmul.f32 %v10085_v50, %v10085_v50  ;;  %vm4920_vm10 = vmor %vm4918_vm9, %vm4919_vm8  ;;  %vm4928_vm12 = vweird.f32 %v4879_v19 }
 0xf32   : > { %5326 = vmatmul.f32.vlgmr.msrb.gmra.mxu2 %v5090_v49  ;;  %5391 = vmatmul.f32.vlgmr.msra.gmra.mxu3 %v5090_v49  ;;  %v4911_v10 = vsel %vm4910_vm7, %v7205_v36, %v4907_v14  ;;  %v4914_v44 = vmul.f32 %v7207_v29, %v4913_v21 }
 0xf33   : > { %v5053_v43 = vmul.f32 %v4911_v10, %v9766_v35  ;;  %4846 = vadd.xlane.f32.xlu1 %v4821_v41  ;;  %4778 = vadd.xlane.f32.xlu2 %v10090_v52 }
 0xf34   : > { %v4915_v13 = vmul.f32 0.5, %v4914_v44  ;;  %v4769_v24 = vpop.xlane.xlu1 %4768  ;;  %v4837_v45 = vpop.xlane.xlu0 %4836 }
 0xf35   : > { %v4790_v37 = vmul.f32 %v4769_v24, %v11369_v23  ;;  %v4864_v51 = vmul.f32 %v4837_v45, %v11369_v23  ;;  %v5072_v34 = vmul.f32 %v10065_v0, %v5053_v43 }
 0xf36   : > { %v4916_v56 = vsub.f32 1.5, %v4915_v13 }
 0xf37   : > { %v7209_v8 = vpop.eup %7208  ;;  %v10098_v42 = vsub.f32 %v9812_v54, %v4790_v37  ;;  %v4880_v36 = vadd.f32 1e-05, %v4864_v51  ;;  %v5091_v35 = vadd.f32 %v10077_v3, %v5072_v34 }
 0xf38   : > { %v4917_v7 = vmul.f32 %v7207_v29, %v4916_v56  ;;  %v4923_v38 = vmul.f32 %v7209_v8, %v4879_v19  ;;  %vm4929_vm11 = vweird.f32 %v7209_v8 }
 0xf39   : > { %7210 = vrsqrt.f32 %v4880_v36  ;;  %5199 = vmatmul.f32.gmra.mxu0 %v5091_v35  ;;  %5264 = vmatmul.f32.gmra.mxu1 %v5091_v35  ;;  %v4822_v2 = vmul.f32 %v10098_v42, %v10098_v42  ;;  %vm4930_vm13 = vmor %vm4928_vm12, %vm4929_vm11  ;;  %vm4938_vm15 = vweird.f32 %v4880_v36 }
 0xf3a   : > { %v4921_v16 = vsel %vm4920_vm10, %v7207_v29, %v4917_v7  ;;  %v4924_v33 = vmul.f32 %v7209_v8, %v4923_v38  ;;  %5329 = vmatmul.f32.gmra.mxu2 %v5091_v35  ;;  %5394 = vmatmul.f32.gmra.mxu3 %v5091_v35 }
 0xf3b   : > { %v5054_v22 = vmul.f32 %v4921_v16, %v9780_v40  ;;  %4848 = vadd.xlane.f32.xlu0 %v4822_v2 }
 0xf3c   : > { %v4925_v27 = vmul.f32 0.5, %v4924_v33  ;;  %v4771_v17 = vpop.xlane.xlu0 %4770  ;;  %v4839_v47 = vpop.xlane.xlu2 %4838 }
 0xf3d   : > { %v4791_v18 = vmul.f32 %v4771_v17, %v11369_v23  ;;  %v4865_v9 = vmul.f32 %v4839_v47, %v11369_v23  ;;  %v5073_v31 = vmul.f32 %v10065_v0, %v5054_v22 }
 0xf3e   : > { %v4926_v11 = vsub.f32 1.5, %v4925_v27 }
 0xf3f   : > { %v7211_v20 = vpop.eup %7210  ;;  %v10108_v55 = vsub.f32 %v9852_v26, %v4791_v18  ;;  %v4881_v63 = vadd.f32 1e-05, %v4865_v9  ;;  %v5092_v58 = vadd.f32 %v10077_v3, %v5073_v31 }
 0xf40   : > { %v4927_v40 = vmul.f32 %v7209_v8, %v4926_v11  ;;  %v4933_v49 = vmul.f32 %v7211_v20, %v4880_v36  ;;  %vm4939_vm14 = vweird.f32 %v7211_v20 }
 0xf41   : > { %7212 = vrsqrt.f32 %v4881_v63  ;;  %5202 = vmatmul.f32.gmra.mxu0 %v5092_v58  ;;  %5267 = vmatmul.f32.gmra.mxu1 %v5092_v58  ;;  %v4823_v29 = vmul.f32 %v10108_v55, %v10108_v55  ;;  %vm4940_vm0 = vmor %vm4938_vm15, %vm4939_vm14  ;;  %vm4948_vm1 = vweird.f32 %v4881_v63 }
 0xf42   : > { %v4931_v14 = vsel %vm4930_vm13, %v7209_v8, %v4927_v40  ;;  %v4934_v21 = vmul.f32 %v7211_v20, %v4933_v49  ;;  %5332 = vmatmul.f32.gmra.mxu2 %v5092_v58  ;;  %5397 = vmatmul.f32.gmra.mxu3 %v5092_v58 }
 0xf43   : > { %v5055_v41 = vmul.f32 %v4931_v14, %v9794_v53  ;;  %4850 = vadd.xlane.f32.xlu1 %v4823_v29 }
 0xf44   : > { %v4935_v10 = vmul.f32 0.5, %v4934_v21  ;;  %v4841_v44 = vpop.xlane.xlu1 %4840  ;;  %v4773_v43 = vpop.xlane.xlu2 %4772 }
 0xf45   : > { %v4866_v19 = vmul.f32 %v4841_v44, %v11369_v23  ;;  %v4792_v13 = vmul.f32 %v4773_v43, %v11369_v23  ;;  %v5074_v24 = vmul.f32 %v10065_v0, %v5055_v41 }
 0xf46   : > { %v4936_v45 = vsub.f32 1.5, %v4935_v10 }
 0xf47   : > { %v7213_v37 = vpop.eup %7212  ;;  %v4882_v51 = vadd.f32 1e-05, %v4866_v19  ;;  %v10118_v34 = vsub.f32 %v9864_v61, %v4792_v13  ;;  %v5093_v56 = vadd.f32 %v10077_v3, %v5074_v24 }
 0xf48   : > { %v4937_v53 = vmul.f32 %v7211_v20, %v4936_v45  ;;  %v4943_v8 = vmul.f32 %v7213_v37, %v4881_v63  ;;  %vm4949_vm2 = vweird.f32 %v7213_v37 }
 0xf49   : > { %7214 = vrsqrt.f32 %v4882_v51  ;;  %5205 = vmatmul.f32.gmra.mxu0 %v5093_v56  ;;  %5270 = vmatmul.f32.gmra.mxu1 %v5093_v56  ;;  %v4824_v35 = vmul.f32 %v10118_v34, %v10118_v34  ;;  %vm4950_vm3 = vmor %vm4948_vm1, %vm4949_vm2  ;;  %vm4958_vm5 = vweird.f32 %v4882_v51 }
 0xf4a   : > { %v4941_v7 = vsel %vm4940_vm0, %v7211_v20, %v4937_v53  ;;  %v4944_v38 = vmul.f32 %v7213_v37, %v4943_v8  ;;  %5335 = vmatmul.f32.gmra.mxu2 %v5093_v56  ;;  %5400 = vmatmul.f32.gmra.mxu3 %v5093_v56 }
 0xf4b   : > { %v5056_v2 = vmul.f32 %v4941_v7, %v9808_v39  ;;  %4852 = vadd.xlane.f32.xlu2 %v4824_v35 }
 0xf4c   : > { %v4945_v16 = vmul.f32 0.5, %v4944_v38  ;;  %v4775_v33 = vpop.xlane.xlu1 %4774 }
 0xf4d   : > { %v4793_v22 = vmul.f32 %v4775_v33, %v11369_v23  ;;  %v5075_v36 = vmul.f32 %v10065_v0, %v5056_v2 }
 0xf4e   : > { %v4946_v27 = vsub.f32 1.5, %v4945_v16 }
 0xf4f   : > { %v7215_v17 = vpop.eup %7214  ;;  %v10127_v47 = vsub.f32 %v9871_v12, %v4793_v22  ;;  %v5094_v18 = vadd.f32 %v10077_v3, %v5075_v36 }
 0xf50   : > { %v4947_v9 = vmul.f32 %v7213_v37, %v4946_v27  ;;  %v4953_v31 = vmul.f32 %v7215_v17, %v4882_v51  ;;  %vm4959_vm4 = vweird.f32 %v7215_v17 }
 0xf51   : > { %5208 = vmatmul.f32.gmra.mxu0 %v5094_v18  ;;  %5273 = vmatmul.f32.gmra.mxu1 %v5094_v18  ;;  %v4825_v39 = vmul.f32 %v10127_v47, %v10127_v47  ;;  %vm4960_vm6 = vmor %vm4958_vm5, %vm4959_vm4 }
 0xf52   : > { %v4951_v11 = vsel %vm4950_vm3, %v7213_v37, %v4947_v9  ;;  %v4954_v20 = vmul.f32 %v7215_v17, %v4953_v31  ;;  %5338 = vmatmul.f32.gmra.mxu2 %v5094_v18  ;;  %5403 = vmatmul.f32.gmra.mxu3 %v5094_v18 }
 0xf53   : > { %v5057_v58 = vmul.f32 %v4951_v11, %v9846_v60  ;;  %4854 = vadd.xlane.f32.xlu0 %v4825_v39 }
 0xf54   : > { %v4955_v40 = vmul.f32 0.5, %v4954_v20 }
 0xf55   : > { %v5076_v49 = vmul.f32 %v10065_v0, %v5057_v58 }
 0xf56   : > { %v4956_v29 = vsub.f32 1.5, %v4955_v40 }
 0xf57   : > { %v5095_v63 = vadd.f32 %v10077_v3, %v5076_v49 }
 0xf58   : > { %v4957_v14 = vmul.f32 %v7215_v17, %v4956_v29 }
 0xf59   : > { %5211 = vmatmul.f32.gmra.mxu0 %v5095_v63  ;;  %5276 = vmatmul.f32.gmra.mxu1 %v5095_v63 }
 0xf5a   : > { %v4961_v21 = vsel %vm4960_vm6, %v7215_v17, %v4957_v14  ;;  %5341 = vmatmul.f32.gmra.mxu2 %v5095_v63  ;;  %5406 = vmatmul.f32.gmra.mxu3 %v5095_v63 }
 0xf5b   : > { %v5058_v41 = vmul.f32 %v4961_v21, %v9860_v15 }
 0xf5d   : > { %v5077_v60 = vmul.f32 %v10065_v0, %v5058_v41 }
 0xf5f   : > { %v5096_v10 = vadd.f32 %v10077_v3, %v5077_v60 }
 0xf61   : > { %5214 = vmatmul.f32.gmra.mxu0 %v5096_v10  ;;  %5279 = vmatmul.f32.gmra.mxu1 %v5096_v10 }
 0xf62   : > { %5344 = vmatmul.f32.gmra.mxu2 %v5096_v10  ;;  %5409 = vmatmul.f32.gmra.mxu3 %v5096_v10 }
 0xf96   : > { %v4843_v44 = vpop.xlane.xlu0 %4842 }
 0xf97   : > { %v4867_v43 = vmul.f32 %v4843_v44, %v11369_v23 }
 0xf99   : > { %v4883_v19 = vadd.f32 1e-05, %v4867_v43 }
 0xf9b   : > { %7216 = vrsqrt.f32 %v4883_v19  ;;  %vm4968_vm8 = vweird.f32 %v4883_v19 }
 0xf9e   : > { %v4777_v13 = vpop.xlane.xlu0 %4776  ;;  %v4845_v45 = vpop.xlane.xlu2 %4844 }
 0xf9f   : > { %v4794_v24 = vmul.f32 %v4777_v13, %v11369_v23  ;;  %v4868_v37 = vmul.f32 %v4845_v45, %v11369_v23 }
 0xfa1   : > { %v7217_v15 = vpop.eup %7216  ;;  %v10142_v51 = vsub.f32 %v10068_v48, %v4794_v24  ;;  %v4884_v53 = vadd.f32 1e-05, %v4868_v37 }
 0xfa2   : > { %v4963_v56 = vmul.f32 %v7217_v15, %v4883_v19  ;;  %vm4969_vm7 = vweird.f32 %v7217_v15 }
 0xfa3   : > { %v4826_v8 = vmul.f32 %v10142_v51, %v10142_v51  ;;  %7218 = vrsqrt.f32 %v4884_v53  ;;  %vm4970_vm9 = vmor %vm4968_vm8, %vm4969_vm7  ;;  %vm4978_vm11 = vweird.f32 %v4884_v53 }
 0xfa4   : > { %v4964_v35 = vmul.f32 %v7217_v15, %v4963_v56 }
 0xfa5   : > { %4856 = vadd.xlane.f32.xlu1 %v4826_v8 }
 0xfa6   : > { %v4965_v7 = vmul.f32 0.5, %v4964_v35  ;;  %v4847_v38 = vpop.xlane.xlu1 %4846  ;;  %v4779_v2 = vpop.xlane.xlu2 %4778 }
 0xfa7   : > { %v4869_v33 = vmul.f32 %v4847_v38, %v11369_v23  ;;  %v4795_v22 = vmul.f32 %v4779_v2, %v11369_v23 }
 0xfa8   : > { %v4966_v16 = vsub.f32 1.5, %v4965_v7 }
 0xfa9   : > { %v7219_v36 = vpop.eup %7218  ;;  %v4885_v17 = vadd.f32 1e-05, %v4869_v33  ;;  %v10149_v18 = vsub.f32 %v10090_v52, %v4795_v22 }
 0xfaa   : > { %v4967_v27 = vmul.f32 %v7217_v15, %v4966_v16  ;;  %v4973_v9 = vmul.f32 %v7219_v36, %v4884_v53  ;;  %vm4979_vm10 = vweird.f32 %v7219_v36 }
 0xfab   : > { %7220 = vrsqrt.f32 %v4885_v17  ;;  %v4827_v39 = vmul.f32 %v10149_v18, %v10149_v18  ;;  %vm4980_vm12 = vmor %vm4978_vm11, %vm4979_vm10  ;;  %vm4988_vm14 = vweird.f32 %v4885_v17 }
 0xfac   : > { %v4971_v31 = vsel %vm4970_vm9, %v7217_v15, %v4967_v27  ;;  %v4974_v20 = vmul.f32 %v7219_v36, %v4973_v9 }
 0xfad   : > { %v5059_v11 = vmul.f32 %v4971_v31, %v10049_v1  ;;  %4858 = vadd.xlane.f32.xlu2 %v4827_v39 }
 0xfae   : > { %v4975_v58 = vmul.f32 0.5, %v4974_v20  ;;  %v4849_v40 = vpop.xlane.xlu0 %4848 }
 0xfaf   : > { %v5078_v49 = vmul.f32 %v10065_v0, %v5059_v11  ;;  %v4870_v29 = vmul.f32 %v4849_v40, %v11369_v23 }
 0xfb0   : > { %v4976_v63 = vsub.f32 1.5, %v4975_v58 }
 0xfb1   : > { %v5097_v14 = vadd.f32 %v10077_v3, %v5078_v49  ;;  %v7221_v21 = vpop.eup %7220  ;;  %v4886_v41 = vadd.f32 1e-05, %v4870_v29 }
 0xfb2   : > { %v4977_v60 = vmul.f32 %v7219_v36, %v4976_v63  ;;  %v4983_v10 = vmul.f32 %v7221_v21, %v4885_v17  ;;  %vm4989_vm13 = vweird.f32 %v7221_v21 }
 0xfb3   : > { %5217 = vmatmul.f32.gmra.mxu0 %v5097_v14  ;;  %5282 = vmatmul.f32.gmra.mxu1 %v5097_v14  ;;  %7222 = vrsqrt.f32 %v4886_v41  ;;  %vm4990_vm15 = vmor %vm4988_vm14, %vm4989_vm13  ;;  %vm4998_vm2 = vweird.f32 %v4886_v41 }
 0xfb4   : > { %5347 = vmatmul.f32.gmra.mxu2 %v5097_v14  ;;  %5412 = vmatmul.f32.gmra.mxu3 %v5097_v14  ;;  %v4984_v1 = vmul.f32 %v7221_v21, %v4983_v10  ;;  %v4981_v44 = vsel %vm4980_vm12, %v7219_v36, %v4977_v60 }
 0xfb5   : > { %v5060_v13 = vmul.f32 %v4981_v44, %v10060_v4 }
 0xfb6   : > { %v4985_v43 = vmul.f32 0.5, %v4984_v1  ;;  %v4851_v19 = vpop.xlane.xlu1 %4850 }
 0xfb7   : > { %v4871_v45 = vmul.f32 %v4851_v19, %v11369_v23  ;;  %v5079_v7 = vmul.f32 %v10065_v0, %v5060_v13 }
 0xfb8   : > { %v4986_v24 = vsub.f32 1.5, %v4985_v43 }
 0xfb9   : > { %v7223_v37 = vpop.eup %7222  ;;  %v4887_v35 = vadd.f32 1e-05, %v4871_v45  ;;  %v5098_v4 = vadd.f32 %v10077_v3, %v5079_v7 }
 0xfba   : > { %v4987_v15 = vmul.f32 %v7221_v21, %v4986_v24  ;;  %v4993_v56 = vmul.f32 %v7223_v37, %v4886_v41  ;;  %vm4999_vm0 = vweird.f32 %v7223_v37 }
 0xfbb   : > { %7224 = vrsqrt.f32 %v4887_v35  ;;  %5220 = vmatmul.f32.gmra.mxu0 %v5098_v4  ;;  %5285 = vmatmul.f32.gmra.mxu1 %v5098_v4  ;;  %vm5000_vm1 = vmor %vm4998_vm2, %vm4999_vm0  ;;  %vm5008_vm4 = vweird.f32 %v4887_v35 }
 0xfbc   : > { %v4991_v53 = vsel %vm4990_vm15, %v7221_v21, %v4987_v15  ;;  %v4994_v8 = vmul.f32 %v7223_v37, %v4993_v56  ;;  %5350 = vmatmul.f32.gmra.mxu2 %v5098_v4  ;;  %5415 = vmatmul.f32.gmra.mxu3 %v5098_v4 }
 0xfbd   : > { %v5061_v38 = vmul.f32 %v4991_v53, %v10085_v50 }
 0xfbe   : > { %v4995_v2 = vmul.f32 0.5, %v4994_v8  ;;  %v4853_v16 = vpop.xlane.xlu2 %4852 }
 0xfbf   : > { %v4872_v22 = vmul.f32 %v4853_v16, %v11369_v23  ;;  %v5080_v36 = vmul.f32 %v10065_v0, %v5061_v38 }
 0xfc0   : > { %v4996_v33 = vsub.f32 1.5, %v4995_v2 }
 0xfc1   : > { %v4888_v17 = vadd.f32 1e-05, %v4872_v22  ;;  %v7225_v50 = vpop.eup %7224  ;;  %v5099_v31 = vadd.f32 %v10077_v3, %v5080_v36  ;;  %v5197_v22 = vpop.f32.mrf.mxu0 }
 0xfc2   : > { %v4997_v27 = vmul.f32 %v7223_v37, %v4996_v33  ;;  %v5003_v11 = vmul.f32 %v7225_v50, %v4887_v35  ;;  %vm5009_vm3 = vweird.f32 %v7225_v50  ;;  %v10178_v36 = vpop.f32.mrf.mxu3 }
 0xfc3   : > { %7226 = vrsqrt.f32 %v4888_v17  ;;  %5223 = vmatmul.f32.gmra.mxu0 %v5099_v31  ;;  %5288 = vmatmul.f32.gmra.mxu1 %v5099_v31  ;;  %vm5010_vm5 = vmor %vm5008_vm4, %vm5009_vm3  ;;  %vm5018_vm7 = vweird.f32 %v4888_v17  ;;  %11395 = vst [vmem:[#allocation26_spill] sm:$0xff] %v10178_v36  ;;  %v10608_v36 = vld [vmem:[%s11289_s12 + $0x180] sm:$0xff] }
 0xfc4   : > { %v5001_v9 = vsel %vm5000_vm1, %v7223_v37, %v4997_v27  ;;  %v5004_v58 = vmul.f32 %v7225_v50, %v5003_v11  ;;  %5353 = vmatmul.f32.gmra.mxu2 %v5099_v31  ;;  %5418 = vmatmul.f32.gmra.mxu3 %v5099_v31  ;;  %v5262_v27 = vpop.f32.mrf.mxu1  ;;  %11405 = vst [vmem:[#allocation31_spill] sm:$0xff] %v10608_v36 }
 0xfc5   : > { %v5062_v39 = vmul.f32 %v5001_v9, %v10098_v42 }
 0xfc6   : > { %v4855_v20 = vpop.xlane.xlu0 %4854  ;;  %v5005_v29 = vmul.f32 0.5, %v5004_v58 }
 0xfc7   : > { %v4873_v40 = vmul.f32 %v4855_v20, %v11369_v23  ;;  %v5081_v49 = vmul.f32 %v10065_v0, %v5062_v39 }
 0xfc8   : > { %v5006_v21 = vsub.f32 1.5, %v5005_v29 }
 0xfc9   : > { %v4889_v63 = vadd.f32 1e-05, %v4873_v40  ;;  %v7227_v14 = vpop.eup %7226  ;;  %v5100_v42 = vadd.f32 %v10077_v3, %v5081_v49  ;;  %v5200_v39 = vpop.f32.mrf.mxu0 }
 0xfca   : > { %v5013_v41 = vmul.f32 %v7227_v14, %v4888_v17  ;;  %v5007_v60 = vmul.f32 %v7225_v50, %v5006_v21  ;;  %vm5019_vm6 = vweird.f32 %v7227_v14  ;;  %v10195_v11 = vpop.f32.mrf.mxu3 }
 0xfcb   : > { %7228 = vrsqrt.f32 %v4889_v63  ;;  %5226 = vmatmul.f32.gmra.mxu0 %v5100_v42  ;;  %5291 = vmatmul.f32.gmra.mxu1 %v5100_v42  ;;  %vm5020_vm8 = vmor %vm5018_vm7, %vm5019_vm6  ;;  %vm5028_vm10 = vweird.f32 %v4889_v63  ;;  %11396 = vst [vmem:[#allocation17_spill] sm:$0xff] %v10195_v11 }
 0xfcc   : > { %v5014_v10 = vmul.f32 %v7227_v14, %v5013_v41  ;;  %v5011_v1 = vsel %vm5010_vm5, %v7225_v50, %v5007_v60  ;;  %5356 = vmatmul.f32.gmra.mxu2 %v5100_v42  ;;  %5421 = vmatmul.f32.gmra.mxu3 %v5100_v42  ;;  %v5265_v20 = vpop.f32.mrf.mxu1 }
 0xfcd   : > { %v5063_v44 = vmul.f32 %v5011_v1, %v10108_v55 }
 0xfce   : > { %v5015_v43 = vmul.f32 0.5, %v5014_v10 }
 0xfcf   : > { %v5082_v45 = vmul.f32 %v10065_v0, %v5063_v44 }
 0xfd0   : > { %v5016_v13 = vsub.f32 1.5, %v5015_v43 }
 0xfd1   : > { %v7229_v19 = vpop.eup %7228  ;;  %v5101_v56 = vadd.f32 %v10077_v3, %v5082_v45  ;;  %v10205_v41 = vpop.f32.mrf.mxu0  ;;  %v6047_v45 = vld [vmem:[%s11289_s12 + $0xf8] sm:$0xff] }
 0xfd2   : > { %v5023_v24 = vmul.f32 %v7229_v19, %v4889_v63  ;;  %v5017_v37 = vmul.f32 %v7227_v14, %v5016_v13  ;;  %vm5029_vm9 = vweird.f32 %v7229_v19  ;;  %v10207_v42 = vpop.f32.mrf.mxu3  ;;  %6149 = vmatpush.msra.mxu1 %v6047_v45  ;;  %v6043_v45 = vld [vmem:[%s11289_s12 + $0xd8] sm:$0xff] }
 0xfd3   : > { %5229 = vmatmul.f32.gmra.mxu0 %v5101_v56  ;;  %5294 = vmatmul.f32.gmra.mxu1 %v5101_v56  ;;  %vm5030_vm11 = vmor %vm5028_vm10, %vm5029_vm9  ;;  %11397 = vst [vmem:[#allocation27_spill] sm:$0xff] %v10207_v42 }
 0xfd4   : > { %v5024_v15 = vmul.f32 %v7229_v19, %v5023_v24  ;;  %v5021_v53 = vsel %vm5020_vm8, %v7227_v14, %v5017_v37  ;;  %5359 = vmatmul.f32.gmra.mxu2 %v5101_v56  ;;  %5424 = vmatmul.f32.gmra.mxu3 %v5101_v56  ;;  %v10211_v1 = vpop.f32.mrf.mxu1  ;;  %v6031_v24 = vld [vmem:[%s11289_s12 + $0x78] sm:$0xff] }
 0xfd5   : > { %v5064_v55 = vmul.f32 %v5021_v53, %v10118_v34  ;;  %v6063_v37 = vld [vmem:[%s11289_s12 + $0x178] sm:$0xff]  ;;  %6084 = vmatpush.msrb.mxu0 %v6031_v24 }
 0xfd6   : > { %v5025_v8 = vmul.f32 0.5, %v5024_v15  ;;  %v10232_v56 = vld [vmem:[%s11289_s12 + $0x1f8] sm:$0xff]  ;;  %6214 = vmatpush.msra.mxu2 %v6063_v37 }
 0xfd7   : > { %v5083_v7 = vmul.f32 %v10065_v0, %v5064_v55  ;;  %6848 = vmatpush.msrb.mxu3 %v10232_v56  ;;  %v6046_v55 = vld [vmem:[%s11289_s12 + $0xf0] sm:$0xff]  ;;  %v6027_v24 = vld [vmem:[%s11289_s12 + $0x58] sm:$0xff] }
 0xfd8   : > { %v5026_v35 = vsub.f32 1.5, %v5025_v8  ;;  %v6030_v8 = vld [vmem:[%s11289_s12 + $0x70] sm:$0xff]  ;;  %6150 = vmatpush.msra.mxu1 %v6046_v55  ;;  %v6059_v37 = vld [vmem:[%s11289_s12 + $0x158] sm:$0xff] }
 0xfd9   : > { %v5102_v4 = vadd.f32 %v10077_v3, %v5083_v7  ;;  %6085 = vmatpush.msrb.mxu0 %v6030_v8  ;;  %v6042_v8 = vld [vmem:[%s11289_s12 + $0xd0] sm:$0xff] }
 0xfda   : > { %v5027_v38 = vmul.f32 %v7229_v19, %v5026_v35  ;;  %v6062_v35 = vld [vmem:[%s11289_s12 + $0x170] sm:$0xff] }
 0xfdb   : > { %5232 = vmatmul.f32.gmra.mxu0 %v5102_v4  ;;  %5297 = vmatmul.f32.gmra.mxu1 %v5102_v4  ;;  %v6058_v55 = vld [vmem:[%s11289_s12 + $0x150] sm:$0xff] }
 0xfdc   : > { %v5031_v2 = vsel %vm5030_vm11, %v7229_v19, %v5027_v38  ;;  %5362 = vmatmul.f32.gmra.mxu2 %v5102_v4  ;;  %5427 = vmatmul.f32.gmra.mxu3 %v5102_v4  ;;  %v10256_v4 = vld [vmem:[%s11289_s12 + $0x1f0] sm:$0xff] }
 0xfdd   : > { %v5065_v16 = vmul.f32 %v5031_v2, %v10127_v47  ;;  %v5170_v47 = vld [vmem:[%s11288_s11] sm:$0xf]  ;;  %6215 = vmatpush.msra.mxu2 %v6062_v35  ;;  %6849 = vmatpush.msrb.mxu3 %v10256_v4 }
 0xfde   : > { %v10183_v17 = vperm.slane %v5170_v47, 0  ;;  %v10185_v50 = vperm.slane %v5170_v47, 1 }
 0xfdf   : > { %v5084_v34 = vmul.f32 %v10065_v0, %v5065_v16  ;;  %v5327_v0 = vpop.f32.mrf.mxu2 }
 0xfe0   : > { %v10188_v9 = vadd.f32 %v5197_v22, %v10183_v17  ;;  %v10193_v31 = vadd.f32 %v5262_v27, %v10185_v50  ;;  %v10215_v43 = vadd.f32 %v5200_v39, %v10183_v17  ;;  %v10246_v7 = vadd.f32 %v5265_v20, %v10185_v50  ;;  %v6045_v22 = vld [vmem:[%s11289_s12 + $0xe8] sm:$0xff]  ;;  %v10269_v39 = vpop.f32.mrf.mxu0  ;;  %v5401_v20 = vpop.f32.mrf.mxu3 }
 0xfe1   : > { %v5103_v33 = vadd.f32 %v10077_v3, %v5084_v34  ;;  %v10190_v3 = vperm.slane %v5170_v47, 2  ;;  %v6061_v27 = vld [vmem:[%s11289_s12 + $0x168] sm:$0xff]  ;;  %6151 = vmatpush.msra.mxu1 %v6045_v22 }
 0xfe2   : > { %v5504_v58 = vmul.f32 0.044715, %v10188_v9  ;;  %v5505_v49 = vmul.f32 0.044715, %v10193_v31  ;;  %v5508_v53 = vmul.f32 0.044715, %v10215_v43  ;;  %6216 = vmatpush.msra.mxu2 %v6061_v27 }
 0xfe3   : > { %5235 = vmatmul.f32.gmra.mxu0 %v5103_v33  ;;  %5300 = vmatmul.f32.gmra.mxu1 %v5103_v33  ;;  %v10199_v40 = vadd.f32 %v5327_v0, %v10190_v3  ;;  %v5440_v5 = vmul.f32 0.5, %v10188_v9  ;;  %v5441_v52 = vmul.f32 0.5, %v10193_v31 }
 0xfe4   : > { %5365 = vmatmul.f32.gmra.mxu2 %v5103_v33  ;;  %5430 = vmatmul.f32.gmra.mxu3 %v5103_v33  ;;  %v5568_v29 = vmul.f32 %v5504_v58, %v10188_v9  ;;  %v5569_v14 = vmul.f32 %v5505_v49, %v10193_v31  ;;  %v6029_v33 = vld [vmem:[%s11289_s12 + $0x68] sm:$0xff]  ;;  %v10276_v49 = vperm.slane %v5170_v47, 3  ;;  %v5572_v47 = vmul.f32 %v5508_v53, %v10215_v43  ;;  %v6026_v53 = vld [vmem:[%s11289_s12 + $0x50] sm:$0xff] }
 0xfe5   : > { %v5506_v63 = vmul.f32 0.044715, %v10199_v40  ;;  %6086 = vmatpush.msrb.mxu0 %v6029_v33  ;;  %v10274_v58 = vld [vmem:[%s11289_s12 + $0x1e8] sm:$0xff] }
 0xfe6   : > { %v5632_v60 = vmul.f32 %v5568_v29, %v10188_v9  ;;  %v5633_v44 = vmul.f32 %v5569_v14, %v10193_v31  ;;  %v10278_v29 = vpop.f32.mrf.mxu1  ;;  %6850 = vmatpush.msrb.mxu3 %v10274_v58  ;;  %v6044_v14 = vld [vmem:[%s11289_s12 + $0xe0] sm:$0xff]  ;;  %v5636_v35 = vmul.f32 %v5572_v47, %v10215_v43 }
 0xfe7   : > { %v5330_v21 = vpop.f32.mrf.mxu2  ;;  %v5570_v10 = vmul.f32 %v5506_v63, %v10199_v40  ;;  %v6028_v63 = vld [vmem:[%s11289_s12 + $0x60] sm:$0xff]  ;;  %6152 = vmatpush.msra.mxu1 %v6044_v14  ;;  %v10347_v14 = vadd.f32 %v10205_v41, %v10183_v17 }
 0xfe8   : > { %v5696_v19 = vadd.f32 %v5632_v60, %v10188_v9  ;;  %v5697_v15 = vadd.f32 %v5633_v44, %v10193_v31  ;;  %v10249_v38 = vadd.f32 %v5330_v21, %v10190_v3  ;;  %v6060_v21 = vld [vmem:[%s11289_s12 + $0x160] sm:$0xff]  ;;  %v5509_v60 = vmul.f32 0.044715, %v10246_v7  ;;  %6087 = vmatpush.msrb.mxu0 %v6028_v63  ;;  %v6057_v63 = vld [vmem:[%s11289_s12 + $0x148] sm:$0xff]  ;;  %v6022_v9 = vld [vmem:[%s11289_s12 + $0x30] sm:$0xff] }
 0xfe9   : > { %v5634_v13 = vmul.f32 %v5570_v10, %v10199_v40  ;;  %v10296_v44 = vld [vmem:[%s11289_s12 + $0x1e0] sm:$0xff]  ;;  %6217 = vmatpush.msra.mxu2 %v6060_v21  ;;  %6153 = vmatpush.msra.mxu1 %v6043_v45  ;;  %v10404_v62 = vmul.f32 0.044715, %v10347_v14  ;;  %v6038_v31 = vld [vmem:[%s11289_s12 + $0xb0] sm:$0xff] }
 0xfea   : > { %v5760_v16 = vmul.f32 0.7978846, %v5696_v19  ;;  %v5761_v0 = vmul.f32 0.7978846, %v5697_v15  ;;  %v5510_v10 = vmul.f32 0.044715, %v10249_v38  ;;  %6851 = vmatpush.msrb.mxu3 %v10296_v44  ;;  %6088 = vmatpush.msrb.mxu0 %v6027_v24 }
 0xfeb   : > { %v5698_v34 = vadd.f32 %v5634_v13, %v10199_v40  ;;  %v10299_v13 = vadd.f32 %v5401_v20, %v10276_v49  ;;  %v10314_v15 = vld [vmem:[%s11289_s12 + $0x1d8] sm:$0xff]  ;;  %6218 = vmatpush.msra.mxu2 %v6059_v37  ;;  %6154 = vmatpush.msra.mxu1 %v6042_v8  ;;  %v6041_v20 = vld [vmem:[%s11289_s12 + $0xc8] sm:$0xff]  ;;  %v6040_v41 = vld [vmem:[%s11289_s12 + $0xc0] sm:$0xff]  ;;  %v10530_v57 = vmul.f32 0.5, %v10249_v38 }
 0xfec   : > { %7230 = vtanh.f32 %v5760_v16  ;;  %6852 = vmatpush.msrb.mxu3 %v10314_v15  ;;  %6089 = vmatpush.msrb.mxu0 %v6026_v53  ;;  %v10330_v16 = vld [vmem:[%s11289_s12 + $0x1d0] sm:$0xff]  ;;  %v5574_v33 = vmul.f32 %v5510_v10, %v10249_v38  ;;  %v6024_v10 = vld [vmem:[%s11289_s12 + $0x40] sm:$0xff]  ;;  %v6023_v37 = vld [vmem:[%s11289_s12 + $0x38] sm:$0xff]  ;;  %v5700_v53 = vadd.f32 %v5636_v35, %v10215_v43 }
 0xfed   : > { %v5762_v19 = vmul.f32 0.7978846, %v5698_v34  ;;  %7232 = vtanh.f32 %v5761_v0  ;;  %v5573_v34 = vmul.f32 %v5509_v60, %v10246_v7  ;;  %v5519_v22 = vmul.f32 0.044715, %v10299_v13  ;;  %6219 = vmatpush.msra.mxu2 %v6058_v55  ;;  %v6025_v0 = vld [vmem:[%s11289_s12 + $0x48] sm:$0xff]  ;;  %6155 = vmatpush.msra.mxu1 %v6041_v20  ;;  %v6056_v24 = vld [vmem:[%s11289_s12 + $0x140] sm:$0xff] }
 0xfee   : > { %6853 = vmatpush.msrb.mxu3 %v10330_v16  ;;  %6090 = vmatpush.msrb.mxu0 %v6025_v0  ;;  %v10355_v60 = vld [vmem:[%s11289_s12 + $0x1c8] sm:$0xff]  ;;  %v10370_v45 = vld [vmem:[%s11289_s12 + $0x1c0] sm:$0xff]  ;;  %v10378_v55 = vadd.f32 %v10211_v1, %v10185_v50  ;;  %v5404_v0 = vpop.f32.mrf.mxu3  ;;  %v6055_v35 = vld [vmem:[%s11289_s12 + $0x138] sm:$0xff] }
 0xfef   : > { %v10251_v2 = vpop.f32.mrf.mxu2  ;;  %7234 = vtanh.f32 %v5762_v19  ;;  %6220 = vmatpush.msra.mxu2 %v6057_v63  ;;  %6156 = vmatpush.msra.mxu1 %v6040_v41  ;;  %v6039_v63 = vld [vmem:[%s11289_s12 + $0xb8] sm:$0xff]  ;;  %v5637_v6 = vmul.f32 %v5573_v34, %v10246_v7  ;;  %v10398_v41 = vpop.f32.mrf.mxu1 }
 0xff0   : > { %6854 = vmatpush.msrb.mxu3 %v10355_v60  ;;  %6091 = vmatpush.msrb.mxu0 %v6024_v10  ;;  %v10393_v1 = vld [vmem:[%s11289_s12 + $0x1b8] sm:$0xff]  ;;  %v5583_v10 = vmul.f32 %v5519_v22, %v10299_v13  ;;  %v10408_v48 = vadd.f32 %v10251_v2, %v10190_v3  ;;  %v10412_v22 = vadd.f32 %v5404_v0, %v10276_v49  ;;  %v6054_v2 = vld [vmem:[%s11289_s12 + $0x130] sm:$0xff] }
 0xff1   : > { %6221 = vmatpush.msra.mxu2 %v6056_v24  ;;  %6157 = vmatpush.msra.mxu1 %v6039_v63  ;;  %v5764_v24 = vmul.f32 0.7978846, %v5700_v53  ;;  %v10429_v0 = vadd.f32 %v10269_v39, %v10183_v17  ;;  %v10434_v63 = vld [vmem:[%s11289_s12 + $0x1b0] sm:$0xff]  ;;  %v6021_v39 = vld [vmem:[%s11289_s12 + $0x28] sm:$0xff] }
 0xff2   : > { %v7231_v19 = vpop.eup %7230  ;;  %6855 = vmatpush.msrb.mxu3 %v10370_v45  ;;  %6092 = vmatpush.msrb.mxu0 %v6023_v37  ;;  %v10425_v37 = vmul.f32 0.044715, %v10378_v55  ;;  %v5647_v53 = vmul.f32 %v5583_v10, %v10299_v13  ;;  %v10454_v10 = vmul.f32 0.5, %v10246_v7  ;;  %v5523_v54 = vmul.f32 0.044715, %v10412_v22 }
 0xff3   : > { %v7233_v8 = vpop.eup %7232  ;;  %v5888_v34 = vadd.f32 1.0, %v7231_v19  ;;  %6222 = vmatpush.msra.mxu2 %v6055_v35  ;;  %6158 = vmatpush.msra.mxu1 %v6038_v31  ;;  %v5701_v35 = vadd.f32 %v5637_v6, %v10246_v7  ;;  %v5442_v6 = vmul.f32 0.5, %v10199_v40  ;;  %v10457_v31 = vmul.f32 0.044715, %v10408_v48  ;;  %v10466_v40 = vld [vmem:[%s11289_s12 + $0x1a8] sm:$0xff]  ;;  %v6036_v7 = vld [vmem:[%s11289_s12 + $0xa0] sm:$0xff] }
 0xff4   : > { %6856 = vmatpush.msrb.mxu3 %v10393_v1  ;;  %v5889_v19 = vadd.f32 1.0, %v7233_v8  ;;  %6093 = vmatpush.msrb.mxu0 %v6022_v9  ;;  %v6037_v8 = vld [vmem:[%s11289_s12 + $0xa8] sm:$0xff]  ;;  %v5711_v30 = vadd.f32 %v5647_v53, %v10299_v13 }
 0xff5   : > { %6223 = vmatpush.msra.mxu2 %v6054_v2  ;;  %v6053_v9 = vld [vmem:[%s11289_s12 + $0x128] sm:$0xff]  ;;  %v10461_v2 = vadd.f32 %v10278_v29, %v10185_v50  ;;  %6159 = vmatpush.msra.mxu1 %v6037_v8  ;;  %v10474_v26 = vmul.f32 %v5888_v34, %v5440_v5  ;;  %v6052_v8 = vld [vmem:[%s11289_s12 + $0x120] sm:$0xff]  ;;  %v10492_v34 = vmul.f32 0.044715, %v10429_v0 }
 0xff6   : > { %6857 = vmatpush.msrb.mxu3 %v10434_v63  ;;  %6094 = vmatpush.msrb.mxu0 %v6021_v39  ;;  %v10487_v59 = vmul.f32 %v5889_v19, %v5441_v52  ;;  %v5407_v25 = vpop.f32.mrf.mxu3  ;;  %v5775_v42 = vmul.f32 0.7978846, %v5711_v30 }
 0xff7   : > { %v10349_v21 = vpop.f32.mrf.mxu2  ;;  %11398 = vst [vmem:[#allocation19_spill] sm:$0xff] %v10474_v26  ;;  %6224 = vmatpush.msra.mxu2 %v6053_v9  ;;  %6160 = vmatpush.msra.mxu1 %v6036_v7  ;;  %v10516_v53 = vmul.f32 0.044715, %v10461_v2 }
 0xff8   : > { %6858 = vmatpush.msrb.mxu3 %v10466_v40  ;;  %11400 = vst [vmem:[#allocation21_spill] sm:$0xff] %v10487_v59 }
 0xff9   : > { %6225 = vmatpush.msra.mxu2 %v6052_v8 }
 0xffa   : > { %6859 = vmatpush.msrb.mxu3 %v10485_v46 }
0x1018   : > { %v4857_v27 = vpop.xlane.xlu1 %4856 }
0x1019   : > { %v4874_v47 = vmul.f32 %v4857_v27, %v11369_v23  ;;  %v10380_v27 = vpop.f32.mrf.mxu0 }
0x101b   : > { %v10382_v20 = vadd.f32 1e-05, %v4874_v47  ;;  %v5638_v47 = vmul.f32 %v5574_v33, %v10249_v38  ;;  %v7235_v33 = vpop.eup %7234 }
0x101c   : > { %v5890_v29 = vadd.f32 1.0, %v7235_v33  ;;  %v5765_v33 = vmul.f32 0.7978846, %v5701_v35  ;;  %v5576_v35 = vmul.f32 %v10404_v62, %v10347_v14  ;;  %v5277_v62 = vpop.f32.mrf.mxu1 }
0x101d   : > { %7236 = vrsqrt.f32 %v10382_v20  ;;  %v5702_v12 = vadd.f32 %v5638_v47, %v10249_v38  ;;  %v10451_v47 = vmul.f32 0.5, %v10215_v43  ;;  %v6020_v43 = vld [vmem:[%s11289_s12 + $0x20] sm:$0xff]  ;;  %v6050_v38 = vld [vmem:[%s11289_s12 + $0x110] sm:$0xff]  ;;  %vm5038_vm13 = vweird.f32 %v10382_v20 }
0x101e   : > { %7238 = vtanh.f32 %v5764_v24  ;;  %6095 = vmatpush.msrb.mxu0 %v6020_v43  ;;  %v6035_v24 = vld [vmem:[%s11289_s12 + $0x98] sm:$0xff]  ;;  %v10520_v43 = vadd.f32 %v10380_v27, %v10183_v17  ;;  %v10527_v8 = vmul.f32 %v5890_v29, %v5442_v6  ;;  %v6018_v27 = vld [vmem:[%s11289_s12 + $0x10] sm:$0xff]  ;;  %v5587_v29 = vmul.f32 %v5523_v54, %v10412_v22 }
0x101f   : > { %v5766_v9 = vmul.f32 0.7978846, %v5702_v12  ;;  %v6051_v12 = vld [vmem:[%s11289_s12 + $0x118] sm:$0xff]  ;;  %6161 = vmatpush.msra.mxu1 %v6035_v24  ;;  %v6034_v6 = vld [vmem:[%s11289_s12 + $0x90] sm:$0xff]  ;;  %v10553_v24 = vadd.f32 %v10398_v41, %v10185_v50  ;;  %v6017_v41 = vld [vmem:[%s11289_s12 + $0x8] sm:$0xff] }
0x1020   : > { %v4859_v61 = vpop.xlane.xlu2 %4858  ;;  %11402 = vst [vmem:[#allocation23_spill] sm:$0xff] %v10527_v8  ;;  %6226 = vmatpush.msra.mxu2 %v6051_v12  ;;  %v10561_v54 = vld [vmem:[%s11289_s12 + $0x190] sm:$0xff] }
0x1021   : > { %v4875_v39 = vmul.f32 %v4859_v61, %v11369_v23  ;;  %v10496_v23 = vadd.f32 %v10349_v21, %v10190_v3  ;;  %v5339_v61 = vpop.f32.mrf.mxu2  ;;  %v6019_v21 = vld [vmem:[%s11289_s12 + $0x18] sm:$0xff]  ;;  %v5212_v7 = vpop.f32.mrf.mxu0  ;;  %6162 = vmatpush.msra.mxu1 %v6034_v6  ;;  %11403 = vst [vmem:[#allocation30_spill] sm:$0xff] %v10561_v54  ;;  %v10581_v6 = vadd.f32 %v5277_v62, %v10185_v50 }
0x1022   : > { %6096 = vmatpush.msrb.mxu0 %v6019_v21  ;;  %v10556_v12 = vadd.f32 %v5339_v61, %v10190_v3  ;;  %6227 = vmatpush.msra.mxu2 %v6050_v38  ;;  %v6033_v61 = vld [vmem:[%s11289_s12 + $0x88] sm:$0xff]  ;;  %v10578_v30 = vadd.f32 %v5212_v7, %v10183_v17  ;;  %v10595_v7 = vmul.f32 0.5, %v10299_v13  ;;  %v10598_v62 = vadd.f32 %v5407_v25, %v10276_v49 }
0x1023   : > { %v10489_v5 = vpop.eup %7236  ;;  %v10501_v19 = vadd.f32 1e-05, %v4875_v39  ;;  %v10525_v39 = vld [vmem:[%s11289_s12 + $0x198] sm:$0xff]  ;;  %v10549_v21 = vmul.f32 0.044715, %v10496_v23  ;;  %6163 = vmatpush.msra.mxu1 %v6033_v61  ;;  %v10586_v38 = vld [vmem:[%s11289_s12 + $0x188] sm:$0xff]  ;;  %v5651_v13 = vmul.f32 %v5587_v29, %v10412_v22 }
0x1024   : > { %v5033_v52 = vmul.f32 %v10489_v5, %v10382_v20  ;;  %11401 = vst [vmem:[#allocation29_spill] sm:$0xff] %v10525_v39  ;;  %6860 = vmatpush.msrb.mxu3 %v10525_v39  ;;  %6097 = vmatpush.msrb.mxu0 %v6018_v27  ;;  %v7239_v28 = vpop.eup %7238  ;;  %v6049_v27 = vld [vmem:[%s11289_s12 + $0x108] sm:$0xff]  ;;  %vm5039_vm12 = vweird.f32 %v10489_v5  ;;  %v6048_v61 = vld [vmem:[%s11289_s12 + $0x100] sm:$0xff]  ;;  %v10612_v25 = vmul.f32 0.044715, %v10553_v24  ;;  %v5577_v20 = vmul.f32 %v10425_v37, %v10378_v55 }
0x1025   : > { %7240 = vrsqrt.f32 %v10501_v19  ;;  %11404 = vst [vmem:[#allocation25_spill] sm:$0xff] %v10586_v38  ;;  %6228 = vmatpush.msra.mxu2 %v6049_v27  ;;  %v5892_v27 = vadd.f32 1.0, %v7239_v28  ;;  %v10630_v28 = vmul.f32 0.044715, %v10581_v6  ;;  %vm5040_vm14 = vmor %vm5038_vm13, %vm5039_vm12  ;;  %vm5048_vm0 = vweird.f32 %v10501_v19 }
0x1026   : > { %v5034_v32 = vmul.f32 %v10489_v5, %v5033_v52  ;;  %v10546_v52 = vmul.f32 0.5, %v10347_v14  ;;  %7242 = vtanh.f32 %v5765_v33  ;;  %6861 = vmatpush.msrb.mxu3 %v10561_v54  ;;  %v5640_v33 = vmul.f32 %v5576_v35, %v10347_v14  ;;  %6098 = vmatpush.msrb.mxu0 %v6017_v41  ;;  %v6032_v35 = vld [vmem:[%s11289_s12 + $0x80] sm:$0xff] }
0x1027   : > { %7244 = vtanh.f32 %v5766_v9  ;;  %v6016_v9 = vld [vmem:[%s11289_s12] sm:$0xff]  ;;  %6164 = vmatpush.msra.mxu1 %v6032_v35  ;;  %6229 = vmatpush.msra.mxu2 %v6048_v61  ;;  %v5715_v61 = vadd.f32 %v5651_v13, %v10412_v22  ;;  %v10647_v26 = vmul.f32 %v5892_v27, %v10451_v47  ;;  %v5280_v13 = vpop.f32.mrf.mxu1 }
0x1028   : > { %v5035_v11 = vmul.f32 0.5, %v5034_v32  ;;  %v10575_v32 = vmul.f32 0.044715, %v10520_v43  ;;  %6862 = vmatpush.msrb.mxu3 %v10586_v38  ;;  %6099 = vmatpush.msrb.mxu0 %v6016_v9  ;;  %v10618_v38 = vmul.f32 0.5, %v10378_v55  ;;  %7246 = vtanh.f32 %v5775_v42  ;;  %v7378_v47 = vld [vmem:[%s11285_s8] ss:$0 sm:$0xff] }
0x1029   : > { %v5704_v29 = vadd.f32 %v5640_v33, %v10347_v14  ;;  %v10627_v9 = vmul.f32 0.044715, %v10578_v30  ;;  %v5342_v35 = vpop.f32.mrf.mxu2  ;;  %v5527_v33 = vmul.f32 0.044715, %v10598_v62  ;;  %11407 = vst [vmem:[#allocation36_spill] sm:$0xff] %v10647_v26 }
0x102a   : > { %v5036_v41 = vsub.f32 1.5, %v5035_v11  ;;  %v10615_v11 = vmul.f32 0.044715, %v10556_v12  ;;  %11406 = vst [vmem:[#allocation35_spill] sm:$0xff] %v10618_v38  ;;  %6863 = vmatpush.msrb.mxu3 %v10608_v36  ;;  %6279 = vmatpush.msra.mxu0 %v10232_v56  ;;  %v5578_v36 = vmul.f32 %v10457_v31, %v10408_v48  ;;  %v5215_v38 = vpop.f32.mrf.mxu0  ;;  %v10650_v56 = vmul.f32 0.5, %v10412_v22 }
0x102b   : > { %v10620_v54 = vpop.eup %7240  ;;  %v10654_v37 = vadd.f32 %v5342_v35, %v10190_v3  ;;  %v10657_v31 = vmul.f32 0.5, %v10408_v48  ;;  %v5591_v26 = vmul.f32 %v5527_v33, %v10598_v62 }
0x102c   : > { %v5037_v39 = vmul.f32 %v10489_v5, %v5036_v41  ;;  %v7243_v46 = vpop.eup %7242  ;;  %v5043_v42 = vmul.f32 %v10620_v54, %v10501_v19  ;;  %6280 = vmatpush.msra.mxu0 %v10256_v4  ;;  %v5642_v35 = vmul.f32 %v5578_v36, %v10408_v48  ;;  %vm5049_vm15 = vweird.f32 %v10620_v54 }
0x102d   : > { %v7245_v14 = vpop.eup %7244  ;;  %vm5050_vm2 = vmor %vm5048_vm0, %vm5049_vm15  ;;  %v5526_v19 = vmul.f32 0.044715, %v10654_v37 }
0x102e   : > { %v5041_v41 = vsel %vm5040_vm14, %v10489_v5, %v5037_v39  ;;  %v5044_v59 = vmul.f32 %v10620_v54, %v5043_v42  ;;  %v5893_v5 = vadd.f32 1.0, %v7243_v46  ;;  %v5768_v39 = vmul.f32 0.7978846, %v5704_v29  ;;  %6281 = vmatpush.msra.mxu0 %v10274_v58  ;;  %v7247_v4 = vpop.eup %7246 }
0x102f   : > { %v5066_v8 = vmul.f32 %v5041_v41, %v10142_v51  ;;  %v5410_v51 = vpop.f32.mrf.mxu3  ;;  %v5894_v22 = vadd.f32 1.0, %v7245_v14  ;;  %v5641_v42 = vmul.f32 %v5577_v20, %v10378_v55  ;;  %v10665_v46 = vadd.f32 %v5215_v38, %v10183_v17 }
0x1030   : > { %v5045_v41 = vmul.f32 0.5, %v5044_v59  ;;  %v5779_v29 = vmul.f32 0.7978846, %v5715_v61  ;;  %v5580_v58 = vmul.f32 %v10492_v34, %v10429_v0  ;;  %6282 = vmatpush.msra.mxu0 %v10296_v44  ;;  %v10677_v38 = vadd.f32 %v5280_v13, %v10185_v50 }
0x1031   : > { %v5085_v27 = vmul.f32 %v7378_v47, %v5066_v8  ;;  %v7379_v8 = vld [vmem:[%s11286_s9] ss:$0 sm:$0xff]  ;;  %v10680_v36 = vadd.f32 %v5410_v51, %v10276_v49  ;;  %7248 = vtanh.f32 %v5768_v39  ;;  %v5581_v20 = vmul.f32 %v10516_v53, %v10461_v2  ;;  %v5345_v13 = vpop.f32.mrf.mxu2 }
0x1032   : > { %v5046_v59 = vsub.f32 1.5, %v5045_v41  ;;  %v5903_v61 = vadd.f32 1.0, %v7247_v4  ;;  %v5705_v34 = vadd.f32 %v5641_v42, %v10378_v55  ;;  %v10690_v44 = vmul.f32 %v5893_v5, %v10454_v10  ;;  %6283 = vmatpush.msra.mxu0 %v10314_v15 }
0x1033   : > { %v5104_v14 = vadd.f32 %v7379_v8, %v5085_v27  ;;  %7250 = vtanh.f32 %v5779_v29  ;;  %v5706_v53 = vadd.f32 %v5642_v35, %v10408_v48  ;;  %v5655_v39 = vmul.f32 %v5591_v26, %v10598_v62 }
0x1034   : > { %v5047_v33 = vmul.f32 %v10620_v54, %v5046_v59  ;;  %v10697_v55 = vmul.f32 %v5894_v22, %v10530_v57  ;;  %v5644_v41 = vmul.f32 %v5580_v58, %v10429_v0  ;;  %v10702_v10 = vmul.f32 0.044715, %v10665_v46  ;;  %6284 = vmatpush.msra.mxu0 %v10330_v16 }
0x1035   : > { %5238 = vmatmul.f32.gmra.mxu0 %v5104_v14  ;;  %5303 = vmatmul.f32.gmra.mxu1 %v5104_v14  ;;  %v5531_v5 = vmul.f32 0.044715, %v10680_v36  ;;  %v5645_v26 = vmul.f32 %v5581_v20, %v10461_v2  ;;  %v10708_v27 = vmul.f32 0.044715, %v10677_v38  ;;  %v5769_v57 = vmul.f32 0.7978846, %v5705_v34 }
0x1036   : > { %5368 = vmatmul.f32.gmra.mxu2 %v5104_v14  ;;  %5433 = vmatmul.f32.gmra.mxu3 %v5104_v14  ;;  %v5051_v51 = vsel %vm5050_vm2, %v10620_v54, %v5047_v33  ;;  %v10711_v54 = vmul.f32 %v5903_v61, %v10595_v7  ;;  %v5582_v22 = vmul.f32 %v10549_v21, %v10496_v23  ;;  %v10721_v59 = vmul.f32 0.5, %v10598_v62 }
0x1037   : > { %v5067_v48 = vmul.f32 %v5051_v51, %v10149_v18  ;;  %v7249_v15 = vpop.eup %7248  ;;  %v10717_v42 = vadd.f32 %v5345_v13, %v10190_v3  ;;  %v5770_v18 = vmul.f32 0.7978846, %v5706_v53  ;;  %v5719_v29 = vadd.f32 %v5655_v39, %v10598_v62  ;;  %v5413_v35 = vpop.f32.mrf.mxu3  ;;  %6285 = vmatpush.msra.mxu0 %v10355_v60 }
0x1038   : > { %v10724_v7 = vmul.f32 0.5, %v10429_v0  ;;  %v5708_v14 = vadd.f32 %v5644_v41, %v10429_v0  ;;  %v10728_v21 = vmul.f32 0.5, %v10461_v2  ;;  %v10733_v20 = vmul.f32 0.5, %v10496_v23 }
0x1039   : > { %v5086_v4 = vmul.f32 %v7378_v47, %v5067_v48  ;;  %v7251_v16 = vpop.eup %7250  ;;  %v5709_v47 = vadd.f32 %v5645_v26, %v10461_v2  ;;  %v5595_v62 = vmul.f32 %v5531_v5, %v10680_v36  ;;  %v5896_v33 = vadd.f32 1.0, %v7249_v15  ;;  %6286 = vmatpush.msra.mxu0 %v10370_v45 }
0x103a   : > { %7252 = vtanh.f32 %v5769_v57  ;;  %v5646_v61 = vmul.f32 %v5582_v22, %v10496_v23  ;;  %v5584_v0 = vmul.f32 %v10575_v32, %v10520_v43  ;;  %v5530_v60 = vmul.f32 0.044715, %v10717_v42 }
0x103b   : > { %v5105_v58 = vadd.f32 %v7379_v8, %v5086_v4  ;;  %7254 = vtanh.f32 %v5770_v18  ;;  %v5783_v2 = vmul.f32 0.7978846, %v5719_v29  ;;  %v5585_v8 = vmul.f32 %v10612_v25, %v10553_v24  ;;  %6287 = vmatpush.msra.mxu0 %v10393_v1 }
0x103c   : > { %v5907_v34 = vadd.f32 1.0, %v7251_v16  ;;  %v5772_v53 = vmul.f32 0.7978846, %v5708_v14  ;;  %v10744_v39 = vmul.f32 0.5, %v10680_v36  ;;  %v5586_v32 = vmul.f32 %v10615_v11, %v10556_v12  ;;  %v11408_v14 = vld [vmem:[#allocation19_spill] sm:$0xff]  ;;  %v11409_v16 = vld [vmem:[#allocation21_spill] sm:$0xff] }
0x103d   : > { %5241 = vmatmul.f32.gmra.mxu0 %v5105_v58  ;;  %5306 = vmatmul.f32.gmra.mxu1 %v5105_v58  ;;  %v10749_v45 = vadd.f32 %v5413_v35, %v10276_v49  ;;  %v5773_v13 = vmul.f32 0.7978846, %v5709_v47  ;;  %v5659_v51 = vmul.f32 %v5595_v62, %v10680_v36  ;;  %v5588_v41 = vmul.f32 %v10627_v9, %v10578_v30  ;;  %v11410_v62 = vld [vmem:[#allocation23_spill] sm:$0xff] }
0x103e   : > { %5371 = vmatmul.f32.gmra.mxu2 %v5105_v58  ;;  %5436 = vmatmul.f32.gmra.mxu3 %v5105_v58  ;;  %v10756_v25 = vmul.f32 %v5896_v33, %v10546_v52  ;;  %v5710_v5 = vadd.f32 %v5646_v61, %v10496_v23  ;;  %v5648_v48 = vmul.f32 %v5584_v0, %v10520_v43  ;;  %7256 = vtanh.f32 %v5783_v2  ;;  %v5283_v2 = vpop.f32.mrf.mxu1 }
0x103f   : > { %v5589_v11 = vmul.f32 %v10630_v28, %v10581_v6  ;;  %v10763_v26 = vmul.f32 0.5, %v10520_v43  ;;  %v5649_v57 = vmul.f32 %v5585_v8, %v10553_v24  ;;  %v5590_v9 = vmul.f32 %v5526_v19, %v10654_v37  ;;  %6288 = vmatpush.msra.mxu0 %v10434_v63  ;;  %v5416_v63 = vpop.f32.mrf.mxu3 }
0x1040   : > { %v7253_v1 = vpop.eup %7252  ;;  %v10769_v52 = vmul.f32 %v5907_v34, %v10650_v56  ;;  %7258 = vtanh.f32 %v5772_v53  ;;  %v10772_v23 = vmul.f32 0.5, %v10553_v24  ;;  %v5650_v28 = vmul.f32 %v5586_v32, %v10556_v12  ;;  %v11411_v32 = vld [vmem:[#allocation28_spill] sm:$0xff] }
0x1041   : > { %v7255_v22 = vpop.eup %7254  ;;  %v5535_v15 = vmul.f32 0.044715, %v10749_v45  ;;  %7260 = vtanh.f32 %v5773_v13  ;;  %v5723_v4 = vadd.f32 %v5659_v51, %v10680_v36  ;;  %v5652_v19 = vmul.f32 %v5588_v41, %v10578_v30  ;;  %6289 = vmatpush.msra.mxu0 %v10466_v40 }
0x1042   : > { %v5774_v18 = vmul.f32 0.7978846, %v5710_v5  ;;  %v5712_v56 = vadd.f32 %v5648_v48, %v10520_v43  ;;  %v5653_v29 = vmul.f32 %v5589_v11, %v10581_v6  ;;  %v5592_v35 = vmul.f32 %v10702_v10, %v10665_v46  ;;  %v5218_v43 = vpop.f32.mrf.mxu0 }
0x1043   : > { %v5713_v58 = vadd.f32 %v5649_v57, %v10553_v24  ;;  %v10787_v36 = vmul.f32 0.5, %v10556_v12  ;;  %v5654_v40 = vmul.f32 %v5590_v9, %v10654_v37  ;;  %v5593_v47 = vmul.f32 %v10708_v27, %v10677_v38  ;;  %6290 = vmatpush.msra.mxu0 %v11411_v32  ;;  %v11412_v9 = vld [vmem:[#allocation29_spill] sm:$0xff] }
0x1044   : > { %v5897_v10 = vadd.f32 1.0, %v7253_v1  ;;  %v5898_v33 = vadd.f32 1.0, %v7255_v22  ;;  %v5714_v61 = vadd.f32 %v5650_v28, %v10556_v12  ;;  %v5594_v0 = vmul.f32 %v5530_v60, %v10717_v42  ;;  %v7257_v24 = vpop.eup %7256  ;;  %v11413_v28 = vld [vmem:[#allocation35_spill] sm:$0xff] }
0x1045   : > { %6100 = vmatmul.f32.vlgmr.msrb.gmra.mxu0 %v11408_v14  ;;  %6165 = vmatmul.f32.vlgmr.msra.gmra.mxu1 %v11409_v16  ;;  %v10797_v8 = vadd.f32 %v5416_v63, %v10276_v49  ;;  %v5787_v34 = vmul.f32 0.7978846, %v5723_v4  ;;  %v5599_v53 = vmul.f32 %v5535_v15, %v10749_v45  ;;  %v5716_v27 = vadd.f32 %v5652_v19, %v10578_v30  ;;  %v11415_v16 = vld [vmem:[#allocation36_spill] sm:$0xff] }
0x1046   : > { %6230 = vmatmul.f32.vlgmr.msra.gmra.mxu2 %v11410_v62  ;;  %6304 = vmatmul.f32.vlgmr.msrb.gmra.mxu3 %v10711_v54  ;;  %v7259_v13 = vpop.eup %7258  ;;  %v10802_v54 = vpop.f32.mrf.mxu2  ;;  %7262 = vtanh.f32 %v5774_v18  ;;  %v5776_v51 = vmul.f32 0.7978846, %v5712_v56  ;;  %v5717_v12 = vadd.f32 %v5653_v29, %v10581_v6  ;;  %v5656_v60 = vmul.f32 %v5592_v35, %v10665_v46  ;;  %v11414_v18 = vld [vmem:[#allocation30_spill] sm:$0xff] }
0x1047   : > { %v7261_v41 = vpop.eup %7260  ;;  %v5777_v5 = vmul.f32 0.7978846, %v5713_v58  ;;  %v10807_v48 = vmul.f32 0.5, %v10578_v30  ;;  %v5718_v11 = vadd.f32 %v5654_v40, %v10654_v37  ;;  %v5657_v57 = vmul.f32 %v5593_v47, %v10677_v38  ;;  %6291 = vmatpush.msra.mxu0 %v11412_v9  ;;  %v5419_v56 = vpop.f32.mrf.mxu3 }
0x1048   : > { %v10813_v1 = vadd.f32 %v5218_v43, %v10183_v17  ;;  %v5961_v22 = vmul.f32 %v5897_v10, %v11413_v28  ;;  %v5778_v15 = vmul.f32 0.7978846, %v5714_v61  ;;  %v5658_v4 = vmul.f32 %v5594_v0, %v10717_v42  ;;  %v11416_v0 = vld [vmem:[#allocation25_spill] sm:$0xff] }
0x1049   : > { %v5539_v19 = vmul.f32 0.044715, %v10797_v8  ;;  %7264 = vtanh.f32 %v5787_v34  ;;  %v5663_v30 = vmul.f32 %v5599_v53, %v10749_v45  ;;  %v5780_v63 = vmul.f32 0.7978846, %v5716_v27  ;;  %6292 = vmatpush.msra.mxu0 %v11414_v18 }
0x104a   : > { %v5962_v29 = vmul.f32 %v5898_v33, %v10657_v31  ;;  %7266 = vtanh.f32 %v5776_v51  ;;  %v5781_v35 = vmul.f32 0.7978846, %v5717_v12  ;;  %v5720_v14 = vadd.f32 %v5656_v60, %v10665_v46  ;;  %v11417_v12 = vld [vmem:[#allocation31_spill] sm:$0xff] }
0x104b   : > { %v5911_v58 = vadd.f32 1.0, %v7257_v24  ;;  %7268 = vtanh.f32 %v5777_v5  ;;  %v5782_v40 = vmul.f32 0.7978846, %v5718_v11  ;;  %v5721_v47 = vadd.f32 %v5657_v57, %v10677_v38  ;;  %6293 = vmatpush.msra.mxu0 %v11416_v0  ;;  %v5221_v24 = vpop.f32.mrf.mxu0 }
0x104c   : > { %v7263_v43 = vpop.eup %7262  ;;  %v5532_v62 = vmul.f32 0.044715, %v10813_v1  ;;  %v10827_v10 = vadd.f32 %v5283_v2, %v10185_v50  ;;  %7270 = vtanh.f32 %v5778_v15  ;;  %v5722_v31 = vadd.f32 %v5658_v4, %v10717_v42 }
0x104d   : > { %6103 = vmatmul.f32.gmra.mxu0 %v11415_v16  ;;  %6168 = vmatmul.f32.gmra.mxu1 %v10690_v44  ;;  %v10833_v44 = vadd.f32 %v5419_v56, %v10276_v49  ;;  %v5727_v33 = vadd.f32 %v5663_v30, %v10749_v45  ;;  %7272 = vtanh.f32 %v5780_v63  ;;  %v5603_v61 = vmul.f32 %v5539_v19, %v10797_v8 }
0x104e   : > { %6233 = vmatmul.f32.gmra.mxu2 %v10697_v55  ;;  %6307 = vmatmul.f32.gmra.mxu3 %v10769_v52  ;;  %v5900_v2 = vadd.f32 1.0, %v7259_v13  ;;  %v5901_v34 = vadd.f32 1.0, %v7261_v41  ;;  %7274 = vtanh.f32 %v5781_v35  ;;  %v5784_v55 = vmul.f32 0.7978846, %v5720_v14  ;;  %v10838_v52 = vpop.f32.mrf.mxu1  ;;  %v5351_v11 = vpop.f32.mrf.mxu2 }
0x104f   : > { %v7265_v53 = vpop.eup %7264  ;;  %v5902_v27 = vadd.f32 1.0, %v7263_v43  ;;  %v10841_v32 = vmul.f32 0.5, %v10581_v6  ;;  %7276 = vtanh.f32 %v5782_v40  ;;  %v5785_v51 = vmul.f32 0.7978846, %v5721_v47  ;;  %6294 = vmatpush.msra.mxu0 %v11417_v12  ;;  %v5422_v30 = vpop.f32.mrf.mxu3 }
0x1050   : > { %v7267_v60 = vpop.eup %7266  ;;  %v5533_v5 = vmul.f32 0.044715, %v10827_v10  ;;  %v5975_v13 = vmul.f32 %v5911_v58, %v10721_v59  ;;  %v5786_v41 = vmul.f32 0.7978846, %v5722_v31  ;;  %v5596_v57 = vmul.f32 %v5532_v62, %v10813_v1 }
0x1051   : > { %v7269_v9 = vpop.eup %7268  ;;  %v5543_v28 = vmul.f32 0.044715, %v10833_v44  ;;  %v5791_v15 = vmul.f32 0.7978846, %v5727_v33  ;;  %v10849_v6 = vmul.f32 0.5, %v10654_v37  ;;  %v5667_v4 = vmul.f32 %v5603_v61, %v10797_v8 }
0x1052   : > { %v7271_v19 = vpop.eup %7270  ;;  %v5964_v63 = vmul.f32 %v5900_v2, %v10724_v7  ;;  %v5965_v18 = vmul.f32 %v5901_v34, %v10728_v21  ;;  %v10855_v59 = vmul.f32 0.5, %v10665_v46  ;;  %7278 = vtanh.f32 %v5784_v55 }
0x1053   : > { %v7273_v56 = vpop.eup %7272  ;;  %v10859_v35 = vadd.f32 %v10802_v54, %v10190_v3  ;;  %v5966_v37 = vmul.f32 %v5902_v27, %v10733_v20  ;;  %v5915_v14 = vadd.f32 1.0, %v7265_v53  ;;  %7280 = vtanh.f32 %v5785_v51  ;;  %v5224_v2 = vpop.f32.mrf.mxu0 }
0x1054   : > { %v7275_v16 = vpop.eup %7274  ;;  %v5904_v7 = vadd.f32 1.0, %v7267_v60  ;;  %7282 = vtanh.f32 %v5786_v41  ;;  %v5660_v46 = vmul.f32 %v5596_v57, %v10813_v1  ;;  %v5597_v21 = vmul.f32 %v5533_v5, %v10827_v10 }
0x1055   : > { %6106 = vmatmul.f32.gmra.mxu0 %v10756_v25  ;;  %6171 = vmatmul.f32.gmra.mxu1 %v5961_v22  ;;  %v7277_v58 = vpop.eup %7276  ;;  %v10866_v54 = vadd.f32 %v5422_v30, %v10276_v49  ;;  %7284 = vtanh.f32 %v5791_v15  ;;  %v5731_v25 = vadd.f32 %v5667_v4, %v10797_v8  ;;  %v5607_v20 = vmul.f32 %v5543_v28, %v10833_v44 }
0x1056   : > { %6236 = vmatmul.f32.gmra.mxu2 %v5962_v29  ;;  %6310 = vmatmul.f32.gmra.mxu3 %v5975_v13  ;;  %v5905_v22 = vadd.f32 1.0, %v7269_v9  ;;  %v5906_v40 = vadd.f32 1.0, %v7271_v19  ;;  %v5908_v47 = vadd.f32 1.0, %v7273_v56  ;;  %v5465_v29 = vmul.f32 0.5, %v10677_v38  ;;  %v5289_v51 = vpop.f32.mrf.mxu1  ;;  %v5354_v5 = vpop.f32.mrf.mxu2 }
0x1057   : > { %v5534_v43 = vmul.f32 0.044715, %v10859_v35  ;;  %v5979_v62 = vmul.f32 %v5915_v14, %v10744_v39  ;;  %v5909_v31 = vadd.f32 1.0, %v7275_v16  ;;  %v5466_v33 = vmul.f32 0.5, %v10717_v42  ;;  %v5425_v13 = vpop.f32.mrf.mxu3 }
0x1058   : > { %v7279_v61 = vpop.eup %7278  ;;  %v10875_v0 = vadd.f32 %v5221_v24, %v10183_v17  ;;  %v5910_v34 = vadd.f32 1.0, %v7277_v58  ;;  %v5724_v55 = vadd.f32 %v5660_v46, %v10813_v1  ;;  %v5661_v53 = vmul.f32 %v5597_v21, %v10827_v10 }
0x1059   : > { %v7281_v27 = vpop.eup %7280  ;;  %v5547_v38 = vmul.f32 0.044715, %v10866_v54  ;;  %v5968_v12 = vmul.f32 %v5904_v7, %v10763_v26  ;;  %v5795_v39 = vmul.f32 0.7978846, %v5731_v25  ;;  %v5671_v60 = vmul.f32 %v5607_v20, %v10833_v44 }
0x105a   : > { %v7283_v42 = vpop.eup %7282  ;;  %v10884_v24 = vadd.f32 %v10838_v52, %v10185_v50  ;;  %v5969_v41 = vmul.f32 %v5905_v22, %v10772_v23  ;;  %v5970_v57 = vmul.f32 %v5906_v40, %v10787_v36  ;;  %v10889_v9 = vmul.f32 %v5908_v47, %v10807_v48 }
0x105b   : > { %v7285_v28 = vpop.eup %7284  ;;  %v10892_v26 = vadd.f32 %v5351_v11, %v10190_v3  ;;  %v10895_v15 = vmul.f32 %v5909_v31, %v10841_v32  ;;  %v5912_v52 = vadd.f32 1.0, %v7279_v61  ;;  %v5598_v4 = vmul.f32 %v5534_v43, %v10859_v35  ;;  %v5227_v47 = vpop.f32.mrf.mxu0 }
0x105c   : > { %v5536_v19 = vmul.f32 0.044715, %v10875_v0  ;;  %v10900_v23 = vmul.f32 %v5910_v34, %v10849_v6  ;;  %v5788_v36 = vmul.f32 0.7978846, %v5724_v55  ;;  %v5725_v48 = vadd.f32 %v5661_v53, %v10827_v10 }
0x105d   : > { %6109 = vmatmul.f32.gmra.mxu0 %v5964_v63  ;;  %6174 = vmatmul.f32.gmra.mxu1 %v5965_v18  ;;  %v10904_v11 = vadd.f32 %v5425_v13, %v10276_v49  ;;  %7286 = vtanh.f32 %v5795_v39  ;;  %v5735_v32 = vadd.f32 %v5671_v60, %v10833_v44  ;;  %v5611_v30 = vmul.f32 %v5547_v38, %v10866_v54 }
0x105e   : > { %6239 = vmatmul.f32.gmra.mxu2 %v5966_v37  ;;  %6313 = vmatmul.f32.gmra.mxu3 %v5979_v62  ;;  %v5537_v63 = vmul.f32 0.044715, %v10884_v24  ;;  %v5919_v18 = vadd.f32 1.0, %v7285_v28  ;;  %v5913_v56 = vadd.f32 1.0, %v7281_v27  ;;  %v5914_v37 = vadd.f32 1.0, %v7283_v42  ;;  %v5292_v34 = vpop.f32.mrf.mxu1 }
0x105f   : > { %v5538_v14 = vmul.f32 0.044715, %v10892_v26  ;;  %v10911_v6 = vadd.f32 %v5224_v2, %v10183_v17  ;;  %v10914_v16 = vmul.f32 %v5912_v52, %v10855_v59  ;;  %v5662_v7 = vmul.f32 %v5598_v4, %v10859_v35  ;;  %v5428_v43 = vpop.f32.mrf.mxu3 }
0x1060   : > { %v10918_v46 = vadd.f32 %v5289_v51, %v10185_v50  ;;  %v5471_v21 = vmul.f32 0.5, %v10749_v45  ;;  %v5789_v58 = vmul.f32 0.7978846, %v5725_v48  ;;  %v5600_v25 = vmul.f32 %v5536_v19, %v10875_v0 }
0x1061   : > { %v5551_v20 = vmul.f32 0.044715, %v10904_v11  ;;  %v5799_v22 = vmul.f32 0.7978846, %v5735_v32  ;;  %7288 = vtanh.f32 %v5788_v36  ;;  %v5675_v40 = vmul.f32 %v5611_v30, %v10866_v54 }
0x1062   : > { %v5983_v59 = vmul.f32 %v5919_v18, %v5471_v21  ;;  %v10924_v62 = vmul.f32 %v5913_v56, %v5465_v29  ;;  %v10926_v31 = vmul.f32 %v5914_v37, %v5466_v33  ;;  %v5601_v61 = vmul.f32 %v5537_v63, %v10884_v24  ;;  %v5357_v33 = vpop.f32.mrf.mxu2 }
0x1063   : > { %v7287_v2 = vpop.eup %7286  ;;  %v5540_v45 = vmul.f32 0.044715, %v10911_v6  ;;  %v5468_v55 = vmul.f32 0.5, %v10813_v1  ;;  %v5726_v53 = vadd.f32 %v5662_v7, %v10859_v35  ;;  %v5602_v27 = vmul.f32 %v5538_v14, %v10892_v26 }
0x1064   : > { %v5541_v51 = vmul.f32 0.044715, %v10918_v46  ;;  %v10935_v29 = vadd.f32 %v5354_v5, %v10190_v3  ;;  %7290 = vtanh.f32 %v5789_v58  ;;  %v5664_v38 = vmul.f32 %v5600_v25, %v10875_v0 }
0x1065   : > { %6112 = vmatmul.f32.gmra.mxu0 %v5968_v12  ;;  %6177 = vmatmul.f32.gmra.mxu1 %v5969_v41  ;;  %v10939_v12 = vadd.f32 %v5428_v43, %v10276_v49  ;;  %7292 = vtanh.f32 %v5799_v22  ;;  %v5739_v1 = vadd.f32 %v5675_v40, %v10866_v54  ;;  %v5615_v39 = vmul.f32 %v5551_v20, %v10904_v11  ;;  %v5230_v22 = vpop.f32.mrf.mxu0 }
0x1066   : > { %6242 = vmatmul.f32.gmra.mxu2 %v5970_v57  ;;  %6316 = vmatmul.f32.gmra.mxu3 %v5983_v59  ;;  %v5923_v60 = vadd.f32 1.0, %v7287_v2  ;;  %v5469_v42 = vmul.f32 0.5, %v10827_v10  ;;  %v10945_v5 = vmul.f32 0.5, %v10859_v35  ;;  %v5665_v13 = vmul.f32 %v5601_v61, %v10884_v24 }
0x1067   : > { %v7289_v41 = vpop.eup %7288  ;;  %v5790_v57 = vmul.f32 0.7978846, %v5726_v53  ;;  %v10949_v28 = vmul.f32 0.5, %v10875_v0  ;;  %v5666_v52 = vmul.f32 %v5602_v27, %v10892_v26  ;;  %v5604_v4 = vmul.f32 %v5540_v45, %v10911_v6  ;;  %v5431_v37 = vpop.f32.mrf.mxu3 }
0x1068   : > { %v5542_v19 = vmul.f32 0.044715, %v10935_v29  ;;  %v5475_v36 = vmul.f32 0.5, %v10797_v8  ;;  %v5728_v10 = vadd.f32 %v5664_v38, %v10875_v0  ;;  %v5605_v35 = vmul.f32 %v5541_v51, %v10918_v46 }
0x1069   : > { %v5555_v48 = vmul.f32 0.044715, %v10939_v12  ;;  %v5803_v32 = vmul.f32 0.7978846, %v5739_v1  ;;  %v10959_v30 = vmul.f32 0.5, %v10884_v24  ;;  %v5679_v63 = vmul.f32 %v5615_v39, %v10904_v11 }
0x106a   : > { %v7291_v18 = vpop.eup %7290  ;;  %v10963_v56 = vadd.f32 %v5227_v47, %v10183_v17  ;;  %v5987_v14 = vmul.f32 %v5923_v60, %v5475_v36  ;;  %v5916_v7 = vadd.f32 1.0, %v7289_v41  ;;  %v5729_v8 = vadd.f32 %v5665_v13, %v10884_v24  ;;  %v5360_v2 = vpop.f32.mrf.mxu2 }
0x106b   : > { %v7293_v0 = vpop.eup %7292  ;;  %v10967_v21 = vadd.f32 %v5292_v34, %v10185_v50  ;;  %7294 = vtanh.f32 %v5790_v57  ;;  %v5730_v58 = vadd.f32 %v5666_v52, %v10892_v26  ;;  %v5668_v25 = vmul.f32 %v5604_v4, %v10911_v6 }
0x106c   : > { %v10974_v20 = vadd.f32 %v5357_v33, %v10190_v3  ;;  %v5792_v24 = vmul.f32 0.7978846, %v5728_v10  ;;  %v5669_v40 = vmul.f32 %v5605_v35, %v10918_v46  ;;  %v5606_v47 = vmul.f32 %v5542_v19, %v10935_v29 }
0x106d   : > { %6115 = vmatmul.f32.gmra.mxu0 %v10889_v9  ;;  %6180 = vmatmul.f32.gmra.mxu1 %v10895_v15  ;;  %v5295_v9 = vpop.f32.mrf.mxu1  ;;  %v10980_v15 = vadd.f32 %v5431_v37, %v10276_v49  ;;  %7296 = vtanh.f32 %v5803_v32  ;;  %v5743_v43 = vadd.f32 %v5679_v63, %v10904_v11  ;;  %v5619_v59 = vmul.f32 %v5555_v48, %v10939_v12  ;;  %v5233_v37 = vpop.f32.mrf.mxu0 }
0x106e   : > { %6245 = vmatmul.f32.gmra.mxu2 %v10900_v23  ;;  %6319 = vmatmul.f32.gmra.mxu3 %v5987_v14  ;;  %v5544_v61 = vmul.f32 0.044715, %v10963_v56  ;;  %v5927_v45 = vadd.f32 1.0, %v7293_v0  ;;  %v5917_v23 = vadd.f32 1.0, %v7291_v18  ;;  %v5793_v34 = vmul.f32 0.7978846, %v5729_v8 }
0x106f   : > { %v5545_v53 = vmul.f32 0.044715, %v10967_v21  ;;  %v5980_v27 = vmul.f32 %v5916_v7, %v5468_v55  ;;  %v5794_v51 = vmul.f32 0.7978846, %v5730_v58  ;;  %v5732_v33 = vadd.f32 %v5668_v25, %v10911_v6 }
0x1070   : > { %v5546_v38 = vmul.f32 0.044715, %v10974_v20  ;;  %v5479_v1 = vmul.f32 0.5, %v10833_v44  ;;  %v5733_v39 = vadd.f32 %v5669_v40, %v10918_v46  ;;  %v5670_v60 = vmul.f32 %v5606_v47, %v10935_v29 }
0x1071   : > { %v7295_v13 = vpop.eup %7294  ;;  %v5559_v41 = vmul.f32 0.044715, %v10980_v15  ;;  %7298 = vtanh.f32 %v5792_v24  ;;  %v5807_v57 = vmul.f32 0.7978846, %v5743_v43  ;;  %v5683_v52 = vmul.f32 %v5619_v59, %v10939_v12 }
0x1072   : > { %v5991_v4 = vmul.f32 %v5927_v45, %v5479_v1  ;;  %v5981_v55 = vmul.f32 %v5917_v23, %v5469_v42  ;;  %7300 = vtanh.f32 %v5793_v34  ;;  %v5608_v19 = vmul.f32 %v5544_v61, %v10963_v56 }
0x1073   : > { %v7297_v36 = vpop.eup %7296  ;;  %v10995_v10 = vadd.f32 %v5230_v22, %v10183_v17  ;;  %7302 = vtanh.f32 %v5794_v51  ;;  %v5796_v44 = vmul.f32 0.7978846, %v5732_v33  ;;  %v5609_v35 = vmul.f32 %v5545_v53, %v10967_v21 }
0x1074   : > { %v11001_v48 = vadd.f32 %v5295_v9, %v10185_v50  ;;  %v5797_v42 = vmul.f32 0.7978846, %v5733_v39  ;;  %v5734_v32 = vadd.f32 %v5670_v60, %v10935_v29  ;;  %v5610_v63 = vmul.f32 %v5546_v38, %v10974_v20  ;;  %v5363_v9 = vpop.f32.mrf.mxu2 }
0x1075   : > { %6118 = vmatmul.f32.gmra.mxu0 %v10914_v16  ;;  %6183 = vmatmul.f32.gmra.mxu1 %v10924_v62  ;;  %v11007_v18 = vadd.f32 %v5360_v2, %v10190_v3  ;;  %7304 = vtanh.f32 %v5807_v57  ;;  %v5747_v16 = vadd.f32 %v5683_v52, %v10939_v12  ;;  %v5623_v62 = vmul.f32 %v5559_v41, %v10980_v15  ;;  %v5298_v25 = vpop.f32.mrf.mxu1 }
0x1076   : > { %6248 = vmatmul.f32.gmra.mxu2 %v10926_v31  ;;  %6322 = vmatmul.f32.gmra.mxu3 %v5991_v4  ;;  %v5918_v14 = vadd.f32 1.0, %v7295_v13  ;;  %v5931_v7 = vadd.f32 1.0, %v7297_v36  ;;  %v5474_v8 = vmul.f32 0.5, %v10892_v26  ;;  %v5672_v31 = vmul.f32 %v5608_v19, %v10963_v56 }
0x1077   : > { %v7299_v0 = vpop.eup %7298  ;;  %v5548_v58 = vmul.f32 0.044715, %v10995_v10  ;;  %v11015_v22 = vmul.f32 0.5, %v10911_v6  ;;  %7306 = vtanh.f32 %v5796_v44  ;;  %v5673_v24 = vmul.f32 %v5609_v35, %v10967_v21 }
0x1078   : > { %v7301_v40 = vpop.eup %7300  ;;  %v5549_v47 = vmul.f32 0.044715, %v11001_v48  ;;  %v5483_v43 = vmul.f32 0.5, %v10866_v54  ;;  %v5798_v59 = vmul.f32 0.7978846, %v5734_v32  ;;  %v5674_v26 = vmul.f32 %v5610_v63, %v10974_v20 }
0x1079   : > { %v7303_v61 = vpop.eup %7302  ;;  %v5550_v2 = vmul.f32 0.044715, %v11007_v18  ;;  %7308 = vtanh.f32 %v5797_v42  ;;  %v5811_v45 = vmul.f32 0.7978846, %v5747_v16  ;;  %v5687_v6 = vmul.f32 %v5623_v62, %v10980_v15  ;;  %v5236_v62 = vpop.f32.mrf.mxu0 }
0x107a   : > { %v5982_v23 = vmul.f32 %v5918_v14, %v10945_v5  ;;  %v5995_v34 = vmul.f32 %v5931_v7, %v5483_v43  ;;  %v5920_v53 = vadd.f32 1.0, %v7299_v0  ;;  %v5736_v51 = vadd.f32 %v5672_v31, %v10963_v56 }
0x107b   : > { %v7305_v33 = vpop.eup %7304  ;;  %v11026_v38 = vadd.f32 %v5233_v37, %v10183_v17  ;;  %v5921_v54 = vadd.f32 1.0, %v7301_v40  ;;  %v5737_v1 = vadd.f32 %v5673_v24, %v10967_v21  ;;  %v5612_v39 = vmul.f32 %v5548_v58, %v10995_v10 }
0x107c   : > { %v11031_v60 = vadd.f32 %v5298_v25, %v10185_v50  ;;  %7310 = vtanh.f32 %v5798_v59  ;;  %v5738_v5 = vadd.f32 %v5674_v26, %v10974_v20  ;;  %v5613_v13 = vmul.f32 %v5549_v47, %v11001_v48 }
0x107d   : > { %6121 = vmatmul.f32.gmra.mxu0 %v5980_v27  ;;  %6186 = vmatmul.f32.gmra.mxu1 %v5981_v55  ;;  %v7307_v41 = vpop.eup %7306  ;;  %v11036_v57 = vadd.f32 %v5363_v9, %v10190_v3  ;;  %7312 = vtanh.f32 %v5811_v45  ;;  %v5751_v27 = vadd.f32 %v5687_v6, %v10980_v15  ;;  %v5614_v52 = vmul.f32 %v5550_v2, %v11007_v18  ;;  %v5301_v31 = vpop.f32.mrf.mxu1 }
0x107e   : > { %6251 = vmatmul.f32.gmra.mxu2 %v5982_v23  ;;  %6325 = vmatmul.f32.gmra.mxu3 %v5995_v34  ;;  %v5984_v4 = vmul.f32 %v5920_v53, %v10949_v28  ;;  %v5922_v55 = vadd.f32 1.0, %v7303_v61  ;;  %v5935_v19 = vadd.f32 1.0, %v7305_v33  ;;  %v5800_v36 = vmul.f32 0.7978846, %v5736_v51 }
0x107f   : > { %v7309_v44 = vpop.eup %7308  ;;  %v5552_v35 = vmul.f32 0.044715, %v11026_v38  ;;  %v5985_v42 = vmul.f32 %v5921_v54, %v10959_v30  ;;  %v5801_v32 = vmul.f32 0.7978846, %v5737_v1  ;;  %v5676_v63 = vmul.f32 %v5612_v39, %v10995_v10  ;;  %v5366_v30 = vpop.f32.mrf.mxu2 }
0x1080   : > { %v5553_v16 = vmul.f32 0.044715, %v11031_v60  ;;  %v5487_v37 = vmul.f32 0.5, %v10904_v11  ;;  %v5802_v14 = vmul.f32 0.7978846, %v5738_v5  ;;  %v5677_v7 = vmul.f32 %v5613_v13, %v11001_v48 }
0x1081   : > { %v5554_v28 = vmul.f32 0.044715, %v11036_v57  ;;  %v5924_v0 = vadd.f32 1.0, %v7307_v41  ;;  %v5815_v58 = vmul.f32 0.7978846, %v5751_v27  ;;  %v5678_v25 = vmul.f32 %v5614_v52, %v11007_v18 }
0x1082   : > { %v7311_v24 = vpop.eup %7310  ;;  %v5986_v40 = vmul.f32 %v5922_v55, %v5474_v8  ;;  %v5999_v47 = vmul.f32 %v5935_v19, %v5487_v37  ;;  %v5925_v9 = vadd.f32 1.0, %v7309_v44  ;;  %7314 = vtanh.f32 %v5800_v36 }
0x1083   : > { %v7313_v43 = vpop.eup %7312  ;;  %v11050_v59 = vadd.f32 %v5236_v62, %v10183_v17  ;;  %7316 = vtanh.f32 %v5801_v32  ;;  %v5740_v11 = vadd.f32 %v5676_v63, %v10995_v10  ;;  %v5616_v26 = vmul.f32 %v5552_v35, %v11026_v38 }
0x1084   : > { %v11055_v61 = vadd.f32 %v5301_v31, %v10185_v50  ;;  %7318 = vtanh.f32 %v5802_v14  ;;  %v5741_v8 = vadd.f32 %v5677_v7, %v11001_v48  ;;  %v5617_v2 = vmul.f32 %v5553_v16, %v11031_v60 }
0x1085   : > { %6124 = vmatmul.f32.gmra.mxu0 %v5984_v4  ;;  %6189 = vmatmul.f32.gmra.mxu1 %v5985_v42  ;;  %v11060_v45 = vadd.f32 %v5366_v30, %v10190_v3  ;;  %7320 = vtanh.f32 %v5815_v58  ;;  %v5742_v6 = vadd.f32 %v5678_v25, %v11007_v18  ;;  %v5618_v23 = vmul.f32 %v5554_v28, %v11036_v57 }
0x1086   : > { %6254 = vmatmul.f32.gmra.mxu2 %v5986_v40  ;;  %6328 = vmatmul.f32.gmra.mxu3 %v5999_v47  ;;  %v5477_v34 = vmul.f32 0.5, %v10918_v46  ;;  %v5478_v53 = vmul.f32 0.5, %v10935_v29  ;;  %v5926_v51 = vadd.f32 1.0, %v7311_v24  ;;  %v5939_v33 = vadd.f32 1.0, %v7313_v43 }
0x1087   : > { %v5556_v54 = vmul.f32 0.044715, %v11050_v59  ;;  %v5988_v1 = vmul.f32 %v5924_v0, %v11015_v22  ;;  %v5804_v39 = vmul.f32 0.7978846, %v5740_v11  ;;  %v5680_v5 = vmul.f32 %v5616_v26, %v11026_v38 }
0x1088   : > { %v7315_v13 = vpop.eup %7314  ;;  %v5557_v41 = vmul.f32 0.044715, %v11055_v61  ;;  %v5491_v27 = vmul.f32 0.5, %v10939_v12  ;;  %v5805_v52 = vmul.f32 0.7978846, %v5741_v8  ;;  %v5681_v4 = vmul.f32 %v5617_v2, %v11031_v60 }
0x1089   : > { %v7317_v46 = vpop.eup %7316  ;;  %v5558_v29 = vmul.f32 0.044715, %v11060_v45  ;;  %v5989_v55 = vmul.f32 %v5925_v9, %v5477_v34  ;;  %v5806_v19 = vmul.f32 0.7978846, %v5742_v6  ;;  %v5682_v36 = vmul.f32 %v5618_v23, %v11036_v57 }
0x108a   : > { %v7319_v44 = vpop.eup %7318  ;;  %v5990_v22 = vmul.f32 %v5926_v51, %v5478_v53  ;;  %v6003_v35 = vmul.f32 %v5939_v33, %v5491_v27  ;;  %7322 = vtanh.f32 %v5804_v39  ;;  %v5744_v32 = vadd.f32 %v5680_v5, %v11026_v38 }
0x108b   : > { %v7321_v42 = vpop.eup %7320  ;;  %v5620_v12 = vmul.f32 %v5556_v54, %v11050_v59  ;;  %v5928_v63 = vadd.f32 1.0, %v7315_v13  ;;  %7324 = vtanh.f32 %v5805_v52  ;;  %v5745_v16 = vadd.f32 %v5681_v4, %v11031_v60 }
0x108c   : > { %v5621_v62 = vmul.f32 %v5557_v41, %v11055_v61  ;;  %v5929_v37 = vadd.f32 1.0, %v7317_v46  ;;  %7326 = vtanh.f32 %v5806_v19  ;;  %v5746_v14 = vadd.f32 %v5682_v36, %v11036_v57 }
0x108d   : > { %6127 = vmatmul.f32.gmra.mxu0 %v5988_v1  ;;  %6192 = vmatmul.f32.gmra.mxu1 %v5989_v55  ;;  %v5622_v7 = vmul.f32 %v5558_v29, %v11060_v45  ;;  %v5930_v28 = vadd.f32 1.0, %v7319_v44  ;;  %v5943_v31 = vadd.f32 1.0, %v7321_v42  ;;  %v5480_v0 = vmul.f32 0.5, %v10963_v56 }
0x108e   : > { %6257 = vmatmul.f32.gmra.mxu2 %v5990_v22  ;;  %6331 = vmatmul.f32.gmra.mxu3 %v6003_v35  ;;  %v5481_v58 = vmul.f32 0.5, %v10967_v21  ;;  %v5808_v25 = vmul.f32 0.7978846, %v5744_v32  ;;  %v5684_v24 = vmul.f32 %v5620_v12, %v11050_v59  ;;  %v5482_v30 = vmul.f32 0.5, %v10974_v20 }
0x108f   : > { %v5495_v40 = vmul.f32 0.5, %v10980_v15  ;;  %v5809_v47 = vmul.f32 0.7978846, %v5745_v16  ;;  %v5685_v9 = vmul.f32 %v5621_v62, %v11055_v61  ;;  %v5992_v11 = vmul.f32 %v5928_v63, %v5480_v0 }
0x1090   : > { %v7323_v43 = vpop.eup %7322  ;;  %v5993_v26 = vmul.f32 %v5929_v37, %v5481_v58  ;;  %v5810_v8 = vmul.f32 0.7978846, %v5746_v14  ;;  %v5686_v2 = vmul.f32 %v5622_v7, %v11060_v45  ;;  %v5994_v56 = vmul.f32 %v5930_v28, %v5482_v30 }
0x1091   : > { %v7325_v6 = vpop.eup %7324  ;;  %v6007_v23 = vmul.f32 %v5943_v31, %v5495_v40  ;;  %7328 = vtanh.f32 %v5808_v25  ;;  %v5748_v20 = vadd.f32 %v5684_v24, %v11050_v59  ;;  %v5749_v15 = vadd.f32 %v5685_v9, %v11055_v61  ;;  %v11419_v40 = vld [vmem:[#allocation17_spill] sm:$0xff] }
0x1092   : > { %v7327_v21 = vpop.eup %7326  ;;  %7330 = vtanh.f32 %v5809_v47  ;;  %v5932_v34 = vadd.f32 1.0, %v7323_v43  ;;  %v5933_v53 = vadd.f32 1.0, %v7325_v6  ;;  %v5750_v51 = vadd.f32 %v5686_v2, %v11060_v45 }
0x1093   : > { %7332 = vtanh.f32 %v5810_v8  ;;  %v5934_v33 = vadd.f32 1.0, %v7327_v21  ;;  %v5484_v54 = vmul.f32 0.5, %v10995_v10  ;;  %v5485_v1 = vmul.f32 0.5, %v11001_v48 }
0x1094   : > { %v5812_v39 = vmul.f32 0.7978846, %v5748_v20  ;;  %v5486_v5 = vmul.f32 0.5, %v11007_v18  ;;  %v5813_v13 = vmul.f32 0.7978846, %v5749_v15  ;;  %v5488_v36 = vmul.f32 0.5, %v11026_v38 }
0x1095   : > { %6130 = vmatmul.f32.gmra.mxu0 %v5992_v11  ;;  %6195 = vmatmul.f32.gmra.mxu1 %v5993_v26  ;;  %v5996_v27 = vmul.f32 %v5932_v34, %v5484_v54  ;;  %v5997_v52 = vmul.f32 %v5933_v53, %v5485_v1  ;;  %v5814_v4 = vmul.f32 0.7978846, %v5750_v51  ;;  %v5489_v18 = vmul.f32 0.5, %v11031_v60  ;;  %v11418_v60 = vld [vmem:[#allocation26_spill] sm:$0xff] }
0x1096   : > { %6260 = vmatmul.f32.gmra.mxu2 %v5994_v56  ;;  %6334 = vmatmul.f32.gmra.mxu3 %v6007_v23  ;;  %v5998_v29 = vmul.f32 %v5934_v33, %v5486_v5  ;;  %7334 = vtanh.f32 %v5812_v39  ;;  %v5490_v44 = vmul.f32 0.5, %v11036_v57  ;;  %v5492_v14 = vmul.f32 0.5, %v11050_v59 }
0x1097   : > { %v7329_v41 = vpop.eup %7328  ;;  %7336 = vtanh.f32 %v5813_v13  ;;  %v5493_v38 = vmul.f32 0.5, %v11055_v61  ;;  %v11100_v7 = vadd.f32 %v11418_v60, %v10276_v49  ;;  %v5494_v57 = vmul.f32 0.5, %v11060_v45  ;;  %v11420_v13 = vld [vmem:[#allocation27_spill] sm:$0xff] }
0x1098   : > { %v7331_v46 = vpop.eup %7330  ;;  %v5936_v19 = vadd.f32 1.0, %v7329_v41  ;;  %7338 = vtanh.f32 %v5814_v4  ;;  %v11109_v47 = vadd.f32 %v11419_v40, %v10276_v49  ;;  %v11130_v41 = vadd.f32 %v11420_v13, %v10276_v49 }
0x1099   : > { %v7333_v55 = vpop.eup %7332  ;;  %v5937_v10 = vadd.f32 1.0, %v7331_v46  ;;  %v5507_v58 = vmul.f32 0.044715, %v11100_v7 }
0x109a   : > { %v5938_v48 = vadd.f32 1.0, %v7333_v55  ;;  %v6000_v35 = vmul.f32 %v5936_v19, %v5488_v36  ;;  %v5511_v8 = vmul.f32 0.044715, %v11109_v47 }
0x109b   : > { %v6001_v42 = vmul.f32 %v5937_v10, %v5489_v18  ;;  %v5571_v59 = vmul.f32 %v5507_v58, %v11100_v7  ;;  %v5515_v18 = vmul.f32 0.044715, %v11130_v41 }
0x109c   : > { %v7335_v22 = vpop.eup %7334  ;;  %v6002_v12 = vmul.f32 %v5938_v48, %v5490_v44  ;;  %v5575_v4 = vmul.f32 %v5511_v8, %v11109_v47 }
0x109d   : > { %6133 = vmatmul.f32.gmra.mxu0 %v5996_v27  ;;  %6198 = vmatmul.f32.gmra.mxu1 %v5997_v52  ;;  %v7337_v32 = vpop.eup %7336  ;;  %v5940_v16 = vadd.f32 1.0, %v7335_v22  ;;  %v5635_v43 = vmul.f32 %v5571_v59, %v11100_v7 }
0x109e   : > { %6263 = vmatmul.f32.gmra.mxu2 %v5998_v29  ;;  %v7339_v63 = vpop.eup %7338  ;;  %v5941_v62 = vadd.f32 1.0, %v7337_v32 }
0x109f   : > { %v5942_v37 = vadd.f32 1.0, %v7339_v63  ;;  %v6004_v28 = vmul.f32 %v5940_v16, %v5492_v14  ;;  %v5699_v15 = vadd.f32 %v5635_v43, %v11100_v7  ;;  %v5639_v63 = vmul.f32 %v5575_v4, %v11109_v47 }
0x10a0   : > { %v6005_v31 = vmul.f32 %v5941_v62, %v5493_v38 }
0x10a1   : > { %v6006_v0 = vmul.f32 %v5942_v37, %v5494_v57  ;;  %v5763_v36 = vmul.f32 0.7978846, %v5699_v15 }
0x10a5   : > { %6136 = vmatmul.f32.gmra.mxu0 %v6000_v35  ;;  %6201 = vmatmul.f32.gmra.mxu1 %v6001_v42 }
0x10a6   : > { %6266 = vmatmul.f32.gmra.mxu2 %v6002_v12 }
0x10ad   : > { %6139 = vmatmul.f32.gmra.mxu0 %v6004_v28  ;;  %6204 = vmatmul.f32.gmra.mxu1 %v6005_v31 }
0x10ae   : > { %6269 = vmatmul.f32.gmra.mxu2 %v6006_v0 }
0x10b2   : > { %v5239_v25 = vpop.f32.mrf.mxu0  ;;  %v5304_v24 = vpop.f32.mrf.mxu1 }
0x10b3   : > { %v5240_v61 = vadd.f32 %v5239_v25, %v10183_v17  ;;  %v5305_v30 = vadd.f32 %v5304_v24, %v10185_v50 }
0x10b5   : > { %v5560_v45 = vmul.f32 0.044715, %v5240_v61  ;;  %v5561_v9 = vmul.f32 0.044715, %v5305_v30  ;;  %v5496_v38 = vmul.f32 0.5, %v5240_v61  ;;  %v5497_v24 = vmul.f32 0.5, %v5305_v30 }
0x10b7   : > { %v5624_v11 = vmul.f32 %v5560_v45, %v5240_v61  ;;  %v5625_v26 = vmul.f32 %v5561_v9, %v5305_v30 }
0x10b9   : > { %v5369_v2 = vpop.f32.mrf.mxu2  ;;  %v5434_v6 = vpop.f32.mrf.mxu3  ;;  %v5688_v56 = vmul.f32 %v5624_v11, %v5240_v61  ;;  %v5689_v23 = vmul.f32 %v5625_v26, %v5305_v30 }
0x10ba   : > { %v11114_v21 = vadd.f32 %v5369_v2, %v10190_v3  ;;  %v11117_v20 = vadd.f32 %v5434_v6, %v10276_v49  ;;  %v5242_v34 = vpop.f32.mrf.mxu0  ;;  %v5307_v53 = vpop.f32.mrf.mxu1  ;;  %v5579_v2 = vmul.f32 %v5515_v18, %v11130_v41 }
0x10bb   : > { %v5752_v51 = vadd.f32 %v5688_v56, %v5240_v61  ;;  %v5753_v33 = vadd.f32 %v5689_v23, %v5305_v30  ;;  %v11123_v39 = vadd.f32 %v5242_v34, %v10183_v17  ;;  %v11126_v5 = vadd.f32 %v5307_v53, %v10185_v50  ;;  %v11140_v50 = vld [vmem:[%s11290_s13] ss:$0 sm:$0xff] }
0x10bc   : > { %v5562_v54 = vmul.f32 0.044715, %v11114_v21  ;;  %v5563_v1 = vmul.f32 0.044715, %v11117_v20  ;;  %v5703_v56 = vadd.f32 %v5639_v63, %v11109_v47  ;;  %v5498_v4 = vmul.f32 0.5, %v11114_v21 }
0x10bd   : > { %v5816_v27 = vmul.f32 0.7978846, %v5752_v51  ;;  %v5817_v52 = vmul.f32 0.7978846, %v5753_v33  ;;  %v5564_v46 = vmul.f32 0.044715, %v11123_v39 }
0x10be   : > { %v5565_v29 = vmul.f32 0.044715, %v11126_v5  ;;  %v5626_v55 = vmul.f32 %v5562_v54, %v11114_v21  ;;  %v5627_v17 = vmul.f32 %v5563_v1, %v11117_v20 }
0x10bf   : > { %7340 = vtanh.f32 %v5816_v27  ;;  %v5628_v48 = vmul.f32 %v5564_v46, %v11123_v39  ;;  %v5643_v27 = vmul.f32 %v5579_v2, %v11130_v41 }
0x10c0   : > { %7342 = vtanh.f32 %v5817_v52  ;;  %v5690_v19 = vmul.f32 %v5626_v55, %v11114_v21  ;;  %v5691_v10 = vmul.f32 %v5627_v17, %v11117_v20  ;;  %v5629_v44 = vmul.f32 %v5565_v29, %v11126_v5 }
0x10c1   : > { %v5372_v22 = vpop.f32.mrf.mxu2  ;;  %v5437_v35 = vpop.f32.mrf.mxu3  ;;  %v5692_v12 = vmul.f32 %v5628_v48, %v11123_v39  ;;  %v5767_v55 = vmul.f32 0.7978846, %v5703_v56 }
0x10c2   : > { %v5754_v42 = vadd.f32 %v5690_v19, %v11114_v21  ;;  %v5755_v32 = vadd.f32 %v5691_v10, %v11117_v20  ;;  %v11152_v16 = vadd.f32 %v5372_v22, %v10190_v3  ;;  %v11155_v62 = vadd.f32 %v5437_v35, %v10276_v49  ;;  %v6101_v37 = vpop.f32.mrf.mxu0  ;;  %v6166_v14 = vpop.f32.mrf.mxu1 }
0x10c3   : > { %v5693_v60 = vmul.f32 %v5629_v44, %v11126_v5  ;;  %v6102_v57 = vadd.f32 %v11140_v50, %v6101_v37  ;;  %v5756_v0 = vadd.f32 %v5692_v12, %v11123_v39  ;;  %v5499_v10 = vmul.f32 0.5, %v11117_v20 }
0x10c4   : > { %v5818_v28 = vmul.f32 0.7978846, %v5754_v42  ;;  %v5819_v31 = vmul.f32 0.7978846, %v5755_v32  ;;  %v5566_v25 = vmul.f32 0.044715, %v11152_v16 }
0x10c5   : > { %v7341_v58 = vpop.eup %7340  ;;  %v5567_v3 = vmul.f32 0.044715, %v11155_v62  ;;  %v5757_v49 = vadd.f32 %v5693_v60, %v11126_v5  ;;  %v6167_v40 = vadd.f32 %v6166_v14, %v6102_v57  ;;  %v5820_v61 = vmul.f32 0.7978846, %v5756_v0 }
0x10c6   : > { %v7343_v59 = vpop.eup %7342  ;;  %v5944_v45 = vadd.f32 1.0, %v7341_v58  ;;  %7344 = vtanh.f32 %v5818_v28  ;;  %v5630_v11 = vmul.f32 %v5566_v25, %v11152_v16  ;;  %v5500_v22 = vmul.f32 0.5, %v11123_v39 }
0x10c7   : > { %v5945_v9 = vadd.f32 1.0, %v7343_v59  ;;  %7346 = vtanh.f32 %v5819_v31  ;;  %v5821_v43 = vmul.f32 0.7978846, %v5757_v49  ;;  %v5631_v8 = vmul.f32 %v5567_v3, %v11155_v62 }
0x10c8   : > { %v6008_v26 = vmul.f32 %v5944_v45, %v5496_v38  ;;  %7348 = vtanh.f32 %v5820_v61  ;;  %v5694_v30 = vmul.f32 %v5630_v11, %v11152_v16  ;;  %v5501_v12 = vmul.f32 0.5, %v11126_v5 }
0x10c9   : > { %v6009_v6 = vmul.f32 %v5945_v9, %v5497_v24  ;;  %7350 = vtanh.f32 %v5821_v43  ;;  %v6231_v23 = vpop.f32.mrf.mxu2  ;;  %v5695_v15 = vmul.f32 %v5631_v8, %v11155_v62  ;;  %v6305_v42 = vpop.f32.mrf.mxu3  ;;  %v5707_v28 = vadd.f32 %v5643_v27, %v11130_v41 }
0x10ca   : > { %6142 = vmatmul.f32.gmra.mxu0 %v6008_v26  ;;  %v11169_v34 = vadd.f32 %v6231_v23, %v6167_v40  ;;  %v6104_v53 = vpop.f32.mrf.mxu0  ;;  %v6169_v51 = vpop.f32.mrf.mxu1  ;;  %v5758_v33 = vadd.f32 %v5694_v30, %v11152_v16  ;;  %7352 = vtanh.f32 %v5763_v36  ;;  %v5502_v25 = vmul.f32 0.5, %v11152_v16 }
0x10cb   : > { %6207 = vmatmul.f32.gmra.mxu1 %v6009_v6  ;;  %v6105_v1 = vadd.f32 %v11140_v50, %v6104_v53  ;;  %v5759_v13 = vadd.f32 %v5695_v15, %v11155_v62  ;;  %v5503_v24 = vmul.f32 0.5, %v11155_v62  ;;  %v5443_v59 = vmul.f32 0.5, %v11100_v7 }
0x10cc   : > { %v7345_v54 = vpop.eup %7344  ;;  %v5822_v29 = vmul.f32 0.7978846, %v5758_v33  ;;  %v5771_v45 = vmul.f32 0.7978846, %v5707_v28  ;;  %v5447_v6 = vmul.f32 0.5, %v11109_v47  ;;  %v5451_v47 = vmul.f32 0.5, %v11130_v41 }
0x10cd   : > { %v7347_v52 = vpop.eup %7346  ;;  %v5946_v46 = vadd.f32 1.0, %v7345_v54  ;;  %v6170_v19 = vadd.f32 %v6169_v51, %v6105_v1  ;;  %v5823_v18 = vmul.f32 0.7978846, %v5759_v13 }
0x10ce   : > { %v7349_v17 = vpop.eup %7348  ;;  %v5947_v48 = vadd.f32 1.0, %v7347_v52  ;;  %7354 = vtanh.f32 %v5822_v29  ;;  %v11421_v52 = vld [vmem:[#allocation14_spill] sm:$0xff] }
0x10cf   : > { %v7351_v44 = vpop.eup %7350  ;;  %v6010_v36 = vmul.f32 %v5946_v46, %v5498_v4  ;;  %v5948_v35 = vadd.f32 1.0, %v7349_v17  ;;  %7356 = vtanh.f32 %v5823_v18 }
0x10d0   : > { %v6011_v32 = vmul.f32 %v5947_v48, %v5499_v10  ;;  %v5949_v21 = vadd.f32 1.0, %v7351_v44  ;;  %v7353_v37 = vpop.eup %7352  ;;  %7358 = vtanh.f32 %v5767_v55 }
0x10d1   : > { %6272 = vmatmul.f32.gmra.mxu2 %v6010_v36  ;;  %v6012_v63 = vmul.f32 %v5948_v35, %v5500_v22  ;;  %v6234_v14 = vpop.f32.mrf.mxu2  ;;  %v5891_v31 = vadd.f32 1.0, %v7353_v37  ;;  %v6308_v11 = vpop.f32.mrf.mxu3  ;;  %7360 = vtanh.f32 %v5771_v45  ;;  %v11422_v36 = vld [vmem:[#allocation9_spill] sm:$0xff]  ;;  %v11423_v37 = vld [vmem:[#allocation16_spill] sm:$0xff] }
0x10d2   : > { %6337 = vmatmul.f32.gmra.mxu3 %v6011_v32  ;;  %v6013_v20 = vmul.f32 %v5949_v21, %v5501_v12  ;;  %v11179_v38 = vadd.f32 %v6234_v14, %v6170_v19  ;;  %v6107_v60 = vpop.f32.mrf.mxu0  ;;  %v6172_v57 = vpop.f32.mrf.mxu1 }
0x10d3   : > { %6145 = vmatmul.f32.gmra.mxu0 %v6012_v63  ;;  %v6108_v39 = vadd.f32 %v11140_v50, %v6107_v60  ;;  %v5955_v9 = vmul.f32 %v5891_v31, %v5443_v59 }
0x10d4   : > { %6210 = vmatmul.f32.gmra.mxu1 %v6013_v20  ;;  %v7355_v5 = vpop.eup %7354 }
0x10d5   : > { %v7357_v0 = vpop.eup %7356  ;;  %v6173_v58 = vadd.f32 %v6172_v57, %v6108_v39  ;;  %v5950_v3 = vadd.f32 1.0, %v7355_v5 }
0x10d6   : > { %v5951_v49 = vadd.f32 1.0, %v7357_v0  ;;  %v7359_v43 = vpop.eup %7358 }
0x10d7   : > { %v6014_v40 = vmul.f32 %v5950_v3, %v5502_v25  ;;  %v5895_v7 = vadd.f32 1.0, %v7359_v43  ;;  %v7361_v23 = vpop.eup %7360  ;;  %v11425_v43 = vld [vmem:[#allocation18_spill] sm:$0xff] }
0x10d8   : > { %v6015_v61 = vmul.f32 %v5951_v49, %v5503_v24  ;;  %v5899_v27 = vadd.f32 1.0, %v7361_v23  ;;  %v11426_v23 = vld [vmem:[#allocation11_spill] sm:$0xff] }
0x10d9   : > { %v6237_v26 = vpop.f32.mrf.mxu2  ;;  %6275 = vmatmul.f32.gmra.mxu2 %v6014_v40  ;;  %v5959_v56 = vmul.f32 %v5895_v7, %v5447_v6  ;;  %v6311_v54 = vpop.f32.mrf.mxu3 }
0x10da   : > { %v11186_v8 = vadd.f32 %v6237_v26, %v6173_v58  ;;  %6340 = vmatmul.f32.gmra.mxu3 %v6015_v61  ;;  %v6110_v16 = vpop.f32.mrf.mxu0  ;;  %v6175_v2 = vpop.f32.mrf.mxu1  ;;  %v5963_v29 = vmul.f32 %v5899_v27, %v5451_v47  ;;  %v11424_v58 = vld [vmem:[#allocation10_spill] sm:$0xff] }
0x10db   : > { %6295 = vmatmul.f32.vlgmr.msra.gmra.mxu0 %v5955_v9  ;;  %v6111_v62 = vadd.f32 %v11140_v50, %v6110_v16 }
0x10dd   : > { %v6176_v30 = vadd.f32 %v6175_v2, %v6111_v62 }
0x10e1   : > { %v6240_v15 = vpop.f32.mrf.mxu2  ;;  %v6314_v44 = vpop.f32.mrf.mxu3 }
0x10e2   : > { %v6241_v53 = vadd.f32 %v6240_v15, %v6176_v30  ;;  %v6113_v51 = vpop.f32.mrf.mxu0  ;;  %v6178_v33 = vpop.f32.mrf.mxu1 }
0x10e3   : > { %6298 = vmatmul.f32.gmra.mxu0 %v5959_v56  ;;  %v6114_v13 = vadd.f32 %v11140_v50, %v6113_v51 }
0x10e4   : > { %v6306_v1 = vadd.f32 %v6305_v42, %v6241_v53 }
0x10e5   : > { %v6179_v46 = vadd.f32 %v6178_v33, %v6114_v13 }
0x10e6   : > { %v6347_v4 = vadd.f32 %v6306_v1, %v11421_v52 }
0x10e8   : > { %6363 = vst [vmem:[%s11196_s28 + $0x18] sm:$0xff] %v6347_v4  ;;  %v11427_v4 = vld [vmem:[#allocation20_spill] sm:$0xff] }
0x10e9   : > { %v6243_v55 = vpop.f32.mrf.mxu2  ;;  %v6317_v20 = vpop.f32.mrf.mxu3 }
0x10ea   : > { %v6244_v17 = vadd.f32 %v6243_v55, %v6179_v46  ;;  %v6116_v19 = vpop.f32.mrf.mxu0  ;;  %v6181_v10 = vpop.f32.mrf.mxu1 }
0x10eb   : > { %6301 = vmatmul.f32.gmra.mxu0 %v5963_v29  ;;  %v6117_v18 = vadd.f32 %v11140_v50, %v6116_v19 }
0x10ec   : > { %v6309_v48 = vadd.f32 %v6308_v11, %v6244_v17 }
0x10ed   : > { %v6182_v41 = vadd.f32 %v6181_v10, %v6117_v18  ;;  %v11428_v18 = vld [vmem:[#allocation8_spill] sm:$0xff] }
0x10ee   : > { %v6348_v22 = vadd.f32 %v6309_v48, %v11422_v36 }
0x10f0   : > { %6364 = vst [vmem:[%s11196_s28 + $0x20] sm:$0xff] %v6348_v22 }
0x10f1   : > { %v6246_v35 = vpop.f32.mrf.mxu2  ;;  %v6320_v24 = vpop.f32.mrf.mxu3 }
0x10f2   : > { %v6247_v42 = vadd.f32 %v6246_v35, %v6182_v41  ;;  %v6119_v32 = vpop.f32.mrf.mxu0  ;;  %v6184_v12 = vpop.f32.mrf.mxu1 }
0x10f3   : > { %v6120_v63 = vadd.f32 %v11140_v50, %v6119_v32 }
0x10f4   : > { %v6312_v21 = vadd.f32 %v6311_v54, %v6247_v42 }
0x10f5   : > { %v6185_v60 = vadd.f32 %v6184_v12, %v6120_v63  ;;  %v11429_v63 = vld [vmem:[#allocation12_spill] sm:$0xff] }
0x10f6   : > { %v6349_v14 = vadd.f32 %v6312_v21, %v11423_v37 }
0x10f8   : > { %6365 = vst [vmem:[%s11196_s28 + $0x28] sm:$0xff] %v6349_v14 }
0x10f9   : > { %v6249_v57 = vpop.f32.mrf.mxu2  ;;  %v6323_v6 = vpop.f32.mrf.mxu3 }
0x10fa   : > { %v6250_v39 = vadd.f32 %v6249_v57, %v6185_v60  ;;  %v6122_v28 = vpop.f32.mrf.mxu0  ;;  %v6187_v5 = vpop.f32.mrf.mxu1 }
0x10fb   : > { %v6123_v0 = vadd.f32 %v11140_v50, %v6122_v28 }
0x10fc   : > { %v6315_v31 = vadd.f32 %v6314_v44, %v6250_v39 }
0x10fd   : > { %v6188_v3 = vadd.f32 %v6187_v5, %v6123_v0 }
0x10fe   : > { %v6350_v25 = vadd.f32 %v6315_v31, %v11424_v58  ;;  %v11430_v31 = vld [vmem:[#allocation22_spill] sm:$0xff] }
0x1100   : > { %6366 = vst [vmem:[%s11196_s28 + $0x30] sm:$0xff] %v6350_v25 }
0x1101   : > { %v6252_v49 = vpop.f32.mrf.mxu2  ;;  %v6326_v52 = vpop.f32.mrf.mxu3 }
0x1102   : > { %v6253_v59 = vadd.f32 %v6252_v49, %v6188_v3  ;;  %v6125_v40 = vpop.f32.mrf.mxu0  ;;  %v6190_v45 = vpop.f32.mrf.mxu1 }
0x1103   : > { %v6126_v9 = vadd.f32 %v11140_v50, %v6125_v40  ;;  %v11431_v40 = vld [vmem:[#allocation13_spill] sm:$0xff] }
0x1104   : > { %v6318_v61 = vadd.f32 %v6317_v20, %v6253_v59 }
0x1105   : > { %v6191_v26 = vadd.f32 %v6190_v45, %v6126_v9 }
0x1106   : > { %v6351_v11 = vadd.f32 %v6318_v61, %v11425_v43 }
0x1108   : > { %6367 = vst [vmem:[%s11196_s28 + $0x38] sm:$0xff] %v6351_v11 }
0x1109   : > { %v6255_v16 = vpop.f32.mrf.mxu2  ;;  %v6329_v36 = vpop.f32.mrf.mxu3 }
0x110a   : > { %v6256_v2 = vadd.f32 %v6255_v16, %v6191_v26  ;;  %v6128_v62 = vpop.f32.mrf.mxu0  ;;  %v6193_v7 = vpop.f32.mrf.mxu1 }
0x110b   : > { %v6129_v56 = vadd.f32 %v11140_v50, %v6128_v62 }
0x110c   : > { %v6321_v30 = vadd.f32 %v6320_v24, %v6256_v2 }
0x110d   : > { %v6194_v53 = vadd.f32 %v6193_v7, %v6129_v56  ;;  %v11432_v56 = vld [vmem:[#allocation24_spill] sm:$0xff] }
0x110e   : > { %v6352_v15 = vadd.f32 %v6321_v30, %v11426_v23 }
0x1110   : > { %6368 = vst [vmem:[%s11196_s28 + $0x40] sm:$0xff] %v6352_v15 }
0x1111   : > { %v6258_v51 = vpop.f32.mrf.mxu2  ;;  %v6332_v20 = vpop.f32.mrf.mxu3 }
0x1112   : > { %v6259_v33 = vadd.f32 %v6258_v51, %v6194_v53  ;;  %v6131_v54 = vpop.f32.mrf.mxu0  ;;  %v6196_v1 = vpop.f32.mrf.mxu1  ;;  %v11433_v51 = vld [vmem:[#allocation32_spill] sm:$0xff] }
0x1113   : > { %v6132_v27 = vadd.f32 %v11140_v50, %v6131_v54 }
0x1114   : > { %v6324_v13 = vadd.f32 %v6323_v6, %v6259_v33 }
0x1115   : > { %v6197_v46 = vadd.f32 %v6196_v1, %v6132_v27 }
0x1116   : > { %v6353_v47 = vadd.f32 %v6324_v13, %v11427_v4 }
0x1118   : > { %6369 = vst [vmem:[%s11196_s28 + $0x48] sm:$0xff] %v6353_v47  ;;  %v11434_v47 = vld [vmem:[#allocation15_spill] sm:$0xff] }
0x1119   : > { %v6261_v29 = vpop.f32.mrf.mxu2  ;;  %v6335_v49 = vpop.f32.mrf.mxu3 }
0x111a   : > { %v6262_v55 = vadd.f32 %v6261_v29, %v6197_v46  ;;  %v6134_v17 = vpop.f32.mrf.mxu0  ;;  %v6199_v19 = vpop.f32.mrf.mxu1 }
0x111b   : > { %v6135_v48 = vadd.f32 %v11140_v50, %v6134_v17 }
0x111c   : > { %v6327_v10 = vadd.f32 %v6326_v52, %v6262_v55 }
0x111d   : > { %v6200_v22 = vadd.f32 %v6199_v19, %v6135_v48  ;;  %v11436_v19 = vld [vmem:[#allocation34_spill] sm:$0xff] }
0x111e   : > { %v6354_v44 = vadd.f32 %v6327_v10, %v11428_v18 }
0x1120   : > { %6370 = vst [vmem:[%s11196_s28 + $0x50] sm:$0xff] %v6354_v44 }
0x1121   : > { %v6264_v41 = vpop.f32.mrf.mxu2 }
0x1122   : > { %v6265_v35 = vadd.f32 %v6264_v41, %v6200_v22  ;;  %v6137_v42 = vpop.f32.mrf.mxu0  ;;  %v6202_v21 = vpop.f32.mrf.mxu1 }
0x1123   : > { %v6138_v12 = vadd.f32 %v11140_v50, %v6137_v42 }
0x1124   : > { %v6330_v32 = vadd.f32 %v6329_v36, %v6265_v35 }
0x1125   : > { %v6203_v14 = vadd.f32 %v6202_v21, %v6138_v12 }
0x1126   : > { %v6355_v37 = vadd.f32 %v6330_v32, %v11429_v63 }
0x1128   : > { %6371 = vst [vmem:[%s11196_s28 + $0x58] sm:$0xff] %v6355_v37 }
0x1129   : > { %v6267_v60 = vpop.f32.mrf.mxu2 }
0x112a   : > { %v6268_v57 = vadd.f32 %v6267_v60, %v6203_v14  ;;  %v6140_v39 = vpop.f32.mrf.mxu0  ;;  %v6205_v58 = vpop.f32.mrf.mxu1 }
0x112b   : > { %v6141_v5 = vadd.f32 %v11140_v50, %v6140_v39 }
0x112c   : > { %v6333_v28 = vadd.f32 %v6332_v20, %v6268_v57 }
0x112d   : > { %v6206_v25 = vadd.f32 %v6205_v58, %v6141_v5 }
0x112e   : > { %v6356_v0 = vadd.f32 %v6333_v28, %v11430_v31 }
0x1130   : > { %6372 = vst [vmem:[%s11196_s28 + $0x60] sm:$0xff] %v6356_v0 }
0x1131   : > { %v6270_v3 = vpop.f32.mrf.mxu2 }
0x1132   : > { %v6271_v24 = vadd.f32 %v6270_v3, %v6206_v25 }
0x1134   : > { %v6336_v59 = vadd.f32 %v6335_v49, %v6271_v24 }
0x1136   : > { %v6357_v45 = vadd.f32 %v6336_v59, %v11431_v40 }
0x1138   : > { %6373 = vst [vmem:[%s11196_s28 + $0x68] sm:$0xff] %v6357_v45 }
0x1147   : > { %v6143_v61 = vpop.f32.mrf.mxu0 }
0x1148   : > { %v6144_v9 = vadd.f32 %v11140_v50, %v6143_v61  ;;  %v6208_v11 = vpop.f32.mrf.mxu1 }
0x114a   : > { %v6209_v26 = vadd.f32 %v6208_v11, %v6144_v9 }
0x1150   : > { %v6146_v43 = vpop.f32.mrf.mxu0 }
0x1151   : > { %v6147_v6 = vadd.f32 %v11140_v50, %v6146_v43  ;;  %v6211_v53 = vpop.f32.mrf.mxu1 }
0x1153   : > { %v6212_v54 = vadd.f32 %v6211_v53, %v6147_v6 }
0x1154   : > { %v6273_v16 = vpop.f32.mrf.mxu2 }
0x1155   : > { %v6274_v2 = vadd.f32 %v6273_v16, %v6209_v26  ;;  %v6338_v62 = vpop.f32.mrf.mxu3 }
0x1157   : > { %v6339_v7 = vadd.f32 %v6338_v62, %v6274_v2 }
0x1158   : > { %v6296_v30 = vpop.f32.mrf.mxu0 }
0x1159   : > { %v6358_v23 = vadd.f32 %v6339_v7, %v11432_v56  ;;  %v6297_v15 = vadd.f32 %v6296_v30, %v11169_v34  ;;  %v11435_v34 = vld [vmem:[#allocation33_spill] sm:$0xff] }
0x115b   : > { %6374 = vst [vmem:[%s11196_s28 + $0x70] sm:$0xff] %v6358_v23  ;;  %v6344_v33 = vadd.f32 %v6297_v15, %v11433_v51 }
0x115c   : > { %v6276_v1 = vpop.f32.mrf.mxu2 }
0x115d   : > { %6360 = vst [vmem:[%s11196_s28] sm:$0xff] %v6344_v33  ;;  %v6277_v13 = vadd.f32 %v6276_v1, %v6212_v54  ;;  %v6341_v27 = vpop.f32.mrf.mxu3 }
0x115f   : > { %v6342_v52 = vadd.f32 %v6341_v27, %v6277_v13 }
0x1160   : > { %v6299_v50 = vpop.f32.mrf.mxu0 }
0x1161   : > { %v6300_v4 = vadd.f32 %v6299_v50, %v11179_v38  ;;  %v6359_v46 = vadd.f32 %v6342_v52, %v11434_v47 }
0x1163   : > { %v6345_v29 = vadd.f32 %v6300_v4, %v11435_v34  ;;  %6375 = vst [vmem:[%s11196_s28 + $0x78] sm:$0xff] %v6359_v46 }
0x1165   : > { %6361 = vst [vmem:[%s11196_s28 + $0x8] sm:$0xff] %v6345_v29 }
0x1168   : > { %v6302_v55 = vpop.f32.mrf.mxu0 }
0x1169   : > { %v6303_v17 = vadd.f32 %v6302_v55, %v11186_v8 }
0x116b   : > { %v6346_v38 = vadd.f32 %v6303_v17, %v11436_v19 }
0x116d   : > { %6362 = vst [vmem:[%s11196_s28 + $0x10] sm:$0xff] %v6346_v38 }
0x116e   : > { %7407 = shalt.err (!%p7404_p3)
}
0x116f   : > { %s7445_s26 = smov 128   ;;  %s7446_s28 = smov 8  }
0x1170   : > { %6864 = dma.vmem_to_hbm [thread:$0]  (%p7560_p5), %s6390_s18, 2048, %s6392_s19, %s6377_s17, %s7445_s26, %s7445_s26, %s7446_s28  }
0x1171 PF: > { %p6870_p4 = scmp.ge.s32.totalorder %s7442_s16, 2  ;;  %s6406_s27 = sand.u32 1, %s7430_s29  }
0x1172   : > { %s6407_s20 = scalar_lea.sflag [#allocation3], %s6406_s27 }
0x1173   : > { %p6867_p7 = pnand %p6870_p4, %p7564_p6 }
0x1175   : > { %p6868_p8 = pneg %p6867_p7 }
0x1177   : > { %7425 = dma.done.wait (%p6868_p8), %s6407_s20, 2048  }
0x1178   : > { %7427 = vsyncadd (%p6868_p8), %s6407_s20, 4294965248  ;;  %s11437_s16 = sld [smem:[#allocation6_spill]]  ;;  %s11440_s29 = smov %s7434_s30 }
0x1179   : > { %s11438_s22 = sld [smem:[#allocation5_spill]] }
0x117a   : > { %s11439_s15 = sld [smem:[#allocation7_spill]] }
0x117e   : > { %p24_p9 = scmp.ge.s32.totalorder %s11437_s16, 4  }
0x117f   : > { %s11441_s30 = smov %s11438_s22 }
0x1180   :  { %26 = sbr.rel (!%p24_p9) target bundleno = 5 (0x5), region = 123 }
0x1185   :  { %6413 = vsyncpa [#allocation3], 1 }
0x1186   :  { %6415 = vsyncpa [#allocation3 + $0x1], 1 }

</bundles_post_ra>
